<compile_context>
chip_gen: v7x
topology: tpu7x:2x2x1
jax: 0.10.0
libtpu: 0.0.40
codegen_flags: <defaults>
</compile_context>

<pallas_src>
import jax
import jax.numpy as jnp
from jax import lax
from jax.experimental import pallas as pl
from jax.experimental.pallas import tpu as pltpu

_EPS = 1e-5  # PyTorch BatchNorm2d default eps


# ----------------------------- Pallas kernel --------------------------------

def _store_haloed(pad_ref, interior, H, W):
    """Write `interior` (B,H,W,C) into pad_ref (B,H+2,W+2,C) with a zero halo.

    Only the 1-pixel border is zeroed (the interior is fully overwritten every
    grid step), instead of a full-buffer zero fill per step.
    """
    B = pad_ref.shape[0]
    C = pad_ref.shape[-1]
    zr = jnp.zeros((B, 1, W + 2, C), pad_ref.dtype)
    zc = jnp.zeros((B, H + 2, 1, C), pad_ref.dtype)
    pad_ref[:, 0:1, :, :] = zr
    pad_ref[:, H + 1:H + 2, :, :] = zr
    pad_ref[:, :, 0:1, :] = zc
    pad_ref[:, :, W + 1:W + 2, :] = zc
    pad_ref[:, 1:H + 1, 1:W + 1, :] = interior.astype(pad_ref.dtype)


def _conv3x3(pad_ref, w, H, W):
    """3x3 'same' conv as a 9-tap shifted-matmul accumulation (f32 acc).

    pad_ref: (B, H+2, W+2, Cin) halo-padded activation (compute dtype).
    w:       (9, Cin, Cout)     tap weight matrices (compute dtype).
    returns: (B*H*W, Cout)      float32 accumulator.
    """
    # NOTE: a single wide-K im2col matmul is only worthwhile when C % 128 == 0;
    # for general channel counts the 9 shifted matmuls have the same vmatmul
    # count without any lane-offset patch stores.
    B = pad_ref.shape[0]
    Cin = pad_ref.shape[-1]
    Cout = w.shape[-1]
    xp = pad_ref[...]
    acc = jnp.zeros((B * H * W, Cout), jnp.float32)
    for t in range(9):                                   # 9 static taps
        ky, kx = divmod(t, 3)
        lhs = xp[:, ky:ky + H, kx:kx + W, :].reshape(B * H * W, Cin)
        acc = acc + jnp.dot(lhs, w[t], preferred_element_type=jnp.float32)
    return acc


def _residual_body(x_ref, w1_ref, s1_ref, c1_ref, w2_ref, s2_ref, c2_ref,
                   wp_ref, o_ref, xpad, ypad):
    """out = relu(bn2(conv2(relu(bn1(conv1(x)))))) + proj(x)  (fused).

    Eval-mode BN is applied as an f32 per-channel scale (s*) + bias (c*) in
    each conv epilogue; y1 never leaves VMEM.
    """
    B, H, W, Cin = x_ref.shape
    Cmid = w1_ref.shape[-1]
    Cout = w2_ref.shape[-1]

    x = x_ref[...]                                       # (B, H, W, Cin)

    # ---- conv1 + BN1 + ReLU -------------------------------------------------
    _store_haloed(xpad, x, H, W)
    y1 = _conv3x3(xpad, w1_ref[...], H, W)               # (B*H*W, Cmid) f32
    y1 = jnp.maximum(y1 * s1_ref[...] + c1_ref[...], 0.0)

    # ---- conv2 + BN2 + ReLU on the VMEM-resident y1 -------------------------
    _store_haloed(ypad, y1.reshape(B, H, W, Cmid), H, W)  # single f32->cdt cast
    y2 = _conv3x3(ypad, w2_ref[...], H, W)                # (B*H*W, Cout) f32
    y2 = jnp.maximum(y2 * s2_ref[...] + c2_ref[...], 0.0)

    # ---- skip path: 1x1 projection matmul, or plain add for identity --------
    if wp_ref is not None:
        skip = jnp.dot(x.reshape(B * H * W, Cin), wp_ref[...],
                       preferred_element_type=jnp.float32)
    else:
        # Identity skip adds the compute-dtype copy of x; use
        # compute_dtype=f32 if stacking many blocks makes this matter.
        skip = x.reshape(B * H * W, Cout).astype(jnp.float32)

    # TODO(synk): for Cout < 128 this store is lane-masked; zero-padding Cout
    # to 128 in the folded weights would make it lane-dense at the cost of
    # extra HBM writeback (measure the tradeoff at real channel counts).
    o_ref[...] = (y2 + skip).reshape(B, H, W, Cout).astype(o_ref.dtype)


def _make_kernel(has_proj):
    if has_proj:
        def kernel(x_ref, w1_ref, s1_ref, c1_ref, w2_ref, s2_ref, c2_ref,
                   wp_ref, o_ref, xpad, ypad):
            _residual_body(x_ref, w1_ref, s1_ref, c1_ref, w2_ref, s2_ref,
                           c2_ref, wp_ref, o_ref, xpad, ypad)
    else:
        def kernel(x_ref, w1_ref, s1_ref, c1_ref, w2_ref, s2_ref, c2_ref,
                   o_ref, xpad, ypad):
            _residual_body(x_ref, w1_ref, s1_ref, c1_ref, w2_ref, s2_ref,
                           c2_ref, None, o_ref, xpad, ypad)
    return kernel


# ------------------------------ JAX wrapper ----------------------------------

def _fold_bn(gamma, beta, mean, var):
    scale = (gamma / jnp.sqrt(var + _EPS)).astype(jnp.float32)
    bias = (beta - mean * scale).astype(jnp.float32)
    return scale, bias


def _vmem_limit_bytes():
    # Generation-aware scoped-VMEM limit (v5e/v6e: 128 MiB physical; v7x: 64).
    try:
        cap = pltpu.get_tpu_info().vmem_capacity_bytes
    except Exception:
        cap = 64 * 1024 * 1024
    return int(min(cap * 0.85, 100 * 1024 * 1024))


def residual_block_forward(x_nchw, params, *, compute_dtype=jnp.bfloat16,
                           block_batch=8, out_dtype=None):
    """Pallas implementation of ResidualBlock.forward (eval-mode BatchNorm)."""
    if out_dtype is None:
        out_dtype = compute_dtype
    N, Cin, H, W = x_nchw.shape
    Cmid = params["w1"].shape[-1]
    Cout = params["w2"].shape[-1]

    # Single fused NCHW->NHWC transpose + dtype cast (no extra f32 copy).
    x = jnp.transpose(x_nchw, (0, 2, 3, 1)).astype(compute_dtype)

    # Batch blocking: several images per grid step (amortizes per-step
    # overhead, larger DMAs, MXU sees M = b_blk*H*W).
    b_blk = max(1, min(block_batch, N))
    n_blocks = -(-N // b_blk)
    n_pad = n_blocks * b_blk
    if n_pad != N:
        x = jnp.pad(x, ((0, n_pad - N), (0, 0), (0, 0), (0, 0)))

    # Eval-mode BN -> per-channel f32 scale + bias (applied in-kernel epilogue).
    s1, c1 = _fold_bn(params["g1"], params["b1"], params["m1"], params["v1"])
    s2, c2 = _fold_bn(params["g2"], params["b2"], params["m2"], params["v2"])
    w1 = params["w1"].reshape(9, Cin, Cmid).astype(compute_dtype)
    w2 = params["w2"].reshape(9, Cmid, Cout).astype(compute_dtype)

    has_proj = "wp" in params
    inputs = [x, w1, s1.reshape(1, Cmid), c1.reshape(1, Cmid),
              w2, s2.reshape(1, Cout), c2.reshape(1, Cout)]
    in_specs = [
        pl.BlockSpec((b_blk, H, W, Cin), lambda n: (n, 0, 0, 0)),
        pl.BlockSpec((9, Cin, Cmid), lambda n: (0, 0, 0)),
        pl.BlockSpec((1, Cmid), lambda n: (0, 0)),
        pl.BlockSpec((1, Cmid), lambda n: (0, 0)),
        pl.BlockSpec((9, Cmid, Cout), lambda n: (0, 0, 0)),
        pl.BlockSpec((1, Cout), lambda n: (0, 0)),
        pl.BlockSpec((1, Cout), lambda n: (0, 0)),
    ]
    if has_proj:
        inputs.append(params["wp"].reshape(Cin, Cout).astype(compute_dtype))
        in_specs.append(pl.BlockSpec((Cin, Cout), lambda n: (0, 0)))

    # TODO(synk): at ResNet scale (large H*W*C) add a spatial H-strip grid axis
    # (parallel, with a 1-row halo) so per-block VMEM stays under v7x's 64 MiB
    # and N=1 workloads still use both v7x TensorCores.
    out = pl.pallas_call(
        _make_kernel(has_proj),
        grid=(n_blocks,),                       # one batch-block per grid step
        out_shape=jax.ShapeDtypeStruct((n_pad, H, W, Cout), out_dtype),
        in_specs=in_specs,
        out_specs=pl.BlockSpec((b_blk, H, W, Cout), lambda n: (n, 0, 0, 0)),
        scratch_shapes=[
            pltpu.VMEM((b_blk, H + 2, W + 2, Cin), compute_dtype),   # halo x
            pltpu.VMEM((b_blk, H + 2, W + 2, Cmid), compute_dtype),  # halo y1
        ],
        compiler_params=pltpu.CompilerParams(
            dimension_semantics=("parallel",),  # megacore-shard over batch blocks
            vmem_limit_bytes=_vmem_limit_bytes(),
        ),
    )(*inputs)

    return jnp.transpose(out[:N], (0, 3, 1, 2))          # NHWC -> NCHW (bf16)


# --------------------------- pure-JAX reference -------------------------------

def _reference_forward(x_nchw, params):
    x = jnp.transpose(x_nchw, (0, 2, 3, 1)).astype(jnp.float32)

    def conv3(v, w):
        return lax.conv_general_dilated(
            v, w, (1, 1), ((1, 1), (1, 1)),
            dimension_numbers=("NHWC", "HWIO", "NHWC"))

    def bn(v, g, b, m, var):
        return (v - m) / jnp.sqrt(var + _EPS) * g + b

    y = jnp.maximum(bn(conv3(x, params["w1"]), params["g1"], params["b1"],
                       params["m1"], params["v1"]), 0.0)
    y = jnp.maximum(bn(conv3(y, params["w2"]), params["g2"], params["b2"],
                       params["m2"], params["v2"]), 0.0)
    if "wp" in params:
        skip = lax.conv_general_dilated(
            x, params["wp"], (1, 1), "VALID",
            dimension_numbers=("NHWC", "HWIO", "NHWC"))
    else:
        skip = x
    return jnp.transpose(y + skip, (0, 3, 1, 2))


# --------------------------------- main ---------------------------------------

def _init_params(key, in_c, out_c):
    ks = jax.random.split(key, 10)
    p = {
        "w1": 0.1 * jax.random.normal(ks[0], (3, 3, in_c, out_c), jnp.float32),
        "g1": 0.5 + jax.random.uniform(ks[1], (out_c,), jnp.float32),
        "b1": 0.1 * jax.random.normal(ks[2], (out_c,), jnp.float32),
        "m1": 0.1 * jax.random.normal(ks[3], (out_c,), jnp.float32),
        "v1": 0.5 + jax.random.uniform(ks[4], (out_c,), jnp.float32),
        "w2": 0.1 * jax.random.normal(ks[5], (3, 3, out_c, out_c), jnp.float32),
        "g2": 0.5 + jax.random.uniform(ks[6], (out_c,), jnp.float32),
        "b2": 0.1 * jax.random.normal(ks[7], (out_c,), jnp.float32),
        "m2": 0.1 * jax.random.normal(ks[8], (out_c,), jnp.float32),
        "v2": 0.5 + jax.random.uniform(ks[9], (out_c,), jnp.float32),
    }
    if in_c != out_c:
        p["wp"] = 0.1 * jax.random.normal(
            jax.random.fold_in(key, 123), (1, 1, in_c, out_c), jnp.float32)
    return p


if __name__ == "__main__":
    key = jax.random.PRNGKey(0)

    # --- Config A: 1x1 projection skip (in_c != out_c) ---
    in_c, out_c = 4, 8
    x = jax.random.normal(jax.random.fold_in(key, 1), (2, in_c, 16, 16), jnp.float32)
    params = _init_params(jax.random.fold_in(key, 2), in_c, out_c)
    ref = jax.block_until_ready(_reference_forward(x, params))

    out_f32 = jax.block_until_ready(
        residual_block_forward(x, params, compute_dtype=jnp.float32))
    assert out_f32.shape == (2, out_c, 16, 16), out_f32.shape
    assert jnp.allclose(out_f32, ref, atol=1e-3, rtol=1e-3), \
        float(jnp.max(jnp.abs(out_f32 - ref)))

    out_bf16 = jax.block_until_ready(residual_block_forward(x, params))  # bf16 MXU path
    err = jnp.abs(out_bf16.astype(jnp.float32) - ref)
    assert jnp.allclose(out_bf16.astype(jnp.float32), ref, atol=5e-2, rtol=5e-2), \
        float(jnp.max(err))

    # --- Config B: identity skip (in_c == out_c), no projection matmul ---
    in_c2 = out_c2 = 8
    x2 = jax.random.normal(jax.random.fold_in(key, 3), (2, in_c2, 16, 16), jnp.float32)
    params2 = _init_params(jax.random.fold_in(key, 4), in_c2, out_c2)
    ref2 = jax.block_until_ready(_reference_forward(x2, params2))
    out2 = jax.block_until_ready(
        residual_block_forward(x2, params2, compute_dtype=jnp.float32))
    assert jnp.allclose(out2, ref2, atol=1e-3, rtol=1e-3), \
        float(jnp.max(jnp.abs(out2 - ref2)))

    print("KERNEL_OK")
</pallas_src>

<mosaic_0001>
module attributes {stable_mosaic.version = 11 : i64} {
  func.func @kernel(%arg0: i32, %arg1: memref<2x16x16x4xf32, #tpu.memory_space<vmem>>, %arg2: memref<9x4x8xf32, #tpu.memory_space<vmem>>, %arg3: memref<1x8xf32, #tpu.memory_space<vmem>>, %arg4: memref<1x8xf32, #tpu.memory_space<vmem>>, %arg5: memref<9x8x8xf32, #tpu.memory_space<vmem>>, %arg6: memref<1x8xf32, #tpu.memory_space<vmem>>, %arg7: memref<1x8xf32, #tpu.memory_space<vmem>>, %arg8: memref<4x8xf32, #tpu.memory_space<vmem>>, %arg9: memref<2x16x16x8xf32, #tpu.memory_space<vmem>>, %arg10: memref<2x18x18x4xf32, #tpu.memory_space<vmem>>, %arg11: memref<2x18x18x8xf32, #tpu.memory_space<vmem>>) attributes {dimension_semantics = [#tpu.dimension_semantics<parallel>], iteration_bounds = array<i64: 1>, scalar_prefetch = 0 : i64, scratch_operands = 2 : i64, tpu.core_type = #tpu.core_type<tc>, window_params = [{transform_indices = @transform_0, window_bounds = array<i64: 2, 16, 16, 4>}, {pipeline_mode = #tpu.pipeline_mode<synchronous>, transform_indices = @transform_1, window_bounds = array<i64: 9, 4, 8>}, {pipeline_mode = #tpu.pipeline_mode<synchronous>, transform_indices = @transform_2, window_bounds = array<i64: 1, 8>}, {pipeline_mode = #tpu.pipeline_mode<synchronous>, transform_indices = @transform_3, window_bounds = array<i64: 1, 8>}, {pipeline_mode = #tpu.pipeline_mode<synchronous>, transform_indices = @transform_4, window_bounds = array<i64: 9, 8, 8>}, {pipeline_mode = #tpu.pipeline_mode<synchronous>, transform_indices = @transform_5, window_bounds = array<i64: 1, 8>}, {pipeline_mode = #tpu.pipeline_mode<synchronous>, transform_indices = @transform_6, window_bounds = array<i64: 1, 8>}, {pipeline_mode = #tpu.pipeline_mode<synchronous>, transform_indices = @transform_7, window_bounds = array<i64: 4, 8>}, {transform_indices = @transform_8, window_bounds = array<i64: 2, 16, 16, 8>}]} {
    %c0 = arith.constant 0 : index
    %c0_0 = arith.constant 0 : index
    %c0_1 = arith.constant 0 : index
    %c0_2 = arith.constant 0 : index
    %0 = vector.load %arg1[%c0, %c0_0, %c0_1, %c0_2] : memref<2x16x16x4xf32, #tpu.memory_space<vmem>>, vector<2x16x16x4xf32>
    %cst = arith.constant 0.000000e+00 : f32
    %1 = vector.broadcast %cst : f32 to vector<2x1x18x4xf32>
    %cst_3 = arith.constant 0.000000e+00 : f32
    %2 = vector.broadcast %cst_3 : f32 to vector<2x18x1x4xf32>
    %c0_4 = arith.constant 0 : index
    %c0_5 = arith.constant 0 : index
    %c0_6 = arith.constant 0 : index
    %c0_7 = arith.constant 0 : index
    %3 = vector.load %arg10[%c0_4, %c0_5, %c0_6, %c0_7] : memref<2x18x18x4xf32, #tpu.memory_space<vmem>>, vector<2x1x18x4xf32>
    tpu.vector_store %arg10[%c0_4, %c0_5, %c0_6, %c0_7], %1 {strides = array<i32>} : memref<2x18x18x4xf32, #tpu.memory_space<vmem>>, vector<2x1x18x4xf32>,
    %c0_8 = arith.constant 0 : index
    %c17 = arith.constant 17 : index
    %c0_9 = arith.constant 0 : index
    %c0_10 = arith.constant 0 : index
    %4 = vector.load %arg10[%c0_8, %c17, %c0_9, %c0_10] : memref<2x18x18x4xf32, #tpu.memory_space<vmem>>, vector<2x1x18x4xf32>
    tpu.vector_store %arg10[%c0_8, %c17, %c0_9, %c0_10], %1 {strides = array<i32>} : memref<2x18x18x4xf32, #tpu.memory_space<vmem>>, vector<2x1x18x4xf32>,
    %c0_11 = arith.constant 0 : index
    %c0_12 = arith.constant 0 : index
    %c0_13 = arith.constant 0 : index
    %c0_14 = arith.constant 0 : index
    %5 = vector.load %arg10[%c0_11, %c0_12, %c0_13, %c0_14] : memref<2x18x18x4xf32, #tpu.memory_space<vmem>>, vector<2x18x1x4xf32>
    tpu.vector_store %arg10[%c0_11, %c0_12, %c0_13, %c0_14], %2 {strides = array<i32>} : memref<2x18x18x4xf32, #tpu.memory_space<vmem>>, vector<2x18x1x4xf32>,
    %c0_15 = arith.constant 0 : index
    %c0_16 = arith.constant 0 : index
    %c17_17 = arith.constant 17 : index
    %c0_18 = arith.constant 0 : index
    %6 = vector.load %arg10[%c0_15, %c0_16, %c17_17, %c0_18] : memref<2x18x18x4xf32, #tpu.memory_space<vmem>>, vector<2x18x1x4xf32>
    tpu.vector_store %arg10[%c0_15, %c0_16, %c17_17, %c0_18], %2 {strides = array<i32>} : memref<2x18x18x4xf32, #tpu.memory_space<vmem>>, vector<2x18x1x4xf32>,
    %c0_19 = arith.constant 0 : index
    %c1 = arith.constant 1 : index
    %c1_20 = arith.constant 1 : index
    %c0_21 = arith.constant 0 : index
    %7 = vector.load %arg10[%c0_19, %c1, %c1_20, %c0_21] : memref<2x18x18x4xf32, #tpu.memory_space<vmem>>, vector<2x16x16x4xf32>
    tpu.vector_store %arg10[%c0_19, %c1, %c1_20, %c0_21], %0 {strides = array<i32>} : memref<2x18x18x4xf32, #tpu.memory_space<vmem>>, vector<2x16x16x4xf32>,
    %c0_22 = arith.constant 0 : index
    %c0_23 = arith.constant 0 : index
    %c0_24 = arith.constant 0 : index
    %8 = vector.load %arg2[%c0_22, %c0_23, %c0_24] : memref<9x4x8xf32, #tpu.memory_space<vmem>>, vector<9x4x8xf32>
    %c0_25 = arith.constant 0 : index
    %c0_26 = arith.constant 0 : index
    %c0_27 = arith.constant 0 : index
    %c0_28 = arith.constant 0 : index
    %9 = vector.load %arg10[%c0_25, %c0_26, %c0_27, %c0_28] : memref<2x18x18x4xf32, #tpu.memory_space<vmem>>, vector<2x18x18x4xf32>
    %cst_29 = arith.constant 0.000000e+00 : f32
    %10 = vector.broadcast %cst_29 : f32 to vector<512x8xf32>
    %11 = vector.extract_strided_slice %9 {offsets = [0, 0, 0, 0], sizes = [2, 16, 16, 4], strides = [1, 1, 1, 1]} : vector<2x18x18x4xf32> to vector<2x16x16x4xf32>
    %12 = vector.shape_cast %11 : vector<2x16x16x4xf32> to vector<512x4xf32>
    %13 = vector.extract_strided_slice %8 {offsets = [0, 0, 0], sizes = [1, 4, 8], strides = [1, 1, 1]} : vector<9x4x8xf32> to vector<1x4x8xf32>
    %14 = vector.shape_cast %13 : vector<1x4x8xf32> to vector<4x8xf32>
    %cst_30 = arith.constant dense<0.000000e+00> : vector<512x8xf32>
    %15 = tpu.matmul %12, %14, %cst_30 {dimension_numbers = #tpu.dot_dimension_numbers<[1], [0], [0], [1], [0, 0, 1, 1], [], []>} : vector<512x4xf32>, vector<4x8xf32>, vector<512x8xf32> -> vector<512x8xf32>
    %16 = arith.addf %10, %15 : vector<512x8xf32>
    %17 = vector.extract_strided_slice %9 {offsets = [0, 0, 1, 0], sizes = [2, 16, 16, 4], strides = [1, 1, 1, 1]} : vector<2x18x18x4xf32> to vector<2x16x16x4xf32>
    %18 = vector.shape_cast %17 : vector<2x16x16x4xf32> to vector<512x4xf32>
    %19 = vector.extract_strided_slice %8 {offsets = [1, 0, 0], sizes = [1, 4, 8], strides = [1, 1, 1]} : vector<9x4x8xf32> to vector<1x4x8xf32>
    %20 = vector.shape_cast %19 : vector<1x4x8xf32> to vector<4x8xf32>
    %cst_31 = arith.constant dense<0.000000e+00> : vector<512x8xf32>
    %21 = tpu.matmul %18, %20, %cst_31 {dimension_numbers = #tpu.dot_dimension_numbers<[1], [0], [0], [1], [0, 0, 1, 1], [], []>} : vector<512x4xf32>, vector<4x8xf32>, vector<512x8xf32> -> vector<512x8xf32>
    %22 = arith.addf %16, %21 : vector<512x8xf32>
    %23 = vector.extract_strided_slice %9 {offsets = [0, 0, 2, 0], sizes = [2, 16, 16, 4], strides = [1, 1, 1, 1]} : vector<2x18x18x4xf32> to vector<2x16x16x4xf32>
    %24 = vector.shape_cast %23 : vector<2x16x16x4xf32> to vector<512x4xf32>
    %25 = vector.extract_strided_slice %8 {offsets = [2, 0, 0], sizes = [1, 4, 8], strides = [1, 1, 1]} : vector<9x4x8xf32> to vector<1x4x8xf32>
    %26 = vector.shape_cast %25 : vector<1x4x8xf32> to vector<4x8xf32>
    %cst_32 = arith.constant dense<0.000000e+00> : vector<512x8xf32>
    %27 = tpu.matmul %24, %26, %cst_32 {dimension_numbers = #tpu.dot_dimension_numbers<[1], [0], [0], [1], [0, 0, 1, 1], [], []>} : vector<512x4xf32>, vector<4x8xf32>, vector<512x8xf32> -> vector<512x8xf32>
    %28 = arith.addf %22, %27 : vector<512x8xf32>
    %29 = vector.extract_strided_slice %9 {offsets = [0, 1, 0, 0], sizes = [2, 16, 16, 4], strides = [1, 1, 1, 1]} : vector<2x18x18x4xf32> to vector<2x16x16x4xf32>
    %30 = vector.shape_cast %29 : vector<2x16x16x4xf32> to vector<512x4xf32>
    %31 = vector.extract_strided_slice %8 {offsets = [3, 0, 0], sizes = [1, 4, 8], strides = [1, 1, 1]} : vector<9x4x8xf32> to vector<1x4x8xf32>
    %32 = vector.shape_cast %31 : vector<1x4x8xf32> to vector<4x8xf32>
    %cst_33 = arith.constant dense<0.000000e+00> : vector<512x8xf32>
    %33 = tpu.matmul %30, %32, %cst_33 {dimension_numbers = #tpu.dot_dimension_numbers<[1], [0], [0], [1], [0, 0, 1, 1], [], []>} : vector<512x4xf32>, vector<4x8xf32>, vector<512x8xf32> -> vector<512x8xf32>
    %34 = arith.addf %28, %33 : vector<512x8xf32>
    %35 = vector.extract_strided_slice %9 {offsets = [0, 1, 1, 0], sizes = [2, 16, 16, 4], strides = [1, 1, 1, 1]} : vector<2x18x18x4xf32> to vector<2x16x16x4xf32>
    %36 = vector.shape_cast %35 : vector<2x16x16x4xf32> to vector<512x4xf32>
    %37 = vector.extract_strided_slice %8 {offsets = [4, 0, 0], sizes = [1, 4, 8], strides = [1, 1, 1]} : vector<9x4x8xf32> to vector<1x4x8xf32>
    %38 = vector.shape_cast %37 : vector<1x4x8xf32> to vector<4x8xf32>
    %cst_34 = arith.constant dense<0.000000e+00> : vector<512x8xf32>
    %39 = tpu.matmul %36, %38, %cst_34 {dimension_numbers = #tpu.dot_dimension_numbers<[1], [0], [0], [1], [0, 0, 1, 1], [], []>} : vector<512x4xf32>, vector<4x8xf32>, vector<512x8xf32> -> vector<512x8xf32>
    %40 = arith.addf %34, %39 : vector<512x8xf32>
    %41 = vector.extract_strided_slice %9 {offsets = [0, 1, 2, 0], sizes = [2, 16, 16, 4], strides = [1, 1, 1, 1]} : vector<2x18x18x4xf32> to vector<2x16x16x4xf32>
    %42 = vector.shape_cast %41 : vector<2x16x16x4xf32> to vector<512x4xf32>
    %43 = vector.extract_strided_slice %8 {offsets = [5, 0, 0], sizes = [1, 4, 8], strides = [1, 1, 1]} : vector<9x4x8xf32> to vector<1x4x8xf32>
    %44 = vector.shape_cast %43 : vector<1x4x8xf32> to vector<4x8xf32>
    %cst_35 = arith.constant dense<0.000000e+00> : vector<512x8xf32>
    %45 = tpu.matmul %42, %44, %cst_35 {dimension_numbers = #tpu.dot_dimension_numbers<[1], [0], [0], [1], [0, 0, 1, 1], [], []>} : vector<512x4xf32>, vector<4x8xf32>, vector<512x8xf32> -> vector<512x8xf32>
    %46 = arith.addf %40, %45 : vector<512x8xf32>
    %47 = vector.extract_strided_slice %9 {offsets = [0, 2, 0, 0], sizes = [2, 16, 16, 4], strides = [1, 1, 1, 1]} : vector<2x18x18x4xf32> to vector<2x16x16x4xf32>
    %48 = vector.shape_cast %47 : vector<2x16x16x4xf32> to vector<512x4xf32>
    %49 = vector.extract_strided_slice %8 {offsets = [6, 0, 0], sizes = [1, 4, 8], strides = [1, 1, 1]} : vector<9x4x8xf32> to vector<1x4x8xf32>
    %50 = vector.shape_cast %49 : vector<1x4x8xf32> to vector<4x8xf32>
    %cst_36 = arith.constant dense<0.000000e+00> : vector<512x8xf32>
    %51 = tpu.matmul %48, %50, %cst_36 {dimension_numbers = #tpu.dot_dimension_numbers<[1], [0], [0], [1], [0, 0, 1, 1], [], []>} : vector<512x4xf32>, vector<4x8xf32>, vector<512x8xf32> -> vector<512x8xf32>
    %52 = arith.addf %46, %51 : vector<512x8xf32>
    %53 = vector.extract_strided_slice %9 {offsets = [0, 2, 1, 0], sizes = [2, 16, 16, 4], strides = [1, 1, 1, 1]} : vector<2x18x18x4xf32> to vector<2x16x16x4xf32>
    %54 = vector.shape_cast %53 : vector<2x16x16x4xf32> to vector<512x4xf32>
    %55 = vector.extract_strided_slice %8 {offsets = [7, 0, 0], sizes = [1, 4, 8], strides = [1, 1, 1]} : vector<9x4x8xf32> to vector<1x4x8xf32>
    %56 = vector.shape_cast %55 : vector<1x4x8xf32> to vector<4x8xf32>
    %cst_37 = arith.constant dense<0.000000e+00> : vector<512x8xf32>
    %57 = tpu.matmul %54, %56, %cst_37 {dimension_numbers = #tpu.dot_dimension_numbers<[1], [0], [0], [1], [0, 0, 1, 1], [], []>} : vector<512x4xf32>, vector<4x8xf32>, vector<512x8xf32> -> vector<512x8xf32>
    %58 = arith.addf %52, %57 : vector<512x8xf32>
    %59 = vector.extract_strided_slice %9 {offsets = [0, 2, 2, 0], sizes = [2, 16, 16, 4], strides = [1, 1, 1, 1]} : vector<2x18x18x4xf32> to vector<2x16x16x4xf32>
    %60 = vector.shape_cast %59 : vector<2x16x16x4xf32> to vector<512x4xf32>
    %61 = vector.extract_strided_slice %8 {offsets = [8, 0, 0], sizes = [1, 4, 8], strides = [1, 1, 1]} : vector<9x4x8xf32> to vector<1x4x8xf32>
    %62 = vector.shape_cast %61 : vector<1x4x8xf32> to vector<4x8xf32>
    %cst_38 = arith.constant dense<0.000000e+00> : vector<512x8xf32>
    %63 = tpu.matmul %60, %62, %cst_38 {dimension_numbers = #tpu.dot_dimension_numbers<[1], [0], [0], [1], [0, 0, 1, 1], [], []>} : vector<512x4xf32>, vector<4x8xf32>, vector<512x8xf32> -> vector<512x8xf32>
    %64 = arith.addf %58, %63 : vector<512x8xf32>
    %c0_39 = arith.constant 0 : index
    %c0_40 = arith.constant 0 : index
    %65 = vector.load %arg3[%c0_39, %c0_40] : memref<1x8xf32, #tpu.memory_space<vmem>>, vector<1x8xf32>
    %66 = vector.broadcast %65 : vector<1x8xf32> to vector<512x8xf32>
    %67 = arith.mulf %64, %66 : vector<512x8xf32>
    %c0_41 = arith.constant 0 : index
    %c0_42 = arith.constant 0 : index
    %68 = vector.load %arg4[%c0_41, %c0_42] : memref<1x8xf32, #tpu.memory_space<vmem>>, vector<1x8xf32>
    %69 = vector.broadcast %68 : vector<1x8xf32> to vector<512x8xf32>
    %70 = arith.addf %67, %69 : vector<512x8xf32>
    %cst_43 = arith.constant 0.000000e+00 : f32
    %71 = vector.broadcast %cst_43 : f32 to vector<512x8xf32>
    %72 = arith.maximumf %70, %71 : vector<512x8xf32>
    %73 = vector.shape_cast %72 : vector<512x8xf32> to vector<2x16x16x8xf32>
    %cst_44 = arith.constant 0.000000e+00 : f32
    %74 = vector.broadcast %cst_44 : f32 to vector<2x1x18x8xf32>
    %cst_45 = arith.constant 0.000000e+00 : f32
    %75 = vector.broadcast %cst_45 : f32 to vector<2x18x1x8xf32>
    %c0_46 = arith.constant 0 : index
    %c0_47 = arith.constant 0 : index
    %c0_48 = arith.constant 0 : index
    %c0_49 = arith.constant 0 : index
    %76 = vector.load %arg11[%c0_46, %c0_47, %c0_48, %c0_49] : memref<2x18x18x8xf32, #tpu.memory_space<vmem>>, vector<2x1x18x8xf32>
    tpu.vector_store %arg11[%c0_46, %c0_47, %c0_48, %c0_49], %74 {strides = array<i32>} : memref<2x18x18x8xf32, #tpu.memory_space<vmem>>, vector<2x1x18x8xf32>,
    %c0_50 = arith.constant 0 : index
    %c17_51 = arith.constant 17 : index
    %c0_52 = arith.constant 0 : index
    %c0_53 = arith.constant 0 : index
    %77 = vector.load %arg11[%c0_50, %c17_51, %c0_52, %c0_53] : memref<2x18x18x8xf32, #tpu.memory_space<vmem>>, vector<2x1x18x8xf32>
    tpu.vector_store %arg11[%c0_50, %c17_51, %c0_52, %c0_53], %74 {strides = array<i32>} : memref<2x18x18x8xf32, #tpu.memory_space<vmem>>, vector<2x1x18x8xf32>,
    %c0_54 = arith.constant 0 : index
    %c0_55 = arith.constant 0 : index
    %c0_56 = arith.constant 0 : index
    %c0_57 = arith.constant 0 : index
    %78 = vector.load %arg11[%c0_54, %c0_55, %c0_56, %c0_57] : memref<2x18x18x8xf32, #tpu.memory_space<vmem>>, vector<2x18x1x8xf32>
    tpu.vector_store %arg11[%c0_54, %c0_55, %c0_56, %c0_57], %75 {strides = array<i32>} : memref<2x18x18x8xf32, #tpu.memory_space<vmem>>, vector<2x18x1x8xf32>,
    %c0_58 = arith.constant 0 : index
    %c0_59 = arith.constant 0 : index
    %c17_60 = arith.constant 17 : index
    %c0_61 = arith.constant 0 : index
    %79 = vector.load %arg11[%c0_58, %c0_59, %c17_60, %c0_61] : memref<2x18x18x8xf32, #tpu.memory_space<vmem>>, vector<2x18x1x8xf32>
    tpu.vector_store %arg11[%c0_58, %c0_59, %c17_60, %c0_61], %75 {strides = array<i32>} : memref<2x18x18x8xf32, #tpu.memory_space<vmem>>, vector<2x18x1x8xf32>,
    %c0_62 = arith.constant 0 : index
    %c1_63 = arith.constant 1 : index
    %c1_64 = arith.constant 1 : index
    %c0_65 = arith.constant 0 : index
    %80 = vector.load %arg11[%c0_62, %c1_63, %c1_64, %c0_65] : memref<2x18x18x8xf32, #tpu.memory_space<vmem>>, vector<2x16x16x8xf32>
    tpu.vector_store %arg11[%c0_62, %c1_63, %c1_64, %c0_65], %73 {strides = array<i32>} : memref<2x18x18x8xf32, #tpu.memory_space<vmem>>, vector<2x16x16x8xf32>,
    %c0_66 = arith.constant 0 : index
    %c0_67 = arith.constant 0 : index
    %c0_68 = arith.constant 0 : index
    %81 = vector.load %arg5[%c0_66, %c0_67, %c0_68] : memref<9x8x8xf32, #tpu.memory_space<vmem>>, vector<9x8x8xf32>
    %c0_69 = arith.constant 0 : index
    %c0_70 = arith.constant 0 : index
    %c0_71 = arith.constant 0 : index
    %c0_72 = arith.constant 0 : index
    %82 = vector.load %arg11[%c0_69, %c0_70, %c0_71, %c0_72] : memref<2x18x18x8xf32, #tpu.memory_space<vmem>>, vector<2x18x18x8xf32>
    %cst_73 = arith.constant 0.000000e+00 : f32
    %83 = vector.broadcast %cst_73 : f32 to vector<512x8xf32>
    %84 = vector.extract_strided_slice %82 {offsets = [0, 0, 0, 0], sizes = [2, 16, 16, 8], strides = [1, 1, 1, 1]} : vector<2x18x18x8xf32> to vector<2x16x16x8xf32>
    %85 = vector.shape_cast %84 : vector<2x16x16x8xf32> to vector<512x8xf32>
    %86 = vector.extract_strided_slice %81 {offsets = [0, 0, 0], sizes = [1, 8, 8], strides = [1, 1, 1]} : vector<9x8x8xf32> to vector<1x8x8xf32>
    %87 = vector.shape_cast %86 : vector<1x8x8xf32> to vector<8x8xf32>
    %cst_74 = arith.constant dense<0.000000e+00> : vector<512x8xf32>
    %88 = tpu.matmul %85, %87, %cst_74 {dimension_numbers = #tpu.dot_dimension_numbers<[1], [0], [0], [1], [0, 0, 1, 1], [], []>} : vector<512x8xf32>, vector<8x8xf32>, vector<512x8xf32> -> vector<512x8xf32>
    %89 = arith.addf %83, %88 : vector<512x8xf32>
    %90 = vector.extract_strided_slice %82 {offsets = [0, 0, 1, 0], sizes = [2, 16, 16, 8], strides = [1, 1, 1, 1]} : vector<2x18x18x8xf32> to vector<2x16x16x8xf32>
    %91 = vector.shape_cast %90 : vector<2x16x16x8xf32> to vector<512x8xf32>
    %92 = vector.extract_strided_slice %81 {offsets = [1, 0, 0], sizes = [1, 8, 8], strides = [1, 1, 1]} : vector<9x8x8xf32> to vector<1x8x8xf32>
    %93 = vector.shape_cast %92 : vector<1x8x8xf32> to vector<8x8xf32>
    %cst_75 = arith.constant dense<0.000000e+00> : vector<512x8xf32>
    %94 = tpu.matmul %91, %93, %cst_75 {dimension_numbers = #tpu.dot_dimension_numbers<[1], [0], [0], [1], [0, 0, 1, 1], [], []>} : vector<512x8xf32>, vector<8x8xf32>, vector<512x8xf32> -> vector<512x8xf32>
    %95 = arith.addf %89, %94 : vector<512x8xf32>
    %96 = vector.extract_strided_slice %82 {offsets = [0, 0, 2, 0], sizes = [2, 16, 16, 8], strides = [1, 1, 1, 1]} : vector<2x18x18x8xf32> to vector<2x16x16x8xf32>
    %97 = vector.shape_cast %96 : vector<2x16x16x8xf32> to vector<512x8xf32>
    %98 = vector.extract_strided_slice %81 {offsets = [2, 0, 0], sizes = [1, 8, 8], strides = [1, 1, 1]} : vector<9x8x8xf32> to vector<1x8x8xf32>
    %99 = vector.shape_cast %98 : vector<1x8x8xf32> to vector<8x8xf32>
    %cst_76 = arith.constant dense<0.000000e+00> : vector<512x8xf32>
    %100 = tpu.matmul %97, %99, %cst_76 {dimension_numbers = #tpu.dot_dimension_numbers<[1], [0], [0], [1], [0, 0, 1, 1], [], []>} : vector<512x8xf32>, vector<8x8xf32>, vector<512x8xf32> -> vector<512x8xf32>
    %101 = arith.addf %95, %100 : vector<512x8xf32>
    %102 = vector.extract_strided_slice %82 {offsets = [0, 1, 0, 0], sizes = [2, 16, 16, 8], strides = [1, 1, 1, 1]} : vector<2x18x18x8xf32> to vector<2x16x16x8xf32>
    %103 = vector.shape_cast %102 : vector<2x16x16x8xf32> to vector<512x8xf32>
    %104 = vector.extract_strided_slice %81 {offsets = [3, 0, 0], sizes = [1, 8, 8], strides = [1, 1, 1]} : vector<9x8x8xf32> to vector<1x8x8xf32>
    %105 = vector.shape_cast %104 : vector<1x8x8xf32> to vector<8x8xf32>
    %cst_77 = arith.constant dense<0.000000e+00> : vector<512x8xf32>
    %106 = tpu.matmul %103, %105, %cst_77 {dimension_numbers = #tpu.dot_dimension_numbers<[1], [0], [0], [1], [0, 0, 1, 1], [], []>} : vector<512x8xf32>, vector<8x8xf32>, vector<512x8xf32> -> vector<512x8xf32>
    %107 = arith.addf %101, %106 : vector<512x8xf32>
    %108 = vector.extract_strided_slice %82 {offsets = [0, 1, 1, 0], sizes = [2, 16, 16, 8], strides = [1, 1, 1, 1]} : vector<2x18x18x8xf32> to vector<2x16x16x8xf32>
    %109 = vector.shape_cast %108 : vector<2x16x16x8xf32> to vector<512x8xf32>
    %110 = vector.extract_strided_slice %81 {offsets = [4, 0, 0], sizes = [1, 8, 8], strides = [1, 1, 1]} : vector<9x8x8xf32> to vector<1x8x8xf32>
    %111 = vector.shape_cast %110 : vector<1x8x8xf32> to vector<8x8xf32>
    %cst_78 = arith.constant dense<0.000000e+00> : vector<512x8xf32>
    %112 = tpu.matmul %109, %111, %cst_78 {dimension_numbers = #tpu.dot_dimension_numbers<[1], [0], [0], [1], [0, 0, 1, 1], [], []>} : vector<512x8xf32>, vector<8x8xf32>, vector<512x8xf32> -> vector<512x8xf32>
    %113 = arith.addf %107, %112 : vector<512x8xf32>
    %114 = vector.extract_strided_slice %82 {offsets = [0, 1, 2, 0], sizes = [2, 16, 16, 8], strides = [1, 1, 1, 1]} : vector<2x18x18x8xf32> to vector<2x16x16x8xf32>
    %115 = vector.shape_cast %114 : vector<2x16x16x8xf32> to vector<512x8xf32>
    %116 = vector.extract_strided_slice %81 {offsets = [5, 0, 0], sizes = [1, 8, 8], strides = [1, 1, 1]} : vector<9x8x8xf32> to vector<1x8x8xf32>
    %117 = vector.shape_cast %116 : vector<1x8x8xf32> to vector<8x8xf32>
    %cst_79 = arith.constant dense<0.000000e+00> : vector<512x8xf32>
    %118 = tpu.matmul %115, %117, %cst_79 {dimension_numbers = #tpu.dot_dimension_numbers<[1], [0], [0], [1], [0, 0, 1, 1], [], []>} : vector<512x8xf32>, vector<8x8xf32>, vector<512x8xf32> -> vector<512x8xf32>
    %119 = arith.addf %113, %118 : vector<512x8xf32>
    %120 = vector.extract_strided_slice %82 {offsets = [0, 2, 0, 0], sizes = [2, 16, 16, 8], strides = [1, 1, 1, 1]} : vector<2x18x18x8xf32> to vector<2x16x16x8xf32>
    %121 = vector.shape_cast %120 : vector<2x16x16x8xf32> to vector<512x8xf32>
    %122 = vector.extract_strided_slice %81 {offsets = [6, 0, 0], sizes = [1, 8, 8], strides = [1, 1, 1]} : vector<9x8x8xf32> to vector<1x8x8xf32>
    %123 = vector.shape_cast %122 : vector<1x8x8xf32> to vector<8x8xf32>
    %cst_80 = arith.constant dense<0.000000e+00> : vector<512x8xf32>
    %124 = tpu.matmul %121, %123, %cst_80 {dimension_numbers = #tpu.dot_dimension_numbers<[1], [0], [0], [1], [0, 0, 1, 1], [], []>} : vector<512x8xf32>, vector<8x8xf32>, vector<512x8xf32> -> vector<512x8xf32>
    %125 = arith.addf %119, %124 : vector<512x8xf32>
    %126 = vector.extract_strided_slice %82 {offsets = [0, 2, 1, 0], sizes = [2, 16, 16, 8], strides = [1, 1, 1, 1]} : vector<2x18x18x8xf32> to vector<2x16x16x8xf32>
    %127 = vector.shape_cast %126 : vector<2x16x16x8xf32> to vector<512x8xf32>
    %128 = vector.extract_strided_slice %81 {offsets = [7, 0, 0], sizes = [1, 8, 8], strides = [1, 1, 1]} : vector<9x8x8xf32> to vector<1x8x8xf32>
    %129 = vector.shape_cast %128 : vector<1x8x8xf32> to vector<8x8xf32>
    %cst_81 = arith.constant dense<0.000000e+00> : vector<512x8xf32>
    %130 = tpu.matmul %127, %129, %cst_81 {dimension_numbers = #tpu.dot_dimension_numbers<[1], [0], [0], [1], [0, 0, 1, 1], [], []>} : vector<512x8xf32>, vector<8x8xf32>, vector<512x8xf32> -> vector<512x8xf32>
    %131 = arith.addf %125, %130 : vector<512x8xf32>
    %132 = vector.extract_strided_slice %82 {offsets = [0, 2, 2, 0], sizes = [2, 16, 16, 8], strides = [1, 1, 1, 1]} : vector<2x18x18x8xf32> to vector<2x16x16x8xf32>
    %133 = vector.shape_cast %132 : vector<2x16x16x8xf32> to vector<512x8xf32>
    %134 = vector.extract_strided_slice %81 {offsets = [8, 0, 0], sizes = [1, 8, 8], strides = [1, 1, 1]} : vector<9x8x8xf32> to vector<1x8x8xf32>
    %135 = vector.shape_cast %134 : vector<1x8x8xf32> to vector<8x8xf32>
    %cst_82 = arith.constant dense<0.000000e+00> : vector<512x8xf32>
    %136 = tpu.matmul %133, %135, %cst_82 {dimension_numbers = #tpu.dot_dimension_numbers<[1], [0], [0], [1], [0, 0, 1, 1], [], []>} : vector<512x8xf32>, vector<8x8xf32>, vector<512x8xf32> -> vector<512x8xf32>
    %137 = arith.addf %131, %136 : vector<512x8xf32>
    %c0_83 = arith.constant 0 : index
    %c0_84 = arith.constant 0 : index
    %138 = vector.load %arg6[%c0_83, %c0_84] : memref<1x8xf32, #tpu.memory_space<vmem>>, vector<1x8xf32>
    %139 = vector.broadcast %138 : vector<1x8xf32> to vector<512x8xf32>
    %140 = arith.mulf %137, %139 : vector<512x8xf32>
    %c0_85 = arith.constant 0 : index
    %c0_86 = arith.constant 0 : index
    %141 = vector.load %arg7[%c0_85, %c0_86] : memref<1x8xf32, #tpu.memory_space<vmem>>, vector<1x8xf32>
    %142 = vector.broadcast %141 : vector<1x8xf32> to vector<512x8xf32>
    %143 = arith.addf %140, %142 : vector<512x8xf32>
    %cst_87 = arith.constant 0.000000e+00 : f32
    %144 = vector.broadcast %cst_87 : f32 to vector<512x8xf32>
    %145 = arith.maximumf %143, %144 : vector<512x8xf32>
    %146 = vector.shape_cast %0 : vector<2x16x16x4xf32> to vector<512x4xf32>
    %c0_88 = arith.constant 0 : index
    %c0_89 = arith.constant 0 : index
    %147 = vector.load %arg8[%c0_88, %c0_89] : memref<4x8xf32, #tpu.memory_space<vmem>>, vector<4x8xf32>
    %cst_90 = arith.constant dense<0.000000e+00> : vector<512x8xf32>
    %148 = tpu.matmul %146, %147, %cst_90 {dimension_numbers = #tpu.dot_dimension_numbers<[1], [0], [0], [1], [0, 0, 1, 1], [], []>} : vector<512x4xf32>, vector<4x8xf32>, vector<512x8xf32> -> vector<512x8xf32>
    %149 = arith.addf %145, %148 : vector<512x8xf32>
    %150 = vector.shape_cast %149 : vector<512x8xf32> to vector<2x16x16x8xf32>
    %c0_91 = arith.constant 0 : index
    %c0_92 = arith.constant 0 : index
    %c0_93 = arith.constant 0 : index
    %c0_94 = arith.constant 0 : index
    %151 = vector.load %arg9[%c0_91, %c0_92, %c0_93, %c0_94] : memref<2x16x16x8xf32, #tpu.memory_space<vmem>>, vector<2x16x16x8xf32>
    tpu.vector_store %arg9[%c0_91, %c0_92, %c0_93, %c0_94], %150 {strides = array<i32>} : memref<2x16x16x8xf32, #tpu.memory_space<vmem>>, vector<2x16x16x8xf32>,
    return
  }
  func.func @transform_0(%arg0: i32) -> (i32, i32, i32, i32) {
    %c0_i32 = arith.constant 0 : i32
    %c0_i32_0 = arith.constant 0 : i32
    %c0_i32_1 = arith.constant 0 : i32
    %c0_i32_2 = arith.constant 0 : i32
    return %arg0, %c0_i32, %c0_i32_0, %c0_i32_1 : i32, i32, i32, i32
  }
  func.func @transform_1(%arg0: i32) -> (i32, i32, i32) {
    %c0_i32 = arith.constant 0 : i32
    %c0_i32_0 = arith.constant 0 : i32
    %c0_i32_1 = arith.constant 0 : i32
    %c0_i32_2 = arith.constant 0 : i32
    return %c0_i32, %c0_i32_0, %c0_i32_1 : i32, i32, i32
  }
  func.func @transform_2(%arg0: i32) -> (i32, i32) {
    %c0_i32 = arith.constant 0 : i32
    %c0_i32_0 = arith.constant 0 : i32
    %c0_i32_1 = arith.constant 0 : i32
    return %c0_i32, %c0_i32_0 : i32, i32
  }
  func.func @transform_3(%arg0: i32) -> (i32, i32) {
    %c0_i32 = arith.constant 0 : i32
    %c0_i32_0 = arith.constant 0 : i32
    %c0_i32_1 = arith.constant 0 : i32
    return %c0_i32, %c0_i32_0 : i32, i32
  }
  func.func @transform_4(%arg0: i32) -> (i32, i32, i32) {
    %c0_i32 = arith.constant 0 : i32
    %c0_i32_0 = arith.constant 0 : i32
    %c0_i32_1 = arith.constant 0 : i32
    %c0_i32_2 = arith.constant 0 : i32
    return %c0_i32, %c0_i32_0, %c0_i32_1 : i32, i32, i32
  }
  func.func @transform_5(%arg0: i32) -> (i32, i32) {
    %c0_i32 = arith.constant 0 : i32
    %c0_i32_0 = arith.constant 0 : i32
    %c0_i32_1 = arith.constant 0 : i32
    return %c0_i32, %c0_i32_0 : i32, i32
  }
  func.func @transform_6(%arg0: i32) -> (i32, i32) {
    %c0_i32 = arith.constant 0 : i32
    %c0_i32_0 = arith.constant 0 : i32
    %c0_i32_1 = arith.constant 0 : i32
    return %c0_i32, %c0_i32_0 : i32, i32
  }
  func.func @transform_7(%arg0: i32) -> (i32, i32) {
    %c0_i32 = arith.constant 0 : i32
    %c0_i32_0 = arith.constant 0 : i32
    %c0_i32_1 = arith.constant 0 : i32
    return %c0_i32, %c0_i32_0 : i32, i32
  }
  func.func @transform_8(%arg0: i32) -> (i32, i32, i32, i32) {
    %c0_i32 = arith.constant 0 : i32
    %c0_i32_0 = arith.constant 0 : i32
    %c0_i32_1 = arith.constant 0 : i32
    %c0_i32_2 = arith.constant 0 : i32
    return %arg0, %c0_i32, %c0_i32_0, %c0_i32_1 : i32, i32, i32, i32
  }
}

</mosaic_0001>

<bundles_post_ra>
// kernel: tpu_custom_call.1
= control target key start
LH: loop header
LB: loop body
LE: loop exit
PB: predicated region body
PF: predicated region fallthrough
CT: control target
= control target key end

     0   :  { %vm748_vm0 = vcmask 1043456   ;;  %vm93_vm1 = vcmask 31744   ;;  %vm108_vm2 = vcmask 24576   ;;  %v22768_v1 = vmov 0.0   ;;  %s22759_s1 = inlined_call_operand.vmem [shape: f32[9,4,8], index: 1, kind: input, shape index: {}]   ;;  %s22760_s0 = inlined_call_operand.vmem [shape: f32[2,16,16,4], index: 0, kind: input, shape index: {}]   ;;  %s22761_s4 = inlined_call_operand.vmem [shape: f32[9,8,8], index: 4, kind: input, shape index: {}]   ;;  %s22762_s2 = inlined_call_operand.vmem [shape: f32[1,8], index: 2, kind: input, shape index: {}]   ;;  %s22763_s3 = inlined_call_operand.vmem [shape: f32[1,8], index: 3, kind: input, shape index: {}]   ;;  %s22764_s7 = inlined_call_operand.vmem [shape: f32[4,8], index: 7, kind: input, shape index: {}]   ;;  %s22765_s5 = inlined_call_operand.vmem [shape: f32[1,8], index: 5, kind: input, shape index: {}]   ;;  %s22766_s6 = inlined_call_operand.vmem [shape: f32[1,8], index: 6, kind: input, shape index: {}]   ;;  %s22767_s8 = inlined_call_operand.vmem [shape: f32[2,16,16,8], index: 8, kind: output, shape index: {}]  }
   0x1   :  { %v16974_v0 = vld [vmem:[%s22759_s1 + $0x4] sm:$0xf]  ;;  %94 = vst.msk [vmem:[#allocation2] sm:$0xff] %vm93_vm1, %v22768_v1  ;;  %95 = vst.msk [vmem:[#allocation2 + $0x8] sm:$0xff] %vm93_vm1, %v22768_v1  ;;  %v17123_v2 = vld [vmem:[%s22759_s1] sm:$0xf] }
   0x2   :  { %98 = vst.msk [vmem:[#allocation2 + $0x1b0] sm:$0xff] %vm93_vm1, %v22768_v1  ;;  %99 = vst.msk [vmem:[#allocation2 + $0x1b8] sm:$0xff] %vm93_vm1, %v22768_v1  ;;  %vm96_vm3 = vcmask 25600   ;;  %13879 = vmatprep.subr.msk.mxu0 %vm748_vm0, %v16974_v0  ;;  %v17142_v3 = vld [vmem:[%s22760_s0] sm:$0xff]  ;;  %v17147_v4 = vld [vmem:[%s22760_s0 + $0x8] sm:$0xff]  ;;  %15741 = vmatprep.subr.msk.mxu1 %vm748_vm0, %v16974_v0  ;;  %vm459_vm4 = vcmask 1046528  }
   0x3   :  { %102 = vst.msk [vmem:[#allocation2 + $0x198] sm:$0xff] %vm93_vm1, %v22768_v1  ;;  %103 = vst.msk [vmem:[#allocation2 + $0x1a0] sm:$0xff] %vm93_vm1, %v22768_v1  ;;  %v17152_v5 = vld [vmem:[%s22760_s0 + $0x10] sm:$0xff]  ;;  %13880 = vmatpush3.msk.msra.mxu0 %vm748_vm0, %v16974_v0  ;;  %v17173_v6 = vld [vmem:[%s22760_s0 + $0x18] sm:$0xff]  ;;  %15742 = vmatpush3.msk.msra.mxu1 %vm748_vm0, %v16974_v0  ;;  %vm1653_vm5 = vcmask 1045504   ;;  %vm5412_vm6 = vcmask 64512  }
   0x4   :  { %105 = vst.msk [vmem:[#allocation2 + $0x348] sm:$0xff] %vm93_vm1, %v22768_v1  ;;  %106 = vst.msk [vmem:[#allocation2 + $0x350] sm:$0xff] %vm93_vm1, %v22768_v1  ;;  %v17180_v7 = vld [vmem:[%s22760_s0 + $0x20] sm:$0xff]  ;;  %v17185_v8 = vld [vmem:[%s22760_s0 + $0x28] sm:$0xff]  ;;  %13977 = vmatprep.subr.msk.mxu0 %vm748_vm0, %v17123_v2  ;;  %vm5427_vm7 = vcmask 57344   ;;  %vm5415_vm8 = vcmask 58368  }
   0x5   :  { %110 = vst.msk [vmem:[#allocation2 + $0x18] sm:$0x1] %vm108_vm2, %v22768_v1  ;;  %111 = vst.msk [vmem:[#allocation2 + $0x30] sm:$0x1] %vm108_vm2, %v22768_v1  ;;  %v17200_v9 = vld [vmem:[%s22760_s0 + $0x30] sm:$0xff]  ;;  %v17205_v10 = vld [vmem:[%s22760_s0 + $0x38] sm:$0xff] }
   0x6   :  { %112 = vst.msk [vmem:[#allocation2 + $0x48] sm:$0x1] %vm108_vm2, %v22768_v1  ;;  %113 = vst.msk [vmem:[#allocation2 + $0x60] sm:$0x1] %vm108_vm2, %v22768_v1  ;;  %v17210_v11 = vld [vmem:[%s22760_s0 + $0x40] sm:$0xff]  ;;  %v17219_v12 = vld [vmem:[%s22760_s0 + $0x48] sm:$0xff] }
   0x7   :  { %114 = vst.msk [vmem:[#allocation2 + $0x78] sm:$0x1] %vm108_vm2, %v22768_v1  ;;  %115 = vst.msk [vmem:[#allocation2 + $0x90] sm:$0x1] %vm108_vm2, %v22768_v1  ;;  %v17226_v13 = vld [vmem:[%s22760_s0 + $0x50] sm:$0xff]  ;;  %v17231_v14 = vld [vmem:[%s22760_s0 + $0x58] sm:$0xff] }
   0x8   :  { %116 = vst.msk [vmem:[#allocation2 + $0xa8] sm:$0x1] %vm108_vm2, %v22768_v1  ;;  %117 = vst.msk [vmem:[#allocation2 + $0xc0] sm:$0x1] %vm108_vm2, %v22768_v1  ;;  %v17242_v15 = vld [vmem:[%s22760_s0 + $0x60] sm:$0xff]  ;;  %v17247_v16 = vld [vmem:[%s22760_s0 + $0x68] sm:$0xff] }
   0x9   :  { %118 = vst.msk [vmem:[#allocation2 + $0xd8] sm:$0x1] %vm108_vm2, %v22768_v1  ;;  %119 = vst.msk [vmem:[#allocation2 + $0xf0] sm:$0x1] %vm108_vm2, %v22768_v1  ;;  %v17252_v17 = vld [vmem:[%s22760_s0 + $0x70] sm:$0xff]  ;;  %v17261_v18 = vld [vmem:[%s22760_s0 + $0x78] sm:$0xff] }
   0xa   :  { %120 = vst.msk [vmem:[#allocation2 + $0x108] sm:$0x1] %vm108_vm2, %v22768_v1  ;;  %121 = vst.msk [vmem:[#allocation2 + $0x120] sm:$0x1] %vm108_vm2, %v22768_v1  ;;  %v17268_v19 = vld [vmem:[%s22760_s0 + $0x80] sm:$0xff]  ;;  %v17273_v20 = vld [vmem:[%s22760_s0 + $0x88] sm:$0xff] }
   0xb   :  { %122 = vst.msk [vmem:[#allocation2 + $0x138] sm:$0x1] %vm108_vm2, %v22768_v1  ;;  %123 = vst.msk [vmem:[#allocation2 + $0x150] sm:$0x1] %vm108_vm2, %v22768_v1  ;;  %v17275_v21 = vld [vmem:[#allocation2 + $0x8] sm:$0xff]  ;;  %v17286_v22 = vld [vmem:[%s22760_s0 + $0x90] sm:$0xff] }
   0xc   :  { %124 = vst.msk [vmem:[#allocation2 + $0x168] sm:$0x1] %vm108_vm2, %v22768_v1  ;;  %125 = vst.msk [vmem:[#allocation2 + $0x180] sm:$0x1] %vm108_vm2, %v22768_v1  ;;  %v17291_v23 = vld [vmem:[%s22760_s0 + $0x98] sm:$0xff]  ;;  %v461_v25 = vrot.slane %v17275_v21, 1 }
   0xd   :  { %128 = vst.msk [vmem:[#allocation2 + $0x1c8] sm:$0x1] %vm108_vm2, %v22768_v1  ;;  %129 = vst.msk [vmem:[#allocation2 + $0x1e0] sm:$0x1] %vm108_vm2, %v22768_v1  ;;  %v17303_v26 = vld [vmem:[%s22760_s0 + $0xa0] sm:$0xff]  ;;  %v17308_v27 = vld [vmem:[%s22760_s0 + $0xa8] sm:$0xff] }
   0xe   :  { %130 = vst.msk [vmem:[#allocation2 + $0x1f8] sm:$0x1] %vm108_vm2, %v22768_v1  ;;  %131 = vst.msk [vmem:[#allocation2 + $0x210] sm:$0x1] %vm108_vm2, %v22768_v1  ;;  %v17391_v0 = vld [vmem:[%s22760_s0 + $0xb0] sm:$0xff] }
   0xf   :  { %132 = vst.msk [vmem:[#allocation2 + $0x228] sm:$0x1] %vm108_vm2, %v22768_v1  ;;  %133 = vst.msk [vmem:[#allocation2 + $0x240] sm:$0x1] %vm108_vm2, %v22768_v1 }
  0x10   :  { %134 = vst.msk [vmem:[#allocation2 + $0x258] sm:$0x1] %vm108_vm2, %v22768_v1  ;;  %135 = vst.msk [vmem:[#allocation2 + $0x270] sm:$0x1] %vm108_vm2, %v22768_v1 }
  0x11   :  { %136 = vst.msk [vmem:[#allocation2 + $0x288] sm:$0x1] %vm108_vm2, %v22768_v1  ;;  %137 = vst.msk [vmem:[#allocation2 + $0x2a0] sm:$0x1] %vm108_vm2, %v22768_v1 }
  0x12   :  { %138 = vst.msk [vmem:[#allocation2 + $0x2b8] sm:$0x1] %vm108_vm2, %v22768_v1  ;;  %139 = vst.msk [vmem:[#allocation2 + $0x2d0] sm:$0x1] %vm108_vm2, %v22768_v1 }
  0x13   :  { %140 = vst.msk [vmem:[#allocation2 + $0x2e8] sm:$0x1] %vm108_vm2, %v22768_v1  ;;  %141 = vst.msk [vmem:[#allocation2 + $0x300] sm:$0x1] %vm108_vm2, %v22768_v1 }
  0x14   :  { %142 = vst.msk [vmem:[#allocation2 + $0x318] sm:$0x1] %vm108_vm2, %v22768_v1  ;;  %143 = vst.msk [vmem:[#allocation2 + $0x330] sm:$0x1] %vm108_vm2, %v22768_v1 }
  0x15   :  { %146 = vst.msk [vmem:[#allocation2 + $0x29] sm:$0x1] %vm108_vm2, %v22768_v1  ;;  %147 = vst.msk [vmem:[#allocation2 + $0x41] sm:$0x1] %vm108_vm2, %v22768_v1 }
  0x16   :  { %148 = vst.msk [vmem:[#allocation2 + $0x59] sm:$0x1] %vm108_vm2, %v22768_v1  ;;  %149 = vst.msk [vmem:[#allocation2 + $0x71] sm:$0x1] %vm108_vm2, %v22768_v1 }
  0x17   :  { %150 = vst.msk [vmem:[#allocation2 + $0x89] sm:$0x1] %vm108_vm2, %v22768_v1  ;;  %151 = vst.msk [vmem:[#allocation2 + $0xa1] sm:$0x1] %vm108_vm2, %v22768_v1 }
  0x18   :  { %152 = vst.msk [vmem:[#allocation2 + $0xb9] sm:$0x1] %vm108_vm2, %v22768_v1  ;;  %153 = vst.msk [vmem:[#allocation2 + $0xd1] sm:$0x1] %vm108_vm2, %v22768_v1 }
  0x19   :  { %154 = vst.msk [vmem:[#allocation2 + $0xe9] sm:$0x1] %vm108_vm2, %v22768_v1  ;;  %155 = vst.msk [vmem:[#allocation2 + $0x101] sm:$0x1] %vm108_vm2, %v22768_v1 }
  0x1a   :  { %156 = vst.msk [vmem:[#allocation2 + $0x119] sm:$0x1] %vm108_vm2, %v22768_v1  ;;  %157 = vst.msk [vmem:[#allocation2 + $0x131] sm:$0x1] %vm108_vm2, %v22768_v1 }
  0x1b   :  { %158 = vst.msk [vmem:[#allocation2 + $0x149] sm:$0x1] %vm108_vm2, %v22768_v1  ;;  %159 = vst.msk [vmem:[#allocation2 + $0x161] sm:$0x1] %vm108_vm2, %v22768_v1 }
  0x1c   :  { %160 = vst.msk [vmem:[#allocation2 + $0x179] sm:$0x1] %vm108_vm2, %v22768_v1  ;;  %161 = vst.msk [vmem:[#allocation2 + $0x191] sm:$0x1] %vm108_vm2, %v22768_v1 }
  0x1d   :  { %164 = vst.msk [vmem:[#allocation2 + $0x1d9] sm:$0x1] %vm108_vm2, %v22768_v1  ;;  %165 = vst.msk [vmem:[#allocation2 + $0x1f1] sm:$0x1] %vm108_vm2, %v22768_v1 }
  0x1e   :  { %166 = vst.msk [vmem:[#allocation2 + $0x209] sm:$0x1] %vm108_vm2, %v22768_v1  ;;  %167 = vst.msk [vmem:[#allocation2 + $0x221] sm:$0x1] %vm108_vm2, %v22768_v1 }
  0x1f   :  { %168 = vst.msk [vmem:[#allocation2 + $0x239] sm:$0x1] %vm108_vm2, %v22768_v1  ;;  %169 = vst.msk [vmem:[#allocation2 + $0x251] sm:$0x1] %vm108_vm2, %v22768_v1 }
  0x20   :  { %170 = vst.msk [vmem:[#allocation2 + $0x269] sm:$0x1] %vm108_vm2, %v22768_v1  ;;  %171 = vst.msk [vmem:[#allocation2 + $0x281] sm:$0x1] %vm108_vm2, %v22768_v1 }
  0x21   :  { %172 = vst.msk [vmem:[#allocation2 + $0x299] sm:$0x1] %vm108_vm2, %v22768_v1  ;;  %173 = vst.msk [vmem:[#allocation2 + $0x2b1] sm:$0x1] %vm108_vm2, %v22768_v1 }
  0x22   :  { %174 = vst.msk [vmem:[#allocation2 + $0x2c9] sm:$0x1] %vm108_vm2, %v22768_v1  ;;  %175 = vst.msk [vmem:[#allocation2 + $0x2e1] sm:$0x1] %vm108_vm2, %v22768_v1 }
  0x23   :  { %176 = vst.msk [vmem:[#allocation2 + $0x2f9] sm:$0x1] %vm108_vm2, %v22768_v1  ;;  %177 = vst.msk [vmem:[#allocation2 + $0x311] sm:$0x1] %vm108_vm2, %v22768_v1 }
  0x24   :  { %178 = vst.msk [vmem:[#allocation2 + $0x329] sm:$0x1] %vm108_vm2, %v22768_v1  ;;  %179 = vst.msk [vmem:[#allocation2 + $0x341] sm:$0x1] %vm108_vm2, %v22768_v1 }
  0x25   :  { %109 = vst.msk [vmem:[#allocation2] sm:$0x1] %vm108_vm2, %v22768_v1  ;;  %126 = vst.msk [vmem:[#allocation2 + $0x198] sm:$0x1] %vm108_vm2, %v22768_v1 }
  0x26   :  { %127 = vst.msk [vmem:[#allocation2 + $0x1b0] sm:$0x1] %vm108_vm2, %v22768_v1  ;;  %144 = vst.msk [vmem:[#allocation2 + $0x348] sm:$0x1] %vm108_vm2, %v22768_v1 }
  0x27   :  { %97 = vst.msk [vmem:[#allocation2 + $0x10] sm:$0x3] %vm96_vm3, %v22768_v1  ;;  %100 = vst.msk [vmem:[#allocation2 + $0x1c0] sm:$0x3] %vm96_vm3, %v22768_v1 }
  0x28   :  { %104 = vst.msk [vmem:[#allocation2 + $0x1a8] sm:$0x3] %vm96_vm3, %v22768_v1  ;;  %107 = vst.msk [vmem:[#allocation2 + $0x358] sm:$0x3] %vm96_vm3, %v22768_v1 }
  0x29   :  { %23314 = vst [vmem:[#allocation4_spill] sm:$0xff] %v17142_v3  ;;  %23315 = vst [vmem:[#allocation5_spill] sm:$0xff] %v17147_v4 }
  0x2a   :  { %23316 = vst [vmem:[#allocation6_spill] sm:$0xff] %v17152_v5  ;;  %145 = vst.msk [vmem:[#allocation2 + $0x11] sm:$0x1] %vm108_vm2, %v22768_v1 }
  0x2b   :  { %162 = vst.msk [vmem:[#allocation2 + $0x1a9] sm:$0x1] %vm108_vm2, %v22768_v1  ;;  %163 = vst.msk [vmem:[#allocation2 + $0x1c1] sm:$0x1] %vm108_vm2, %v22768_v1 }
  0x2c   :  { %180 = vst.msk [vmem:[#allocation2 + $0x359] sm:$0x1] %vm108_vm2, %v22768_v1  ;;  %23317 = vst [vmem:[#allocation7_spill] sm:$0xff] %v17173_v6  ;;  %v17293_v24 = vld [vmem:[#allocation2] sm:$0xff] }
  0x2d   :  { %182 = vst.msk [vmem:[#allocation2 + $0x19] sm:$0xff] %vm93_vm1, %v17142_v3  ;;  %183 = vst.msk [vmem:[#allocation2 + $0x21] sm:$0xff] %vm93_vm1, %v17147_v4  ;;  %v460_v28 = vrot.slane %v17293_v24, 1  ;;  %v17473_v1 = vld [vmem:[%s22760_s0 + $0x100] sm:$0xff] }
  0x2e   :  { %184 = vst.msk [vmem:[#allocation2 + $0x31] sm:$0xff] %vm93_vm1, %v17152_v5  ;;  %23318 = vst [vmem:[#allocation8_spill] sm:$0xff] %v17180_v7 }
  0x2f   :  { %23319 = vst [vmem:[#allocation9_spill] sm:$0xff] %v17185_v8  ;;  %185 = vst.msk [vmem:[#allocation2 + $0x39] sm:$0xff] %vm93_vm1, %v17173_v6  ;;  %v462_v36 = vsel %vm459_vm4, %v460_v28, %v461_v25 }
  0x30   :  { %186 = vst.msk [vmem:[#allocation2 + $0x49] sm:$0xff] %vm93_vm1, %v17180_v7  ;;  %187 = vst.msk [vmem:[#allocation2 + $0x51] sm:$0xff] %vm93_vm1, %v17185_v8  ;;  %13881 = vmatprep.mubr.msk.f32.mxu0 %vm93_vm1, %v462_v36 }
  0x31   :  { %23320 = vst [vmem:[#allocation10_spill] sm:$0xff] %v17200_v9  ;;  %23321 = vst [vmem:[#allocation11_spill] sm:$0xff] %v17205_v10  ;;  %v17311_v29 = vld [vmem:[#allocation2 + $0x10] sm:$0x3] }
  0x32   :  { %23322 = vst [vmem:[#allocation12_spill] sm:$0xff] %v17210_v11  ;;  %188 = vst.msk [vmem:[#allocation2 + $0x61] sm:$0xff] %vm93_vm1, %v17200_v9  ;;  %v463_v32 = vrot.slane %v17311_v29, 1 }
  0x33   :  { %189 = vst.msk [vmem:[#allocation2 + $0x69] sm:$0xff] %vm93_vm1, %v17205_v10  ;;  %23323 = vst [vmem:[#allocation13_spill] sm:$0xff] %v17219_v12 }
  0x34   :  { %190 = vst.msk [vmem:[#allocation2 + $0x79] sm:$0xff] %vm93_vm1, %v17210_v11  ;;  %23324 = vst [vmem:[#allocation14_spill] sm:$0xff] %v17226_v13  ;;  %v17313_v30 = vld [vmem:[#allocation2 + $0x18] sm:$0xff]  ;;  %v17315_v31 = vld [vmem:[#allocation2 + $0x20] sm:$0xff]  ;;  %v464_v41 = vsel %vm459_vm4, %v461_v25, %v463_v32 }
  0x35   :  { %23325 = vst [vmem:[#allocation15_spill] sm:$0xff] %v17231_v14  ;;  %191 = vst.msk [vmem:[#allocation2 + $0x81] sm:$0xff] %vm93_vm1, %v17219_v12  ;;  %v465_v33 = vrot.slane %v17313_v30, 1  ;;  %v466_v34 = vrot.slane %v17315_v31, 1  ;;  %v17324_v35 = vld [vmem:[#allocation2 + $0x28] sm:$0x3]  ;;  %13882 = vmatmul.mubr.msk.f32.vlgmr.msra.gmra.mrb[0].mxu0 %vm93_vm1, %v464_v41 }
  0x36   :  { %192 = vst.msk [vmem:[#allocation2 + $0x91] sm:$0xff] %vm93_vm1, %v17226_v13  ;;  %193 = vst.msk [vmem:[#allocation2 + $0x99] sm:$0xff] %vm93_vm1, %v17231_v14  ;;  %v468_v37 = vrot.slane %v17324_v35, 1  ;;  %v17328_v38 = vld [vmem:[#allocation2 + $0x30] sm:$0xff]  ;;  %v17330_v39 = vld [vmem:[#allocation2 + $0x38] sm:$0xff]  ;;  %13978 = vmatpush3.msk.msra.mxu0 %vm748_vm0, %v17123_v2 }
  0x37   :  { %23326 = vst [vmem:[#allocation16_spill] sm:$0xff] %v17242_v15  ;;  %23327 = vst [vmem:[#allocation17_spill] sm:$0xff] %v17247_v16  ;;  %v17332_v40 = vld [vmem:[#allocation2 + $0x40] sm:$0x3]  ;;  %v17337_v42 = vsel %vm459_vm4, %v465_v33, %v466_v34  ;;  %v470_v43 = vrot.slane %v17328_v38, 1  ;;  %v471_v44 = vrot.slane %v17330_v39, 1 }
  0x38   :  { %23328 = vst [vmem:[#allocation18_spill] sm:$0xff] %v17252_v17  ;;  %194 = vst.msk [vmem:[#allocation2 + $0xa9] sm:$0xff] %vm93_vm1, %v17242_v15  ;;  %v17341_v45 = vld [vmem:[#allocation2 + $0x48] sm:$0xff]  ;;  %v17343_v46 = vld [vmem:[#allocation2 + $0x50] sm:$0xff]  ;;  %13884 = vmatprep.mubr.msk.f32.mxu0 %vm93_vm1, %v17337_v42  ;;  %v17351_v47 = vsel %vm459_vm4, %v466_v34, %v468_v37  ;;  %v473_v48 = vrot.slane %v17332_v40, 1 }
  0x39   :  { %195 = vst.msk [vmem:[#allocation2 + $0xb1] sm:$0xff] %vm93_vm1, %v17247_v16  ;;  %23329 = vst [vmem:[#allocation19_spill] sm:$0xff] %v17261_v18  ;;  %v17355_v49 = vsel %vm459_vm4, %v470_v43, %v471_v44  ;;  %v475_v50 = vrot.slane %v17341_v45, 1  ;;  %v476_v51 = vrot.slane %v17343_v46, 1  ;;  %v17359_v52 = vld [vmem:[#allocation2 + $0x58] sm:$0x3]  ;;  %13885 = vmatmul.mubr.msk.f32.gmra.mrb[2].mxu0 %vm93_vm1, %v17351_v47 }
  0x3a   :  { %196 = vst.msk [vmem:[#allocation2 + $0xc1] sm:$0xff] %vm93_vm1, %v17252_v17  ;;  %23330 = vst [vmem:[#allocation20_spill] sm:$0xff] %v17268_v19  ;;  %v17361_v53 = vld [vmem:[#allocation2 + $0x60] sm:$0xff]  ;;  %v17363_v54 = vld [vmem:[#allocation2 + $0x68] sm:$0xff]  ;;  %13887 = vmatprep.mubr.msk.f32.mxu0 %vm93_vm1, %v17355_v49  ;;  %v17370_v55 = vsel %vm459_vm4, %v471_v44, %v473_v48  ;;  %v478_v56 = vrot.slane %v17359_v52, 1 }
  0x3b   :  { %23331 = vst [vmem:[#allocation21_spill] sm:$0xff] %v17273_v20  ;;  %197 = vst.msk [vmem:[#allocation2 + $0xc9] sm:$0xff] %vm93_vm1, %v17261_v18  ;;  %v17374_v57 = vsel %vm459_vm4, %v475_v50, %v476_v51  ;;  %v480_v58 = vrot.slane %v17361_v53, 1  ;;  %v481_v59 = vrot.slane %v17363_v54, 1  ;;  %v17378_v60 = vld [vmem:[#allocation2 + $0x70] sm:$0x3] }
  0x3c   :  { %198 = vst.msk [vmem:[#allocation2 + $0xd9] sm:$0xff] %vm93_vm1, %v17268_v19  ;;  %199 = vst.msk [vmem:[#allocation2 + $0xe1] sm:$0xff] %vm93_vm1, %v17273_v20  ;;  %v17380_v61 = vld [vmem:[#allocation2 + $0x78] sm:$0xff]  ;;  %v17382_v62 = vld [vmem:[#allocation2 + $0x80] sm:$0xff]  ;;  %v17396_v2 = vsel %vm459_vm4, %v476_v51, %v478_v56  ;;  %v483_v25 = vrot.slane %v17378_v60, 1 }
  0x3d   :  { %23332 = vst [vmem:[#allocation22_spill] sm:$0xff] %v17286_v22  ;;  %23333 = vst [vmem:[#allocation23_spill] sm:$0xff] %v17291_v23  ;;  %13888 = vmatmul.mubr.msk.f32.gmra.mrb[4].mxu0 %vm93_vm1, %v17370_v55  ;;  %v17386_v63 = vld [vmem:[#allocation2 + $0x88] sm:$0x3]  ;;  %v17399_v28 = vld [vmem:[#allocation2 + $0x90] sm:$0xff]  ;;  %v17416_v36 = vsel %vm459_vm4, %v480_v58, %v481_v59  ;;  %v485_v37 = vrot.slane %v17380_v61, 1 }
  0x3e   :  { %200 = vst.msk [vmem:[#allocation2 + $0xf1] sm:$0xff] %vm93_vm1, %v17286_v22  ;;  %201 = vst.msk [vmem:[#allocation2 + $0xf9] sm:$0xff] %vm93_vm1, %v17291_v23  ;;  %13890 = vmatprep.mubr.msk.f32.mxu0 %vm93_vm1, %v17374_v57  ;;  %v17401_v32 = vld [vmem:[#allocation2 + $0x98] sm:$0xff]  ;;  %v17413_v34 = vld [vmem:[%s22760_s0 + $0xc0] sm:$0xff]  ;;  %v486_v41 = vrot.slane %v17382_v62, 1 }
  0x3f   :  { %23334 = vst [vmem:[#allocation24_spill] sm:$0xff] %v17303_v26  ;;  %23335 = vst [vmem:[#allocation25_spill] sm:$0xff] %v17308_v27  ;;  %v17406_v33 = vld [vmem:[%s22760_s0 + $0xb8] sm:$0xff]  ;;  %v17425_v43 = vld [vmem:[%s22760_s0 + $0xc8] sm:$0xff] }
  0x40   :  { %202 = vst.msk [vmem:[#allocation2 + $0x109] sm:$0xff] %vm93_vm1, %v17303_v26  ;;  %203 = vst.msk [vmem:[#allocation2 + $0x111] sm:$0xff] %vm93_vm1, %v17308_v27  ;;  %v17432_v44 = vld [vmem:[%s22760_s0 + $0xd0] sm:$0xff]  ;;  %v17437_v48 = vld [vmem:[%s22760_s0 + $0xd8] sm:$0xff] }
  0x41   :  { %23336 = vst [vmem:[#allocation26_spill] sm:$0xff] %v17337_v42  ;;  %23337 = vst [vmem:[#allocation27_spill] sm:$0xff] %v17351_v47  ;;  %v17448_v50 = vld [vmem:[%s22760_s0 + $0xe0] sm:$0xff]  ;;  %v17453_v51 = vld [vmem:[%s22760_s0 + $0xe8] sm:$0xff]  ;;  %13891 = vmatmul.mubr.msk.f32.gmra.mrb[6].mxu0 %vm93_vm1, %v17396_v2 }
  0x42   :  { %23338 = vst [vmem:[#allocation28_spill] sm:$0xff] %v17355_v49  ;;  %23339 = vst [vmem:[#allocation29_spill] sm:$0xff] %v17370_v55  ;;  %v17458_v56 = vld [vmem:[%s22759_s1 + $0x8] sm:$0xf]  ;;  %v17462_v58 = vld [vmem:[#allocation2 + $0xa0] sm:$0x3]  ;;  %13893 = vmatprep.mubr.msk.f32.mxu0 %vm93_vm1, %v17416_v36 }
  0x43   :  { %23340 = vst [vmem:[#allocation30_spill] sm:$0xff] %v17374_v57  ;;  %23341 = vst [vmem:[#allocation31_spill] sm:$0xff] %v17391_v0  ;;  %14075 = vmatprep.subr.msk.mxu0 %vm748_vm0, %v17458_v56  ;;  %v17582_v23 = vld [vmem:[#allocation2 + $0xb8] sm:$0x3]  ;;  %v17584_v22 = vld [vmem:[#allocation2 + $0xc0] sm:$0xff] }
  0x44   :  { %23342 = vst [vmem:[#allocation32_spill] sm:$0xff] %v17396_v2  ;;  %23343 = vst [vmem:[#allocation33_spill] sm:$0xff] %v17406_v33  ;;  %v17601_v19 = vld [vmem:[#allocation2 + $0xd0] sm:$0x3]  ;;  %v17603_v18 = vld [vmem:[#allocation2 + $0xd8] sm:$0xff] }
  0x45   :  { %204 = vst.msk [vmem:[#allocation2 + $0x121] sm:$0xff] %vm93_vm1, %v17391_v0  ;;  %23344 = vst [vmem:[#allocation34_spill] sm:$0xff] %v17413_v34  ;;  %v17516_v0 = vld [vmem:[%s22760_s0 + $0x120] sm:$0xff]  ;;  %v17623_v16 = vld [vmem:[%s22760_s0 + $0x168] sm:$0xff] }
  0x46   :  { %23345 = vst [vmem:[#allocation35_spill] sm:$0xff] %v17416_v36  ;;  %205 = vst.msk [vmem:[#allocation2 + $0x129] sm:$0xff] %vm93_vm1, %v17406_v33  ;;  %v491_v33 = vrot.slane %v17401_v32, 1  ;;  %v17605_v17 = vld [vmem:[#allocation2 + $0xe0] sm:$0xff]  ;;  %v17628_v15 = vld [vmem:[%s22760_s0 + $0x170] sm:$0xff] }
  0x47   :  { %23346 = vst [vmem:[#allocation36_spill] sm:$0xff] %v17425_v43  ;;  %206 = vst.msk [vmem:[#allocation2 + $0x139] sm:$0xff] %vm93_vm1, %v17413_v34  ;;  %v17495_v34 = vld [vmem:[%s22760_s0 + $0x110] sm:$0xff]  ;;  %v506_v14 = vrot.slane %v17605_v17, 1  ;;  %v17635_v13 = vld [vmem:[#allocation2 + $0xe8] sm:$0x3] }
  0x48   :  { %23347 = vst [vmem:[#allocation37_spill] sm:$0xff] %v17432_v44  ;;  %23348 = vst [vmem:[#allocation38_spill] sm:$0xff] %v17437_v48  ;;  %v17651_v12 = vld [vmem:[%s22760_s0 + $0x180] sm:$0xff]  ;;  %v17653_v11 = vld [vmem:[#allocation2 + $0xf0] sm:$0xff] }
  0x49   :  { %207 = vst.msk [vmem:[#allocation2 + $0x141] sm:$0xff] %vm93_vm1, %v17425_v43  ;;  %208 = vst.msk [vmem:[#allocation2 + $0x151] sm:$0xff] %vm93_vm1, %v17432_v44  ;;  %v488_v44 = vrot.slane %v17386_v63, 1  ;;  %v17483_v43 = vld [vmem:[#allocation2 + $0xb0] sm:$0xff]  ;;  %v17655_v10 = vld [vmem:[#allocation2 + $0xf8] sm:$0xff] }
  0x4a   :  { %209 = vst.msk [vmem:[#allocation2 + $0x159] sm:$0xff] %vm93_vm1, %v17437_v48  ;;  %23349 = vst [vmem:[#allocation39_spill] sm:$0xff] %v17448_v50  ;;  %v17478_v48 = vsel %vm459_vm4, %v481_v59, %v483_v25  ;;  %v17500_v59 = vld [vmem:[%s22760_s0 + $0x118] sm:$0xff]  ;;  %v17503_v25 = vsel %vm459_vm4, %v485_v37, %v486_v41  ;;  %v17521_v37 = vld [vmem:[%s22760_s0 + $0x128] sm:$0xff]  ;;  %v496_v26 = vrot.slane %v17483_v43, 1  ;;  %v511_v9 = vrot.slane %v17655_v10, 1 }
  0x4b   :  { %23350 = vst [vmem:[#allocation40_spill] sm:$0xff] %v17453_v51  ;;  %210 = vst.msk [vmem:[#allocation2 + $0x169] sm:$0xff] %vm93_vm1, %v17448_v50  ;;  %v17481_v50 = vld [vmem:[#allocation2 + $0xa8] sm:$0xff]  ;;  %13894 = vmatmul.mubr.msk.f32.gmra.mrb[8].mxu0 %vm93_vm1, %v17478_v48  ;;  %v17681_v8 = vld [vmem:[#allocation2 + $0x100] sm:$0x3] }
  0x4c   :  { %211 = vst.msk [vmem:[#allocation2 + $0x171] sm:$0xff] %vm93_vm1, %v17453_v51  ;;  %23351 = vst [vmem:[#allocation41_spill] sm:$0xff] %v17473_v1  ;;  %v17490_v51 = vld [vmem:[%s22760_s0 + $0x108] sm:$0xff]  ;;  %13896 = vmatprep.mubr.msk.f32.mxu0 %vm93_vm1, %v17503_v25  ;;  %v495_v27 = vrot.slane %v17481_v50, 1  ;;  %v513_v6 = vrot.slane %v17681_v8, 1 }
  0x4d   :  { %23352 = vst [vmem:[#allocation42_spill] sm:$0xff] %v17478_v48  ;;  %214 = vst.msk [vmem:[#allocation2 + $0x1c9] sm:$0xff] %vm93_vm1, %v17473_v1  ;;  %v490_v1 = vrot.slane %v17399_v28, 1  ;;  %v17688_v7 = vld [vmem:[#allocation2 + $0x108] sm:$0xff]  ;;  %v17714_v3 = vld [vmem:[#allocation2 + $0x118] sm:$0x3] }
  0x4e   :  { %23353 = vst [vmem:[#allocation43_spill] sm:$0xff] %v17490_v51  ;;  %23354 = vst [vmem:[#allocation44_spill] sm:$0xff] %v17495_v34  ;;  %v515_v5 = vrot.slane %v17688_v7, 1 }
  0x4f   :  { %23355 = vst [vmem:[#allocation45_spill] sm:$0xff] %v17500_v59  ;;  %23356 = vst [vmem:[#allocation46_spill] sm:$0xff] %v17503_v25 }
  0x50   :  { %215 = vst.msk [vmem:[#allocation2 + $0x1d1] sm:$0xff] %vm93_vm1, %v17490_v51  ;;  %216 = vst.msk [vmem:[#allocation2 + $0x1e1] sm:$0xff] %vm93_vm1, %v17495_v34  ;;  %v17526_v51 = vld [vmem:[%s22760_s0 + $0x130] sm:$0xff]  ;;  %v17542_v34 = vld [vmem:[%s22760_s0 + $0x140] sm:$0xff] }
  0x51   :  { %217 = vst.msk [vmem:[#allocation2 + $0x1e9] sm:$0xff] %vm93_vm1, %v17500_v59  ;;  %23357 = vst [vmem:[#allocation47_spill] sm:$0xff] %v17516_v0  ;;  %v17537_v59 = vld [vmem:[%s22760_s0 + $0x138] sm:$0xff]  ;;  %v17813_v36 = vld [vmem:[#allocation2 + $0x160] sm:$0x3] }
  0x52   :  { %23358 = vst [vmem:[#allocation48_spill] sm:$0xff] %v17521_v37  ;;  %23359 = vst [vmem:[#allocation49_spill] sm:$0xff] %v17526_v51 }
  0x53   :  { %218 = vst.msk [vmem:[#allocation2 + $0x1f9] sm:$0xff] %vm93_vm1, %v17516_v0  ;;  %219 = vst.msk [vmem:[#allocation2 + $0x201] sm:$0xff] %vm93_vm1, %v17521_v37  ;;  %v17547_v0 = vld [vmem:[%s22760_s0 + $0x148] sm:$0xff]  ;;  %v17565_v37 = vld [vmem:[%s22760_s0 + $0x158] sm:$0xff] }
  0x54   :  { %220 = vst.msk [vmem:[#allocation2 + $0x211] sm:$0xff] %vm93_vm1, %v17526_v51  ;;  %23360 = vst [vmem:[#allocation50_spill] sm:$0xff] %v17537_v59  ;;  %v17560_v51 = vld [vmem:[%s22760_s0 + $0x150] sm:$0xff]  ;;  %v17846_v55 = vld [vmem:[#allocation2 + $0x178] sm:$0x3] }
  0x55   :  { %23361 = vst [vmem:[#allocation51_spill] sm:$0xff] %v17542_v34  ;;  %23362 = vst [vmem:[#allocation52_spill] sm:$0xff] %v17547_v0 }
  0x56   :  { %221 = vst.msk [vmem:[#allocation2 + $0x219] sm:$0xff] %vm93_vm1, %v17537_v59  ;;  %222 = vst.msk [vmem:[#allocation2 + $0x229] sm:$0xff] %vm93_vm1, %v17542_v34  ;;  %v17570_v59 = vsel %vm459_vm4, %v486_v41, %v488_v44  ;;  %v493_v34 = vrot.slane %v17462_v58, 1  ;;  %v17586_v41 = vld [vmem:[#allocation2 + $0xc8] sm:$0xff] }
  0x57   :  { %223 = vst.msk [vmem:[#allocation2 + $0x231] sm:$0xff] %vm93_vm1, %v17547_v0  ;;  %23363 = vst [vmem:[#allocation53_spill] sm:$0xff] %v17560_v51  ;;  %v17578_v0 = vsel %vm459_vm4, %v490_v1, %v491_v33  ;;  %13897 = vmatmul.mubr.msk.f32.gmra.mrb[10].mxu0 %vm93_vm1, %v17570_v59  ;;  %v498_v1 = vrot.slane %v17582_v23, 1  ;;  %v501_v20 = vrot.slane %v17586_v41, 1 }
  0x58   :  { %23364 = vst [vmem:[#allocation54_spill] sm:$0xff] %v17565_v37  ;;  %23365 = vst [vmem:[#allocation55_spill] sm:$0xff] %v17570_v59  ;;  %13899 = vmatprep.mubr.msk.f32.mxu0 %vm93_vm1, %v17578_v0  ;;  %v17593_v44 = vsel %vm459_vm4, %v491_v33, %v493_v34  ;;  %v17618_v34 = vld [vmem:[%s22760_s0 + $0x160] sm:$0xff]  ;;  %v17780_v59 = vld [vmem:[#allocation2 + $0x148] sm:$0x3] }
  0x59   :  { %224 = vst.msk [vmem:[#allocation2 + $0x241] sm:$0xff] %vm93_vm1, %v17560_v51  ;;  %225 = vst.msk [vmem:[#allocation2 + $0x249] sm:$0xff] %vm93_vm1, %v17565_v37  ;;  %v17597_v37 = vsel %vm459_vm4, %v495_v27, %v496_v26  ;;  %v500_v51 = vrot.slane %v17584_v22, 1  ;;  %v17612_v33 = vsel %vm459_vm4, %v496_v26, %v498_v1  ;;  %v503_v27 = vrot.slane %v17601_v19, 1 }
  0x5a   :  { %23366 = vst [vmem:[#allocation56_spill] sm:$0xff] %v17578_v0  ;;  %23367 = vst [vmem:[#allocation57_spill] sm:$0xff] %v17593_v44  ;;  %v505_v1 = vrot.slane %v17603_v18, 1 }
  0x5b   :  { %23368 = vst [vmem:[#allocation58_spill] sm:$0xff] %v17597_v37  ;;  %13900 = vmatmul.mubr.msk.f32.gmra.mrb[12].mxu0 %vm93_vm1, %v17593_v44  ;;  %23369 = vst [vmem:[#allocation59_spill] sm:$0xff] %v17612_v33  ;;  %v17631_v26 = vsel %vm459_vm4, %v500_v51, %v501_v20  ;;  %v17646_v51 = vld [vmem:[%s22760_s0 + $0x178] sm:$0xff] }
  0x5c   :  { %13902 = vmatprep.mubr.msk.f32.mxu0 %vm93_vm1, %v17597_v37  ;;  %23370 = vst [vmem:[#allocation60_spill] sm:$0xff] %v17618_v34  ;;  %23371 = vst [vmem:[#allocation61_spill] sm:$0xff] %v17623_v16  ;;  %v17747_v37 = vld [vmem:[#allocation2 + $0x130] sm:$0x3] }
  0x5d   :  { %23372 = vst [vmem:[#allocation62_spill] sm:$0xff] %v17628_v15  ;;  %23373 = vst [vmem:[#allocation63_spill] sm:$0xff] %v17631_v26 }
  0x5e   :  { %226 = vst.msk [vmem:[#allocation2 + $0x259] sm:$0xff] %vm93_vm1, %v17618_v34  ;;  %227 = vst.msk [vmem:[#allocation2 + $0x261] sm:$0xff] %vm93_vm1, %v17623_v16  ;;  %v17673_v16 = vsel %vm459_vm4, %v501_v20, %v503_v27  ;;  %v510_v34 = vrot.slane %v17653_v11, 1  ;;  %v17690_v20 = vld [vmem:[#allocation2 + $0x110] sm:$0xff]  ;;  %v17697_v27 = vld [vmem:[%s22760_s0 + $0x198] sm:$0xff] }
  0x5f   :  { %228 = vst.msk [vmem:[#allocation2 + $0x271] sm:$0xff] %vm93_vm1, %v17628_v15  ;;  %23374 = vst [vmem:[#allocation64_spill] sm:$0xff] %v17646_v51  ;;  %v17664_v15 = vld [vmem:[%s22760_s0 + $0x188] sm:$0xff]  ;;  %13903 = vmatmul.mubr.msk.f32.gmra.mrb[14].mxu0 %vm93_vm1, %v17612_v33  ;;  %v516_v4 = vrot.slane %v17690_v20, 1 }
  0x60   :  { %23375 = vst [vmem:[#allocation65_spill] sm:$0xff] %v17651_v12  ;;  %229 = vst.msk [vmem:[#allocation2 + $0x279] sm:$0xff] %vm93_vm1, %v17646_v51  ;;  %13905 = vmatprep.mubr.msk.f32.mxu0 %vm93_vm1, %v17631_v26  ;;  %v508_v51 = vrot.slane %v17635_v13, 1  ;;  %v18001_v49 = vld [vmem:[#allocation2 + $0x240] sm:$0xff]  ;;  %v18007_v47 = vld [vmem:[#allocation2 + $0x248] sm:$0xff] }
  0x61   :  { %230 = vst.msk [vmem:[#allocation2 + $0x289] sm:$0xff] %vm93_vm1, %v17651_v12  ;;  %23376 = vst [vmem:[#allocation66_spill] sm:$0xff] %v17664_v15  ;;  %v17677_v12 = vsel %vm459_vm4, %v505_v1, %v506_v14 }
  0x62   :  { %231 = vst.msk [vmem:[#allocation2 + $0x291] sm:$0xff] %vm93_vm1, %v17664_v15  ;;  %23377 = vst [vmem:[#allocation67_spill] sm:$0xff] %v17673_v16  ;;  %v17686_v15 = vld [vmem:[%s22760_s0 + $0x190] sm:$0xff]  ;;  %v17706_v1 = vsel %vm459_vm4, %v506_v14, %v508_v51  ;;  %v17723_v14 = vld [vmem:[#allocation2 + $0x128] sm:$0xff]  ;;  %v17739_v51 = vsel %vm459_vm4, %v511_v9, %v513_v6 }
  0x63   :  { %23378 = vst [vmem:[#allocation68_spill] sm:$0xff] %v17677_v12  ;;  %23379 = vst [vmem:[#allocation69_spill] sm:$0xff] %v17686_v15  ;;  %13906 = vmatmul.mubr.msk.f32.gmra.mrb[16].mxu0 %vm93_vm1, %v17673_v16  ;;  %v518_v16 = vrot.slane %v17714_v3, 1  ;;  %v521_v33 = vrot.slane %v17723_v14, 1  ;;  %v17756_v6 = vld [vmem:[#allocation2 + $0x140] sm:$0xff] }
  0x64   :  { %232 = vst.msk [vmem:[#allocation2 + $0x2a1] sm:$0xff] %vm93_vm1, %v17686_v15  ;;  %23380 = vst [vmem:[#allocation70_spill] sm:$0xff] %v17697_v27  ;;  %13908 = vmatprep.mubr.msk.f32.mxu0 %vm93_vm1, %v17677_v12  ;;  %v17710_v15 = vsel %vm459_vm4, %v510_v34, %v511_v9  ;;  %v17721_v12 = vld [vmem:[#allocation2 + $0x120] sm:$0xff]  ;;  %v17730_v34 = vld [vmem:[%s22760_s0 + $0x1a8] sm:$0xff]  ;;  %v526_v0 = vrot.slane %v17756_v6, 1 }
  0x65   :  { %233 = vst.msk [vmem:[#allocation2 + $0x2a9] sm:$0xff] %vm93_vm1, %v17697_v27  ;;  %23381 = vst [vmem:[#allocation71_spill] sm:$0xff] %v17706_v1  ;;  %v17719_v27 = vld [vmem:[%s22760_s0 + $0x1a0] sm:$0xff]  ;;  %v520_v26 = vrot.slane %v17721_v12, 1  ;;  %v17772_v9 = vsel %vm459_vm4, %v516_v4, %v518_v16  ;;  %v17796_v16 = vld [vmem:[%s22760_s0 + $0x1c8] sm:$0xff] }
  0x66   :  { %23382 = vst [vmem:[#allocation72_spill] sm:$0xff] %v17710_v15  ;;  %23383 = vst [vmem:[#allocation73_spill] sm:$0xff] %v17719_v27  ;;  %v18009_v42 = vld [vmem:[#allocation2 + $0x258] sm:$0xff] }
  0x67   :  { %234 = vst.msk [vmem:[#allocation2 + $0x2b9] sm:$0xff] %vm93_vm1, %v17719_v27  ;;  %23384 = vst [vmem:[#allocation74_spill] sm:$0xff] %v17730_v34  ;;  %13909 = vmatmul.mubr.msk.f32.gmra.mrb[18].mxu0 %vm93_vm1, %v17706_v1  ;;  %v17743_v27 = vsel %vm459_vm4, %v515_v5, %v516_v4  ;;  %v17763_v5 = vld [vmem:[%s22760_s0 + $0x1b8] sm:$0xff]  ;;  %v523_v1 = vrot.slane %v17747_v37, 1 }
  0x68   :  { %235 = vst.msk [vmem:[#allocation2 + $0x2c1] sm:$0xff] %vm93_vm1, %v17730_v34  ;;  %13911 = vmatprep.mubr.msk.f32.mxu0 %vm93_vm1, %v17710_v15  ;;  %23385 = vst [vmem:[#allocation75_spill] sm:$0xff] %v17739_v51  ;;  %v17752_v34 = vld [vmem:[%s22760_s0 + $0x1b0] sm:$0xff]  ;;  %v17754_v15 = vld [vmem:[#allocation2 + $0x138] sm:$0xff] }
  0x69   :  { %23386 = vst [vmem:[#allocation76_spill] sm:$0xff] %v17743_v27  ;;  %23387 = vst [vmem:[#allocation77_spill] sm:$0xff] %v17752_v34  ;;  %v525_v44 = vrot.slane %v17754_v15, 1  ;;  %v17789_v4 = vld [vmem:[#allocation2 + $0x158] sm:$0xff] }
  0x6a   :  { %236 = vst.msk [vmem:[#allocation2 + $0x2d1] sm:$0xff] %vm93_vm1, %v17752_v34  ;;  %23388 = vst [vmem:[#allocation78_spill] sm:$0xff] %v17763_v5  ;;  %v17776_v34 = vsel %vm459_vm4, %v520_v26, %v521_v33  ;;  %v17805_v26 = vsel %vm459_vm4, %v521_v33, %v523_v1  ;;  %v531_v48 = vrot.slane %v17789_v4, 1  ;;  %v17822_v33 = vld [vmem:[#allocation2 + $0x170] sm:$0xff] }
  0x6b   :  { %13912 = vmatmul.mubr.msk.f32.gmra.mrb[20].mxu0 %vm93_vm1, %v17739_v51  ;;  %237 = vst.msk [vmem:[#allocation2 + $0x2d9] sm:$0xff] %vm93_vm1, %v17763_v5  ;;  %23389 = vst [vmem:[#allocation79_spill] sm:$0xff] %v17772_v9  ;;  %v17785_v5 = vld [vmem:[%s22760_s0 + $0x1c0] sm:$0xff]  ;;  %v528_v51 = vrot.slane %v17780_v59, 1  ;;  %v536_v57 = vrot.slane %v17822_v33, 1 }
  0x6c   :  { %13914 = vmatprep.mubr.msk.f32.mxu0 %vm93_vm1, %v17743_v27  ;;  %23390 = vst [vmem:[#allocation80_spill] sm:$0xff] %v17776_v34  ;;  %23391 = vst [vmem:[#allocation81_spill] sm:$0xff] %v17785_v5  ;;  %v17787_v27 = vld [vmem:[#allocation2 + $0x150] sm:$0xff] }
  0x6d   :  { %238 = vst.msk [vmem:[#allocation2 + $0x2e9] sm:$0xff] %vm93_vm1, %v17785_v5  ;;  %23392 = vst [vmem:[#allocation82_spill] sm:$0xff] %v17796_v16  ;;  %v17809_v5 = vsel %vm459_vm4, %v525_v44, %v526_v0  ;;  %v530_v25 = vrot.slane %v17787_v27, 1  ;;  %v17829_v44 = vld [vmem:[%s22760_s0 + $0x1d8] sm:$0xff]  ;;  %v17838_v1 = vsel %vm459_vm4, %v526_v0, %v528_v51  ;;  %v17858_v0 = vld [vmem:[%s22760_s0 + $0x1e8] sm:$0xff]  ;;  %v538_v51 = vrot.slane %v17846_v55, 1 }
  0x6e   :  { %239 = vst.msk [vmem:[#allocation2 + $0x2f1] sm:$0xff] %vm93_vm1, %v17796_v16  ;;  %23393 = vst [vmem:[#allocation83_spill] sm:$0xff] %v17805_v26  ;;  %v17818_v16 = vld [vmem:[%s22760_s0 + $0x1d0] sm:$0xff] }
  0x6f   :  { %13915 = vmatmul.mubr.msk.f32.gmra.mrb[22].mxu0 %vm93_vm1, %v17772_v9  ;;  %23394 = vst [vmem:[#allocation84_spill] sm:$0xff] %v17809_v5  ;;  %23395 = vst [vmem:[#allocation85_spill] sm:$0xff] %v17818_v16  ;;  %v533_v9 = vrot.slane %v17813_v36, 1 }
  0x70   :  { %13917 = vmatprep.mubr.msk.f32.mxu0 %vm93_vm1, %v17776_v34  ;;  %v17820_v34 = vld [vmem:[#allocation2 + $0x168] sm:$0xff]  ;;  %240 = vst.msk [vmem:[#allocation2 + $0x301] sm:$0xff] %vm93_vm1, %v17818_v16  ;;  %23396 = vst [vmem:[#allocation86_spill] sm:$0xff] %v17829_v44  ;;  %v17842_v16 = vsel %vm459_vm4, %v530_v25, %v531_v48 }
  0x71   :  { %241 = vst.msk [vmem:[#allocation2 + $0x309] sm:$0xff] %vm93_vm1, %v17829_v44  ;;  %23397 = vst [vmem:[#allocation87_spill] sm:$0xff] %v17838_v1  ;;  %v535_v2 = vrot.slane %v17820_v34, 1  ;;  %v17851_v44 = vld [vmem:[%s22760_s0 + $0x1e0] sm:$0xff]  ;;  %v17867_v25 = vsel %vm459_vm4, %v531_v48, %v533_v9  ;;  %v17959_v48 = vld [vmem:[#allocation2 + $0x1b8] sm:$0xff] }
  0x72   :  { %23398 = vst [vmem:[#allocation88_spill] sm:$0xff] %v17842_v16  ;;  %23399 = vst [vmem:[#allocation89_spill] sm:$0xff] %v17851_v44  ;;  %v17967_v9 = vld [vmem:[#allocation2 + $0x1d0] sm:$0xff] }
  0x73   :  { %13918 = vmatmul.mubr.msk.f32.gmra.mrb[24].mxu0 %vm93_vm1, %v17805_v26  ;;  %242 = vst.msk [vmem:[#allocation2 + $0x319] sm:$0xff] %vm93_vm1, %v17851_v44  ;;  %23400 = vst [vmem:[#allocation90_spill] sm:$0xff] %v17858_v0  ;;  %v17871_v44 = vsel %vm459_vm4, %v535_v2, %v536_v57  ;;  %v17887_v2 = vld [vmem:[%s22759_s1 + $0xc] sm:$0xf]  ;;  %v17999_v26 = vld [vmem:[#allocation2 + $0x230] sm:$0xff] }
  0x74   :  { %13920 = vmatprep.mubr.msk.f32.mxu0 %vm93_vm1, %v17809_v5  ;;  %243 = vst.msk [vmem:[#allocation2 + $0x321] sm:$0xff] %vm93_vm1, %v17858_v0  ;;  %23401 = vst [vmem:[#allocation91_spill] sm:$0xff] %v17867_v25  ;;  %v17975_v0 = vld [vmem:[#allocation2 + $0x1e8] sm:$0xff] }
  0x75   :  { %23402 = vst [vmem:[#allocation92_spill] sm:$0xff] %v17871_v44  ;;  %v17993_v5 = vld [vmem:[#allocation2 + $0x228] sm:$0xff]  ;;  %23409 = vst [vmem:[#allocation99_spill] sm:$0xff] %v17999_v26 }
  0x76   :  { %23408 = vst [vmem:[#allocation98_spill] sm:$0xff] %v17993_v5  ;;  %23410 = vst [vmem:[#allocation100_spill] sm:$0xff] %v18001_v49 }
  0x77   :  { %13921 = vmatmul.mubr.msk.f32.gmra.mrb[26].mxu0 %vm93_vm1, %v17838_v1  ;;  %v17878_v1 = vsel %vm459_vm4, %v536_v57, %v538_v51  ;;  %v17953_v57 = vld [vmem:[#allocation2 + $0x1b0] sm:$0xff]  ;;  %v17969_v51 = vld [vmem:[#allocation2 + $0x1e0] sm:$0xff]  ;;  %23411 = vst [vmem:[#allocation101_spill] sm:$0xff] %v18007_v47  ;;  %23412 = vst [vmem:[#allocation102_spill] sm:$0xff] %v18009_v42 }
  0x78   :  { %13923 = vmatprep.mubr.msk.f32.mxu0 %vm93_vm1, %v17842_v16  ;;  %23403 = vst [vmem:[#allocation93_spill] sm:$0xff] %v17878_v1  ;;  %v17991_v16 = vld [vmem:[#allocation2 + $0x218] sm:$0xff] }
  0x79   :  { %23407 = vst [vmem:[#allocation97_spill] sm:$0xff] %v17991_v16 }
  0x7b   :  { %13924 = vmatmul.mubr.msk.f32.gmra.mrb[28].mxu0 %vm93_vm1, %v17867_v25  ;;  %v17985_v25 = vld [vmem:[#allocation2 + $0x210] sm:$0xff] }
  0x7c   :  { %13926 = vmatprep.mubr.msk.f32.mxu0 %vm93_vm1, %v17871_v44  ;;  %v17983_v44 = vld [vmem:[#allocation2 + $0x200] sm:$0xff]  ;;  %23406 = vst [vmem:[#allocation96_spill] sm:$0xff] %v17985_v25 }
  0x7d   :  { %23405 = vst [vmem:[#allocation95_spill] sm:$0xff] %v17983_v44 }
  0x7f   :  { %13927 = vmatmul.mubr.msk.f32.gmra.mrb[30].mxu0 %vm93_vm1, %v17878_v1  ;;  %v17977_v1 = vld [vmem:[#allocation2 + $0x1f8] sm:$0xff] }
  0x80   :  { %13979 = vmatprep.mubr.msk.f32.mxu0 %vm93_vm1, %v17293_v24  ;;  %23404 = vst [vmem:[#allocation94_spill] sm:$0xff] %v17977_v1 }
  0x83   :  { %13980 = vmatmul.mubr.msk.f32.vlgmr.msra.gmra.mrb[0].mxu0 %vm93_vm1, %v17275_v21 }
  0x84   :  { %14076 = vmatpush3.msk.msra.mxu0 %vm748_vm0, %v17458_v56  ;;  %13982 = vmatprep.mubr.msk.f32.mxu0 %vm93_vm1, %v17313_v30  ;;  %v17961_v56 = vld [vmem:[#allocation2 + $0x1c8] sm:$0xff] }
  0x85   :  { %14173 = vmatprep.subr.msk.mxu0 %vm748_vm0, %v17887_v2 }
  0x87   :  { %13983 = vmatmul.mubr.msk.f32.gmra.mrb[2].mxu0 %vm93_vm1, %v17315_v31 }
  0x88   :  { %13985 = vmatprep.mubr.msk.f32.mxu0 %vm93_vm1, %v17328_v38 }
  0x8b   :  { %13986 = vmatmul.mubr.msk.f32.gmra.mrb[4].mxu0 %vm93_vm1, %v17330_v39 }
  0x8c   :  { %13988 = vmatprep.mubr.msk.f32.mxu0 %vm93_vm1, %v17341_v45 }
  0x8f   :  { %13989 = vmatmul.mubr.msk.f32.gmra.mrb[6].mxu0 %vm93_vm1, %v17343_v46 }
  0x90   :  { %13991 = vmatprep.mubr.msk.f32.mxu0 %vm93_vm1, %v17361_v53 }
  0x93   :  { %13992 = vmatmul.mubr.msk.f32.gmra.mrb[8].mxu0 %vm93_vm1, %v17363_v54 }
  0x94   :  { %13994 = vmatprep.mubr.msk.f32.mxu0 %vm93_vm1, %v17380_v61 }
  0x97   :  { %13995 = vmatmul.mubr.msk.f32.gmra.mrb[10].mxu0 %vm93_vm1, %v17382_v62 }
  0x98   :  { %13997 = vmatprep.mubr.msk.f32.mxu0 %vm93_vm1, %v17399_v28 }
  0x9b   :  { %13998 = vmatmul.mubr.msk.f32.gmra.mrb[12].mxu0 %vm93_vm1, %v17401_v32 }
  0x9c   :  { %14000 = vmatprep.mubr.msk.f32.mxu0 %vm93_vm1, %v17481_v50 }
  0x9f   :  { %14001 = vmatmul.mubr.msk.f32.gmra.mrb[14].mxu0 %vm93_vm1, %v17483_v43 }
  0xa0   :  { %14003 = vmatprep.mubr.msk.f32.mxu0 %vm93_vm1, %v17584_v22 }
  0xa3   :  { %14004 = vmatmul.mubr.msk.f32.gmra.mrb[16].mxu0 %vm93_vm1, %v17586_v41 }
  0xa4   :  { %14006 = vmatprep.mubr.msk.f32.mxu0 %vm93_vm1, %v17603_v18 }
  0xa7   :  { %14007 = vmatmul.mubr.msk.f32.gmra.mrb[18].mxu0 %vm93_vm1, %v17605_v17 }
  0xa8   :  { %14009 = vmatprep.mubr.msk.f32.mxu0 %vm93_vm1, %v17653_v11 }
  0xab   :  { %14010 = vmatmul.mubr.msk.f32.gmra.mrb[20].mxu0 %vm93_vm1, %v17655_v10 }
  0xac   :  { %14012 = vmatprep.mubr.msk.f32.mxu0 %vm93_vm1, %v17688_v7 }
  0xaf   :  { %14013 = vmatmul.mubr.msk.f32.gmra.mrb[22].mxu0 %vm93_vm1, %v17690_v20 }
  0xb0   :  { %14015 = vmatprep.mubr.msk.f32.mxu0 %vm93_vm1, %v17721_v12 }
  0xb3   :  { %14016 = vmatmul.mubr.msk.f32.gmra.mrb[24].mxu0 %vm93_vm1, %v17723_v14 }
  0xb4   :  { %14018 = vmatprep.mubr.msk.f32.mxu0 %vm93_vm1, %v17754_v15 }
  0xb7   :  { %14019 = vmatmul.mubr.msk.f32.gmra.mrb[26].mxu0 %vm93_vm1, %v17756_v6 }
  0xb8   :  { %14021 = vmatprep.mubr.msk.f32.mxu0 %vm93_vm1, %v17787_v27 }
  0xbb   :  { %14022 = vmatmul.mubr.msk.f32.gmra.mrb[28].mxu0 %vm93_vm1, %v17789_v4 }
  0xbc   :  { %14024 = vmatprep.mubr.msk.f32.mxu0 %vm93_vm1, %v17820_v34 }
  0xbf   :  { %14025 = vmatmul.mubr.msk.f32.gmra.mrb[30].mxu0 %vm93_vm1, %v17822_v33 }
  0xc0   :  { %14027 = vmatprep.mubr.msk.f32.mxu0 %vm93_vm1, %v17953_v57 }
  0xc3   :  { %14028 = vmatmul.mubr.msk.f32.gmra.mrb[32].mxu0 %vm93_vm1, %v17959_v48 }
  0xc4   :  { %14030 = vmatprep.mubr.msk.f32.mxu0 %vm93_vm1, %v17961_v56 }
  0xc7   :  { %14031 = vmatmul.mubr.msk.f32.gmra.mrb[34].mxu0 %vm93_vm1, %v17967_v9 }
  0xc8   :  { %14033 = vmatprep.mubr.msk.f32.mxu0 %vm93_vm1, %v17969_v51 }
  0xcb   :  { %14034 = vmatmul.mubr.msk.f32.gmra.mrb[36].mxu0 %vm93_vm1, %v17975_v0 }
  0xcc   :  { %14036 = vmatprep.mubr.msk.f32.mxu0 %vm93_vm1, %v17977_v1  ;;  %v1660_v1 = vrot.slane %v17315_v31, 2 }
  0xcf   :  { %14037 = vmatmul.mubr.msk.f32.gmra.mrb[38].mxu0 %vm93_vm1, %v17983_v44  ;;  %v1659_v44 = vrot.slane %v17313_v30, 2  ;;  %v18100_v30 = vld [vmem:[%s22759_s1 + $0x10] sm:$0xf] }
  0xd0   :  { %14039 = vmatprep.mubr.msk.f32.mxu0 %vm93_vm1, %v17985_v25  ;;  %v1654_v25 = vrot.slane %v17293_v24, 2  ;;  %v1662_v24 = vrot.slane %v17324_v35, 2  ;;  %v1667_v35 = vrot.slane %v17332_v40, 2  ;;  %v1672_v40 = vrot.slane %v17359_v52, 2 }
  0xd2   :  { %v18108_v31 = vsel %vm1653_vm5, %v1660_v1, %v1662_v24  ;;  %v1687_v24 = vrot.slane %v17462_v58, 2 }
  0xd3   :  { %14040 = vmatmul.mubr.msk.f32.gmra.mrb[40].mxu0 %vm93_vm1, %v17991_v16  ;;  %v18017_v16 = vld [vmem:[#allocation2 + $0x270] sm:$0xff]  ;;  %23429 = vst [vmem:[#allocation119_spill] sm:$0xff] %v18108_v31 }
  0xd4   :  { %14042 = vmatprep.mubr.msk.f32.mxu0 %vm93_vm1, %v17993_v5  ;;  %v18015_v5 = vld [vmem:[#allocation2 + $0x260] sm:$0xff]  ;;  %23414 = vst [vmem:[#allocation104_spill] sm:$0xff] %v18017_v16 }
  0xd5   :  { %23413 = vst [vmem:[#allocation103_spill] sm:$0xff] %v18015_v5 }
  0xd7   :  { %14043 = vmatmul.mubr.msk.f32.gmra.mrb[42].mxu0 %vm93_vm1, %v17999_v26  ;;  %v18025_v26 = vld [vmem:[#allocation2 + $0x288] sm:$0xff] }
  0xd8   :  { %14045 = vmatprep.mubr.msk.f32.mxu0 %vm93_vm1, %v18001_v49  ;;  %v18023_v49 = vld [vmem:[#allocation2 + $0x278] sm:$0xff]  ;;  %23416 = vst [vmem:[#allocation106_spill] sm:$0xff] %v18025_v26 }
  0xd9   :  { %23415 = vst [vmem:[#allocation105_spill] sm:$0xff] %v18023_v49 }
  0xdb   :  { %14046 = vmatmul.mubr.msk.f32.gmra.mrb[44].mxu0 %vm93_vm1, %v18007_v47  ;;  %v18033_v47 = vld [vmem:[#allocation2 + $0x2a0] sm:$0xff] }
  0xdc   :  { %14048 = vmatprep.mubr.msk.f32.mxu0 %vm93_vm1, %v18009_v42  ;;  %v18031_v42 = vld [vmem:[#allocation2 + $0x290] sm:$0xff]  ;;  %23418 = vst [vmem:[#allocation108_spill] sm:$0xff] %v18033_v47 }
  0xdd   :  { %23417 = vst [vmem:[#allocation107_spill] sm:$0xff] %v18031_v42 }
  0xdf   :  { %14049 = vmatmul.mubr.msk.f32.gmra.mrb[46].mxu0 %vm93_vm1, %v18015_v5  ;;  %v18041_v5 = vld [vmem:[#allocation2 + $0x2b8] sm:$0xff] }
  0xe0   :  { %14051 = vmatprep.mubr.msk.f32.mxu0 %vm93_vm1, %v18017_v16  ;;  %v18039_v16 = vld [vmem:[#allocation2 + $0x2a8] sm:$0xff]  ;;  %23420 = vst [vmem:[#allocation110_spill] sm:$0xff] %v18041_v5 }
  0xe1   :  { %23419 = vst [vmem:[#allocation109_spill] sm:$0xff] %v18039_v16 }
  0xe3   :  { %14052 = vmatmul.mubr.msk.f32.gmra.mrb[48].mxu0 %vm93_vm1, %v18023_v49  ;;  %v18049_v49 = vld [vmem:[#allocation2 + $0x2d0] sm:$0xff] }
  0xe4   :  { %14054 = vmatprep.mubr.msk.f32.mxu0 %vm93_vm1, %v18025_v26  ;;  %v18047_v26 = vld [vmem:[#allocation2 + $0x2c0] sm:$0xff]  ;;  %23422 = vst [vmem:[#allocation112_spill] sm:$0xff] %v18049_v49 }
  0xe5   :  { %23421 = vst [vmem:[#allocation111_spill] sm:$0xff] %v18047_v26 }
  0xe7   :  { %14055 = vmatmul.mubr.msk.f32.gmra.mrb[50].mxu0 %vm93_vm1, %v18031_v42  ;;  %v18057_v42 = vld [vmem:[#allocation2 + $0x2e8] sm:$0xff] }
  0xe8   :  { %14057 = vmatprep.mubr.msk.f32.mxu0 %vm93_vm1, %v18033_v47  ;;  %v18055_v47 = vld [vmem:[#allocation2 + $0x2d8] sm:$0xff]  ;;  %23424 = vst [vmem:[#allocation114_spill] sm:$0xff] %v18057_v42 }
  0xe9   :  { %23423 = vst [vmem:[#allocation113_spill] sm:$0xff] %v18055_v47 }
  0xeb   :  { %14058 = vmatmul.mubr.msk.f32.gmra.mrb[52].mxu0 %vm93_vm1, %v18039_v16  ;;  %v18065_v16 = vld [vmem:[#allocation2 + $0x300] sm:$0xff] }
  0xec   :  { %14060 = vmatprep.mubr.msk.f32.mxu0 %vm93_vm1, %v18041_v5  ;;  %v18063_v5 = vld [vmem:[#allocation2 + $0x2f0] sm:$0xff]  ;;  %23426 = vst [vmem:[#allocation116_spill] sm:$0xff] %v18065_v16 }
  0xed   :  { %23425 = vst [vmem:[#allocation115_spill] sm:$0xff] %v18063_v5 }
  0xef   :  { %14061 = vmatmul.mubr.msk.f32.gmra.mrb[54].mxu0 %vm93_vm1, %v18047_v26  ;;  %v18073_v26 = vld [vmem:[#allocation2 + $0x318] sm:$0xff] }
  0xf0   :  { %14063 = vmatprep.mubr.msk.f32.mxu0 %vm93_vm1, %v18049_v49  ;;  %v18071_v49 = vld [vmem:[#allocation2 + $0x308] sm:$0xff]  ;;  %23427 = vst [vmem:[#allocation117_spill] sm:$0xff] %v18073_v26 }
  0xf3   :  { %14064 = vmatmul.mubr.msk.f32.gmra.mrb[56].mxu0 %vm93_vm1, %v18055_v47  ;;  %v1655_v47 = vrot.slane %v17275_v21, 2 }
  0xf4   :  { %14066 = vmatprep.mubr.msk.f32.mxu0 %vm93_vm1, %v18057_v42  ;;  %v1657_v42 = vrot.slane %v17311_v29, 2  ;;  %v18093_v29 = vsel %vm1653_vm5, %v1659_v44, %v1660_v1  ;;  %v1677_v44 = vrot.slane %v17378_v60, 2  ;;  %v1679_v1 = vrot.slane %v17380_v61, 2 }
  0xf5   :  { %23428 = vst [vmem:[#allocation118_spill] sm:$0xff] %v18093_v29  ;;  %v1685_v61 = vrot.slane %v17401_v32, 2 }
  0xf6   :  { %v1658_v21 = vsel %vm1653_vm5, %v1655_v47, %v1657_v42  ;;  %v1670_v42 = vrot.slane %v17343_v46, 2  ;;  %v1675_v46 = vrot.slane %v17363_v54, 2 }
  0xf7   :  { %14067 = vmatmul.mubr.msk.f32.gmra.mrb[58].mxu0 %vm93_vm1, %v18063_v5  ;;  %v18082_v5 = vld [vmem:[#allocation2 + $0x320] sm:$0xff]  ;;  %v18175_v32 = vsel %vm1653_vm5, %v1685_v61, %v1687_v24  ;;  %v1710_v24 = vrot.slane %v17690_v20, 2 }
  0xf8   :  { %14069 = vmatprep.mubr.msk.f32.mxu0 %vm93_vm1, %v18065_v16  ;;  %v1656_v16 = vsel %vm1653_vm5, %v1654_v25, %v1655_v47  ;;  %v1665_v25 = vrot.slane %v17330_v39, 2  ;;  %v1669_v39 = vrot.slane %v17341_v45, 2  ;;  %v1674_v45 = vrot.slane %v17361_v53, 2  ;;  %23439 = vst [vmem:[#allocation129_spill] sm:$0xff] %v18175_v32 }
  0xf9   :  { %v1680_v53 = vrot.slane %v17382_v62, 2  ;;  %v18149_v54 = vsel %vm1653_vm5, %v1675_v46, %v1677_v44  ;;  %v1702_v44 = vrot.slane %v17635_v13, 2 }
  0xfa   :  { %v18123_v47 = vsel %vm1653_vm5, %v1665_v25, %v1667_v35  ;;  %v18140_v52 = vsel %vm1653_vm5, %v1674_v45, %v1675_v46  ;;  %23435 = vst [vmem:[#allocation125_spill] sm:$0xff] %v18149_v54  ;;  %v1692_v35 = vrot.slane %v17582_v23, 2  ;;  %v1700_v45 = vrot.slane %v17605_v17, 2 }
  0xfb   :  { %14070 = vmatmul.mubr.msk.f32.gmra.mrb[60].mxu0 %vm93_vm1, %v18071_v49  ;;  %23431 = vst [vmem:[#allocation121_spill] sm:$0xff] %v18123_v47  ;;  %23434 = vst [vmem:[#allocation124_spill] sm:$0xff] %v18140_v52  ;;  %v18153_v60 = vsel %vm1653_vm5, %v1679_v1, %v1680_v53  ;;  %v1704_v1 = vrot.slane %v17653_v11, 2 }
  0xfc   :  { %14072 = vmatprep.mubr.msk.f32.mxu0 %vm93_vm1, %v18073_v26  ;;  %v1664_v26 = vrot.slane %v17328_v38, 2  ;;  %23436 = vst [vmem:[#allocation126_spill] sm:$0xff] %v18153_v60 }
  0xfe   :  { %v18112_v38 = vsel %vm1653_vm5, %v1664_v26, %v1665_v25  ;;  %v18136_v26 = vsel %vm1653_vm5, %v1670_v42, %v1672_v40  ;;  %v1689_v25 = vrot.slane %v17481_v50, 2  ;;  %v1695_v50 = vrot.slane %v17586_v41, 2 }
  0xff   :  { %14073 = vmatmul.mubr.msk.f32.gmra.mrb[62].mxu0 %vm93_vm1, %v18082_v5  ;;  %23430 = vst [vmem:[#allocation120_spill] sm:$0xff] %v18112_v38  ;;  %23433 = vst [vmem:[#allocation123_spill] sm:$0xff] %v18136_v26  ;;  %v1699_v40 = vrot.slane %v17603_v18, 2 }
 0x100   :  { %14077 = vmatprep.mubr.msk.f32.mxu0 %vm93_vm1, %v1656_v16  ;;  %v18127_v16 = vsel %vm1653_vm5, %v1669_v39, %v1670_v42  ;;  %v1694_v39 = vrot.slane %v17584_v22, 2  ;;  %v1697_v42 = vrot.slane %v17601_v19, 2 }
 0x101   :  { %23432 = vst [vmem:[#allocation122_spill] sm:$0xff] %v18127_v16  ;;  %v18205_v19 = vsel %vm1653_vm5, %v1699_v40, %v1700_v45  ;;  %v1719_v40 = vrot.slane %v17754_v15, 2 }
 0x102   :  { %v18192_v23 = vsel %vm1653_vm5, %v1694_v39, %v1695_v50  ;;  %v18201_v46 = vsel %vm1653_vm5, %v1695_v50, %v1697_v42  ;;  %23444 = vst [vmem:[#allocation134_spill] sm:$0xff] %v18205_v19  ;;  %v1715_v39 = vrot.slane %v17723_v14, 2  ;;  %v1717_v42 = vrot.slane %v17747_v37, 2 }
 0x103   :  { %14078 = vmatmul.mubr.msk.f32.vlgmr.msra.gmra.mrb[0].mxu0 %vm93_vm1, %v1658_v21  ;;  %v1684_v21 = vrot.slane %v17399_v28, 2  ;;  %v1690_v28 = vrot.slane %v17483_v43, 2  ;;  %23442 = vst [vmem:[#allocation132_spill] sm:$0xff] %v18192_v23  ;;  %23443 = vst [vmem:[#allocation133_spill] sm:$0xff] %v18201_v46 }
 0x104   :  { %14174 = vmatpush3.msk.msra.mxu0 %vm748_vm0, %v17887_v2  ;;  %14080 = vmatprep.mubr.msk.f32.mxu0 %vm93_vm1, %v18093_v29  ;;  %v1682_v2 = vrot.slane %v17386_v63, 2  ;;  %v23507_v29 = vld [vmem:[#allocation113_spill] sm:$0xff] }
 0x105   :  { %14271 = vmatprep.subr.msk.mxu0 %vm748_vm0, %v18100_v30  ;;  %v18166_v63 = vsel %vm1653_vm5, %v1684_v21, %v1685_v61  ;;  %v18179_v58 = vsel %vm1653_vm5, %v1689_v25, %v1690_v28  ;;  %v18188_v43 = vsel %vm1653_vm5, %v1690_v28, %v1692_v35  ;;  %v1707_v21 = vrot.slane %v17681_v8, 2 }
 0x106   :  { %v18162_v62 = vsel %vm1653_vm5, %v1680_v53, %v1682_v2  ;;  %23438 = vst [vmem:[#allocation128_spill] sm:$0xff] %v18166_v63  ;;  %23440 = vst [vmem:[#allocation130_spill] sm:$0xff] %v18179_v58  ;;  %v1705_v53 = vrot.slane %v17655_v10, 2  ;;  %v18214_v2 = vsel %vm1653_vm5, %v1700_v45, %v1702_v44  ;;  %v1709_v61 = vrot.slane %v17688_v7, 2 }
 0x107   :  { %14081 = vmatmul.mubr.msk.f32.gmra.mrb[2].mxu0 %vm93_vm1, %v18108_v31  ;;  %23437 = vst [vmem:[#allocation127_spill] sm:$0xff] %v18162_v62  ;;  %23441 = vst [vmem:[#allocation131_spill] sm:$0xff] %v18188_v43  ;;  %v1712_v28 = vrot.slane %v17714_v3, 2  ;;  %v1714_v35 = vrot.slane %v17721_v12, 2  ;;  %v1720_v45 = vrot.slane %v17756_v6, 2  ;;  %v18253_v44 = vsel %vm1653_vm5, %v1715_v39, %v1717_v42  ;;  %v18284_v42 = vld [vmem:[%s22760_s0 + $0xf8] sm:$0xff] }
 0x108   :  { %14083 = vmatprep.mubr.msk.f32.mxu0 %vm93_vm1, %v18112_v38  ;;  %23445 = vst [vmem:[#allocation135_spill] sm:$0xff] %v18214_v2  ;;  %v18218_v13 = vsel %vm1653_vm5, %v1704_v1, %v1705_v53  ;;  %v18227_v25 = vsel %vm1653_vm5, %v1705_v53, %v1707_v21  ;;  %v18231_v8 = vsel %vm1653_vm5, %v1709_v61, %v1710_v24  ;;  %23451 = vst [vmem:[#allocation141_spill] sm:$0xff] %v18253_v44  ;;  %v18457_v31 = vld [vmem:[#allocation2 + $0x2c8] sm:$0x3] }
 0x109   :  { %23446 = vst [vmem:[#allocation136_spill] sm:$0xff] %v18218_v13  ;;  %23447 = vst [vmem:[#allocation137_spill] sm:$0xff] %v18227_v25  ;;  %v18240_v50 = vsel %vm1653_vm5, %v1710_v24, %v1712_v28  ;;  %v18244_v3 = vsel %vm1653_vm5, %v1714_v35, %v1715_v39  ;;  %v1722_v1 = vrot.slane %v17780_v59, 2  ;;  %v18257_v37 = vsel %vm1653_vm5, %v1719_v40, %v1720_v45  ;;  %v18277_v39 = vld [vmem:[%s22760_s0 + $0xf0] sm:$0xff] }
 0x10a   :  { %23448 = vst [vmem:[#allocation138_spill] sm:$0xff] %v18231_v8  ;;  %23449 = vst [vmem:[#allocation139_spill] sm:$0xff] %v18240_v50  ;;  %v1724_v53 = vrot.slane %v17787_v27, 2  ;;  %v1725_v21 = vrot.slane %v17789_v4, 2  ;;  %v1727_v24 = vrot.slane %v17813_v36, 2  ;;  %v1729_v28 = vrot.slane %v17820_v34, 2 }
 0x10b   :  { %14084 = vmatmul.mubr.msk.f32.gmra.mrb[4].mxu0 %vm93_vm1, %v18123_v47  ;;  %23450 = vst [vmem:[#allocation140_spill] sm:$0xff] %v18244_v3  ;;  %23452 = vst [vmem:[#allocation142_spill] sm:$0xff] %v18257_v37  ;;  %v18266_v61 = vsel %vm1653_vm5, %v1720_v45, %v1722_v1  ;;  %v1730_v35 = vrot.slane %v17822_v33, 2  ;;  %v1732_v40 = vrot.slane %v17846_v55, 2  ;;  %v1734_v45 = vrot.slane %v17953_v57, 2  ;;  %v23502_v47 = vld [vmem:[#allocation111_spill] sm:$0xff] }
 0x10c   :  { %14086 = vmatprep.mubr.msk.f32.mxu0 %vm93_vm1, %v18127_v16  ;;  %23453 = vst [vmem:[#allocation143_spill] sm:$0xff] %v18266_v61  ;;  %v18270_v59 = vsel %vm1653_vm5, %v1724_v53, %v1725_v21  ;;  %23455 = vst [vmem:[#allocation145_spill] sm:$0xff] %v18277_v39  ;;  %v18293_v36 = vsel %vm1653_vm5, %v1725_v21, %v1727_v24  ;;  %v1735_v1 = vrot.slane %v17959_v48, 2  ;;  %v1739_v55 = vrot.slane %v17961_v56, 2  ;;  %v18311_v24 = vld [vmem:[#allocation2 + $0x1d8] sm:$0x3] }
 0x10d   :  { %23454 = vst [vmem:[#allocation144_spill] sm:$0xff] %v18270_v59  ;;  %212 = vst.msk [vmem:[#allocation2 + $0x181] sm:$0xff] %vm93_vm1, %v18277_v39  ;;  %v18299_v53 = vsel %vm1653_vm5, %v1729_v28, %v1730_v35  ;;  %v311_v39 = vld [vmem:[#allocation2 + $0x1c0] sm:$0x3]  ;;  %v1740_v57 = vrot.slane %v17967_v9, 2  ;;  %v1790_v38 = vrot.slane %v23502_v47, 2 }
 0x10e   :  { %23456 = vst [vmem:[#allocation146_spill] sm:$0xff] %v18284_v42  ;;  %213 = vst.msk [vmem:[#allocation2 + $0x189] sm:$0xff] %vm93_vm1, %v18284_v42  ;;  %v18306_v42 = vsel %vm1653_vm5, %v1730_v35, %v1732_v40  ;;  %v1737_v21 = vrot.slane %v311_v39, 2  ;;  %v1736_v48 = vsel %vm1653_vm5, %v1734_v45, %v1735_v1  ;;  %v1744_v39 = vrot.slane %v17969_v51, 2  ;;  %v18442_v16 = vld [vmem:[#allocation2 + $0x2b0] sm:$0x3] }
 0x10f   :  { %14087 = vmatmul.mubr.msk.f32.gmra.mrb[6].mxu0 %vm93_vm1, %v18136_v26  ;;  %23457 = vst [vmem:[#allocation147_spill] sm:$0xff] %v18293_v36  ;;  %23458 = vst [vmem:[#allocation148_spill] sm:$0xff] %v18299_v53  ;;  %v18319_v35 = vsel %vm1653_vm5, %v1739_v55, %v1740_v57  ;;  %v1745_v40 = vrot.slane %v17975_v0, 2  ;;  %v23463_v55 = vld [vmem:[#allocation94_spill] sm:$0xff] }
 0x110   :  { %14089 = vmatprep.mubr.msk.f32.mxu0 %vm93_vm1, %v18140_v52  ;;  %23459 = vst [vmem:[#allocation149_spill] sm:$0xff] %v18306_v42  ;;  %v1738_v28 = vsel %vm1653_vm5, %v1735_v1, %v1737_v21  ;;  %23460 = vst [vmem:[#allocation150_spill] sm:$0xff] %v18319_v35  ;;  %v23497_v52 = vld [vmem:[#allocation109_spill] sm:$0xff] }
 0x111   :  { %v18333_v21 = vsel %vm1653_vm5, %v1744_v39, %v1745_v40  ;;  %v23467_v39 = vld [vmem:[#allocation96_spill] sm:$0xff]  ;;  %v1785_v26 = vrot.slane %v23497_v52, 2 }
 0x112   :  { %23462 = vst [vmem:[#allocation152_spill] sm:$0xff] %v18333_v21 }
 0x113   :  { %14090 = vmatmul.mubr.msk.f32.gmra.mrb[8].mxu0 %vm93_vm1, %v18149_v54  ;;  %v18427_v54 = vld [vmem:[#allocation2 + $0x298] sm:$0x3] }
 0x114   :  { %14092 = vmatprep.mubr.msk.f32.mxu0 %vm93_vm1, %v18153_v60 }
 0x117   :  { %14093 = vmatmul.mubr.msk.f32.gmra.mrb[10].mxu0 %vm93_vm1, %v18162_v62  ;;  %v23492_v62 = vld [vmem:[#allocation107_spill] sm:$0xff] }
 0x118   :  { %14095 = vmatprep.mubr.msk.f32.mxu0 %vm93_vm1, %v18166_v63  ;;  %v18412_v63 = vld [vmem:[#allocation2 + $0x280] sm:$0x3]  ;;  %v1780_v60 = vrot.slane %v23492_v62, 2 }
 0x11b   :  { %14096 = vmatmul.mubr.msk.f32.gmra.mrb[12].mxu0 %vm93_vm1, %v18175_v32 }
 0x11c   :  { %14098 = vmatprep.mubr.msk.f32.mxu0 %vm93_vm1, %v18179_v58  ;;  %v23487_v58 = vld [vmem:[#allocation105_spill] sm:$0xff] }
 0x11d   :  { %v1775_v32 = vrot.slane %v23487_v58, 2 }
 0x11f   :  { %14099 = vmatmul.mubr.msk.f32.gmra.mrb[14].mxu0 %vm93_vm1, %v18188_v43  ;;  %v18397_v43 = vld [vmem:[#allocation2 + $0x268] sm:$0x3] }
 0x120   :  { %14101 = vmatprep.mubr.msk.f32.mxu0 %vm93_vm1, %v18192_v23 }
 0x123   :  { %14102 = vmatmul.mubr.msk.f32.gmra.mrb[16].mxu0 %vm93_vm1, %v18201_v46  ;;  %v23482_v46 = vld [vmem:[#allocation103_spill] sm:$0xff] }
 0x124   :  { %14104 = vmatprep.mubr.msk.f32.mxu0 %vm93_vm1, %v18205_v19  ;;  %v18382_v19 = vld [vmem:[#allocation2 + $0x250] sm:$0x3]  ;;  %v1770_v23 = vrot.slane %v23482_v46, 2 }
 0x127   :  { %14105 = vmatmul.mubr.msk.f32.gmra.mrb[18].mxu0 %vm93_vm1, %v18214_v2 }
 0x128   :  { %14107 = vmatprep.mubr.msk.f32.mxu0 %vm93_vm1, %v18218_v13  ;;  %v23477_v13 = vld [vmem:[#allocation101_spill] sm:$0xff] }
 0x129   :  { %v1765_v2 = vrot.slane %v23477_v13, 2 }
 0x12b   :  { %14108 = vmatmul.mubr.msk.f32.gmra.mrb[20].mxu0 %vm93_vm1, %v18227_v25  ;;  %v18367_v25 = vld [vmem:[#allocation2 + $0x238] sm:$0x3] }
 0x12c   :  { %14110 = vmatprep.mubr.msk.f32.mxu0 %vm93_vm1, %v18231_v8 }
 0x12f   :  { %14111 = vmatmul.mubr.msk.f32.gmra.mrb[22].mxu0 %vm93_vm1, %v18240_v50  ;;  %v23472_v50 = vld [vmem:[#allocation99_spill] sm:$0xff] }
 0x130   :  { %14113 = vmatprep.mubr.msk.f32.mxu0 %vm93_vm1, %v18244_v3  ;;  %v18352_v3 = vld [vmem:[#allocation2 + $0x220] sm:$0x3]  ;;  %v1760_v8 = vrot.slane %v23472_v50, 2 }
 0x133   :  { %14114 = vmatmul.mubr.msk.f32.gmra.mrb[24].mxu0 %vm93_vm1, %v18253_v44 }
 0x134   :  { %14116 = vmatprep.mubr.msk.f32.mxu0 %vm93_vm1, %v18257_v37  ;;  %v23468_v37 = vld [vmem:[#allocation97_spill] sm:$0xff] }
 0x135   :  { %v1755_v44 = vrot.slane %v23468_v37, 2 }
 0x137   :  { %14117 = vmatmul.mubr.msk.f32.gmra.mrb[26].mxu0 %vm93_vm1, %v18266_v61  ;;  %v18337_v61 = vld [vmem:[#allocation2 + $0x208] sm:$0x3] }
 0x138   :  { %14119 = vmatprep.mubr.msk.f32.mxu0 %vm93_vm1, %v18270_v59 }
 0x13b   :  { %14120 = vmatmul.mubr.msk.f32.gmra.mrb[28].mxu0 %vm93_vm1, %v18293_v36  ;;  %v18323_v36 = vld [vmem:[#allocation2 + $0x1f0] sm:$0x3] }
 0x13c   :  { %14122 = vmatprep.mubr.msk.f32.mxu0 %vm93_vm1, %v18299_v53  ;;  %v1742_v53 = vrot.slane %v18311_v24, 2  ;;  %v1747_v1 = vrot.slane %v18323_v36, 2 }
 0x13e   :  { %v18329_v45 = vsel %vm1653_vm5, %v1740_v57, %v1742_v53  ;;  %v18344_v53 = vsel %vm1653_vm5, %v1745_v40, %v1747_v1  ;;  %v1752_v57 = vrot.slane %v18337_v61, 2  ;;  %v1757_v1 = vrot.slane %v18352_v3, 2 }
 0x13f   :  { %14123 = vmatmul.mubr.msk.f32.gmra.mrb[30].mxu0 %vm93_vm1, %v18306_v42  ;;  %23461 = vst [vmem:[#allocation151_spill] sm:$0xff] %v18329_v45  ;;  %v23464_v42 = vld [vmem:[#allocation95_spill] sm:$0xff]  ;;  %23465 = vst [vmem:[#allocation94_spill] sm:$0xff] %v18344_v53 }
 0x140   :  { %14125 = vmatprep.mubr.msk.f32.mxu0 %vm93_vm1, %v1736_v48  ;;  %v1749_v48 = vrot.slane %v23463_v55, 2  ;;  %v1750_v59 = vrot.slane %v23464_v42, 2 }
 0x142   :  { %v18359_v40 = vsel %vm1653_vm5, %v1750_v59, %v1752_v57  ;;  %v1762_v57 = vrot.slane %v18367_v25, 2 }
 0x143   :  { %14126 = vmatmul.mubr.msk.f32.gmra.mrb[32].mxu0 %vm93_vm1, %v1738_v28  ;;  %v18348_v28 = vsel %vm1653_vm5, %v1749_v48, %v1750_v59  ;;  %23469 = vst [vmem:[#allocation96_spill] sm:$0xff] %v18359_v40  ;;  %v18374_v59 = vsel %vm1653_vm5, %v1755_v44, %v1757_v1  ;;  %v1767_v1 = vrot.slane %v18382_v19, 2 }
 0x144   :  { %14128 = vmatprep.mubr.msk.f32.mxu0 %vm93_vm1, %v18319_v35  ;;  %23466 = vst [vmem:[#allocation95_spill] sm:$0xff] %v18348_v28  ;;  %v1754_v35 = vrot.slane %v23467_v39, 2  ;;  %23474 = vst [vmem:[#allocation99_spill] sm:$0xff] %v18374_v59 }
 0x146   :  { %v18363_v48 = vsel %vm1653_vm5, %v1754_v35, %v1755_v44  ;;  %v18389_v44 = vsel %vm1653_vm5, %v1760_v8, %v1762_v57  ;;  %v1772_v57 = vrot.slane %v18397_v43, 2 }
 0x147   :  { %14129 = vmatmul.mubr.msk.f32.gmra.mrb[34].mxu0 %vm93_vm1, %v18329_v45  ;;  %23470 = vst [vmem:[#allocation97_spill] sm:$0xff] %v18363_v48  ;;  %23479 = vst [vmem:[#allocation101_spill] sm:$0xff] %v18389_v44 }
 0x148   :  { %14131 = vmatprep.mubr.msk.f32.mxu0 %vm93_vm1, %v18333_v21  ;;  %v23471_v21 = vld [vmem:[#allocation98_spill] sm:$0xff] }
 0x149   :  { %v1759_v45 = vrot.slane %v23471_v21, 2  ;;  %23473 = vst [vmem:[#allocation98_spill] sm:$0xff] %v18367_v25  ;;  %v18517_v25 = vld [vmem:[#allocation2 + $0x328] sm:$0x3] }
 0x14b   :  { %14132 = vmatmul.mubr.msk.f32.gmra.mrb[36].mxu0 %vm93_vm1, %v18344_v53  ;;  %v18378_v35 = vsel %vm1653_vm5, %v1759_v45, %v1760_v8  ;;  %v18404_v8 = vsel %vm1653_vm5, %v1765_v2, %v1767_v1  ;;  %v1777_v1 = vrot.slane %v18412_v63, 2 }
 0x14c   :  { %14134 = vmatprep.mubr.msk.f32.mxu0 %vm93_vm1, %v18348_v28  ;;  %23475 = vst [vmem:[#allocation153_spill] sm:$0xff] %v18378_v35  ;;  %v23476_v28 = vld [vmem:[#allocation100_spill] sm:$0xff]  ;;  %23484 = vst [vmem:[#allocation103_spill] sm:$0xff] %v18404_v8 }
 0x14d   :  { %v1764_v53 = vrot.slane %v23476_v28, 2  ;;  %23478 = vst [vmem:[#allocation100_spill] sm:$0xff] %v18382_v19  ;;  %v18502_v19 = vld [vmem:[#allocation2 + $0x310] sm:$0x3] }
 0x14f   :  { %14135 = vmatmul.mubr.msk.f32.gmra.mrb[38].mxu0 %vm93_vm1, %v18359_v40  ;;  %v18393_v45 = vsel %vm1653_vm5, %v1764_v53, %v1765_v2  ;;  %v18419_v2 = vsel %vm1653_vm5, %v1770_v23, %v1772_v57  ;;  %v1782_v57 = vrot.slane %v18427_v54, 2 }
 0x150   :  { %14137 = vmatprep.mubr.msk.f32.mxu0 %vm93_vm1, %v18363_v48  ;;  %23480 = vst [vmem:[#allocation154_spill] sm:$0xff] %v18393_v45  ;;  %v23481_v48 = vld [vmem:[#allocation102_spill] sm:$0xff]  ;;  %23489 = vst [vmem:[#allocation105_spill] sm:$0xff] %v18419_v2 }
 0x151   :  { %v1769_v40 = vrot.slane %v23481_v48, 2  ;;  %23483 = vst [vmem:[#allocation102_spill] sm:$0xff] %v18397_v43  ;;  %v18487_v43 = vld [vmem:[#allocation2 + $0x2f8] sm:$0x3] }
 0x153   :  { %14138 = vmatmul.mubr.msk.f32.gmra.mrb[40].mxu0 %vm93_vm1, %v18374_v59  ;;  %v18408_v53 = vsel %vm1653_vm5, %v1769_v40, %v1770_v23  ;;  %v18434_v23 = vsel %vm1653_vm5, %v1775_v32, %v1777_v1  ;;  %v1787_v1 = vrot.slane %v18442_v16, 2 }
 0x154   :  { %14140 = vmatprep.mubr.msk.f32.mxu0 %vm93_vm1, %v18378_v35  ;;  %23485 = vst [vmem:[#allocation155_spill] sm:$0xff] %v18408_v53  ;;  %v23486_v35 = vld [vmem:[#allocation104_spill] sm:$0xff]  ;;  %23494 = vst [vmem:[#allocation107_spill] sm:$0xff] %v18434_v23 }
 0x155   :  { %v1774_v59 = vrot.slane %v23486_v35, 2  ;;  %23488 = vst [vmem:[#allocation104_spill] sm:$0xff] %v18412_v63 }
 0x157   :  { %14141 = vmatmul.mubr.msk.f32.gmra.mrb[42].mxu0 %vm93_vm1, %v18389_v44  ;;  %v18423_v40 = vsel %vm1653_vm5, %v1774_v59, %v1775_v32  ;;  %v18449_v32 = vsel %vm1653_vm5, %v1780_v60, %v1782_v57  ;;  %v1792_v57 = vrot.slane %v18457_v31, 2 }
 0x158   :  { %14143 = vmatprep.mubr.msk.f32.mxu0 %vm93_vm1, %v18393_v45  ;;  %23490 = vst [vmem:[#allocation156_spill] sm:$0xff] %v18423_v40  ;;  %v23491_v45 = vld [vmem:[#allocation106_spill] sm:$0xff]  ;;  %23499 = vst [vmem:[#allocation109_spill] sm:$0xff] %v18449_v32 }
 0x159   :  { %v1779_v44 = vrot.slane %v23491_v45, 2  ;;  %23493 = vst [vmem:[#allocation106_spill] sm:$0xff] %v18427_v54  ;;  %v18472_v54 = vld [vmem:[#allocation2 + $0x2e0] sm:$0x3] }
 0x15b   :  { %14144 = vmatmul.mubr.msk.f32.gmra.mrb[44].mxu0 %vm93_vm1, %v18404_v8  ;;  %v18438_v59 = vsel %vm1653_vm5, %v1779_v44, %v1780_v60  ;;  %v18464_v60 = vsel %vm1653_vm5, %v1785_v26, %v1787_v1  ;;  %v1797_v1 = vrot.slane %v18472_v54, 2 }
 0x15c   :  { %14146 = vmatprep.mubr.msk.f32.mxu0 %vm93_vm1, %v18408_v53  ;;  %23495 = vst [vmem:[#allocation157_spill] sm:$0xff] %v18438_v59  ;;  %v23496_v53 = vld [vmem:[#allocation108_spill] sm:$0xff]  ;;  %23504 = vst [vmem:[#allocation111_spill] sm:$0xff] %v18464_v60 }
 0x15d   :  { %v1784_v8 = vrot.slane %v23496_v53, 2  ;;  %23498 = vst [vmem:[#allocation108_spill] sm:$0xff] %v18442_v16  ;;  %v1795_v16 = vrot.slane %v23507_v29, 2 }
 0x15f   :  { %14147 = vmatmul.mubr.msk.f32.gmra.mrb[46].mxu0 %vm93_vm1, %v18419_v2  ;;  %v18453_v44 = vsel %vm1653_vm5, %v1784_v8, %v1785_v26  ;;  %v18479_v26 = vsel %vm1653_vm5, %v1790_v38, %v1792_v57  ;;  %v1802_v57 = vrot.slane %v18487_v43, 2 }
 0x160   :  { %14149 = vmatprep.mubr.msk.f32.mxu0 %vm93_vm1, %v18423_v40  ;;  %23500 = vst [vmem:[#allocation158_spill] sm:$0xff] %v18453_v44  ;;  %v23501_v40 = vld [vmem:[#allocation110_spill] sm:$0xff]  ;;  %23509 = vst [vmem:[#allocation113_spill] sm:$0xff] %v18479_v26 }
 0x161   :  { %v1789_v2 = vrot.slane %v23501_v40, 2  ;;  %23503 = vst [vmem:[#allocation110_spill] sm:$0xff] %v18457_v31  ;;  %v23512_v31 = vld [vmem:[#allocation115_spill] sm:$0xff] }
 0x162   :  { %v1800_v63 = vrot.slane %v23512_v31, 2 }
 0x163   :  { %14150 = vmatmul.mubr.msk.f32.gmra.mrb[48].mxu0 %vm93_vm1, %v18434_v23  ;;  %v18468_v8 = vsel %vm1653_vm5, %v1789_v2, %v1790_v38  ;;  %v18494_v38 = vsel %vm1653_vm5, %v1795_v16, %v1797_v1  ;;  %v1807_v1 = vrot.slane %v18502_v19, 2 }
 0x164   :  { %14152 = vmatprep.mubr.msk.f32.mxu0 %vm93_vm1, %v18438_v59  ;;  %23505 = vst [vmem:[#allocation159_spill] sm:$0xff] %v18468_v8  ;;  %v23506_v59 = vld [vmem:[#allocation112_spill] sm:$0xff]  ;;  %23514 = vst [vmem:[#allocation115_spill] sm:$0xff] %v18494_v38 }
 0x165   :  { %v1794_v23 = vrot.slane %v23506_v59, 2  ;;  %23508 = vst [vmem:[#allocation112_spill] sm:$0xff] %v18472_v54  ;;  %v1805_v54 = vrot.slane %v18071_v49, 2 }
 0x167   :  { %14153 = vmatmul.mubr.msk.f32.gmra.mrb[50].mxu0 %vm93_vm1, %v18449_v32  ;;  %v18483_v2 = vsel %vm1653_vm5, %v1794_v23, %v1795_v16  ;;  %v18509_v16 = vsel %vm1653_vm5, %v1800_v63, %v1802_v57  ;;  %v1812_v57 = vrot.slane %v18517_v25, 2 }
 0x168   :  { %14155 = vmatprep.mubr.msk.f32.mxu0 %vm93_vm1, %v18453_v44  ;;  %23510 = vst [vmem:[#allocation160_spill] sm:$0xff] %v18483_v2  ;;  %v23511_v44 = vld [vmem:[#allocation114_spill] sm:$0xff] }
 0x169   :  { %v1799_v32 = vrot.slane %v23511_v44, 2  ;;  %23513 = vst [vmem:[#allocation114_spill] sm:$0xff] %v18487_v43  ;;  %v1810_v43 = vrot.slane %v18082_v5, 2 }
 0x16b   :  { %14156 = vmatmul.mubr.msk.f32.gmra.mrb[52].mxu0 %vm93_vm1, %v18464_v60  ;;  %v18498_v23 = vsel %vm1653_vm5, %v1799_v32, %v1800_v63  ;;  %v18529_v63 = vld [vmem:[%s22760_s0 + $0x1f8] sm:$0xff] }
 0x16c   :  { %14158 = vmatprep.mubr.msk.f32.mxu0 %vm93_vm1, %v18468_v8  ;;  %23515 = vst [vmem:[#allocation161_spill] sm:$0xff] %v18498_v23  ;;  %v23516_v8 = vld [vmem:[#allocation116_spill] sm:$0xff]  ;;  %23521 = vst [vmem:[#allocation163_spill] sm:$0xff] %v18529_v63 }
 0x16d   :  { %v1804_v60 = vrot.slane %v23516_v8, 2  ;;  %23517 = vst [vmem:[#allocation116_spill] sm:$0xff] %v18509_v16  ;;  %245 = vst.msk [vmem:[#allocation2 + $0x339] sm:$0xff] %vm93_vm1, %v18529_v63  ;;  %v16768_v63 = vld [vmem:[#allocation2 + $0x18] sm:$0xff] }
 0x16f   :  { %14159 = vmatmul.mubr.msk.f32.gmra.mrb[54].mxu0 %vm93_vm1, %v18479_v26  ;;  %v18513_v32 = vsel %vm1653_vm5, %v1804_v60, %v1805_v54  ;;  %v18538_v60 = vsel %vm1653_vm5, %v1805_v54, %v1807_v1  ;;  %v18557_v54 = vld [vmem:[%s22759_s1 + $0x14] sm:$0xf] }
 0x170   :  { %14161 = vmatprep.mubr.msk.f32.mxu0 %vm93_vm1, %v18483_v2  ;;  %23518 = vst [vmem:[#allocation162_spill] sm:$0xff] %v18513_v32  ;;  %v23519_v2 = vld [vmem:[#allocation117_spill] sm:$0xff]  ;;  %v18562_v1 = vld [vmem:[#allocation2 + $0x30] sm:$0xff] }
 0x171   :  { %v1809_v26 = vrot.slane %v23519_v2, 2 }
 0x173   :  { %14162 = vmatmul.mubr.msk.f32.gmra.mrb[56].mxu0 %vm93_vm1, %v18494_v38  ;;  %v18522_v38 = vld [vmem:[%s22760_s0 + $0x1f0] sm:$0xff] }
 0x174   :  { %14164 = vmatprep.mubr.msk.f32.mxu0 %vm93_vm1, %v18498_v23  ;;  %23520 = vst [vmem:[#allocation117_spill] sm:$0xff] %v18522_v38  ;;  %244 = vst.msk [vmem:[#allocation2 + $0x331] sm:$0xff] %vm93_vm1, %v18522_v38  ;;  %v18542_v38 = vsel %vm1653_vm5, %v1809_v26, %v1810_v43  ;;  %v16769_v26 = vld [vmem:[#allocation2 + $0x20] sm:$0xff] }
 0x177   :  { %14165 = vmatmul.mubr.msk.f32.gmra.mrb[58].mxu0 %vm93_vm1, %v18509_v16  ;;  %v18549_v16 = vsel %vm1653_vm5, %v1810_v43, %v1812_v57  ;;  %v18568_v43 = vld [vmem:[#allocation2 + $0x38] sm:$0xff]  ;;  %v18576_v57 = vld [vmem:[#allocation2 + $0x50] sm:$0xff] }
 0x178   :  { %14167 = vmatprep.mubr.msk.f32.mxu0 %vm93_vm1, %v18513_v32  ;;  %23522 = vst [vmem:[#allocation164_spill] sm:$0xff] %v18568_v43  ;;  %23524 = vst [vmem:[#allocation166_spill] sm:$0xff] %v18576_v57 }
 0x17b   :  { %14168 = vmatmul.mubr.msk.f32.gmra.mrb[60].mxu0 %vm93_vm1, %v18538_v60 }
 0x17c   :  { %14170 = vmatprep.mubr.msk.f32.mxu0 %vm93_vm1, %v18542_v38 }
 0x17f   :  { %14171 = vmatmul.mubr.msk.f32.gmra.mrb[62].mxu0 %vm93_vm1, %v18549_v16 }
 0x180   :  { %14175 = vmatprep.mubr.msk.f32.mxu0 %vm93_vm1, %v16768_v63  ;;  %v18572_v63 = vld [vmem:[#allocation2 + $0x48] sm:$0xff] }
 0x181   :  { %23523 = vst [vmem:[#allocation165_spill] sm:$0xff] %v18572_v63 }
 0x183   :  { %14176 = vmatmul.mubr.msk.f32.vlgmr.msra.gmra.mrb[0].mxu0 %vm93_vm1, %v16769_v26  ;;  %v18584_v26 = vld [vmem:[#allocation2 + $0x68] sm:$0xff] }
 0x184   :  { %14272 = vmatpush3.msk.msra.mxu0 %vm748_vm0, %v18100_v30  ;;  %14178 = vmatprep.mubr.msk.f32.mxu0 %vm93_vm1, %v18562_v1  ;;  %v18580_v30 = vld [vmem:[#allocation2 + $0x60] sm:$0xff]  ;;  %23526 = vst [vmem:[#allocation168_spill] sm:$0xff] %v18584_v26 }
 0x185   :  { %14369 = vmatprep.subr.msk.mxu0 %vm748_vm0, %v18557_v54  ;;  %23525 = vst [vmem:[#allocation167_spill] sm:$0xff] %v18580_v30 }
 0x187   :  { %14179 = vmatmul.mubr.msk.f32.gmra.mrb[2].mxu0 %vm93_vm1, %v18568_v43  ;;  %v18588_v43 = vld [vmem:[#allocation2 + $0x78] sm:$0xff] }
 0x188   :  { %14181 = vmatprep.mubr.msk.f32.mxu0 %vm93_vm1, %v18572_v63  ;;  %23527 = vst [vmem:[#allocation169_spill] sm:$0xff] %v18588_v43  ;;  %v18592_v63 = vld [vmem:[#allocation2 + $0x80] sm:$0xff] }
 0x18b   :  { %14182 = vmatmul.mubr.msk.f32.gmra.mrb[4].mxu0 %vm93_vm1, %v18576_v57  ;;  %v18596_v57 = vld [vmem:[#allocation2 + $0x90] sm:$0xff] }
 0x18c   :  { %14184 = vmatprep.mubr.msk.f32.mxu0 %vm93_vm1, %v18580_v30  ;;  %v18600_v30 = vld [vmem:[#allocation2 + $0x98] sm:$0xff] }
 0x18f   :  { %14185 = vmatmul.mubr.msk.f32.gmra.mrb[6].mxu0 %vm93_vm1, %v18584_v26  ;;  %v18604_v26 = vld [vmem:[#allocation2 + $0xa8] sm:$0xff] }
 0x190   :  { %14187 = vmatprep.mubr.msk.f32.mxu0 %vm93_vm1, %v18588_v43  ;;  %v18608_v43 = vld [vmem:[#allocation2 + $0xb0] sm:$0xff] }
 0x193   :  { %14188 = vmatmul.mubr.msk.f32.gmra.mrb[8].mxu0 %vm93_vm1, %v18592_v63 }
 0x194   :  { %14190 = vmatprep.mubr.msk.f32.mxu0 %vm93_vm1, %v18596_v57 }
 0x197   :  { %14191 = vmatmul.mubr.msk.f32.gmra.mrb[10].mxu0 %vm93_vm1, %v18600_v30 }
 0x198   :  { %14193 = vmatprep.mubr.msk.f32.mxu0 %vm93_vm1, %v18604_v26 }
 0x19b   :  { %14194 = vmatmul.mubr.msk.f32.gmra.mrb[12].mxu0 %vm93_vm1, %v18608_v43 }
 0x19c   :  { %14196 = vmatprep.mubr.msk.f32.mxu0 %vm93_vm1, %v17584_v22  ;;  %v23530_v22 = vld [vmem:[#allocation28_spill] sm:$0xff] }
 0x19f   :  { %14197 = vmatmul.mubr.msk.f32.gmra.mrb[14].mxu0 %vm93_vm1, %v17586_v41  ;;  %v23531_v41 = vld [vmem:[#allocation29_spill] sm:$0xff] }
 0x1a0   :  { %14199 = vmatprep.mubr.msk.f32.mxu0 %vm93_vm1, %v17603_v18  ;;  %v23529_v18 = vld [vmem:[#allocation27_spill] sm:$0xff] }
 0x1a3   :  { %14200 = vmatmul.mubr.msk.f32.gmra.mrb[16].mxu0 %vm93_vm1, %v17605_v17  ;;  %v18725_v17 = vld [vmem:[%s22759_s1 + $0x18] sm:$0xf] }
 0x1a4   :  { %14202 = vmatprep.mubr.msk.f32.mxu0 %vm93_vm1, %v17653_v11  ;;  %v18710_v11 = vld [vmem:[#allocation2 + $0x330] sm:$0xff] }
 0x1a7   :  { %14203 = vmatmul.mubr.msk.f32.gmra.mrb[18].mxu0 %vm93_vm1, %v17655_v10  ;;  %v18648_v10 = vld [vmem:[#allocation2 + $0x188] sm:$0xff] }
 0x1a8   :  { %14205 = vmatprep.mubr.msk.f32.mxu0 %vm93_vm1, %v17688_v7  ;;  %v18642_v7 = vld [vmem:[#allocation2 + $0x180] sm:$0xff] }
 0x1ab   :  { %14206 = vmatmul.mubr.msk.f32.gmra.mrb[20].mxu0 %vm93_vm1, %v17690_v20  ;;  %v23532_v20 = vld [vmem:[#allocation30_spill] sm:$0xff] }
 0x1ac   :  { %14208 = vmatprep.mubr.msk.f32.mxu0 %vm93_vm1, %v17721_v12  ;;  %v18716_v12 = vld [vmem:[#allocation2 + $0x338] sm:$0xff] }
 0x1af   :  { %14209 = vmatmul.mubr.msk.f32.gmra.mrb[22].mxu0 %vm93_vm1, %v17723_v14  ;;  %v23534_v14 = vld [vmem:[#allocation35_spill] sm:$0xff] }
 0x1b0   :  { %14211 = vmatprep.mubr.msk.f32.mxu0 %vm93_vm1, %v17754_v15  ;;  %v23528_v15 = vld [vmem:[#allocation26_spill] sm:$0xff] }
 0x1b3   :  { %14212 = vmatmul.mubr.msk.f32.gmra.mrb[24].mxu0 %vm93_vm1, %v17756_v6  ;;  %v23536_v6 = vld [vmem:[#allocation46_spill] sm:$0xff] }
 0x1b4   :  { %14214 = vmatprep.mubr.msk.f32.mxu0 %vm93_vm1, %v17787_v27  ;;  %v23533_v27 = vld [vmem:[#allocation32_spill] sm:$0xff] }
 0x1b7   :  { %14215 = vmatmul.mubr.msk.f32.gmra.mrb[26].mxu0 %vm93_vm1, %v17789_v4  ;;  %v23537_v4 = vld [vmem:[#allocation55_spill] sm:$0xff] }
 0x1b8   :  { %14217 = vmatprep.mubr.msk.f32.mxu0 %vm93_vm1, %v17820_v34  ;;  %v23535_v34 = vld [vmem:[#allocation42_spill] sm:$0xff] }
 0x1bb   :  { %14218 = vmatmul.mubr.msk.f32.gmra.mrb[28].mxu0 %vm93_vm1, %v17822_v33  ;;  %v23538_v33 = vld [vmem:[#allocation56_spill] sm:$0xff] }
 0x1bc   :  { %14220 = vmatprep.mubr.msk.f32.mxu0 %vm93_vm1, %v18642_v7 }
 0x1bf   :  { %14221 = vmatmul.mubr.msk.f32.gmra.mrb[30].mxu0 %vm93_vm1, %v18648_v10 }
 0x1c0   :  { %14223 = vmatprep.mubr.msk.f32.mxu0 %vm93_vm1, %v17961_v56 }
 0x1c3   :  { %14224 = vmatmul.mubr.msk.f32.gmra.mrb[32].mxu0 %vm93_vm1, %v17967_v9 }
 0x1c4   :  { %14226 = vmatprep.mubr.msk.f32.mxu0 %vm93_vm1, %v17969_v51 }
 0x1c7   :  { %14227 = vmatmul.mubr.msk.f32.gmra.mrb[34].mxu0 %vm93_vm1, %v17975_v0 }
 0x1c8   :  { %14229 = vmatprep.mubr.msk.f32.mxu0 %vm93_vm1, %v23463_v55 }
 0x1cb   :  { %14230 = vmatmul.mubr.msk.f32.gmra.mrb[36].mxu0 %vm93_vm1, %v23464_v42 }
 0x1cc   :  { %14232 = vmatprep.mubr.msk.f32.mxu0 %vm93_vm1, %v23467_v39 }
 0x1cf   :  { %14233 = vmatmul.mubr.msk.f32.gmra.mrb[38].mxu0 %vm93_vm1, %v23468_v37 }
 0x1d0   :  { %14235 = vmatprep.mubr.msk.f32.mxu0 %vm93_vm1, %v23471_v21 }
 0x1d3   :  { %14236 = vmatmul.mubr.msk.f32.gmra.mrb[40].mxu0 %vm93_vm1, %v23472_v50 }
 0x1d4   :  { %14238 = vmatprep.mubr.msk.f32.mxu0 %vm93_vm1, %v23476_v28 }
 0x1d7   :  { %14239 = vmatmul.mubr.msk.f32.gmra.mrb[42].mxu0 %vm93_vm1, %v23477_v13 }
 0x1d8   :  { %14241 = vmatprep.mubr.msk.f32.mxu0 %vm93_vm1, %v23481_v48 }
 0x1db   :  { %14242 = vmatmul.mubr.msk.f32.gmra.mrb[44].mxu0 %vm93_vm1, %v23482_v46 }
 0x1dc   :  { %14244 = vmatprep.mubr.msk.f32.mxu0 %vm93_vm1, %v23486_v35 }
 0x1df   :  { %14245 = vmatmul.mubr.msk.f32.gmra.mrb[46].mxu0 %vm93_vm1, %v23487_v58 }
 0x1e0   :  { %14247 = vmatprep.mubr.msk.f32.mxu0 %vm93_vm1, %v23491_v45 }
 0x1e3   :  { %14248 = vmatmul.mubr.msk.f32.gmra.mrb[48].mxu0 %vm93_vm1, %v23492_v62 }
 0x1e4   :  { %14250 = vmatprep.mubr.msk.f32.mxu0 %vm93_vm1, %v23496_v53 }
 0x1e7   :  { %14251 = vmatmul.mubr.msk.f32.gmra.mrb[50].mxu0 %vm93_vm1, %v23497_v52 }
 0x1e8   :  { %14253 = vmatprep.mubr.msk.f32.mxu0 %vm93_vm1, %v23501_v40 }
 0x1eb   :  { %14254 = vmatmul.mubr.msk.f32.gmra.mrb[52].mxu0 %vm93_vm1, %v23502_v47 }
 0x1ec   :  { %14256 = vmatprep.mubr.msk.f32.mxu0 %vm93_vm1, %v23506_v59 }
 0x1ef   :  { %14257 = vmatmul.mubr.msk.f32.gmra.mrb[54].mxu0 %vm93_vm1, %v23507_v29 }
 0x1f0   :  { %14259 = vmatprep.mubr.msk.f32.mxu0 %vm93_vm1, %v23511_v44 }
 0x1f3   :  { %14260 = vmatmul.mubr.msk.f32.gmra.mrb[56].mxu0 %vm93_vm1, %v23512_v31 }
 0x1f4   :  { %14262 = vmatprep.mubr.msk.f32.mxu0 %vm93_vm1, %v23516_v8 }
 0x1f7   :  { %14263 = vmatmul.mubr.msk.f32.gmra.mrb[58].mxu0 %vm93_vm1, %v18071_v49 }
 0x1f8   :  { %14265 = vmatprep.mubr.msk.f32.mxu0 %vm93_vm1, %v23519_v2 }
 0x1fb   :  { %14266 = vmatmul.mubr.msk.f32.gmra.mrb[60].mxu0 %vm93_vm1, %v18082_v5 }
 0x1fc   :  { %14268 = vmatprep.mubr.msk.f32.mxu0 %vm93_vm1, %v18710_v11 }
 0x1ff   :  { %14269 = vmatmul.mubr.msk.f32.gmra.mrb[62].mxu0 %vm93_vm1, %v18716_v12 }
 0x200   :  { %14273 = vmatprep.mubr.msk.f32.mxu0 %vm93_vm1, %v23528_v15  ;;  %v23540_v15 = vld [vmem:[#allocation58_spill] sm:$0xff] }
 0x203   :  { %14274 = vmatmul.mubr.msk.f32.vlgmr.msra.gmra.mrb[0].mxu0 %vm93_vm1, %v23529_v18  ;;  %v23541_v18 = vld [vmem:[#allocation59_spill] sm:$0xff] }
 0x204   :  { %14370 = vmatpush3.msk.msra.mxu0 %vm748_vm0, %v18557_v54  ;;  %14276 = vmatprep.mubr.msk.f32.mxu0 %vm93_vm1, %v23530_v22  ;;  %v23539_v54 = vld [vmem:[#allocation57_spill] sm:$0xff] }
 0x205   :  { %14467 = vmatprep.subr.msk.mxu0 %vm748_vm0, %v18725_v17 }
 0x207   :  { %14277 = vmatmul.mubr.msk.f32.gmra.mrb[2].mxu0 %vm93_vm1, %v23531_v41 }
 0x208   :  { %14279 = vmatprep.mubr.msk.f32.mxu0 %vm93_vm1, %v23532_v20  ;;  %v23557_v20 = vld [vmem:[#allocation93_spill] sm:$0xff] }
 0x20b   :  { %14280 = vmatmul.mubr.msk.f32.gmra.mrb[4].mxu0 %vm93_vm1, %v23533_v27  ;;  %v23555_v27 = vld [vmem:[#allocation91_spill] sm:$0xff] }
 0x20c   :  { %14282 = vmatprep.mubr.msk.f32.mxu0 %vm93_vm1, %v23534_v14  ;;  %v23542_v14 = vld [vmem:[#allocation63_spill] sm:$0xff] }
 0x20f   :  { %14283 = vmatmul.mubr.msk.f32.gmra.mrb[6].mxu0 %vm93_vm1, %v23535_v34  ;;  %v23543_v34 = vld [vmem:[#allocation67_spill] sm:$0xff] }
 0x210   :  { %14285 = vmatprep.mubr.msk.f32.mxu0 %vm93_vm1, %v23536_v6  ;;  %v23544_v6 = vld [vmem:[#allocation68_spill] sm:$0xff] }
 0x213   :  { %14286 = vmatmul.mubr.msk.f32.gmra.mrb[8].mxu0 %vm93_vm1, %v23537_v4  ;;  %v23545_v4 = vld [vmem:[#allocation71_spill] sm:$0xff] }
 0x214   :  { %14288 = vmatprep.mubr.msk.f32.mxu0 %vm93_vm1, %v23538_v33  ;;  %v23546_v33 = vld [vmem:[#allocation72_spill] sm:$0xff] }
 0x217   :  { %14289 = vmatmul.mubr.msk.f32.gmra.mrb[10].mxu0 %vm93_vm1, %v23539_v54  ;;  %v23547_v54 = vld [vmem:[#allocation75_spill] sm:$0xff] }
 0x218   :  { %14291 = vmatprep.mubr.msk.f32.mxu0 %vm93_vm1, %v23540_v15  ;;  %v23548_v15 = vld [vmem:[#allocation76_spill] sm:$0xff] }
 0x21b   :  { %14292 = vmatmul.mubr.msk.f32.gmra.mrb[12].mxu0 %vm93_vm1, %v23541_v18  ;;  %v23549_v18 = vld [vmem:[#allocation79_spill] sm:$0xff] }
 0x21c   :  { %14294 = vmatprep.mubr.msk.f32.mxu0 %vm93_vm1, %v23542_v14  ;;  %v23550_v14 = vld [vmem:[#allocation80_spill] sm:$0xff] }
 0x21f   :  { %14295 = vmatmul.mubr.msk.f32.gmra.mrb[14].mxu0 %vm93_vm1, %v23543_v34  ;;  %v23551_v34 = vld [vmem:[#allocation83_spill] sm:$0xff] }
 0x220   :  { %14297 = vmatprep.mubr.msk.f32.mxu0 %vm93_vm1, %v23544_v6  ;;  %v23552_v6 = vld [vmem:[#allocation84_spill] sm:$0xff] }
 0x223   :  { %14298 = vmatmul.mubr.msk.f32.gmra.mrb[16].mxu0 %vm93_vm1, %v23545_v4  ;;  %v23553_v4 = vld [vmem:[#allocation87_spill] sm:$0xff] }
 0x224   :  { %14300 = vmatprep.mubr.msk.f32.mxu0 %vm93_vm1, %v23546_v33  ;;  %v23554_v33 = vld [vmem:[#allocation88_spill] sm:$0xff] }
 0x227   :  { %14301 = vmatmul.mubr.msk.f32.gmra.mrb[18].mxu0 %vm93_vm1, %v23547_v54  ;;  %v2861_v54 = vrot.slane %v18648_v10, 1 }
 0x228   :  { %14303 = vmatprep.mubr.msk.f32.mxu0 %vm93_vm1, %v23548_v15  ;;  %v2860_v15 = vrot.slane %v18642_v7, 1 }
 0x22b   :  { %14304 = vmatmul.mubr.msk.f32.gmra.mrb[20].mxu0 %vm93_vm1, %v23549_v18  ;;  %v18785_v18 = vld [vmem:[#allocation2 + $0x190] sm:$0x3] }
 0x22c   :  { %14306 = vmatprep.mubr.msk.f32.mxu0 %vm93_vm1, %v23550_v14  ;;  %v23556_v14 = vld [vmem:[#allocation92_spill] sm:$0xff] }
 0x22f   :  { %14307 = vmatmul.mubr.msk.f32.gmra.mrb[22].mxu0 %vm93_vm1, %v23551_v34  ;;  %v545_v34 = vrot.slane %v17961_v56, 1  ;;  %v550_v56 = vrot.slane %v17969_v51, 1  ;;  %v556_v51 = vrot.slane %v23464_v42, 1 }
 0x230   :  { %14309 = vmatprep.mubr.msk.f32.mxu0 %vm93_vm1, %v23552_v6  ;;  %v2863_v6 = vrot.slane %v18785_v18, 1 }
 0x233   :  { %14310 = vmatmul.mubr.msk.f32.gmra.mrb[24].mxu0 %vm93_vm1, %v23553_v4  ;;  %v546_v4 = vrot.slane %v17967_v9, 1  ;;  %v551_v9 = vrot.slane %v17975_v0, 1 }
 0x234   :  { %14312 = vmatprep.mubr.msk.f32.mxu0 %vm93_vm1, %v23554_v33  ;;  %v18795_v33 = vsel %vm459_vm4, %v2860_v15, %v2861_v54 }
 0x235   :  { %v18806_v41 = vsel %vm459_vm4, %v545_v34, %v546_v4  ;;  %v555_v34 = vrot.slane %v23463_v55, 1  ;;  %v561_v55 = vrot.slane %v23468_v37, 1 }
 0x237   :  { %14313 = vmatmul.mubr.msk.f32.gmra.mrb[26].mxu0 %vm93_vm1, %v23555_v27  ;;  %v18802_v27 = vsel %vm459_vm4, %v2861_v54, %v2863_v6  ;;  %v553_v6 = vrot.slane %v18323_v36, 1  ;;  %v18832_v36 = vsel %vm459_vm4, %v555_v34, %v556_v51  ;;  %v563_v54 = vrot.slane %v18352_v3, 1 }
 0x238   :  { %14315 = vmatprep.mubr.msk.f32.mxu0 %vm93_vm1, %v23556_v14  ;;  %v548_v14 = vrot.slane %v18311_v24, 1  ;;  %v18819_v24 = vsel %vm459_vm4, %v550_v56, %v551_v9  ;;  %v565_v56 = vrot.slane %v23471_v21, 1  ;;  %v570_v34 = vrot.slane %v23476_v28, 1 }
 0x239   :  { %v18828_v0 = vsel %vm459_vm4, %v551_v9, %v553_v6  ;;  %v18854_v37 = vsel %vm459_vm4, %v561_v55, %v563_v54  ;;  %v23558_v9 = vld [vmem:[#allocation98_spill] sm:$0xff]  ;;  %v571_v21 = vrot.slane %v23477_v13, 1  ;;  %v576_v28 = vrot.slane %v23482_v46, 1 }
 0x23a   :  { %v18815_v15 = vsel %vm459_vm4, %v546_v4, %v548_v14  ;;  %v558_v14 = vrot.slane %v18337_v61, 1  ;;  %v560_v4 = vrot.slane %v23467_v39, 1  ;;  %v566_v39 = vrot.slane %v23472_v50, 1  ;;  %v23560_v54 = vld [vmem:[#allocation102_spill] sm:$0xff] }
 0x23b   :  { %14316 = vmatmul.mubr.msk.f32.gmra.mrb[28].mxu0 %vm93_vm1, %v23557_v20  ;;  %v568_v6 = vrot.slane %v23558_v9, 1  ;;  %v580_v9 = vrot.slane %v23486_v35, 1  ;;  %v586_v35 = vrot.slane %v23492_v62, 1 }
 0x23c   :  { %14318 = vmatprep.mubr.msk.f32.mxu0 %vm93_vm1, %v18795_v33  ;;  %v18841_v42 = vsel %vm459_vm4, %v556_v51, %v558_v14  ;;  %v18845_v61 = vsel %vm459_vm4, %v560_v4, %v561_v55  ;;  %v18858_v3 = vsel %vm459_vm4, %v565_v56, %v566_v39  ;;  %v23559_v51 = vld [vmem:[#allocation100_spill] sm:$0xff]  ;;  %v18871_v4 = vsel %vm459_vm4, %v570_v34, %v571_v21 }
 0x23d   :  { %v18867_v50 = vsel %vm459_vm4, %v566_v39, %v568_v6  ;;  %v573_v14 = vrot.slane %v23559_v51, 1  ;;  %v575_v55 = vrot.slane %v23481_v48, 1  ;;  %v578_v56 = vrot.slane %v23560_v54, 1  ;;  %v23561_v6 = vld [vmem:[#allocation104_spill] sm:$0xff] }
 0x23e   :  { %v581_v48 = vrot.slane %v23487_v58, 1  ;;  %v583_v34 = vrot.slane %v23561_v6, 1  ;;  %v585_v51 = vrot.slane %v23491_v45, 1  ;;  %v590_v54 = vrot.slane %v23496_v53, 1 }
 0x23f   :  { %14319 = vmatmul.mubr.msk.f32.gmra.mrb[30].mxu0 %vm93_vm1, %v18802_v27  ;;  %v18880_v13 = vsel %vm459_vm4, %v571_v21, %v573_v14  ;;  %v18884_v39 = vsel %vm459_vm4, %v575_v55, %v576_v28  ;;  %v18893_v46 = vsel %vm459_vm4, %v576_v28, %v578_v56  ;;  %v23562_v14 = vld [vmem:[#allocation106_spill] sm:$0xff]  ;;  %v591_v45 = vrot.slane %v23497_v52, 1  ;;  %v23563_v56 = vld [vmem:[#allocation108_spill] sm:$0xff] }
 0x240   :  { %14321 = vmatprep.mubr.msk.f32.mxu0 %vm93_vm1, %v18806_v41  ;;  %v18897_v21 = vsel %vm459_vm4, %v580_v9, %v581_v48  ;;  %v18906_v58 = vsel %vm459_vm4, %v581_v48, %v583_v34  ;;  %v588_v55 = vrot.slane %v23562_v14, 1  ;;  %v18910_v28 = vsel %vm459_vm4, %v585_v51, %v586_v35  ;;  %v23564_v34 = vld [vmem:[#allocation110_spill] sm:$0xff] }
 0x241   :  { %v593_v9 = vrot.slane %v23563_v56, 1  ;;  %v18923_v48 = vsel %vm459_vm4, %v590_v54, %v591_v45  ;;  %v595_v6 = vrot.slane %v23501_v40, 1  ;;  %v596_v53 = vrot.slane %v23502_v47, 1 }
 0x242   :  { %v18919_v62 = vsel %vm459_vm4, %v586_v35, %v588_v55  ;;  %v598_v51 = vrot.slane %v23564_v34, 1  ;;  %v600_v14 = vrot.slane %v23506_v59, 1  ;;  %v601_v40 = vrot.slane %v23507_v29, 1  ;;  %v23565_v55 = vld [vmem:[#allocation112_spill] sm:$0xff] }
 0x243   :  { %14322 = vmatmul.mubr.msk.f32.gmra.mrb[32].mxu0 %vm93_vm1, %v18815_v15  ;;  %v18932_v52 = vsel %vm459_vm4, %v591_v45, %v593_v9  ;;  %v18936_v35 = vsel %vm459_vm4, %v595_v6, %v596_v53  ;;  %v603_v54 = vrot.slane %v23565_v55, 1  ;;  %v605_v56 = vrot.slane %v23511_v44, 1  ;;  %v23566_v9 = vld [vmem:[#allocation114_spill] sm:$0xff] }
 0x244   :  { %14324 = vmatprep.mubr.msk.f32.mxu0 %vm93_vm1, %v18819_v24  ;;  %v18945_v47 = vsel %vm459_vm4, %v596_v53, %v598_v51  ;;  %v18949_v45 = vsel %vm459_vm4, %v600_v14, %v601_v40  ;;  %v606_v59 = vrot.slane %v23512_v31, 1  ;;  %v608_v6 = vrot.slane %v23566_v9, 1 }
 0x245   :  { %v18958_v29 = vsel %vm459_vm4, %v601_v40, %v603_v54  ;;  %v610_v34 = vrot.slane %v23516_v8, 1  ;;  %v611_v44 = vrot.slane %v18071_v49, 1  ;;  %v613_v51 = vrot.slane %v18502_v19, 1 }
 0x246   :  { %v18962_v53 = vsel %vm459_vm4, %v605_v56, %v606_v59  ;;  %v18971_v31 = vsel %vm459_vm4, %v606_v59, %v608_v6  ;;  %v615_v40 = vrot.slane %v23519_v2, 1  ;;  %v616_v8 = vrot.slane %v18082_v5, 1  ;;  %v18992_v2 = vld [vmem:[#allocation2 + $0x340] sm:$0x3]  ;;  %v23567_v6 = vld [vmem:[#allocation118_spill] sm:$0xff] }
 0x247   :  { %14325 = vmatmul.mubr.msk.f32.gmra.mrb[34].mxu0 %vm93_vm1, %v18828_v0  ;;  %v18975_v14 = vsel %vm459_vm4, %v610_v34, %v611_v44  ;;  %v18984_v49 = vsel %vm459_vm4, %v611_v44, %v613_v51  ;;  %v618_v55 = vrot.slane %v18517_v25, 1  ;;  %v2865_v19 = vrot.slane %v18710_v11, 1  ;;  %v19019_v34 = vld [vmem:[%s22759_s1 + $0x1c] sm:$0xf]  ;;  %v23569_v51 = vld [vmem:[#allocation120_spill] sm:$0xff] }
 0x248   :  { %14327 = vmatprep.mubr.msk.f32.mxu0 %vm93_vm1, %v18832_v36  ;;  %v2866_v54 = vrot.slane %v18716_v12, 1  ;;  %v18990_v56 = vsel %vm459_vm4, %v615_v40, %v616_v8  ;;  %v2868_v25 = vrot.slane %v18992_v2, 1  ;;  %v23568_v44 = vld [vmem:[#allocation119_spill] sm:$0xff]  ;;  %v23570_v40 = vld [vmem:[#allocation121_spill] sm:$0xff] }
 0x249   :  { %v18999_v5 = vsel %vm459_vm4, %v616_v8, %v618_v55  ;;  %v23571_v8 = vld [vmem:[#allocation122_spill] sm:$0xff]  ;;  %v23572_v55 = vld [vmem:[#allocation123_spill] sm:$0xff] }
 0x24a   :  { %v19003_v59 = vsel %vm459_vm4, %v2865_v19, %v2866_v54  ;;  %v19010_v9 = vsel %vm459_vm4, %v2866_v54, %v2868_v25  ;;  %v23573_v19 = vld [vmem:[#allocation124_spill] sm:$0xff]  ;;  %v23574_v54 = vld [vmem:[#allocation125_spill] sm:$0xff]  ;;  %v23576_v25 = vld [vmem:[#allocation127_spill] sm:$0xff] }
 0x24b   :  { %14328 = vmatmul.mubr.msk.f32.gmra.mrb[36].mxu0 %vm93_vm1, %v18841_v42 }
 0x24c   :  { %14330 = vmatprep.mubr.msk.f32.mxu0 %vm93_vm1, %v18845_v61 }
 0x24f   :  { %14331 = vmatmul.mubr.msk.f32.gmra.mrb[38].mxu0 %vm93_vm1, %v18854_v37 }
 0x250   :  { %14333 = vmatprep.mubr.msk.f32.mxu0 %vm93_vm1, %v18858_v3 }
 0x253   :  { %14334 = vmatmul.mubr.msk.f32.gmra.mrb[40].mxu0 %vm93_vm1, %v18867_v50 }
 0x254   :  { %14336 = vmatprep.mubr.msk.f32.mxu0 %vm93_vm1, %v18871_v4 }
 0x257   :  { %14337 = vmatmul.mubr.msk.f32.gmra.mrb[42].mxu0 %vm93_vm1, %v18880_v13 }
 0x258   :  { %14339 = vmatprep.mubr.msk.f32.mxu0 %vm93_vm1, %v18884_v39 }
 0x25b   :  { %14340 = vmatmul.mubr.msk.f32.gmra.mrb[44].mxu0 %vm93_vm1, %v18893_v46 }
 0x25c   :  { %14342 = vmatprep.mubr.msk.f32.mxu0 %vm93_vm1, %v18897_v21 }
 0x25f   :  { %14343 = vmatmul.mubr.msk.f32.gmra.mrb[46].mxu0 %vm93_vm1, %v18906_v58 }
 0x260   :  { %14345 = vmatprep.mubr.msk.f32.mxu0 %vm93_vm1, %v18910_v28 }
 0x263   :  { %14346 = vmatmul.mubr.msk.f32.gmra.mrb[48].mxu0 %vm93_vm1, %v18919_v62 }
 0x264   :  { %14348 = vmatprep.mubr.msk.f32.mxu0 %vm93_vm1, %v18923_v48 }
 0x267   :  { %14349 = vmatmul.mubr.msk.f32.gmra.mrb[50].mxu0 %vm93_vm1, %v18932_v52 }
 0x268   :  { %14351 = vmatprep.mubr.msk.f32.mxu0 %vm93_vm1, %v18936_v35 }
 0x26b   :  { %14352 = vmatmul.mubr.msk.f32.gmra.mrb[52].mxu0 %vm93_vm1, %v18945_v47 }
 0x26c   :  { %14354 = vmatprep.mubr.msk.f32.mxu0 %vm93_vm1, %v18949_v45 }
 0x26f   :  { %14355 = vmatmul.mubr.msk.f32.gmra.mrb[54].mxu0 %vm93_vm1, %v18958_v29 }
 0x270   :  { %14357 = vmatprep.mubr.msk.f32.mxu0 %vm93_vm1, %v18962_v53 }
 0x273   :  { %14358 = vmatmul.mubr.msk.f32.gmra.mrb[56].mxu0 %vm93_vm1, %v18971_v31 }
 0x274   :  { %14360 = vmatprep.mubr.msk.f32.mxu0 %vm93_vm1, %v18975_v14 }
 0x277   :  { %14361 = vmatmul.mubr.msk.f32.gmra.mrb[58].mxu0 %vm93_vm1, %v18984_v49 }
 0x278   :  { %14363 = vmatprep.mubr.msk.f32.mxu0 %vm93_vm1, %v18990_v56 }
 0x27b   :  { %14364 = vmatmul.mubr.msk.f32.gmra.mrb[60].mxu0 %vm93_vm1, %v18999_v5 }
 0x27c   :  { %14366 = vmatprep.mubr.msk.f32.mxu0 %vm93_vm1, %v19003_v59 }
 0x27f   :  { %14367 = vmatmul.mubr.msk.f32.gmra.mrb[62].mxu0 %vm93_vm1, %v19010_v9 }
 0x280   :  { %14371 = vmatprep.mubr.msk.f32.mxu0 %vm93_vm1, %v23567_v6  ;;  %v23577_v6 = vld [vmem:[#allocation128_spill] sm:$0xff] }
 0x283   :  { %14372 = vmatmul.mubr.msk.f32.vlgmr.msra.gmra.mrb[0].mxu0 %vm93_vm1, %v23568_v44  ;;  %v23578_v44 = vld [vmem:[#allocation129_spill] sm:$0xff] }
 0x284   :  { %14468 = vmatpush3.msk.msra.mxu0 %vm748_vm0, %v18725_v17  ;;  %14374 = vmatprep.mubr.msk.f32.mxu0 %vm93_vm1, %v23569_v51  ;;  %v23575_v17 = vld [vmem:[#allocation126_spill] sm:$0xff] }
 0x285   :  { %14565 = vmatprep.subr.msk.mxu0 %vm748_vm0, %v19019_v34 }
 0x287   :  { %14375 = vmatmul.mubr.msk.f32.gmra.mrb[2].mxu0 %vm93_vm1, %v23570_v40  ;;  %v23596_v40 = vld [vmem:[#allocation149_spill] sm:$0xff] }
 0x288   :  { %14377 = vmatprep.mubr.msk.f32.mxu0 %vm93_vm1, %v23571_v8  ;;  %v23579_v8 = vld [vmem:[#allocation130_spill] sm:$0xff] }
 0x28b   :  { %14378 = vmatmul.mubr.msk.f32.gmra.mrb[4].mxu0 %vm93_vm1, %v23572_v55  ;;  %v23580_v55 = vld [vmem:[#allocation131_spill] sm:$0xff] }
 0x28c   :  { %14380 = vmatprep.mubr.msk.f32.mxu0 %vm93_vm1, %v23573_v19  ;;  %v23581_v19 = vld [vmem:[#allocation132_spill] sm:$0xff] }
 0x28f   :  { %14381 = vmatmul.mubr.msk.f32.gmra.mrb[6].mxu0 %vm93_vm1, %v23574_v54  ;;  %v23582_v54 = vld [vmem:[#allocation133_spill] sm:$0xff] }
 0x290   :  { %14383 = vmatprep.mubr.msk.f32.mxu0 %vm93_vm1, %v23575_v17  ;;  %v23583_v17 = vld [vmem:[#allocation134_spill] sm:$0xff] }
 0x293   :  { %14384 = vmatmul.mubr.msk.f32.gmra.mrb[8].mxu0 %vm93_vm1, %v23576_v25  ;;  %v23584_v25 = vld [vmem:[#allocation135_spill] sm:$0xff] }
 0x294   :  { %14386 = vmatprep.mubr.msk.f32.mxu0 %vm93_vm1, %v23577_v6  ;;  %v23585_v6 = vld [vmem:[#allocation136_spill] sm:$0xff] }
 0x297   :  { %14387 = vmatmul.mubr.msk.f32.gmra.mrb[10].mxu0 %vm93_vm1, %v23578_v44  ;;  %v23586_v44 = vld [vmem:[#allocation137_spill] sm:$0xff] }
 0x298   :  { %14389 = vmatprep.mubr.msk.f32.mxu0 %vm93_vm1, %v23579_v8  ;;  %v23587_v8 = vld [vmem:[#allocation138_spill] sm:$0xff] }
 0x29b   :  { %14390 = vmatmul.mubr.msk.f32.gmra.mrb[12].mxu0 %vm93_vm1, %v23580_v55  ;;  %v23588_v55 = vld [vmem:[#allocation139_spill] sm:$0xff] }
 0x29c   :  { %14392 = vmatprep.mubr.msk.f32.mxu0 %vm93_vm1, %v23581_v19  ;;  %v23589_v19 = vld [vmem:[#allocation140_spill] sm:$0xff] }
 0x29f   :  { %14393 = vmatmul.mubr.msk.f32.gmra.mrb[14].mxu0 %vm93_vm1, %v23582_v54  ;;  %v23590_v54 = vld [vmem:[#allocation141_spill] sm:$0xff] }
 0x2a0   :  { %14395 = vmatprep.mubr.msk.f32.mxu0 %vm93_vm1, %v23583_v17  ;;  %v23591_v17 = vld [vmem:[#allocation142_spill] sm:$0xff] }
 0x2a3   :  { %14396 = vmatmul.mubr.msk.f32.gmra.mrb[16].mxu0 %vm93_vm1, %v23584_v25  ;;  %v23592_v25 = vld [vmem:[#allocation143_spill] sm:$0xff] }
 0x2a4   :  { %14398 = vmatprep.mubr.msk.f32.mxu0 %vm93_vm1, %v23585_v6  ;;  %v23593_v6 = vld [vmem:[#allocation144_spill] sm:$0xff] }
 0x2a7   :  { %14399 = vmatmul.mubr.msk.f32.gmra.mrb[18].mxu0 %vm93_vm1, %v23586_v44  ;;  %v3331_v44 = vrot.slane %v18648_v10, 2 }
 0x2a8   :  { %14401 = vmatprep.mubr.msk.f32.mxu0 %vm93_vm1, %v23587_v8  ;;  %v3330_v8 = vrot.slane %v18642_v7, 2 }
 0x2ab   :  { %14402 = vmatmul.mubr.msk.f32.gmra.mrb[20].mxu0 %vm93_vm1, %v23588_v55  ;;  %v23594_v55 = vld [vmem:[#allocation147_spill] sm:$0xff] }
 0x2ac   :  { %14404 = vmatprep.mubr.msk.f32.mxu0 %vm93_vm1, %v23589_v19  ;;  %v23595_v19 = vld [vmem:[#allocation148_spill] sm:$0xff] }
 0x2af   :  { %14405 = vmatmul.mubr.msk.f32.gmra.mrb[22].mxu0 %vm93_vm1, %v23590_v54  ;;  %v3333_v54 = vrot.slane %v18785_v18, 2  ;;  %v23600_v18 = vld [vmem:[#allocation152_spill] sm:$0xff] }
 0x2b0   :  { %14407 = vmatprep.mubr.msk.f32.mxu0 %vm93_vm1, %v23591_v17  ;;  %v19085_v17 = vsel %vm1653_vm5, %v3330_v8, %v3331_v44  ;;  %v23601_v8 = vld [vmem:[#allocation94_spill] sm:$0xff] }
 0x2b3   :  { %14408 = vmatmul.mubr.msk.f32.gmra.mrb[24].mxu0 %vm93_vm1, %v23592_v25 }
 0x2b4   :  { %14410 = vmatprep.mubr.msk.f32.mxu0 %vm93_vm1, %v23593_v6  ;;  %v19092_v6 = vsel %vm1653_vm5, %v3331_v44, %v3333_v54  ;;  %v23603_v54 = vld [vmem:[#allocation96_spill] sm:$0xff]  ;;  %v23604_v44 = vld [vmem:[#allocation97_spill] sm:$0xff] }
 0x2b5   :  { %23597 = vst [vmem:[#allocation26_spill] sm:$0xff] %v19092_v6 }
 0x2b7   :  { %14411 = vmatmul.mubr.msk.f32.gmra.mrb[26].mxu0 %vm93_vm1, %v23594_v55  ;;  %v23598_v55 = vld [vmem:[#allocation150_spill] sm:$0xff] }
 0x2b8   :  { %14413 = vmatprep.mubr.msk.f32.mxu0 %vm93_vm1, %v23595_v19  ;;  %v23599_v19 = vld [vmem:[#allocation151_spill] sm:$0xff] }
 0x2bb   :  { %14414 = vmatmul.mubr.msk.f32.gmra.mrb[28].mxu0 %vm93_vm1, %v23596_v40  ;;  %v23602_v40 = vld [vmem:[#allocation95_spill] sm:$0xff] }
 0x2bc   :  { %14416 = vmatprep.mubr.msk.f32.mxu0 %vm93_vm1, %v19085_v17 }
 0x2bf   :  { %14417 = vmatmul.mubr.msk.f32.gmra.mrb[30].mxu0 %vm93_vm1, %v19092_v6  ;;  %v23605_v6 = vld [vmem:[#allocation99_spill] sm:$0xff] }
 0x2c0   :  { %14419 = vmatprep.mubr.msk.f32.mxu0 %vm93_vm1, %v23598_v55  ;;  %v23606_v55 = vld [vmem:[#allocation153_spill] sm:$0xff] }
 0x2c3   :  { %14420 = vmatmul.mubr.msk.f32.gmra.mrb[32].mxu0 %vm93_vm1, %v23599_v19  ;;  %v23607_v19 = vld [vmem:[#allocation101_spill] sm:$0xff] }
 0x2c4   :  { %14422 = vmatprep.mubr.msk.f32.mxu0 %vm93_vm1, %v23600_v18  ;;  %v23608_v18 = vld [vmem:[#allocation154_spill] sm:$0xff] }
 0x2c7   :  { %14423 = vmatmul.mubr.msk.f32.gmra.mrb[34].mxu0 %vm93_vm1, %v23601_v8  ;;  %v23609_v8 = vld [vmem:[#allocation103_spill] sm:$0xff] }
 0x2c8   :  { %14425 = vmatprep.mubr.msk.f32.mxu0 %vm93_vm1, %v23602_v40  ;;  %v23610_v40 = vld [vmem:[#allocation155_spill] sm:$0xff] }
 0x2cb   :  { %14426 = vmatmul.mubr.msk.f32.gmra.mrb[36].mxu0 %vm93_vm1, %v23603_v54  ;;  %v23611_v54 = vld [vmem:[#allocation105_spill] sm:$0xff] }
 0x2cc   :  { %14428 = vmatprep.mubr.msk.f32.mxu0 %vm93_vm1, %v23604_v44  ;;  %v23612_v44 = vld [vmem:[#allocation156_spill] sm:$0xff] }
 0x2cf   :  { %14429 = vmatmul.mubr.msk.f32.gmra.mrb[38].mxu0 %vm93_vm1, %v23605_v6  ;;  %v23613_v6 = vld [vmem:[#allocation107_spill] sm:$0xff] }
 0x2d0   :  { %14431 = vmatprep.mubr.msk.f32.mxu0 %vm93_vm1, %v23606_v55  ;;  %v23614_v55 = vld [vmem:[#allocation157_spill] sm:$0xff] }
 0x2d3   :  { %14432 = vmatmul.mubr.msk.f32.gmra.mrb[40].mxu0 %vm93_vm1, %v23607_v19  ;;  %v23615_v19 = vld [vmem:[#allocation109_spill] sm:$0xff] }
 0x2d4   :  { %14434 = vmatprep.mubr.msk.f32.mxu0 %vm93_vm1, %v23608_v18  ;;  %v23616_v18 = vld [vmem:[#allocation158_spill] sm:$0xff] }
 0x2d7   :  { %14435 = vmatmul.mubr.msk.f32.gmra.mrb[42].mxu0 %vm93_vm1, %v23609_v8  ;;  %v23617_v8 = vld [vmem:[#allocation111_spill] sm:$0xff] }
 0x2d8   :  { %14437 = vmatprep.mubr.msk.f32.mxu0 %vm93_vm1, %v23610_v40  ;;  %v23618_v40 = vld [vmem:[#allocation159_spill] sm:$0xff] }
 0x2db   :  { %14438 = vmatmul.mubr.msk.f32.gmra.mrb[44].mxu0 %vm93_vm1, %v23611_v54  ;;  %v23619_v54 = vld [vmem:[#allocation113_spill] sm:$0xff] }
 0x2dc   :  { %14440 = vmatprep.mubr.msk.f32.mxu0 %vm93_vm1, %v23612_v44  ;;  %v23620_v44 = vld [vmem:[#allocation160_spill] sm:$0xff] }
 0x2df   :  { %14441 = vmatmul.mubr.msk.f32.gmra.mrb[46].mxu0 %vm93_vm1, %v23613_v6  ;;  %v23621_v6 = vld [vmem:[#allocation115_spill] sm:$0xff] }
 0x2e0   :  { %14443 = vmatprep.mubr.msk.f32.mxu0 %vm93_vm1, %v23614_v55 }
 0x2e3   :  { %14444 = vmatmul.mubr.msk.f32.gmra.mrb[48].mxu0 %vm93_vm1, %v23615_v19  ;;  %v23622_v19 = vld [vmem:[#allocation116_spill] sm:$0xff] }
 0x2e4   :  { %14446 = vmatprep.mubr.msk.f32.mxu0 %vm93_vm1, %v23616_v18 }
 0x2e7   :  { %14447 = vmatmul.mubr.msk.f32.gmra.mrb[50].mxu0 %vm93_vm1, %v23617_v8  ;;  %v3336_v8 = vrot.slane %v18716_v12, 2 }
 0x2e8   :  { %14449 = vmatprep.mubr.msk.f32.mxu0 %vm93_vm1, %v23618_v40  ;;  %v3335_v40 = vrot.slane %v18710_v11, 2 }
 0x2eb   :  { %14450 = vmatmul.mubr.msk.f32.gmra.mrb[52].mxu0 %vm93_vm1, %v23619_v54 }
 0x2ec   :  { %14452 = vmatprep.mubr.msk.f32.mxu0 %vm93_vm1, %v23620_v44 }
 0x2ef   :  { %14453 = vmatmul.mubr.msk.f32.gmra.mrb[54].mxu0 %vm93_vm1, %v23621_v6  ;;  %v3338_v6 = vrot.slane %v18992_v2, 2  ;;  %v19174_v2 = vld [vmem:[%s22759_s1 + $0x20] sm:$0xf] }
 0x2f0   :  { %14455 = vmatprep.mubr.msk.f32.mxu0 %vm93_vm1, %v18498_v23  ;;  %v19158_v23 = vsel %vm1653_vm5, %v3335_v40, %v3336_v8  ;;  %v23625_v40 = vld [vmem:[#allocation164_spill] sm:$0xff] }
 0x2f1   :  { %23623 = vst [vmem:[#allocation27_spill] sm:$0xff] %v19158_v23 }
 0x2f3   :  { %14456 = vmatmul.mubr.msk.f32.gmra.mrb[56].mxu0 %vm93_vm1, %v23622_v19 }
 0x2f4   :  { %14458 = vmatprep.mubr.msk.f32.mxu0 %vm93_vm1, %v18513_v32  ;;  %v19165_v32 = vsel %vm1653_vm5, %v3336_v8, %v3338_v6  ;;  %v23627_v6 = vld [vmem:[#allocation166_spill] sm:$0xff]  ;;  %v23629_v8 = vld [vmem:[#allocation168_spill] sm:$0xff] }
 0x2f5   :  { %23624 = vst [vmem:[#allocation28_spill] sm:$0xff] %v19165_v32 }
 0x2f7   :  { %14459 = vmatmul.mubr.msk.f32.gmra.mrb[58].mxu0 %vm93_vm1, %v18538_v60 }
 0x2f8   :  { %14461 = vmatprep.mubr.msk.f32.mxu0 %vm93_vm1, %v18542_v38 }
 0x2fb   :  { %14462 = vmatmul.mubr.msk.f32.gmra.mrb[60].mxu0 %vm93_vm1, %v18549_v16 }
 0x2fc   :  { %14464 = vmatprep.mubr.msk.f32.mxu0 %vm93_vm1, %v19158_v23  ;;  %v23626_v23 = vld [vmem:[#allocation165_spill] sm:$0xff] }
 0x2ff   :  { %14465 = vmatmul.mubr.msk.f32.gmra.mrb[62].mxu0 %vm93_vm1, %v19165_v32  ;;  %v23630_v32 = vld [vmem:[#allocation169_spill] sm:$0xff] }
 0x300   :  { %14469 = vmatprep.mubr.msk.f32.mxu0 %vm93_vm1, %v18562_v1  ;;  %v23628_v1 = vld [vmem:[#allocation167_spill] sm:$0xff] }
 0x303   :  { %14470 = vmatmul.mubr.msk.f32.vlgmr.msra.gmra.mrb[0].mxu0 %vm93_vm1, %v23625_v40  ;;  %v16790_v40 = vld [vmem:[#allocation2 + $0x120] sm:$0xff] }
 0x304   :  { %14566 = vmatpush3.msk.msra.mxu0 %vm748_vm0, %v19019_v34  ;;  %14472 = vmatprep.mubr.msk.f32.mxu0 %vm93_vm1, %v23626_v23  ;;  %v16782_v23 = vld [vmem:[#allocation2 + $0xc0] sm:$0xff]  ;;  %v16783_v34 = vld [vmem:[#allocation2 + $0xc8] sm:$0xff] }
 0x305   :  { %14663 = vmatprep.subr.msk.mxu0 %vm748_vm0, %v19174_v2 }
 0x307   :  { %14473 = vmatmul.mubr.msk.f32.gmra.mrb[2].mxu0 %vm93_vm1, %v23627_v6  ;;  %v16791_v6 = vld [vmem:[#allocation2 + $0x128] sm:$0xff] }
 0x308   :  { %14475 = vmatprep.mubr.msk.f32.mxu0 %vm93_vm1, %v23628_v1  ;;  %v16792_v1 = vld [vmem:[#allocation2 + $0x138] sm:$0xff] }
 0x30b   :  { %14476 = vmatmul.mubr.msk.f32.gmra.mrb[4].mxu0 %vm93_vm1, %v23629_v8  ;;  %v16793_v8 = vld [vmem:[#allocation2 + $0x140] sm:$0xff] }
 0x30c   :  { %14478 = vmatprep.mubr.msk.f32.mxu0 %vm93_vm1, %v23630_v32  ;;  %v16784_v32 = vld [vmem:[#allocation2 + $0xd8] sm:$0xff] }
 0x30f   :  { %14479 = vmatmul.mubr.msk.f32.gmra.mrb[6].mxu0 %vm93_vm1, %v18592_v63  ;;  %v16785_v63 = vld [vmem:[#allocation2 + $0xe0] sm:$0xff] }
 0x310   :  { %14481 = vmatprep.mubr.msk.f32.mxu0 %vm93_vm1, %v18596_v57  ;;  %v16786_v57 = vld [vmem:[#allocation2 + $0xf0] sm:$0xff] }
 0x313   :  { %14482 = vmatmul.mubr.msk.f32.gmra.mrb[8].mxu0 %vm93_vm1, %v18600_v30  ;;  %v16787_v30 = vld [vmem:[#allocation2 + $0xf8] sm:$0xff] }
 0x314   :  { %14484 = vmatprep.mubr.msk.f32.mxu0 %vm93_vm1, %v18604_v26  ;;  %v16788_v26 = vld [vmem:[#allocation2 + $0x108] sm:$0xff] }
 0x317   :  { %14485 = vmatmul.mubr.msk.f32.gmra.mrb[10].mxu0 %vm93_vm1, %v18608_v43  ;;  %v16789_v43 = vld [vmem:[#allocation2 + $0x110] sm:$0xff] }
 0x318   :  { %14487 = vmatprep.mubr.msk.f32.mxu0 %vm93_vm1, %v16782_v23  ;;  %v16794_v23 = vld [vmem:[#allocation2 + $0x150] sm:$0xff] }
 0x31b   :  { %14488 = vmatmul.mubr.msk.f32.gmra.mrb[12].mxu0 %vm93_vm1, %v16783_v34  ;;  %v16795_v34 = vld [vmem:[#allocation2 + $0x158] sm:$0xff] }
 0x31c   :  { %14490 = vmatprep.mubr.msk.f32.mxu0 %vm93_vm1, %v16784_v32  ;;  %v16796_v32 = vld [vmem:[#allocation2 + $0x168] sm:$0xff] }
 0x31f   :  { %14491 = vmatmul.mubr.msk.f32.gmra.mrb[14].mxu0 %vm93_vm1, %v16785_v63  ;;  %v16797_v63 = vld [vmem:[#allocation2 + $0x170] sm:$0xff] }
 0x320   :  { %14493 = vmatprep.mubr.msk.f32.mxu0 %vm93_vm1, %v16786_v57  ;;  %v19220_v57 = vld [vmem:[#allocation2 + $0x198] sm:$0xff] }
 0x323   :  { %14494 = vmatmul.mubr.msk.f32.gmra.mrb[16].mxu0 %vm93_vm1, %v16787_v30  ;;  %v19226_v30 = vld [vmem:[#allocation2 + $0x1a0] sm:$0xff] }
 0x324   :  { %14496 = vmatprep.mubr.msk.f32.mxu0 %vm93_vm1, %v16788_v26  ;;  %v16798_v26 = vld [vmem:[#allocation2 + $0x1e0] sm:$0xff] }
 0x327   :  { %14497 = vmatmul.mubr.msk.f32.gmra.mrb[18].mxu0 %vm93_vm1, %v16789_v43  ;;  %v16799_v43 = vld [vmem:[#allocation2 + $0x1e8] sm:$0xff] }
 0x328   :  { %14499 = vmatprep.mubr.msk.f32.mxu0 %vm93_vm1, %v16790_v40  ;;  %v16801_v40 = vld [vmem:[#allocation2 + $0x200] sm:$0xff] }
 0x32b   :  { %14500 = vmatmul.mubr.msk.f32.gmra.mrb[20].mxu0 %vm93_vm1, %v16791_v6  ;;  %v16803_v6 = vld [vmem:[#allocation2 + $0x218] sm:$0xff] }
 0x32c   :  { %14502 = vmatprep.mubr.msk.f32.mxu0 %vm93_vm1, %v16792_v1  ;;  %v16804_v1 = vld [vmem:[#allocation2 + $0x228] sm:$0xff] }
 0x32f   :  { %14503 = vmatmul.mubr.msk.f32.gmra.mrb[22].mxu0 %vm93_vm1, %v16793_v8  ;;  %v16805_v8 = vld [vmem:[#allocation2 + $0x230] sm:$0xff] }
 0x330   :  { %14505 = vmatprep.mubr.msk.f32.mxu0 %vm93_vm1, %v16794_v23  ;;  %v16806_v23 = vld [vmem:[#allocation2 + $0x240] sm:$0xff] }
 0x333   :  { %14506 = vmatmul.mubr.msk.f32.gmra.mrb[24].mxu0 %vm93_vm1, %v16795_v34  ;;  %v16807_v34 = vld [vmem:[#allocation2 + $0x248] sm:$0xff] }
 0x334   :  { %14508 = vmatprep.mubr.msk.f32.mxu0 %vm93_vm1, %v16796_v32  ;;  %v16808_v32 = vld [vmem:[#allocation2 + $0x258] sm:$0xff] }
 0x337   :  { %14509 = vmatmul.mubr.msk.f32.gmra.mrb[26].mxu0 %vm93_vm1, %v16797_v63  ;;  %v16809_v63 = vld [vmem:[#allocation2 + $0x260] sm:$0xff] }
 0x338   :  { %14511 = vmatprep.mubr.msk.f32.mxu0 %vm93_vm1, %v18642_v7  ;;  %v16800_v7 = vld [vmem:[#allocation2 + $0x1f8] sm:$0xff] }
 0x33b   :  { %14512 = vmatmul.mubr.msk.f32.gmra.mrb[28].mxu0 %vm93_vm1, %v18648_v10  ;;  %v16802_v10 = vld [vmem:[#allocation2 + $0x210] sm:$0xff] }
 0x33c   :  { %14514 = vmatprep.mubr.msk.f32.mxu0 %vm93_vm1, %v19220_v57 }
 0x33f   :  { %14515 = vmatmul.mubr.msk.f32.gmra.mrb[30].mxu0 %vm93_vm1, %v19226_v30 }
 0x340   :  { %14517 = vmatprep.mubr.msk.f32.mxu0 %vm93_vm1, %v16798_v26  ;;  %v16810_v26 = vld [vmem:[#allocation2 + $0x270] sm:$0xff] }
 0x343   :  { %14518 = vmatmul.mubr.msk.f32.gmra.mrb[32].mxu0 %vm93_vm1, %v16799_v43  ;;  %v16811_v43 = vld [vmem:[#allocation2 + $0x278] sm:$0xff] }
 0x344   :  { %14520 = vmatprep.mubr.msk.f32.mxu0 %vm93_vm1, %v16800_v7  ;;  %v16812_v7 = vld [vmem:[#allocation2 + $0x288] sm:$0xff] }
 0x347   :  { %14521 = vmatmul.mubr.msk.f32.gmra.mrb[34].mxu0 %vm93_vm1, %v16801_v40  ;;  %v16813_v40 = vld [vmem:[#allocation2 + $0x290] sm:$0xff] }
 0x348   :  { %14523 = vmatprep.mubr.msk.f32.mxu0 %vm93_vm1, %v16802_v10  ;;  %v16814_v10 = vld [vmem:[#allocation2 + $0x2a0] sm:$0xff] }
 0x34b   :  { %14524 = vmatmul.mubr.msk.f32.gmra.mrb[36].mxu0 %vm93_vm1, %v16803_v6  ;;  %v16815_v6 = vld [vmem:[#allocation2 + $0x2a8] sm:$0xff] }
 0x34c   :  { %14526 = vmatprep.mubr.msk.f32.mxu0 %vm93_vm1, %v16804_v1  ;;  %v16816_v1 = vld [vmem:[#allocation2 + $0x2b8] sm:$0xff] }
 0x34f   :  { %14527 = vmatmul.mubr.msk.f32.gmra.mrb[38].mxu0 %vm93_vm1, %v16805_v8  ;;  %v16817_v8 = vld [vmem:[#allocation2 + $0x2c0] sm:$0xff] }
 0x350   :  { %14529 = vmatprep.mubr.msk.f32.mxu0 %vm93_vm1, %v16806_v23  ;;  %v16818_v23 = vld [vmem:[#allocation2 + $0x2d0] sm:$0xff] }
 0x353   :  { %14530 = vmatmul.mubr.msk.f32.gmra.mrb[40].mxu0 %vm93_vm1, %v16807_v34  ;;  %v16819_v34 = vld [vmem:[#allocation2 + $0x2d8] sm:$0xff] }
 0x354   :  { %14532 = vmatprep.mubr.msk.f32.mxu0 %vm93_vm1, %v16808_v32  ;;  %v16820_v32 = vld [vmem:[#allocation2 + $0x2e8] sm:$0xff] }
 0x357   :  { %14533 = vmatmul.mubr.msk.f32.gmra.mrb[42].mxu0 %vm93_vm1, %v16809_v63  ;;  %v16821_v63 = vld [vmem:[#allocation2 + $0x2f0] sm:$0xff] }
 0x358   :  { %14535 = vmatprep.mubr.msk.f32.mxu0 %vm93_vm1, %v16810_v26  ;;  %v16822_v26 = vld [vmem:[#allocation2 + $0x300] sm:$0xff] }
 0x35b   :  { %14536 = vmatmul.mubr.msk.f32.gmra.mrb[44].mxu0 %vm93_vm1, %v16811_v43  ;;  %v16823_v43 = vld [vmem:[#allocation2 + $0x308] sm:$0xff] }
 0x35c   :  { %14538 = vmatprep.mubr.msk.f32.mxu0 %vm93_vm1, %v16812_v7  ;;  %v16824_v7 = vld [vmem:[#allocation2 + $0x318] sm:$0xff] }
 0x35f   :  { %14539 = vmatmul.mubr.msk.f32.gmra.mrb[46].mxu0 %vm93_vm1, %v16813_v40  ;;  %v16825_v40 = vld [vmem:[#allocation2 + $0x320] sm:$0xff] }
 0x360   :  { %14541 = vmatprep.mubr.msk.f32.mxu0 %vm93_vm1, %v16814_v10  ;;  %v19260_v10 = vld [vmem:[#allocation2 + $0x348] sm:$0xff] }
 0x363   :  { %14542 = vmatmul.mubr.msk.f32.gmra.mrb[48].mxu0 %vm93_vm1, %v16815_v6  ;;  %v19266_v6 = vld [vmem:[#allocation2 + $0x350] sm:$0xff] }
 0x364   :  { %14544 = vmatprep.mubr.msk.f32.mxu0 %vm93_vm1, %v16816_v1  ;;  %v23631_v1 = vld [vmem:[#allocation29_spill] sm:$0xff] }
 0x367   :  { %14545 = vmatmul.mubr.msk.f32.gmra.mrb[50].mxu0 %vm93_vm1, %v16817_v8  ;;  %v23634_v8 = vld [vmem:[#allocation35_spill] sm:$0xff] }
 0x368   :  { %14547 = vmatprep.mubr.msk.f32.mxu0 %vm93_vm1, %v16818_v23  ;;  %v23635_v23 = vld [vmem:[#allocation42_spill] sm:$0xff] }
 0x36b   :  { %14548 = vmatmul.mubr.msk.f32.gmra.mrb[52].mxu0 %vm93_vm1, %v16819_v34  ;;  %v23636_v34 = vld [vmem:[#allocation46_spill] sm:$0xff] }
 0x36c   :  { %14550 = vmatprep.mubr.msk.f32.mxu0 %vm93_vm1, %v16820_v32  ;;  %v23638_v32 = vld [vmem:[#allocation56_spill] sm:$0xff] }
 0x36f   :  { %14551 = vmatmul.mubr.msk.f32.gmra.mrb[54].mxu0 %vm93_vm1, %v16821_v63  ;;  %v23640_v63 = vld [vmem:[#allocation58_spill] sm:$0xff] }
 0x370   :  { %14553 = vmatprep.mubr.msk.f32.mxu0 %vm93_vm1, %v16822_v26  ;;  %v23641_v26 = vld [vmem:[#allocation59_spill] sm:$0xff] }
 0x373   :  { %14554 = vmatmul.mubr.msk.f32.gmra.mrb[56].mxu0 %vm93_vm1, %v16823_v43  ;;  %v23642_v43 = vld [vmem:[#allocation63_spill] sm:$0xff] }
 0x374   :  { %14556 = vmatprep.mubr.msk.f32.mxu0 %vm93_vm1, %v16824_v7  ;;  %v23643_v7 = vld [vmem:[#allocation67_spill] sm:$0xff] }
 0x377   :  { %14557 = vmatmul.mubr.msk.f32.gmra.mrb[58].mxu0 %vm93_vm1, %v16825_v40  ;;  %v23644_v40 = vld [vmem:[#allocation68_spill] sm:$0xff] }
 0x378   :  { %14559 = vmatprep.mubr.msk.f32.mxu0 %vm93_vm1, %v18710_v11  ;;  %v23632_v11 = vld [vmem:[#allocation30_spill] sm:$0xff] }
 0x37b   :  { %14560 = vmatmul.mubr.msk.f32.gmra.mrb[60].mxu0 %vm93_vm1, %v18716_v12  ;;  %v23633_v12 = vld [vmem:[#allocation32_spill] sm:$0xff] }
 0x37c   :  { %14562 = vmatprep.mubr.msk.f32.mxu0 %vm93_vm1, %v19260_v10 }
 0x37f   :  { %14563 = vmatmul.mubr.msk.f32.gmra.mrb[62].mxu0 %vm93_vm1, %v19266_v6 }
 0x380   :  { %14567 = vmatprep.mubr.msk.f32.mxu0 %vm93_vm1, %v23530_v22  ;;  %v23637_v22 = vld [vmem:[#allocation55_spill] sm:$0xff] }
 0x383   :  { %14568 = vmatmul.mubr.msk.f32.vlgmr.msra.gmra.mrb[0].mxu0 %vm93_vm1, %v23631_v1  ;;  %v23645_v1 = vld [vmem:[#allocation71_spill] sm:$0xff] }
 0x384   :  { %14664 = vmatpush3.msk.msra.mxu0 %vm748_vm0, %v19174_v2  ;;  %14570 = vmatprep.mubr.msk.f32.mxu0 %vm93_vm1, %v23632_v11  ;;  %v23639_v2 = vld [vmem:[#allocation57_spill] sm:$0xff]  ;;  %v23646_v11 = vld [vmem:[#allocation72_spill] sm:$0xff] }
 0x387   :  { %14571 = vmatmul.mubr.msk.f32.gmra.mrb[2].mxu0 %vm93_vm1, %v23633_v12  ;;  %v23647_v12 = vld [vmem:[#allocation75_spill] sm:$0xff] }
 0x388   :  { %14573 = vmatprep.mubr.msk.f32.mxu0 %vm93_vm1, %v23634_v8  ;;  %v23648_v8 = vld [vmem:[#allocation76_spill] sm:$0xff] }
 0x38b   :  { %14574 = vmatmul.mubr.msk.f32.gmra.mrb[4].mxu0 %vm93_vm1, %v23635_v23  ;;  %v23649_v23 = vld [vmem:[#allocation79_spill] sm:$0xff] }
 0x38c   :  { %14576 = vmatprep.mubr.msk.f32.mxu0 %vm93_vm1, %v23636_v34  ;;  %v23650_v34 = vld [vmem:[#allocation80_spill] sm:$0xff] }
 0x38f   :  { %14577 = vmatmul.mubr.msk.f32.gmra.mrb[6].mxu0 %vm93_vm1, %v23637_v22  ;;  %v23651_v22 = vld [vmem:[#allocation83_spill] sm:$0xff] }
 0x390   :  { %14579 = vmatprep.mubr.msk.f32.mxu0 %vm93_vm1, %v23638_v32  ;;  %v23652_v32 = vld [vmem:[#allocation84_spill] sm:$0xff] }
 0x393   :  { %14580 = vmatmul.mubr.msk.f32.gmra.mrb[8].mxu0 %vm93_vm1, %v23639_v2  ;;  %v23653_v2 = vld [vmem:[#allocation87_spill] sm:$0xff] }
 0x394   :  { %14582 = vmatprep.mubr.msk.f32.mxu0 %vm93_vm1, %v23640_v63  ;;  %v23654_v63 = vld [vmem:[#allocation88_spill] sm:$0xff] }
 0x397   :  { %14583 = vmatmul.mubr.msk.f32.gmra.mrb[10].mxu0 %vm93_vm1, %v23641_v26  ;;  %v23655_v26 = vld [vmem:[#allocation91_spill] sm:$0xff] }
 0x398   :  { %14585 = vmatprep.mubr.msk.f32.mxu0 %vm93_vm1, %v23642_v43  ;;  %v23656_v43 = vld [vmem:[#allocation92_spill] sm:$0xff] }
 0x39b   :  { %14586 = vmatmul.mubr.msk.f32.gmra.mrb[12].mxu0 %vm93_vm1, %v23643_v7  ;;  %v4266_v7 = vrot.slane %v19220_v57, 1 }
 0x39c   :  { %14588 = vmatprep.mubr.msk.f32.mxu0 %vm93_vm1, %v23644_v40  ;;  %v4267_v40 = vrot.slane %v19226_v30, 1 }
 0x39f   :  { %14589 = vmatmul.mubr.msk.f32.gmra.mrb[14].mxu0 %vm93_vm1, %v23645_v1  ;;  %v19328_v1 = vld [vmem:[#allocation2 + $0x1a8] sm:$0x3] }
 0x3a0   :  { %14591 = vmatprep.mubr.msk.f32.mxu0 %vm93_vm1, %v23646_v11  ;;  %v4269_v11 = vrot.slane %v19328_v1, 1 }
 0x3a3   :  { %14592 = vmatmul.mubr.msk.f32.gmra.mrb[16].mxu0 %vm93_vm1, %v23647_v12  ;;  %v4268_v12 = vsel %vm459_vm4, %v4266_v7, %v4267_v40  ;;  %v23683_v7 = vld [vmem:[#allocation26_spill] sm:$0xff] }
 0x3a4   :  { %14594 = vmatprep.mubr.msk.f32.mxu0 %vm93_vm1, %v23648_v8  ;;  %v4270_v8 = vsel %vm459_vm4, %v4267_v40, %v4269_v11  ;;  %v23688_v11 = vld [vmem:[#allocation97_spill] sm:$0xff] }
 0x3a7   :  { %14595 = vmatmul.mubr.msk.f32.gmra.mrb[18].mxu0 %vm93_vm1, %v23649_v23  ;;  %v16826_v23 = vld [vmem:[#allocation2 + $0x1b0] sm:$0xff] }
 0x3a8   :  { %14597 = vmatprep.mubr.msk.f32.mxu0 %vm93_vm1, %v23650_v34  ;;  %v540_v34 = vrot.slane %v16826_v23, 1  ;;  %v23691_v23 = vld [vmem:[#allocation101_spill] sm:$0xff] }
 0x3ab   :  { %14598 = vmatmul.mubr.msk.f32.gmra.mrb[20].mxu0 %vm93_vm1, %v23651_v22  ;;  %v16827_v22 = vld [vmem:[#allocation2 + $0x1b8] sm:$0xff] }
 0x3ac   :  { %14600 = vmatprep.mubr.msk.f32.mxu0 %vm93_vm1, %v23652_v32  ;;  %v541_v32 = vrot.slane %v16827_v22, 1  ;;  %v23693_v22 = vld [vmem:[#allocation103_spill] sm:$0xff] }
 0x3af   :  { %14601 = vmatmul.mubr.msk.f32.gmra.mrb[22].mxu0 %vm93_vm1, %v23653_v2 }
 0x3b0   :  { %14603 = vmatprep.mubr.msk.f32.mxu0 %vm93_vm1, %v23654_v63  ;;  %v4737_v63 = vrot.slane %v19226_v30, 2  ;;  %v23685_v30 = vld [vmem:[#allocation94_spill] sm:$0xff] }
 0x3b3   :  { %14604 = vmatmul.mubr.msk.f32.gmra.mrb[24].mxu0 %vm93_vm1, %v23655_v26  ;;  %v23682_v26 = vld [vmem:[#allocation149_spill] sm:$0xff] }
 0x3b4   :  { %14606 = vmatprep.mubr.msk.f32.mxu0 %vm93_vm1, %v23656_v43 }
 0x3b7   :  { %14607 = vmatmul.mubr.msk.f32.gmra.mrb[26].mxu0 %vm93_vm1, %v23557_v20  ;;  %v16828_v20 = vld [vmem:[#allocation2 + $0x1c0] sm:$0x3] }
 0x3b8   :  { %14609 = vmatprep.mubr.msk.f32.mxu0 %vm93_vm1, %v18795_v33  ;;  %v543_v2 = vrot.slane %v16828_v20, 1  ;;  %v542_v33 = vsel %vm459_vm4, %v540_v34, %v541_v32  ;;  %v23692_v34 = vld [vmem:[#allocation154_spill] sm:$0xff]  ;;  %v23695_v20 = vld [vmem:[#allocation105_spill] sm:$0xff] }
 0x3b9   :  { %13929 = vmatprep.mubr.msk.f32.mxu1 %vm93_vm1, %v542_v33  ;;  %v23697_v33 = vmov 0.0  }
 0x3ba   :  { %5413 = vst.msk [vmem:[#allocation3] sm:$0xff] %vm5412_vm6, %v23697_v33  ;;  %5414 = vst.msk [vmem:[#allocation3 + $0x8] sm:$0xff] %vm5412_vm6, %v23697_v33 }
 0x3bb   :  { %14610 = vmatmul.mubr.msk.f32.gmra.mrb[28].mxu0 %vm93_vm1, %v18802_v27  ;;  %v544_v27 = vsel %vm459_vm4, %v541_v32, %v543_v2  ;;  %v23694_v32 = vld [vmem:[#allocation155_spill] sm:$0xff]  ;;  %v23696_v2 = vld [vmem:[#allocation156_spill] sm:$0xff]  ;;  %5417 = vst.msk [vmem:[#allocation3 + $0x1b0] sm:$0xff] %vm5412_vm6, %v23697_v33  ;;  %5418 = vst.msk [vmem:[#allocation3 + $0x1b8] sm:$0xff] %vm5412_vm6, %v23697_v33 }
 0x3bc   :  { %14612 = vmatprep.mubr.msk.f32.mxu0 %vm93_vm1, %v4268_v12  ;;  %13930 = vmatmul.mubr.msk.f32.vlgmr.msra.gmra.mrb[0].mxu1 %vm93_vm1, %v544_v27  ;;  %v23689_v12 = vld [vmem:[#allocation99_spill] sm:$0xff]  ;;  %5421 = vst.msk [vmem:[#allocation3 + $0x198] sm:$0xff] %vm5412_vm6, %v23697_v33  ;;  %5422 = vst.msk [vmem:[#allocation3 + $0x1a0] sm:$0xff] %vm5412_vm6, %v23697_v33 }
 0x3bd   :  { %13932 = vmatprep.mubr.msk.f32.mxu1 %vm93_vm1, %v18806_v41  ;;  %v4271_v41 = vrot.slane %v19260_v10, 1  ;;  %5424 = vst.msk [vmem:[#allocation3 + $0x348] sm:$0xff] %vm5412_vm6, %v23697_v33  ;;  %5425 = vst.msk [vmem:[#allocation3 + $0x350] sm:$0xff] %vm5412_vm6, %v23697_v33  ;;  %v23698_v27 = vld [vmem:[#allocation107_spill] sm:$0xff] }
 0x3be   :  { %5428 = vst.msk [vmem:[#allocation3] sm:$0x1] %vm5427_vm7, %v23697_v33  ;;  %5429 = vst.msk [vmem:[#allocation3 + $0x18] sm:$0x1] %vm5427_vm7, %v23697_v33 }
 0x3bf   :  { %14613 = vmatmul.mubr.msk.f32.gmra.mrb[30].mxu0 %vm93_vm1, %v4270_v8  ;;  %v23690_v8 = vld [vmem:[#allocation153_spill] sm:$0xff]  ;;  %5430 = vst.msk [vmem:[#allocation3 + $0x30] sm:$0x1] %vm5427_vm7, %v23697_v33  ;;  %5431 = vst.msk [vmem:[#allocation3 + $0x48] sm:$0x1] %vm5427_vm7, %v23697_v33 }
 0x3c0   :  { %14615 = vmatprep.mubr.msk.f32.mxu0 %vm93_vm1, %v18819_v24  ;;  %13933 = vmatmul.mubr.msk.f32.gmra.mrb[2].mxu1 %vm93_vm1, %v18815_v15  ;;  %v4272_v15 = vrot.slane %v19266_v6, 1  ;;  %5432 = vst.msk [vmem:[#allocation3 + $0x60] sm:$0x1] %vm5427_vm7, %v23697_v33  ;;  %5433 = vst.msk [vmem:[#allocation3 + $0x78] sm:$0x1] %vm5427_vm7, %v23697_v33 }
 0x3c1   :  { %13935 = vmatprep.mubr.msk.f32.mxu1 %vm93_vm1, %v18819_v24  ;;  %v19451_v24 = vld [vmem:[#allocation2 + $0x358] sm:$0x3]  ;;  %5434 = vst.msk [vmem:[#allocation3 + $0x90] sm:$0x1] %vm5427_vm7, %v23697_v33  ;;  %5435 = vst.msk [vmem:[#allocation3 + $0xa8] sm:$0x1] %vm5427_vm7, %v23697_v33 }
 0x3c2   :  { %5436 = vst.msk [vmem:[#allocation3 + $0xc0] sm:$0x1] %vm5427_vm7, %v23697_v33  ;;  %5437 = vst.msk [vmem:[#allocation3 + $0xd8] sm:$0x1] %vm5427_vm7, %v23697_v33 }
 0x3c3   :  { %14616 = vmatmul.mubr.msk.f32.gmra.mrb[32].mxu0 %vm93_vm1, %v18828_v0  ;;  %5438 = vst.msk [vmem:[#allocation3 + $0xf0] sm:$0x1] %vm5427_vm7, %v23697_v33  ;;  %5439 = vst.msk [vmem:[#allocation3 + $0x108] sm:$0x1] %vm5427_vm7, %v23697_v33 }
 0x3c4   :  { %14618 = vmatprep.mubr.msk.f32.mxu0 %vm93_vm1, %v18832_v36  ;;  %13936 = vmatmul.mubr.msk.f32.gmra.mrb[4].mxu1 %vm93_vm1, %v18828_v0  ;;  %v4274_v0 = vrot.slane %v19451_v24, 1  ;;  %5440 = vst.msk [vmem:[#allocation3 + $0x120] sm:$0x1] %vm5427_vm7, %v23697_v33  ;;  %5441 = vst.msk [vmem:[#allocation3 + $0x138] sm:$0x1] %vm5427_vm7, %v23697_v33 }
 0x3c5   :  { %13938 = vmatprep.mubr.msk.f32.mxu1 %vm93_vm1, %v18832_v36  ;;  %v4273_v36 = vsel %vm459_vm4, %v4271_v41, %v4272_v15  ;;  %5442 = vst.msk [vmem:[#allocation3 + $0x150] sm:$0x1] %vm5427_vm7, %v23697_v33  ;;  %5443 = vst.msk [vmem:[#allocation3 + $0x168] sm:$0x1] %vm5427_vm7, %v23697_v33  ;;  %v23699_v41 = vld [vmem:[#allocation109_spill] sm:$0xff] }
 0x3c6   :  { %5444 = vst.msk [vmem:[#allocation3 + $0x180] sm:$0x1] %vm5427_vm7, %v23697_v33  ;;  %5445 = vst.msk [vmem:[#allocation3 + $0x198] sm:$0x1] %vm5427_vm7, %v23697_v33 }
 0x3c7   :  { %14619 = vmatmul.mubr.msk.f32.gmra.mrb[34].mxu0 %vm93_vm1, %v18841_v42  ;;  %5446 = vst.msk [vmem:[#allocation3 + $0x1b0] sm:$0x1] %vm5427_vm7, %v23697_v33  ;;  %5447 = vst.msk [vmem:[#allocation3 + $0x1c8] sm:$0x1] %vm5427_vm7, %v23697_v33 }
 0x3c8   :  { %14621 = vmatprep.mubr.msk.f32.mxu0 %vm93_vm1, %v18845_v61  ;;  %13939 = vmatmul.mubr.msk.f32.gmra.mrb[6].mxu1 %vm93_vm1, %v18841_v42  ;;  %v4275_v42 = vsel %vm459_vm4, %v4272_v15, %v4274_v0  ;;  %5448 = vst.msk [vmem:[#allocation3 + $0x1e0] sm:$0x1] %vm5427_vm7, %v23697_v33  ;;  %5449 = vst.msk [vmem:[#allocation3 + $0x1f8] sm:$0x1] %vm5427_vm7, %v23697_v33  ;;  %v5574_v15 = vld [vmem:[#allocation3] sm:$0xff]  ;;  %v5575_v0 = vld [vmem:[#allocation3 + $0x8] sm:$0xff] }
 0x3c9   :  { %13941 = vmatprep.mubr.msk.f32.mxu1 %vm93_vm1, %v18845_v61  ;;  %v5566_v61 = vld [vmem:[%s22761_s4 + $0x8] sm:$0xff]  ;;  %5450 = vst.msk [vmem:[#allocation3 + $0x210] sm:$0x1] %vm5427_vm7, %v23697_v33  ;;  %5451 = vst.msk [vmem:[#allocation3 + $0x228] sm:$0x1] %vm5427_vm7, %v23697_v33 }
 0x3ca   :  { %14761 = vmatprep.subr.mxu1 %v5566_v61  ;;  %5452 = vst.msk [vmem:[#allocation3 + $0x240] sm:$0x1] %vm5427_vm7, %v23697_v33  ;;  %5453 = vst.msk [vmem:[#allocation3 + $0x258] sm:$0x1] %vm5427_vm7, %v23697_v33 }
 0x3cb   :  { %14622 = vmatmul.mubr.msk.f32.gmra.mrb[36].mxu0 %vm93_vm1, %v18854_v37  ;;  %14762 = vmatpush3.msra.mxu1 %v5566_v61  ;;  %5454 = vst.msk [vmem:[#allocation3 + $0x270] sm:$0x1] %vm5427_vm7, %v23697_v33  ;;  %5455 = vst.msk [vmem:[#allocation3 + $0x288] sm:$0x1] %vm5427_vm7, %v23697_v33 }
 0x3cc   :  { %14624 = vmatprep.mubr.msk.f32.mxu0 %vm93_vm1, %v18858_v3  ;;  %13942 = vmatmul.mubr.msk.f32.gmra.mrb[8].mxu1 %vm93_vm1, %v18854_v37  ;;  %v23657_v37 = vld [vmem:[#allocation121_spill] sm:$0xff]  ;;  %5456 = vst.msk [vmem:[#allocation3 + $0x2a0] sm:$0x1] %vm5427_vm7, %v23697_v33  ;;  %5457 = vst.msk [vmem:[#allocation3 + $0x2b8] sm:$0x1] %vm5427_vm7, %v23697_v33 }
 0x3cd   :  { %13944 = vmatprep.mubr.msk.f32.mxu1 %vm93_vm1, %v18858_v3  ;;  %v23658_v3 = vld [vmem:[#allocation122_spill] sm:$0xff]  ;;  %5458 = vst.msk [vmem:[#allocation3 + $0x2d0] sm:$0x1] %vm5427_vm7, %v23697_v33  ;;  %5459 = vst.msk [vmem:[#allocation3 + $0x2e8] sm:$0x1] %vm5427_vm7, %v23697_v33 }
 0x3ce   :  { %5460 = vst.msk [vmem:[#allocation3 + $0x300] sm:$0x1] %vm5427_vm7, %v23697_v33  ;;  %5461 = vst.msk [vmem:[#allocation3 + $0x318] sm:$0x1] %vm5427_vm7, %v23697_v33 }
 0x3cf   :  { %14625 = vmatmul.mubr.msk.f32.gmra.mrb[38].mxu0 %vm93_vm1, %v18867_v50  ;;  %5462 = vst.msk [vmem:[#allocation3 + $0x330] sm:$0x1] %vm5427_vm7, %v23697_v33  ;;  %5463 = vst.msk [vmem:[#allocation3 + $0x348] sm:$0x1] %vm5427_vm7, %v23697_v33 }
 0x3d0   :  { %14627 = vmatprep.mubr.msk.f32.mxu0 %vm93_vm1, %v18871_v4  ;;  %13945 = vmatmul.mubr.msk.f32.gmra.mrb[10].mxu1 %vm93_vm1, %v18867_v50  ;;  %v23659_v50 = vld [vmem:[#allocation123_spill] sm:$0xff]  ;;  %5465 = vst.msk [vmem:[#allocation3 + $0x29] sm:$0x1] %vm5427_vm7, %v23697_v33  ;;  %5466 = vst.msk [vmem:[#allocation3 + $0x41] sm:$0x1] %vm5427_vm7, %v23697_v33 }
 0x3d1   :  { %13947 = vmatprep.mubr.msk.f32.mxu1 %vm93_vm1, %v18871_v4  ;;  %v23660_v4 = vld [vmem:[#allocation124_spill] sm:$0xff]  ;;  %5467 = vst.msk [vmem:[#allocation3 + $0x59] sm:$0x1] %vm5427_vm7, %v23697_v33  ;;  %5468 = vst.msk [vmem:[#allocation3 + $0x71] sm:$0x1] %vm5427_vm7, %v23697_v33 }
 0x3d2   :  { %5469 = vst.msk [vmem:[#allocation3 + $0x89] sm:$0x1] %vm5427_vm7, %v23697_v33  ;;  %5470 = vst.msk [vmem:[#allocation3 + $0xa1] sm:$0x1] %vm5427_vm7, %v23697_v33 }
 0x3d3   :  { %14628 = vmatmul.mubr.msk.f32.gmra.mrb[40].mxu0 %vm93_vm1, %v18880_v13  ;;  %5471 = vst.msk [vmem:[#allocation3 + $0xb9] sm:$0x1] %vm5427_vm7, %v23697_v33  ;;  %5472 = vst.msk [vmem:[#allocation3 + $0xd1] sm:$0x1] %vm5427_vm7, %v23697_v33 }
 0x3d4   :  { %14630 = vmatprep.mubr.msk.f32.mxu0 %vm93_vm1, %v18884_v39  ;;  %13948 = vmatmul.mubr.msk.f32.gmra.mrb[12].mxu1 %vm93_vm1, %v18880_v13  ;;  %v23661_v13 = vld [vmem:[#allocation125_spill] sm:$0xff]  ;;  %5473 = vst.msk [vmem:[#allocation3 + $0xe9] sm:$0x1] %vm5427_vm7, %v23697_v33  ;;  %5474 = vst.msk [vmem:[#allocation3 + $0x101] sm:$0x1] %vm5427_vm7, %v23697_v33 }
 0x3d5   :  { %13950 = vmatprep.mubr.msk.f32.mxu1 %vm93_vm1, %v18884_v39  ;;  %v23662_v39 = vld [vmem:[#allocation126_spill] sm:$0xff]  ;;  %5475 = vst.msk [vmem:[#allocation3 + $0x119] sm:$0x1] %vm5427_vm7, %v23697_v33  ;;  %5476 = vst.msk [vmem:[#allocation3 + $0x131] sm:$0x1] %vm5427_vm7, %v23697_v33 }
 0x3d6   :  { %5477 = vst.msk [vmem:[#allocation3 + $0x149] sm:$0x1] %vm5427_vm7, %v23697_v33  ;;  %5478 = vst.msk [vmem:[#allocation3 + $0x161] sm:$0x1] %vm5427_vm7, %v23697_v33 }
 0x3d7   :  { %14631 = vmatmul.mubr.msk.f32.gmra.mrb[42].mxu0 %vm93_vm1, %v18893_v46  ;;  %5479 = vst.msk [vmem:[#allocation3 + $0x179] sm:$0x1] %vm5427_vm7, %v23697_v33  ;;  %5480 = vst.msk [vmem:[#allocation3 + $0x191] sm:$0x1] %vm5427_vm7, %v23697_v33 }
 0x3d8   :  { %14633 = vmatprep.mubr.msk.f32.mxu0 %vm93_vm1, %v18897_v21  ;;  %13951 = vmatmul.mubr.msk.f32.gmra.mrb[14].mxu1 %vm93_vm1, %v18893_v46  ;;  %v23663_v46 = vld [vmem:[#allocation127_spill] sm:$0xff]  ;;  %5483 = vst.msk [vmem:[#allocation3 + $0x1d9] sm:$0x1] %vm5427_vm7, %v23697_v33  ;;  %5484 = vst.msk [vmem:[#allocation3 + $0x1f1] sm:$0x1] %vm5427_vm7, %v23697_v33 }
 0x3d9   :  { %13953 = vmatprep.mubr.msk.f32.mxu1 %vm93_vm1, %v18897_v21  ;;  %v23664_v21 = vld [vmem:[#allocation128_spill] sm:$0xff]  ;;  %5485 = vst.msk [vmem:[#allocation3 + $0x209] sm:$0x1] %vm5427_vm7, %v23697_v33  ;;  %5486 = vst.msk [vmem:[#allocation3 + $0x221] sm:$0x1] %vm5427_vm7, %v23697_v33 }
 0x3da   :  { %5487 = vst.msk [vmem:[#allocation3 + $0x239] sm:$0x1] %vm5427_vm7, %v23697_v33  ;;  %5488 = vst.msk [vmem:[#allocation3 + $0x251] sm:$0x1] %vm5427_vm7, %v23697_v33 }
 0x3db   :  { %14634 = vmatmul.mubr.msk.f32.gmra.mrb[44].mxu0 %vm93_vm1, %v18906_v58  ;;  %5489 = vst.msk [vmem:[#allocation3 + $0x269] sm:$0x1] %vm5427_vm7, %v23697_v33  ;;  %5490 = vst.msk [vmem:[#allocation3 + $0x281] sm:$0x1] %vm5427_vm7, %v23697_v33 }
 0x3dc   :  { %14636 = vmatprep.mubr.msk.f32.mxu0 %vm93_vm1, %v18910_v28  ;;  %13954 = vmatmul.mubr.msk.f32.gmra.mrb[16].mxu1 %vm93_vm1, %v18906_v58  ;;  %v23665_v58 = vld [vmem:[#allocation129_spill] sm:$0xff]  ;;  %5491 = vst.msk [vmem:[#allocation3 + $0x299] sm:$0x1] %vm5427_vm7, %v23697_v33  ;;  %5492 = vst.msk [vmem:[#allocation3 + $0x2b1] sm:$0x1] %vm5427_vm7, %v23697_v33 }
 0x3dd   :  { %13956 = vmatprep.mubr.msk.f32.mxu1 %vm93_vm1, %v18910_v28  ;;  %v23666_v28 = vld [vmem:[#allocation130_spill] sm:$0xff]  ;;  %5493 = vst.msk [vmem:[#allocation3 + $0x2c9] sm:$0x1] %vm5427_vm7, %v23697_v33  ;;  %5494 = vst.msk [vmem:[#allocation3 + $0x2e1] sm:$0x1] %vm5427_vm7, %v23697_v33 }
 0x3de   :  { %5495 = vst.msk [vmem:[#allocation3 + $0x2f9] sm:$0x1] %vm5427_vm7, %v23697_v33  ;;  %5496 = vst.msk [vmem:[#allocation3 + $0x311] sm:$0x1] %vm5427_vm7, %v23697_v33 }
 0x3df   :  { %14637 = vmatmul.mubr.msk.f32.gmra.mrb[46].mxu0 %vm93_vm1, %v18919_v62  ;;  %5497 = vst.msk [vmem:[#allocation3 + $0x329] sm:$0x1] %vm5427_vm7, %v23697_v33  ;;  %5498 = vst.msk [vmem:[#allocation3 + $0x341] sm:$0x1] %vm5427_vm7, %v23697_v33 }
 0x3e0   :  { %14639 = vmatprep.mubr.msk.f32.mxu0 %vm93_vm1, %v18923_v48  ;;  %13957 = vmatmul.mubr.msk.f32.gmra.mrb[18].mxu1 %vm93_vm1, %v18919_v62  ;;  %v23667_v62 = vld [vmem:[#allocation131_spill] sm:$0xff]  ;;  %5416 = vst.msk [vmem:[#allocation3 + $0x10] sm:$0x3] %vm5415_vm8, %v23697_v33  ;;  %5419 = vst.msk [vmem:[#allocation3 + $0x1c0] sm:$0x3] %vm5415_vm8, %v23697_v33 }
 0x3e1   :  { %13959 = vmatprep.mubr.msk.f32.mxu1 %vm93_vm1, %v18923_v48  ;;  %v23668_v48 = vld [vmem:[#allocation132_spill] sm:$0xff]  ;;  %5423 = vst.msk [vmem:[#allocation3 + $0x1a8] sm:$0x3] %vm5415_vm8, %v23697_v33  ;;  %5426 = vst.msk [vmem:[#allocation3 + $0x358] sm:$0x3] %vm5415_vm8, %v23697_v33 }
 0x3e2   :  { %5464 = vst.msk [vmem:[#allocation3 + $0x11] sm:$0x1] %vm5427_vm7, %v23697_v33  ;;  %5481 = vst.msk [vmem:[#allocation3 + $0x1a9] sm:$0x1] %vm5427_vm7, %v23697_v33 }
 0x3e3   :  { %14640 = vmatmul.mubr.msk.f32.gmra.mrb[48].mxu0 %vm93_vm1, %v18932_v52  ;;  %5482 = vst.msk [vmem:[#allocation3 + $0x1c1] sm:$0x1] %vm5427_vm7, %v23697_v33  ;;  %5499 = vst.msk [vmem:[#allocation3 + $0x359] sm:$0x1] %vm5427_vm7, %v23697_v33 }
 0x3e4   :  { %14642 = vmatprep.mubr.msk.f32.mxu0 %vm93_vm1, %v18936_v35  ;;  %13960 = vmatmul.mubr.msk.f32.gmra.mrb[20].mxu1 %vm93_vm1, %v18932_v52  ;;  %v23669_v52 = vld [vmem:[#allocation133_spill] sm:$0xff] }
 0x3e5   :  { %13962 = vmatprep.mubr.msk.f32.mxu1 %vm93_vm1, %v18936_v35  ;;  %v23670_v35 = vld [vmem:[#allocation134_spill] sm:$0xff] }
 0x3e7   :  { %14643 = vmatmul.mubr.msk.f32.gmra.mrb[50].mxu0 %vm93_vm1, %v18945_v47 }
 0x3e8   :  { %14645 = vmatprep.mubr.msk.f32.mxu0 %vm93_vm1, %v18949_v45  ;;  %13963 = vmatmul.mubr.msk.f32.gmra.mrb[22].mxu1 %vm93_vm1, %v18945_v47  ;;  %v23671_v47 = vld [vmem:[#allocation135_spill] sm:$0xff] }
 0x3e9   :  { %13965 = vmatprep.mubr.msk.f32.mxu1 %vm93_vm1, %v18949_v45  ;;  %v23672_v45 = vld [vmem:[#allocation136_spill] sm:$0xff]  ;;  %v5576_v61 = vld [vmem:[#allocation3 + $0x10] sm:$0x3] }
 0x3eb   :  { %14646 = vmatmul.mubr.msk.f32.gmra.mrb[52].mxu0 %vm93_vm1, %v18958_v29 }
 0x3ec   :  { %14648 = vmatprep.mubr.msk.f32.mxu0 %vm93_vm1, %v18962_v53  ;;  %13966 = vmatmul.mubr.msk.f32.gmra.mrb[24].mxu1 %vm93_vm1, %v18958_v29  ;;  %v23673_v29 = vld [vmem:[#allocation137_spill] sm:$0xff] }
 0x3ed   :  { %13968 = vmatprep.mubr.msk.f32.mxu1 %vm93_vm1, %v18962_v53  ;;  %v23674_v53 = vld [vmem:[#allocation138_spill] sm:$0xff] }
 0x3ef   :  { %14649 = vmatmul.mubr.msk.f32.gmra.mrb[54].mxu0 %vm93_vm1, %v18971_v31 }
 0x3f0   :  { %14651 = vmatprep.mubr.msk.f32.mxu0 %vm93_vm1, %v18975_v14  ;;  %13969 = vmatmul.mubr.msk.f32.gmra.mrb[26].mxu1 %vm93_vm1, %v18971_v31  ;;  %v23675_v31 = vld [vmem:[#allocation139_spill] sm:$0xff] }
 0x3f1   :  { %13971 = vmatprep.mubr.msk.f32.mxu1 %vm93_vm1, %v18975_v14  ;;  %v23676_v14 = vld [vmem:[#allocation140_spill] sm:$0xff] }
 0x3f3   :  { %14652 = vmatmul.mubr.msk.f32.gmra.mrb[56].mxu0 %vm93_vm1, %v18984_v49 }
 0x3f4   :  { %14654 = vmatprep.mubr.msk.f32.mxu0 %vm93_vm1, %v18990_v56  ;;  %13972 = vmatmul.mubr.msk.f32.gmra.mrb[28].mxu1 %vm93_vm1, %v18984_v49  ;;  %v23677_v49 = vld [vmem:[#allocation141_spill] sm:$0xff] }
 0x3f5   :  { %13974 = vmatprep.mubr.msk.f32.mxu1 %vm93_vm1, %v18990_v56  ;;  %v23678_v56 = vld [vmem:[#allocation142_spill] sm:$0xff] }
 0x3f7   :  { %14655 = vmatmul.mubr.msk.f32.gmra.mrb[58].mxu0 %vm93_vm1, %v18999_v5 }
 0x3f8   :  { %14657 = vmatprep.mubr.msk.f32.mxu0 %vm93_vm1, %v19003_v59  ;;  %13975 = vmatmul.mubr.msk.f32.gmra.mrb[30].mxu1 %vm93_vm1, %v18999_v5  ;;  %v23679_v5 = vld [vmem:[#allocation144_spill] sm:$0xff]  ;;  %v23680_v59 = vld [vmem:[#allocation147_spill] sm:$0xff] }
 0x3fb   :  { %14658 = vmatmul.mubr.msk.f32.gmra.mrb[60].mxu0 %vm93_vm1, %v19010_v9  ;;  %v23681_v9 = vld [vmem:[#allocation148_spill] sm:$0xff] }
 0x3fc   :  { %14660 = vmatprep.mubr.msk.f32.mxu0 %vm93_vm1, %v4273_v36  ;;  %v5778_v36 = vrot.slane %v5574_v15, 1 }
 0x3ff   :  { %14661 = vmatmul.mubr.msk.f32.gmra.mrb[62].mxu0 %vm93_vm1, %v4275_v42  ;;  %v5779_v42 = vrot.slane %v5575_v0, 1 }
 0x400   :  { %14665 = vmatprep.mubr.msk.f32.mxu0 %vm93_vm1, %v23569_v51  ;;  %v4736_v51 = vrot.slane %v19220_v57, 2  ;;  %v23684_v57 = vld [vmem:[#allocation152_spill] sm:$0xff] }
 0x402   :  { %v4738_v43 = vsel %vm1653_vm5, %v4736_v51, %v4737_v63 }
 0x403   :  { %14666 = vmatmul.mubr.msk.f32.vlgmr.msra.gmra.mrb[0].mxu0 %vm93_vm1, %v23657_v37  ;;  %v23700_v37 = vld [vmem:[#allocation111_spill] sm:$0xff] }
 0x404   :  { %14668 = vmatprep.mubr.msk.f32.mxu0 %vm93_vm1, %v23658_v3  ;;  %v5781_v3 = vrot.slane %v5576_v61, 1 }
 0x407   :  { %14669 = vmatmul.mubr.msk.f32.gmra.mrb[2].mxu0 %vm93_vm1, %v23659_v50  ;;  %v23701_v50 = vld [vmem:[#allocation159_spill] sm:$0xff] }
 0x408   :  { %14671 = vmatprep.mubr.msk.f32.mxu0 %vm93_vm1, %v23660_v4  ;;  %v5782_v4 = vsel %vm459_vm4, %v5779_v42, %v5781_v3 }
 0x40b   :  { %14672 = vmatmul.mubr.msk.f32.gmra.mrb[4].mxu0 %vm93_vm1, %v23661_v13  ;;  %v23703_v13 = vld [vmem:[#allocation161_spill] sm:$0xff] }
 0x40c   :  { %14674 = vmatprep.mubr.msk.f32.mxu0 %vm93_vm1, %v23662_v39  ;;  %v5565_v39 = vld [vmem:[%s22761_s4] sm:$0xff] }
 0x40d   :  { %14859 = vmatprep.subr.mxu1 %v5565_v39 }
 0x40f   :  { %14675 = vmatmul.mubr.msk.f32.gmra.mrb[6].mxu0 %vm93_vm1, %v23663_v46  ;;  %v23704_v46 = vld [vmem:[#allocation162_spill] sm:$0xff] }
 0x410   :  { %14677 = vmatprep.mubr.msk.f32.mxu0 %vm93_vm1, %v23664_v21  ;;  %v23705_v21 = vld [vmem:[#allocation27_spill] sm:$0xff] }
 0x413   :  { %14678 = vmatmul.mubr.msk.f32.gmra.mrb[8].mxu0 %vm93_vm1, %v23665_v58 }
 0x414   :  { %14680 = vmatprep.mubr.msk.f32.mxu0 %vm93_vm1, %v23666_v28  ;;  %v23706_v28 = vld [vmem:[#allocation28_spill] sm:$0xff] }
 0x417   :  { %14681 = vmatmul.mubr.msk.f32.gmra.mrb[10].mxu0 %vm93_vm1, %v23667_v62 }
 0x418   :  { %14683 = vmatprep.mubr.msk.f32.mxu0 %vm93_vm1, %v23668_v48 }
 0x41b   :  { %14684 = vmatmul.mubr.msk.f32.gmra.mrb[12].mxu0 %vm93_vm1, %v23669_v52 }
 0x41c   :  { %14686 = vmatprep.mubr.msk.f32.mxu0 %vm93_vm1, %v23670_v35 }
 0x41f   :  { %14687 = vmatmul.mubr.msk.f32.gmra.mrb[14].mxu0 %vm93_vm1, %v23671_v47 }
 0x420   :  { %14689 = vmatprep.mubr.msk.f32.mxu0 %vm93_vm1, %v23672_v45 }
 0x423   :  { %14690 = vmatmul.mubr.msk.f32.gmra.mrb[16].mxu0 %vm93_vm1, %v23673_v29 }
 0x424   :  { %14692 = vmatprep.mubr.msk.f32.mxu0 %vm93_vm1, %v23674_v53 }
 0x427   :  { %14693 = vmatmul.mubr.msk.f32.gmra.mrb[18].mxu0 %vm93_vm1, %v23675_v31 }
 0x428   :  { %14695 = vmatprep.mubr.msk.f32.mxu0 %vm93_vm1, %v23676_v14 }
 0x42b   :  { %14696 = vmatmul.mubr.msk.f32.gmra.mrb[20].mxu0 %vm93_vm1, %v23677_v49 }
 0x42c   :  { %14698 = vmatprep.mubr.msk.f32.mxu0 %vm93_vm1, %v23678_v56 }
 0x42f   :  { %14699 = vmatmul.mubr.msk.f32.gmra.mrb[22].mxu0 %vm93_vm1, %v23592_v25  ;;  %v4739_v25 = vrot.slane %v19328_v1, 2  ;;  %v23687_v1 = vld [vmem:[#allocation96_spill] sm:$0xff] }
 0x430   :  { %14701 = vmatprep.mubr.msk.f32.mxu0 %vm93_vm1, %v23679_v5 }
 0x431   :  { %v4740_v40 = vsel %vm1653_vm5, %v4737_v63, %v4739_v25 }
 0x433   :  { %14702 = vmatmul.mubr.msk.f32.gmra.mrb[24].mxu0 %vm93_vm1, %v23680_v59 }
 0x434   :  { %14704 = vmatprep.mubr.msk.f32.mxu0 %vm93_vm1, %v23681_v9 }
 0x437   :  { %14705 = vmatmul.mubr.msk.f32.gmra.mrb[26].mxu0 %vm93_vm1, %v23682_v26 }
 0x438   :  { %14707 = vmatprep.mubr.msk.f32.mxu0 %vm93_vm1, %v19085_v17  ;;  %v23686_v17 = vld [vmem:[#allocation95_spill] sm:$0xff] }
 0x43b   :  { %14708 = vmatmul.mubr.msk.f32.gmra.mrb[28].mxu0 %vm93_vm1, %v23683_v7 }
 0x43c   :  { %14710 = vmatprep.mubr.msk.f32.mxu0 %vm93_vm1, %v4738_v43 }
 0x43f   :  { %14711 = vmatmul.mubr.msk.f32.gmra.mrb[30].mxu0 %vm93_vm1, %v4740_v40 }
 0x440   :  { %14713 = vmatprep.mubr.msk.f32.mxu0 %vm93_vm1, %v23684_v57 }
 0x443   :  { %14714 = vmatmul.mubr.msk.f32.gmra.mrb[32].mxu0 %vm93_vm1, %v23685_v30 }
 0x444   :  { %14716 = vmatprep.mubr.msk.f32.mxu0 %vm93_vm1, %v23686_v17 }
 0x447   :  { %14717 = vmatmul.mubr.msk.f32.gmra.mrb[34].mxu0 %vm93_vm1, %v23687_v1 }
 0x448   :  { %14719 = vmatprep.mubr.msk.f32.mxu0 %vm93_vm1, %v23688_v11 }
 0x44b   :  { %14720 = vmatmul.mubr.msk.f32.gmra.mrb[36].mxu0 %vm93_vm1, %v23689_v12 }
 0x44c   :  { %14722 = vmatprep.mubr.msk.f32.mxu0 %vm93_vm1, %v23690_v8  ;;  %v19855_v8 = vld [vmem:[%s22762_s2] ss:$0 sm:$0xff] }
 0x44f   :  { %14723 = vmatmul.mubr.msk.f32.gmra.mrb[38].mxu0 %vm93_vm1, %v23691_v23 }
 0x450   :  { %14725 = vmatprep.mubr.msk.f32.mxu0 %vm93_vm1, %v23692_v34  ;;  %v19860_v34 = vld [vmem:[%s22763_s3] ss:$0 sm:$0xff] }
 0x453   :  { %14726 = vmatmul.mubr.msk.f32.gmra.mrb[40].mxu0 %vm93_vm1, %v23693_v22 }
 0x454   :  { %14728 = vmatprep.mubr.msk.f32.mxu0 %vm93_vm1, %v23694_v32 }
 0x457   :  { %14729 = vmatmul.mubr.msk.f32.gmra.mrb[42].mxu0 %vm93_vm1, %v23695_v20 }
 0x458   :  { %14731 = vmatprep.mubr.msk.f32.mxu0 %vm93_vm1, %v23696_v2 }
 0x45b   :  { %14732 = vmatmul.mubr.msk.f32.gmra.mrb[44].mxu0 %vm93_vm1, %v23698_v27 }
 0x45c   :  { %14734 = vmatprep.mubr.msk.f32.mxu0 %vm93_vm1, %v23614_v55  ;;  %v5780_v55 = vsel %vm459_vm4, %v5778_v36, %v5779_v42 }
 0x45d   :  { %14763 = vmatprep.mubr.msk.f32.mxu1 %vm5412_vm6, %v5780_v55 }
 0x45e   :  { %14764 = vmatmul.mubr.msk.f32.vlgmr.msra.gmra.mrb[32].mxu1 %vm5412_vm6, %v5782_v4 }
 0x45f   :  { %14735 = vmatmul.mubr.msk.f32.gmra.mrb[46].mxu0 %vm93_vm1, %v23699_v41  ;;  %14860 = vmatpush3.msra.mxu1 %v5565_v39 }
 0x460   :  { %14737 = vmatprep.mubr.msk.f32.mxu0 %vm93_vm1, %v23616_v18  ;;  %v23702_v18 = vld [vmem:[#allocation115_spill] sm:$0xff] }
 0x463   :  { %14738 = vmatmul.mubr.msk.f32.gmra.mrb[48].mxu0 %vm93_vm1, %v23700_v37 }
 0x464   :  { %14740 = vmatprep.mubr.msk.f32.mxu0 %vm93_vm1, %v23701_v50 }
 0x467   :  { %14741 = vmatmul.mubr.msk.f32.gmra.mrb[50].mxu0 %vm93_vm1, %v23619_v54  ;;  %v4741_v54 = vrot.slane %v19260_v10, 2 }
 0x468   :  { %14743 = vmatprep.mubr.msk.f32.mxu0 %vm93_vm1, %v23620_v44  ;;  %v4742_v44 = vrot.slane %v19266_v6, 2 }
 0x46a   :  { %v4743_v58 = vsel %vm1653_vm5, %v4741_v54, %v4742_v44 }
 0x46b   :  { %14744 = vmatmul.mubr.msk.f32.gmra.mrb[52].mxu0 %vm93_vm1, %v23702_v18 }
 0x46c   :  { %14746 = vmatprep.mubr.msk.f32.mxu0 %vm93_vm1, %v23703_v13 }
 0x46f   :  { %14747 = vmatmul.mubr.msk.f32.gmra.mrb[54].mxu0 %vm93_vm1, %v23622_v19  ;;  %v4744_v19 = vrot.slane %v19451_v24, 2 }
 0x470   :  { %14749 = vmatprep.mubr.msk.f32.mxu0 %vm93_vm1, %v23704_v46 }
 0x473   :  { %14750 = vmatmul.mubr.msk.f32.gmra.mrb[56].mxu0 %vm93_vm1, %v18538_v60  ;;  %v23707_v60 = vld [vmem:[#allocation4_spill] sm:$0xff] }
 0x474   :  { %14752 = vmatprep.mubr.msk.f32.mxu0 %vm93_vm1, %v18542_v38  ;;  %v4745_v38 = vsel %vm1653_vm5, %v4742_v44, %v4744_v19 }
 0x477   :  { %14753 = vmatmul.mubr.msk.f32.gmra.mrb[58].mxu0 %vm93_vm1, %v18549_v16 }
 0x478   :  { %14755 = vmatprep.mubr.msk.f32.mxu0 %vm93_vm1, %v23705_v21 }
 0x47b   :  { %14756 = vmatmul.mubr.msk.f32.gmra.mrb[60].mxu0 %vm93_vm1, %v23706_v28 }
 0x47c   :  { %14758 = vmatprep.mubr.msk.f32.mxu0 %vm93_vm1, %v4743_v58 }
 0x47f   :  { %14759 = vmatmul.mubr.msk.f32.gmra.mrb[62].mxu0 %vm93_vm1, %v4745_v38 }
 0x480   :  { %15645 = vmatprep.mubr.msk.f32.mxu0 %vm93_vm1, %v23707_v60 }
 0x48f   :  { %v19788_v16 = vpop.f32.mrb[0].mxu1 }
 0x490   :  { %v19790_v10 = vpop.f32.mrb[1].mxu1 }
 0x493   :  { %v19792_v6 = vpop.f32.mrb[2].mxu1 }
 0x494   :  { %v19794_v24 = vpop.f32.mrb[3].mxu1 }
 0x497   :  { %v19796_v62 = vpop.f32.mrb[4].mxu1 }
 0x498   :  { %v19798_v48 = vpop.f32.mrb[5].mxu1 }
 0x49b   :  { %v19800_v52 = vpop.f32.mrb[6].mxu1 }
 0x49c   :  { %v19802_v35 = vpop.f32.mrb[7].mxu1 }
 0x49f   :  { %v19804_v47 = vpop.f32.mrb[8].mxu1 }
 0x4a0   :  { %v19806_v45 = vpop.f32.mrb[9].mxu1 }
 0x4a3   :  { %v19808_v29 = vpop.f32.mrb[10].mxu1 }
 0x4a4   :  { %v19810_v53 = vpop.f32.mrb[11].mxu1 }
 0x4a7   :  { %v19812_v31 = vpop.f32.mrb[12].mxu1 }
 0x4a8   :  { %v19814_v14 = vpop.f32.mrb[13].mxu1 }
 0x4ab   :  { %v19816_v49 = vpop.f32.mrb[14].mxu1 }
 0x4ac   :  { %v19818_v56 = vpop.f32.mrb[15].mxu1 }
 0x4af   :  { %v19820_v5 = vpop.f32.mrb[16].mxu1 }
 0x4b0   :  { %v19822_v59 = vpop.f32.mrb[17].mxu1 }
 0x4b3   :  { %v19824_v9 = vpop.f32.mrb[18].mxu1 }
 0x4b4   :  { %v19826_v51 = vpop.f32.mrb[19].mxu1 }
 0x4b7   :  { %v19828_v63 = vpop.f32.mrb[20].mxu1 }
 0x4b8   :  { %v19830_v26 = vpop.f32.mrb[21].mxu1 }
 0x4bb   :  { %v19832_v25 = vpop.f32.mrb[22].mxu1 }
 0x4bc   :  { %v19834_v43 = vpop.f32.mrb[23].mxu1 }
 0x4bf   :  { %v19836_v7 = vpop.f32.mrb[24].mxu1 }
 0x4c0   :  { %v19838_v40 = vpop.f32.mrb[25].mxu1 }
 0x4c3   :  { %v19840_v57 = vpop.f32.mrb[26].mxu1 }
 0x4c4   :  { %v19842_v30 = vpop.f32.mrb[27].mxu1 }
 0x4c7   :  { %v19844_v17 = vpop.f32.mrb[28].mxu1 }
 0x4c8   :  { %v19846_v1 = vpop.f32.mrb[29].mxu1 }
 0x4cb   :  { %v19848_v11 = vpop.f32.mrb[30].mxu1 }
 0x4cc   :  { %v19850_v12 = vpop.f32.mrb[31].mxu1 }
 0x4d6   :  { %v14667_v23 = vpop.f32.mrb[0].mxu0 }
 0x4d7   :  { %v5214_v22 = vmul.f32 %v14667_v23, %v19855_v8  ;;  %v4823_v32 = vpop.f32.mrb[1].mxu0 }
 0x4d8   :  { %v5213_v20 = vmul.f32 %v19855_v8, %v4823_v32 }
 0x4d9   :  { %v5285_v2 = vadd.f32 %v19860_v34, %v5214_v22 }
 0x4da   :  { %v5284_v33 = vadd.f32 %v19860_v34, %v5213_v20  ;;  %v14670_v27 = vpop.f32.mrb[2].mxu0  ;;  %v5567_v20 = vld [vmem:[%s22761_s4 + $0x10] sm:$0xff] }
 0x4db   :  { %v5349_v41 = vmax.f32 %v5285_v2, 0.0  ;;  %v5216_v15 = vmul.f32 %v14670_v27, %v19855_v8  ;;  %v4833_v0 = vpop.f32.mrb[3].mxu0  ;;  %14957 = vmatprep.subr.mxu1 %v5567_v20 }
 0x4dc   :  { %v5348_v36 = vmax.f32 %v5284_v33, 0.0  ;;  %v5215_v42 = vmul.f32 %v19855_v8, %v4833_v0 }
 0x4dd   :  { %5502 = vst.msk [vmem:[#allocation3 + $0x21] sm:$0xff] %vm5412_vm6, %v5349_v41  ;;  %v5287_v61 = vadd.f32 %v19860_v34, %v5216_v15 }
 0x4de   :  { %5501 = vst.msk [vmem:[#allocation3 + $0x19] sm:$0xff] %vm5412_vm6, %v5348_v36  ;;  %v5286_v37 = vadd.f32 %v19860_v34, %v5215_v42  ;;  %v14673_v3 = vpop.f32.mrb[4].mxu0 }
 0x4df   :  { %v5351_v50 = vmax.f32 %v5287_v61, 0.0  ;;  %v5218_v55 = vmul.f32 %v14673_v3, %v19855_v8  ;;  %v4843_v4 = vpop.f32.mrb[5].mxu0 }
 0x4e0   :  { %v5350_v18 = vmax.f32 %v5286_v37, 0.0  ;;  %v5217_v13 = vmul.f32 %v19855_v8, %v4843_v4 }
 0x4e1   :  { %5504 = vst.msk [vmem:[#allocation3 + $0x39] sm:$0xff] %vm5412_vm6, %v5351_v50  ;;  %v5289_v39 = vadd.f32 %v19860_v34, %v5218_v55 }
 0x4e2   :  { %5503 = vst.msk [vmem:[#allocation3 + $0x31] sm:$0xff] %vm5412_vm6, %v5350_v18  ;;  %v5288_v46 = vadd.f32 %v19860_v34, %v5217_v13  ;;  %v14676_v54 = vpop.f32.mrb[6].mxu0 }
 0x4e3   :  { %v5353_v44 = vmax.f32 %v5289_v39, 0.0  ;;  %v5220_v21 = vmul.f32 %v14676_v54, %v19855_v8  ;;  %v4853_v19 = vpop.f32.mrb[7].mxu0 }
 0x4e4   :  { %v5352_v58 = vmax.f32 %v5288_v46, 0.0  ;;  %v5219_v28 = vmul.f32 %v19855_v8, %v4853_v19  ;;  %v5579_v38 = vld [vmem:[#allocation3 + $0x28] sm:$0x3] }
 0x4e5   :  { %5506 = vst.msk [vmem:[#allocation3 + $0x51] sm:$0xff] %vm5412_vm6, %v5353_v44  ;;  %v5291_v60 = vadd.f32 %v19860_v34, %v5220_v21  ;;  %v5577_v23 = vld [vmem:[#allocation3 + $0x18] sm:$0xff]  ;;  %v5578_v22 = vld [vmem:[#allocation3 + $0x20] sm:$0xff]  ;;  %v5786_v32 = vrot.slane %v5579_v38, 1 }
 0x4e6   :  { %5505 = vst.msk [vmem:[#allocation3 + $0x49] sm:$0xff] %vm5412_vm6, %v5352_v58  ;;  %v5290_v2 = vadd.f32 %v19860_v34, %v5219_v28  ;;  %v14679_v33 = vpop.f32.mrb[8].mxu0  ;;  %v5783_v27 = vrot.slane %v5577_v23, 1  ;;  %v5784_v41 = vrot.slane %v5578_v22, 1 }
 0x4e7   :  { %v5355_v15 = vmax.f32 %v5291_v60, 0.0  ;;  %v5222_v0 = vmul.f32 %v14679_v33, %v19855_v8  ;;  %v4863_v36 = vpop.f32.mrb[9].mxu0 }
 0x4e8   :  { %v5354_v42 = vmax.f32 %v5290_v2, 0.0  ;;  %v5221_v61 = vmul.f32 %v19855_v8, %v4863_v36  ;;  %v19890_v37 = vsel %vm459_vm4, %v5783_v27, %v5784_v41  ;;  %v19893_v3 = vsel %vm459_vm4, %v5784_v41, %v5786_v32  ;;  %v5582_v50 = vld [vmem:[#allocation3 + $0x40] sm:$0x3] }
 0x4e9   :  { %23708 = vst [vmem:[#allocation93_spill] sm:$0xff] %v19890_v37  ;;  %23709 = vst [vmem:[#allocation98_spill] sm:$0xff] %v19893_v3  ;;  %v5293_v55 = vadd.f32 %v19860_v34, %v5222_v0  ;;  %14766 = vmatprep.mubr.msk.f32.mxu1 %vm5412_vm6, %v19890_v37  ;;  %v5580_v4 = vld [vmem:[#allocation3 + $0x30] sm:$0xff]  ;;  %v5581_v18 = vld [vmem:[#allocation3 + $0x38] sm:$0xff]  ;;  %v5791_v13 = vrot.slane %v5582_v50, 1 }
 0x4ea   :  { %5508 = vst.msk [vmem:[#allocation3 + $0x69] sm:$0xff] %vm5412_vm6, %v5355_v15  ;;  %5507 = vst.msk [vmem:[#allocation3 + $0x61] sm:$0xff] %vm5412_vm6, %v5354_v42  ;;  %v5292_v39 = vadd.f32 %v19860_v34, %v5221_v61  ;;  %v14682_v46 = vpop.f32.mrb[10].mxu0  ;;  %14767 = vmatmul.mubr.msk.f32.gmra.mrb[34].mxu1 %vm5412_vm6, %v19893_v3  ;;  %v5788_v54 = vrot.slane %v5580_v4, 1  ;;  %v5789_v44 = vrot.slane %v5581_v18, 1 }
 0x4eb   :  { %v5357_v21 = vmax.f32 %v5293_v55, 0.0  ;;  %v5224_v19 = vmul.f32 %v14682_v46, %v19855_v8  ;;  %v4873_v58 = vpop.f32.mrb[11].mxu0 }
 0x4ec   :  { %v5356_v28 = vmax.f32 %v5292_v39, 0.0  ;;  %v5223_v38 = vmul.f32 %v19855_v8, %v4873_v58  ;;  %v19906_v60 = vsel %vm459_vm4, %v5788_v54, %v5789_v44  ;;  %v19909_v23 = vsel %vm459_vm4, %v5789_v44, %v5791_v13  ;;  %v5585_v22 = vld [vmem:[#allocation3 + $0x58] sm:$0x3] }
 0x4ed   :  { %23710 = vst [vmem:[#allocation100_spill] sm:$0xff] %v19906_v60  ;;  %23711 = vst [vmem:[#allocation102_spill] sm:$0xff] %v19909_v23  ;;  %v5295_v32 = vadd.f32 %v19860_v34, %v5224_v19  ;;  %14769 = vmatprep.mubr.msk.f32.mxu1 %vm5412_vm6, %v19906_v60  ;;  %v5583_v20 = vld [vmem:[#allocation3 + $0x48] sm:$0xff]  ;;  %v5584_v2 = vld [vmem:[#allocation3 + $0x50] sm:$0xff]  ;;  %v5796_v33 = vrot.slane %v5585_v22, 1 }
 0x4ee   :  { %5510 = vst.msk [vmem:[#allocation3 + $0x81] sm:$0xff] %vm5412_vm6, %v5357_v21  ;;  %5509 = vst.msk [vmem:[#allocation3 + $0x79] sm:$0xff] %vm5412_vm6, %v5356_v28  ;;  %v5294_v27 = vadd.f32 %v19860_v34, %v5223_v38  ;;  %v14685_v41 = vpop.f32.mrb[12].mxu0  ;;  %14770 = vmatmul.mubr.msk.f32.gmra.mrb[36].mxu1 %vm5412_vm6, %v19909_v23  ;;  %v5793_v15 = vrot.slane %v5583_v20, 1  ;;  %v5794_v0 = vrot.slane %v5584_v2, 1  ;;  %v20123_v60 = vld [vmem:[#allocation3 + $0x1b0] sm:$0xff] }
 0x4ef   :  { %v5359_v36 = vmax.f32 %v5295_v32, 0.0  ;;  %v5226_v42 = vmul.f32 %v14685_v41, %v19855_v8  ;;  %v4883_v61 = vpop.f32.mrb[13].mxu0  ;;  %23734 = vst [vmem:[#allocation169_spill] sm:$0xff] %v20123_v60 }
 0x4f0   :  { %v5358_v50 = vmax.f32 %v5294_v27, 0.0  ;;  %v5225_v55 = vmul.f32 %v19855_v8, %v4883_v61  ;;  %v19922_v4 = vsel %vm459_vm4, %v5793_v15, %v5794_v0  ;;  %v19925_v18 = vsel %vm459_vm4, %v5794_v0, %v5796_v33 }
 0x4f1   :  { %23712 = vst [vmem:[#allocation104_spill] sm:$0xff] %v19922_v4  ;;  %23713 = vst [vmem:[#allocation106_spill] sm:$0xff] %v19925_v18  ;;  %v5588_v13 = vld [vmem:[#allocation3 + $0x70] sm:$0x3]  ;;  %v5297_v39 = vadd.f32 %v19860_v34, %v5226_v42  ;;  %14772 = vmatprep.mubr.msk.f32.mxu1 %vm5412_vm6, %v19922_v4  ;;  %v5586_v46 = vld [vmem:[#allocation3 + $0x60] sm:$0xff] }
 0x4f2   :  { %5512 = vst.msk [vmem:[#allocation3 + $0x99] sm:$0xff] %vm5412_vm6, %v5359_v36  ;;  %v5587_v54 = vld [vmem:[#allocation3 + $0x68] sm:$0xff]  ;;  %v5801_v44 = vrot.slane %v5588_v13, 1  ;;  %5511 = vst.msk [vmem:[#allocation3 + $0x91] sm:$0xff] %vm5412_vm6, %v5358_v50  ;;  %v5296_v21 = vadd.f32 %v19860_v34, %v5225_v55  ;;  %v14688_v19 = vpop.f32.mrb[14].mxu0  ;;  %14773 = vmatmul.mubr.msk.f32.gmra.mrb[38].mxu1 %vm5412_vm6, %v19925_v18  ;;  %v5798_v58 = vrot.slane %v5586_v46, 1 }
 0x4f3   :  { %v5799_v28 = vrot.slane %v5587_v54, 1  ;;  %v5361_v38 = vmax.f32 %v5297_v39, 0.0  ;;  %v5228_v22 = vmul.f32 %v14688_v19, %v19855_v8  ;;  %v4893_v32 = vpop.f32.mrb[15].mxu0 }
 0x4f4   :  { %v5360_v20 = vmax.f32 %v5296_v21, 0.0  ;;  %v5227_v2 = vmul.f32 %v19855_v8, %v4893_v32 }
 0x4f5   :  { %v19938_v33 = vsel %vm459_vm4, %v5798_v58, %v5799_v28  ;;  %v19941_v27 = vsel %vm459_vm4, %v5799_v28, %v5801_v44  ;;  %v5591_v41 = vld [vmem:[#allocation3 + $0x88] sm:$0x3]  ;;  %5514 = vst.msk [vmem:[#allocation3 + $0xb1] sm:$0xff] %vm5412_vm6, %v5361_v38  ;;  %v5299_v15 = vadd.f32 %v19860_v34, %v5228_v22  ;;  %v5589_v0 = vld [vmem:[#allocation3 + $0x78] sm:$0xff]  ;;  %v5590_v36 = vld [vmem:[#allocation3 + $0x80] sm:$0xff] }
 0x4f6   :  { %23714 = vst [vmem:[#allocation108_spill] sm:$0xff] %v19938_v33  ;;  %23715 = vst [vmem:[#allocation110_spill] sm:$0xff] %v19941_v27  ;;  %14775 = vmatprep.mubr.msk.f32.mxu1 %vm5412_vm6, %v19938_v33  ;;  %v5806_v42 = vrot.slane %v5591_v41, 1  ;;  %v5298_v61 = vadd.f32 %v19860_v34, %v5227_v2  ;;  %v14691_v50 = vpop.f32.mrb[16].mxu0  ;;  %v5803_v55 = vrot.slane %v5589_v0, 1  ;;  %v5804_v13 = vrot.slane %v5590_v36, 1 }
 0x4f7   :  { %5513 = vst.msk [vmem:[#allocation3 + $0xa9] sm:$0xff] %vm5412_vm6, %v5360_v20  ;;  %14776 = vmatmul.mubr.msk.f32.gmra.mrb[40].mxu1 %vm5412_vm6, %v19941_v27  ;;  %v5363_v39 = vmax.f32 %v5299_v15, 0.0  ;;  %v5230_v46 = vmul.f32 %v14691_v50, %v19855_v8  ;;  %v4903_v54 = vpop.f32.mrb[17].mxu0 }
 0x4f8   :  { %v5362_v44 = vmax.f32 %v5298_v61, 0.0  ;;  %v5229_v21 = vmul.f32 %v19855_v8, %v4903_v54  ;;  %v19954_v19 = vsel %vm459_vm4, %v5803_v55, %v5804_v13  ;;  %v19957_v58 = vsel %vm459_vm4, %v5804_v13, %v5806_v42 }
 0x4f9   :  { %23716 = vst [vmem:[#allocation112_spill] sm:$0xff] %v19954_v19  ;;  %23717 = vst [vmem:[#allocation114_spill] sm:$0xff] %v19957_v58  ;;  %v5594_v28 = vld [vmem:[#allocation3 + $0xa0] sm:$0x3]  ;;  %v5301_v38 = vadd.f32 %v19860_v34, %v5230_v46  ;;  %14778 = vmatprep.mubr.msk.f32.mxu1 %vm5412_vm6, %v19954_v19  ;;  %v5592_v22 = vld [vmem:[#allocation3 + $0x90] sm:$0xff] }
 0x4fa   :  { %5516 = vst.msk [vmem:[#allocation3 + $0xc9] sm:$0xff] %vm5412_vm6, %v5363_v39  ;;  %v5593_v32 = vld [vmem:[#allocation3 + $0x98] sm:$0xff]  ;;  %v5811_v20 = vrot.slane %v5594_v28, 1  ;;  %5515 = vst.msk [vmem:[#allocation3 + $0xc1] sm:$0xff] %vm5412_vm6, %v5362_v44  ;;  %v5300_v2 = vadd.f32 %v19860_v34, %v5229_v21  ;;  %v14694_v41 = vpop.f32.mrb[18].mxu0  ;;  %v5808_v15 = vrot.slane %v5592_v22, 1 }
 0x4fb   :  { %14779 = vmatmul.mubr.msk.f32.gmra.mrb[42].mxu1 %vm5412_vm6, %v19957_v58  ;;  %v5809_v0 = vrot.slane %v5593_v32, 1  ;;  %v5365_v36 = vmax.f32 %v5301_v38, 0.0  ;;  %v5232_v42 = vmul.f32 %v14694_v41, %v19855_v8  ;;  %v4913_v61 = vpop.f32.mrb[19].mxu0 }
 0x4fc   :  { %v5364_v50 = vmax.f32 %v5300_v2, 0.0  ;;  %v5231_v55 = vmul.f32 %v19855_v8, %v4913_v61  ;;  %v5597_v46 = vld [vmem:[#allocation3 + $0xb8] sm:$0x3] }
 0x4fd   :  { %v19970_v13 = vsel %vm459_vm4, %v5808_v15, %v5809_v0  ;;  %v19973_v39 = vsel %vm459_vm4, %v5809_v0, %v5811_v20  ;;  %5518 = vst.msk [vmem:[#allocation3 + $0xe1] sm:$0xff] %vm5412_vm6, %v5365_v36  ;;  %v5303_v54 = vadd.f32 %v19860_v34, %v5232_v42  ;;  %v5816_v28 = vrot.slane %v5597_v46, 1 }
 0x4fe   :  { %23718 = vst [vmem:[#allocation118_spill] sm:$0xff] %v19970_v13  ;;  %23719 = vst [vmem:[#allocation119_spill] sm:$0xff] %v19973_v39  ;;  %14781 = vmatprep.mubr.msk.f32.mxu1 %vm5412_vm6, %v19970_v13  ;;  %v5595_v44 = vld [vmem:[#allocation3 + $0xa8] sm:$0xff]  ;;  %v5596_v21 = vld [vmem:[#allocation3 + $0xb0] sm:$0xff]  ;;  %v5302_v38 = vadd.f32 %v19860_v34, %v5231_v55  ;;  %v14697_v22 = vpop.f32.mrb[20].mxu0 }
 0x4ff   :  { %5517 = vst.msk [vmem:[#allocation3 + $0xd9] sm:$0xff] %vm5412_vm6, %v5364_v50  ;;  %14782 = vmatmul.mubr.msk.f32.gmra.mrb[44].mxu1 %vm5412_vm6, %v19973_v39  ;;  %v5813_v32 = vrot.slane %v5595_v44, 1  ;;  %v5814_v20 = vrot.slane %v5596_v21, 1  ;;  %v5367_v2 = vmax.f32 %v5303_v54, 0.0  ;;  %v5234_v41 = vmul.f32 %v14697_v22, %v19855_v8  ;;  %v4923_v15 = vpop.f32.mrb[21].mxu0 }
 0x500   :  { %v5366_v0 = vmax.f32 %v5302_v38, 0.0  ;;  %v5233_v36 = vmul.f32 %v19855_v8, %v4923_v15 }
 0x501   :  { %v19986_v42 = vsel %vm459_vm4, %v5813_v32, %v5814_v20  ;;  %v19989_v61 = vsel %vm459_vm4, %v5814_v20, %v5816_v28  ;;  %v5600_v50 = vld [vmem:[#allocation3 + $0xd0] sm:$0x3]  ;;  %5520 = vst.msk [vmem:[#allocation3 + $0xf9] sm:$0xff] %vm5412_vm6, %v5367_v2  ;;  %v5305_v55 = vadd.f32 %v19860_v34, %v5234_v41  ;;  %v19995_v46 = vld [vmem:[#allocation3 + $0xc0] sm:$0xff]  ;;  %v19997_v54 = vld [vmem:[#allocation3 + $0xc8] sm:$0xff] }
 0x502   :  { %23720 = vst [vmem:[#allocation120_spill] sm:$0xff] %v19986_v42  ;;  %23721 = vst [vmem:[#allocation143_spill] sm:$0xff] %v19989_v61  ;;  %14784 = vmatprep.mubr.msk.f32.mxu1 %vm5412_vm6, %v19986_v42  ;;  %v5821_v44 = vrot.slane %v5600_v50, 1  ;;  %v5304_v21 = vadd.f32 %v19860_v34, %v5233_v36  ;;  %v14700_v38 = vpop.f32.mrb[22].mxu0  ;;  %v5818_v28 = vrot.slane %v19995_v46, 1  ;;  %v5819_v22 = vrot.slane %v19997_v54, 1 }
 0x503   :  { %5519 = vst.msk [vmem:[#allocation3 + $0xf1] sm:$0xff] %vm5412_vm6, %v5366_v0  ;;  %14785 = vmatmul.mubr.msk.f32.gmra.mrb[46].mxu1 %vm5412_vm6, %v19989_v61  ;;  %v5369_v32 = vmax.f32 %v5305_v55, 0.0  ;;  %v5236_v20 = vmul.f32 %v14700_v38, %v19855_v8  ;;  %v4933_v2 = vpop.f32.mrb[23].mxu0 }
 0x504   :  { %v5368_v41 = vmax.f32 %v5304_v21, 0.0  ;;  %v5235_v15 = vmul.f32 %v19855_v8, %v4933_v2  ;;  %v20008_v50 = vsel %vm459_vm4, %v5818_v28, %v5819_v22  ;;  %v20011_v0 = vsel %vm459_vm4, %v5819_v22, %v5821_v44  ;;  %v5603_v36 = vld [vmem:[#allocation3 + $0xe8] sm:$0x3] }
 0x505   :  { %23722 = vst [vmem:[#allocation150_spill] sm:$0xff] %v20008_v50  ;;  %23723 = vst [vmem:[#allocation151_spill] sm:$0xff] %v20011_v0  ;;  %v5307_v61 = vadd.f32 %v19860_v34, %v5236_v20  ;;  %14787 = vmatprep.mubr.msk.f32.mxu1 %vm5412_vm6, %v20008_v50  ;;  %v5826_v21 = vrot.slane %v5603_v36, 1 }
 0x506   :  { %5522 = vst.msk [vmem:[#allocation3 + $0x111] sm:$0xff] %vm5412_vm6, %v5369_v32  ;;  %v20017_v55 = vld [vmem:[#allocation3 + $0xd8] sm:$0xff]  ;;  %v20019_v38 = vld [vmem:[#allocation3 + $0xe0] sm:$0xff]  ;;  %5521 = vst.msk [vmem:[#allocation3 + $0x109] sm:$0xff] %vm5412_vm6, %v5368_v41  ;;  %v5306_v28 = vadd.f32 %v19860_v34, %v5235_v15  ;;  %v14703_v2 = vpop.f32.mrb[24].mxu0 }
 0x507   :  { %14788 = vmatmul.mubr.msk.f32.gmra.mrb[48].mxu1 %vm5412_vm6, %v20011_v0  ;;  %v5823_v44 = vrot.slane %v20017_v55, 1  ;;  %v5824_v22 = vrot.slane %v20019_v38, 1  ;;  %v5371_v32 = vmax.f32 %v5307_v61, 0.0  ;;  %v5238_v20 = vmul.f32 %v14703_v2, %v19855_v8  ;;  %v4943_v50 = vpop.f32.mrb[25].mxu0 }
 0x508   :  { %v5370_v42 = vmax.f32 %v5306_v28, 0.0  ;;  %v5237_v39 = vmul.f32 %v19855_v8, %v4943_v50  ;;  %v5606_v15 = vld [vmem:[#allocation3 + $0x100] sm:$0x3] }
 0x509   :  { %v20030_v36 = vsel %vm459_vm4, %v5823_v44, %v5824_v22  ;;  %v20033_v41 = vsel %vm459_vm4, %v5824_v22, %v5826_v21  ;;  %5524 = vst.msk [vmem:[#allocation3 + $0x129] sm:$0xff] %vm5412_vm6, %v5371_v32  ;;  %v5309_v0 = vadd.f32 %v19860_v34, %v5238_v20  ;;  %v5831_v28 = vrot.slane %v5606_v15, 1 }
 0x50a   :  { %23724 = vst [vmem:[#allocation157_spill] sm:$0xff] %v20030_v36  ;;  %23725 = vst [vmem:[#allocation158_spill] sm:$0xff] %v20033_v41  ;;  %14790 = vmatprep.mubr.msk.f32.mxu1 %vm5412_vm6, %v20030_v36  ;;  %v20039_v61 = vld [vmem:[#allocation3 + $0xf0] sm:$0xff]  ;;  %v20041_v2 = vld [vmem:[#allocation3 + $0xf8] sm:$0xff]  ;;  %v5308_v50 = vadd.f32 %v19860_v34, %v5237_v39  ;;  %v14706_v44 = vpop.f32.mrb[26].mxu0 }
 0x50b   :  { %5523 = vst.msk [vmem:[#allocation3 + $0x121] sm:$0xff] %vm5412_vm6, %v5370_v42  ;;  %14791 = vmatmul.mubr.msk.f32.gmra.mrb[50].mxu1 %vm5412_vm6, %v20033_v41  ;;  %v5828_v21 = vrot.slane %v20039_v61, 1  ;;  %v5829_v22 = vrot.slane %v20041_v2, 1  ;;  %v5373_v32 = vmax.f32 %v5309_v0, 0.0  ;;  %v5240_v20 = vmul.f32 %v14706_v44, %v19855_v8  ;;  %v4953_v36 = vpop.f32.mrb[27].mxu0 }
 0x50c   :  { %v5372_v13 = vmax.f32 %v5308_v50, 0.0  ;;  %v5239_v58 = vmul.f32 %v19855_v8, %v4953_v36 }
 0x50d   :  { %v20052_v15 = vsel %vm459_vm4, %v5828_v21, %v5829_v22  ;;  %v20055_v39 = vsel %vm459_vm4, %v5829_v22, %v5831_v28  ;;  %v5609_v42 = vld [vmem:[#allocation3 + $0x118] sm:$0x3]  ;;  %5526 = vst.msk [vmem:[#allocation3 + $0x141] sm:$0xff] %vm5412_vm6, %v5373_v32  ;;  %v5311_v41 = vadd.f32 %v19860_v34, %v5240_v20  ;;  %v20061_v0 = vld [vmem:[#allocation3 + $0x108] sm:$0xff]  ;;  %v20063_v44 = vld [vmem:[#allocation3 + $0x110] sm:$0xff] }
 0x50e   :  { %23726 = vst [vmem:[#allocation113_spill] sm:$0xff] %v20052_v15  ;;  %23727 = vst [vmem:[#allocation160_spill] sm:$0xff] %v20055_v39  ;;  %14793 = vmatprep.mubr.msk.f32.mxu1 %vm5412_vm6, %v20052_v15  ;;  %v5836_v50 = vrot.slane %v5609_v42, 1  ;;  %v5310_v36 = vadd.f32 %v19860_v34, %v5239_v58  ;;  %v14709_v21 = vpop.f32.mrb[28].mxu0  ;;  %v5833_v28 = vrot.slane %v20061_v0, 1  ;;  %v5834_v22 = vrot.slane %v20063_v44, 1 }
 0x50f   :  { %5525 = vst.msk [vmem:[#allocation3 + $0x139] sm:$0xff] %vm5412_vm6, %v5372_v13  ;;  %14794 = vmatmul.mubr.msk.f32.gmra.mrb[52].mxu1 %vm5412_vm6, %v20055_v39  ;;  %v5375_v32 = vmax.f32 %v5311_v41, 0.0  ;;  %v5242_v20 = vmul.f32 %v14709_v21, %v19855_v8  ;;  %v4963_v15 = vpop.f32.mrb[29].mxu0 }
 0x510   :  { %v5374_v19 = vmax.f32 %v5310_v36, 0.0  ;;  %v5241_v27 = vmul.f32 %v19855_v8, %v4963_v15  ;;  %v20074_v42 = vsel %vm459_vm4, %v5833_v28, %v5834_v22  ;;  %v20077_v58 = vsel %vm459_vm4, %v5834_v22, %v5836_v50  ;;  %v5612_v13 = vld [vmem:[#allocation3 + $0x130] sm:$0x3] }
 0x511   :  { %23728 = vst [vmem:[#allocation116_spill] sm:$0xff] %v20074_v42  ;;  %23729 = vst [vmem:[#allocation164_spill] sm:$0xff] %v20077_v58  ;;  %v5313_v39 = vadd.f32 %v19860_v34, %v5242_v20  ;;  %14796 = vmatprep.mubr.msk.f32.mxu1 %vm5412_vm6, %v20074_v42  ;;  %v5841_v36 = vrot.slane %v5612_v13, 1 }
 0x512   :  { %5528 = vst.msk [vmem:[#allocation3 + $0x159] sm:$0xff] %vm5412_vm6, %v5375_v32  ;;  %v20083_v41 = vld [vmem:[#allocation3 + $0x120] sm:$0xff]  ;;  %v20085_v21 = vld [vmem:[#allocation3 + $0x128] sm:$0xff]  ;;  %5527 = vst.msk [vmem:[#allocation3 + $0x151] sm:$0xff] %vm5412_vm6, %v5374_v19  ;;  %v5312_v15 = vadd.f32 %v19860_v34, %v5241_v27  ;;  %v14712_v28 = vpop.f32.mrb[30].mxu0 }
 0x513   :  { %14797 = vmatmul.mubr.msk.f32.gmra.mrb[54].mxu1 %vm5412_vm6, %v20077_v58  ;;  %v5838_v50 = vrot.slane %v20083_v41, 1  ;;  %v5839_v22 = vrot.slane %v20085_v21, 1  ;;  %v5377_v32 = vmax.f32 %v5313_v39, 0.0  ;;  %v5244_v20 = vmul.f32 %v14712_v28, %v19855_v8  ;;  %v4973_v42 = vpop.f32.mrb[31].mxu0 }
 0x514   :  { %v5376_v33 = vmax.f32 %v5312_v15, 0.0  ;;  %v5243_v18 = vmul.f32 %v19855_v8, %v4973_v42  ;;  %v5615_v19 = vld [vmem:[#allocation3 + $0x148] sm:$0x3] }
 0x515   :  { %v20096_v13 = vsel %vm459_vm4, %v5838_v50, %v5839_v22  ;;  %v20099_v27 = vsel %vm459_vm4, %v5839_v22, %v5841_v36  ;;  %5530 = vst.msk [vmem:[#allocation3 + $0x171] sm:$0xff] %vm5412_vm6, %v5377_v32  ;;  %v5315_v58 = vadd.f32 %v19860_v34, %v5244_v20  ;;  %v5846_v15 = vrot.slane %v5615_v19, 1 }
 0x516   :  { %23730 = vst [vmem:[#allocation165_spill] sm:$0xff] %v20096_v13  ;;  %23731 = vst [vmem:[#allocation166_spill] sm:$0xff] %v20099_v27  ;;  %14799 = vmatprep.mubr.msk.f32.mxu1 %vm5412_vm6, %v20096_v13  ;;  %v20105_v39 = vld [vmem:[#allocation3 + $0x138] sm:$0xff]  ;;  %v20107_v28 = vld [vmem:[#allocation3 + $0x140] sm:$0xff]  ;;  %v5314_v42 = vadd.f32 %v19860_v34, %v5243_v18  ;;  %v14715_v50 = vpop.f32.mrb[32].mxu0 }
 0x517   :  { %5529 = vst.msk [vmem:[#allocation3 + $0x169] sm:$0xff] %vm5412_vm6, %v5376_v33  ;;  %14800 = vmatmul.mubr.msk.f32.gmra.mrb[56].mxu1 %vm5412_vm6, %v20099_v27  ;;  %v5843_v36 = vrot.slane %v20105_v39, 1  ;;  %v5844_v22 = vrot.slane %v20107_v28, 1  ;;  %v5379_v32 = vmax.f32 %v5315_v58, 0.0  ;;  %v15743_v20 = vadd.f32 %v14715_v50, %v19788_v16  ;;  %v4983_v13 = vpop.f32.mrb[33].mxu0  ;;  %v20125_v27 = vld [vmem:[#allocation3 + $0x1b8] sm:$0xff] }
 0x518   :  { %v5378_v4 = vmax.f32 %v5314_v42, 0.0  ;;  %v15744_v23 = vadd.f32 %v4983_v13, %v19790_v10  ;;  %23735 = vst [vmem:[#allocation29_spill] sm:$0xff] %v20125_v27 }
 0x519   :  { %v20118_v19 = vsel %vm459_vm4, %v5843_v36, %v5844_v22  ;;  %v20121_v18 = vsel %vm459_vm4, %v5844_v22, %v5846_v15  ;;  %v5618_v33 = vld [vmem:[#allocation3 + $0x160] sm:$0x3]  ;;  %5532 = vst.msk [vmem:[#allocation3 + $0x189] sm:$0xff] %vm5412_vm6, %v5379_v32  ;;  %v5246_v58 = vmul.f32 %v15743_v20, %v19855_v8  ;;  %v20131_v16 = vld [vmem:[#allocation3 + $0x150] sm:$0xff]  ;;  %v20133_v10 = vld [vmem:[#allocation3 + $0x158] sm:$0xff] }
 0x51a   :  { %23732 = vst [vmem:[#allocation167_spill] sm:$0xff] %v20118_v19  ;;  %23733 = vst [vmem:[#allocation168_spill] sm:$0xff] %v20121_v18  ;;  %14802 = vmatprep.mubr.msk.f32.mxu1 %vm5412_vm6, %v20118_v19  ;;  %v5851_v13 = vrot.slane %v5618_v33, 1  ;;  %v5245_v15 = vmul.f32 %v15744_v23, %v19855_v8  ;;  %v14718_v42 = vpop.f32.mrb[34].mxu0  ;;  %v5848_v50 = vrot.slane %v20131_v16, 1  ;;  %v5849_v36 = vrot.slane %v20133_v10, 1 }
 0x51b   :  { %23736 = vst [vmem:[#allocation30_spill] sm:$0xff] %v20133_v10  ;;  %5531 = vst.msk [vmem:[#allocation3 + $0x181] sm:$0xff] %vm5412_vm6, %v5378_v4  ;;  %14803 = vmatmul.mubr.msk.f32.gmra.mrb[58].mxu1 %vm5412_vm6, %v20121_v18  ;;  %v5317_v22 = vadd.f32 %v19860_v34, %v5246_v58  ;;  %v15745_v32 = vadd.f32 %v14718_v42, %v19792_v6  ;;  %v4993_v20 = vpop.f32.mrb[35].mxu0  ;;  %v5858_v19 = vrot.slane %v20123_v60, 1  ;;  %v5859_v33 = vrot.slane %v20125_v27, 1 }
 0x51c   :  { %v5316_v4 = vadd.f32 %v19860_v34, %v5245_v15  ;;  %v15746_v23 = vadd.f32 %v4993_v20, %v19794_v24  ;;  %v20148_v3 = vsel %vm459_vm4, %v5848_v50, %v5849_v36  ;;  %v20151_v18 = vsel %vm459_vm4, %v5849_v36, %v5851_v13  ;;  %v5621_v37 = vld [vmem:[#allocation3 + $0x178] sm:$0x3]  ;;  %v5630_v10 = vld [vmem:[#allocation3 + $0x1c0] sm:$0x3] }
 0x51d   :  { %23737 = vst [vmem:[#allocation32_spill] sm:$0xff] %v20148_v3  ;;  %23738 = vst [vmem:[#allocation35_spill] sm:$0xff] %v20151_v18  ;;  %v5381_v58 = vmax.f32 %v5317_v22, 0.0  ;;  %v5248_v6 = vmul.f32 %v15745_v32, %v19855_v8  ;;  %14805 = vmatprep.mubr.msk.f32.mxu1 %vm5412_vm6, %v20148_v3  ;;  %v5856_v15 = vrot.slane %v5621_v37, 1  ;;  %v5860_v37 = vsel %vm459_vm4, %v5858_v19, %v5859_v33 }
 0x51e   :  { %v20156_v42 = vld [vmem:[#allocation3 + $0x168] sm:$0xff]  ;;  %v20158_v27 = vld [vmem:[#allocation3 + $0x170] sm:$0xff]  ;;  %v5380_v24 = vmax.f32 %v5316_v4, 0.0  ;;  %v5247_v50 = vmul.f32 %v15746_v23, %v19855_v8  ;;  %v14721_v20 = vpop.f32.mrb[36].mxu0  ;;  %v5861_v4 = vrot.slane %v5630_v10, 1 }
 0x51f   :  { %23739 = vst [vmem:[#allocation42_spill] sm:$0xff] %v20158_v27  ;;  %14806 = vmatmul.mubr.msk.f32.gmra.mrb[60].mxu1 %vm5412_vm6, %v20151_v18  ;;  %v5853_v13 = vrot.slane %v20156_v42, 1  ;;  %v5854_v36 = vrot.slane %v20158_v27, 1  ;;  %5534 = vst.msk [vmem:[#allocation3 + $0x1d1] sm:$0xff] %vm5412_vm6, %v5381_v58  ;;  %v5319_v22 = vadd.f32 %v19860_v34, %v5248_v6  ;;  %v15747_v32 = vadd.f32 %v14721_v20, %v19796_v62  ;;  %v5003_v3 = vpop.f32.mrb[37].mxu0 }
 0x520   :  { %5533 = vst.msk [vmem:[#allocation3 + $0x1c9] sm:$0xff] %vm5412_vm6, %v5380_v24  ;;  %v5318_v23 = vadd.f32 %v19860_v34, %v5247_v50  ;;  %v15748_v18 = vadd.f32 %v5003_v3, %v19798_v48  ;;  %v5862_v24 = vsel %vm459_vm4, %v5859_v33, %v5861_v4 }
 0x521   :  { %v20173_v60 = vsel %vm459_vm4, %v5853_v13, %v5854_v36  ;;  %v20176_v27 = vsel %vm459_vm4, %v5854_v36, %v5856_v15  ;;  %v5383_v58 = vmax.f32 %v5319_v22, 0.0  ;;  %v5250_v6 = vmul.f32 %v15747_v32, %v19855_v8 }
 0x522   :  { %23740 = vst [vmem:[#allocation46_spill] sm:$0xff] %v20173_v60  ;;  %23741 = vst [vmem:[#allocation55_spill] sm:$0xff] %v20176_v27  ;;  %14808 = vmatprep.mubr.msk.f32.mxu1 %vm5412_vm6, %v20173_v60  ;;  %v5382_v62 = vmax.f32 %v5318_v23, 0.0  ;;  %v5249_v19 = vmul.f32 %v15748_v18, %v19855_v8  ;;  %v14724_v10 = vpop.f32.mrb[38].mxu0 }
 0x523   :  { %14809 = vmatmul.mubr.msk.f32.gmra.mrb[62].mxu1 %vm5412_vm6, %v20176_v27  ;;  %5536 = vst.msk [vmem:[#allocation3 + $0x1e9] sm:$0xff] %vm5412_vm6, %v5383_v58  ;;  %v5321_v48 = vadd.f32 %v19860_v34, %v5250_v6  ;;  %v15749_v3 = vadd.f32 %v14724_v10, %v19800_v52  ;;  %v5013_v15 = vpop.f32.mrb[39].mxu0 }
 0x524   :  { %14811 = vmatprep.mubr.msk.f32.mxu1 %vm5412_vm6, %v5860_v37  ;;  %5535 = vst.msk [vmem:[#allocation3 + $0x1e1] sm:$0xff] %vm5412_vm6, %v5382_v62  ;;  %v5320_v50 = vadd.f32 %v19860_v34, %v5249_v19  ;;  %v15750_v18 = vadd.f32 %v5013_v15, %v19802_v35 }
 0x525   :  { %v5385_v20 = vmax.f32 %v5321_v48, 0.0  ;;  %v5252_v13 = vmul.f32 %v15749_v3, %v19855_v8 }
 0x526   :  { %v5384_v36 = vmax.f32 %v5320_v50, 0.0  ;;  %v5251_v22 = vmul.f32 %v15750_v18, %v19855_v8  ;;  %v14727_v32 = vpop.f32.mrb[40].mxu0  ;;  %v20195_v52 = vld [vmem:[#allocation3 + $0x1d8] sm:$0x3] }
 0x527   :  { %14812 = vmatmul.mubr.msk.f32.gmra.mrb[64].mxu1 %vm5412_vm6, %v5862_v24  ;;  %5538 = vst.msk [vmem:[#allocation3 + $0x201] sm:$0xff] %vm5412_vm6, %v5385_v20  ;;  %v5323_v33 = vadd.f32 %v19860_v34, %v5252_v13  ;;  %v15751_v37 = vadd.f32 %v14727_v32, %v19804_v47  ;;  %v5023_v4 = vpop.f32.mrb[41].mxu0  ;;  %v20200_v23 = vld [vmem:[#allocation3 + $0x1c8] sm:$0xff]  ;;  %v20202_v35 = vld [vmem:[#allocation3 + $0x1d0] sm:$0xff]  ;;  %v5866_v58 = vrot.slane %v20195_v52, 1 }
 0x528   :  { %5537 = vst.msk [vmem:[#allocation3 + $0x1f9] sm:$0xff] %vm5412_vm6, %v5384_v36  ;;  %v5322_v6 = vadd.f32 %v19860_v34, %v5251_v22  ;;  %v15752_v62 = vadd.f32 %v5023_v4, %v19806_v45  ;;  %v5863_v19 = vrot.slane %v20200_v23, 1  ;;  %v5864_v10 = vrot.slane %v20202_v35, 1 }
 0x529   :  { %v5387_v48 = vmax.f32 %v5323_v33, 0.0  ;;  %v5254_v47 = vmul.f32 %v15751_v37, %v19855_v8 }
 0x52a   :  { %v5386_v3 = vmax.f32 %v5322_v6, 0.0  ;;  %v5253_v15 = vmul.f32 %v15752_v62, %v19855_v8  ;;  %v14730_v24 = vpop.f32.mrb[42].mxu0  ;;  %v20213_v50 = vsel %vm459_vm4, %v5863_v19, %v5864_v10  ;;  %v20216_v18 = vsel %vm459_vm4, %v5864_v10, %v5866_v58  ;;  %v20218_v20 = vld [vmem:[#allocation3 + $0x1f0] sm:$0x3] }
 0x52b   :  { %23742 = vst [vmem:[#allocation56_spill] sm:$0xff] %v20213_v50  ;;  %23743 = vst [vmem:[#allocation57_spill] sm:$0xff] %v20216_v18  ;;  %v5325_v45 = vadd.f32 %v19860_v34, %v5254_v47  ;;  %v15753_v13 = vadd.f32 %v14730_v24, %v19808_v29  ;;  %v5033_v36 = vpop.f32.mrb[43].mxu0  ;;  %14814 = vmatprep.mubr.msk.f32.mxu1 %vm5412_vm6, %v20213_v50  ;;  %v20225_v22 = vld [vmem:[#allocation3 + $0x1e0] sm:$0xff]  ;;  %v20227_v32 = vld [vmem:[#allocation3 + $0x1e8] sm:$0xff]  ;;  %v5871_v33 = vrot.slane %v20218_v20, 1 }
 0x52c   :  { %5540 = vst.msk [vmem:[#allocation3 + $0x219] sm:$0xff] %vm5412_vm6, %v5387_v48  ;;  %5539 = vst.msk [vmem:[#allocation3 + $0x211] sm:$0xff] %vm5412_vm6, %v5386_v3  ;;  %v5324_v37 = vadd.f32 %v19860_v34, %v5253_v15  ;;  %v15754_v4 = vadd.f32 %v5033_v36, %v19810_v53  ;;  %14815 = vmatmul.mubr.msk.f32.gmra.mrb[66].mxu1 %vm5412_vm6, %v20216_v18  ;;  %v5868_v29 = vrot.slane %v20225_v22, 1  ;;  %v5869_v58 = vrot.slane %v20227_v32, 1 }
 0x52d   :  { %v5389_v6 = vmax.f32 %v5325_v45, 0.0  ;;  %v5256_v62 = vmul.f32 %v15753_v13, %v19855_v8 }
 0x52e   :  { %v5388_v19 = vmax.f32 %v5324_v37, 0.0  ;;  %v5255_v10 = vmul.f32 %v15754_v4, %v19855_v8  ;;  %v14733_v48 = vpop.f32.mrb[44].mxu0  ;;  %v20240_v47 = vsel %vm459_vm4, %v5868_v29, %v5869_v58  ;;  %v20243_v3 = vsel %vm459_vm4, %v5869_v58, %v5871_v33  ;;  %v20245_v53 = vld [vmem:[#allocation3 + $0x208] sm:$0x3] }
 0x52f   :  { %23744 = vst [vmem:[#allocation58_spill] sm:$0xff] %v20240_v47  ;;  %23745 = vst [vmem:[#allocation59_spill] sm:$0xff] %v20243_v3  ;;  %v5327_v15 = vadd.f32 %v19860_v34, %v5256_v62  ;;  %v15755_v24 = vadd.f32 %v14733_v48, %v19812_v31  ;;  %v5043_v45 = vpop.f32.mrb[45].mxu0  ;;  %14817 = vmatprep.mubr.msk.f32.mxu1 %vm5412_vm6, %v20240_v47  ;;  %v20252_v13 = vld [vmem:[#allocation3 + $0x1f8] sm:$0xff]  ;;  %v20254_v36 = vld [vmem:[#allocation3 + $0x200] sm:$0xff]  ;;  %v5876_v37 = vrot.slane %v20245_v53, 1 }
 0x530   :  { %5542 = vst.msk [vmem:[#allocation3 + $0x231] sm:$0xff] %vm5412_vm6, %v5389_v6  ;;  %5541 = vst.msk [vmem:[#allocation3 + $0x229] sm:$0xff] %vm5412_vm6, %v5388_v19  ;;  %v5326_v33 = vadd.f32 %v19860_v34, %v5255_v10  ;;  %v15756_v4 = vadd.f32 %v5043_v45, %v19814_v14  ;;  %14818 = vmatmul.mubr.msk.f32.gmra.mrb[68].mxu1 %vm5412_vm6, %v20243_v3  ;;  %v5873_v31 = vrot.slane %v20252_v13, 1  ;;  %v5874_v29 = vrot.slane %v20254_v36, 1 }
 0x531   :  { %v5391_v58 = vmax.f32 %v5327_v15, 0.0  ;;  %v5258_v6 = vmul.f32 %v15755_v24, %v19855_v8 }
 0x532   :  { %v5390_v62 = vmax.f32 %v5326_v33, 0.0  ;;  %v5257_v48 = vmul.f32 %v15756_v4, %v19855_v8  ;;  %v14736_v47 = vpop.f32.mrb[46].mxu0  ;;  %v20267_v19 = vsel %vm459_vm4, %v5873_v31, %v5874_v29  ;;  %v20270_v10 = vsel %vm459_vm4, %v5874_v29, %v5876_v37 }
 0x533   :  { %23746 = vst [vmem:[#allocation63_spill] sm:$0xff] %v20267_v19  ;;  %23747 = vst [vmem:[#allocation67_spill] sm:$0xff] %v20270_v10  ;;  %v20272_v14 = vld [vmem:[#allocation3 + $0x220] sm:$0x3]  ;;  %v5329_v45 = vadd.f32 %v19860_v34, %v5258_v6  ;;  %v15757_v15 = vadd.f32 %v14736_v47, %v19816_v49  ;;  %v5053_v3 = vpop.f32.mrb[47].mxu0  ;;  %14820 = vmatprep.mubr.msk.f32.mxu1 %vm5412_vm6, %v20267_v19  ;;  %v20279_v24 = vld [vmem:[#allocation3 + $0x210] sm:$0xff] }
 0x534   :  { %23748 = vst [vmem:[#allocation68_spill] sm:$0xff] %v20272_v14  ;;  %5544 = vst.msk [vmem:[#allocation3 + $0x249] sm:$0xff] %vm5412_vm6, %v5391_v58  ;;  %v20281_v33 = vld [vmem:[#allocation3 + $0x218] sm:$0xff]  ;;  %v5881_v4 = vrot.slane %v20272_v14, 1  ;;  %v5328_v37 = vadd.f32 %v19860_v34, %v5257_v48  ;;  %v15758_v31 = vadd.f32 %v5053_v3, %v19818_v56  ;;  %14821 = vmatmul.mubr.msk.f32.gmra.mrb[70].mxu1 %vm5412_vm6, %v20270_v10  ;;  %v5878_v49 = vrot.slane %v20279_v24, 1  ;;  %v20661_v14 = vld [vmem:[#allocation3 + $0xb0] sm:$0xff] }
 0x535   :  { %5543 = vst.msk [vmem:[#allocation3 + $0x241] sm:$0xff] %vm5412_vm6, %v5390_v62  ;;  %v5879_v47 = vrot.slane %v20281_v33, 1  ;;  %v5393_v29 = vmax.f32 %v5329_v45, 0.0  ;;  %v5260_v58 = vmul.f32 %v15757_v15, %v19855_v8 }
 0x536   :  { %v5392_v6 = vmax.f32 %v5328_v37, 0.0  ;;  %v5259_v19 = vmul.f32 %v15758_v31, %v19855_v8  ;;  %v14739_v18 = vpop.f32.mrb[48].mxu0 }
 0x537   :  { %v20294_v62 = vsel %vm459_vm4, %v5878_v49, %v5879_v47  ;;  %v20297_v48 = vsel %vm459_vm4, %v5879_v47, %v5881_v4  ;;  %v20299_v56 = vld [vmem:[#allocation3 + $0x238] sm:$0x3]  ;;  %5546 = vst.msk [vmem:[#allocation3 + $0x261] sm:$0xff] %vm5412_vm6, %v5393_v29  ;;  %v5331_v3 = vadd.f32 %v19860_v34, %v5260_v58  ;;  %v15759_v45 = vadd.f32 %v14739_v18, %v19820_v5  ;;  %v5063_v10 = vpop.f32.mrb[49].mxu0  ;;  %v20306_v15 = vld [vmem:[#allocation3 + $0x228] sm:$0xff]  ;;  %v20308_v37 = vld [vmem:[#allocation3 + $0x230] sm:$0xff] }
 0x538   :  { %23749 = vst [vmem:[#allocation71_spill] sm:$0xff] %v20294_v62  ;;  %23750 = vst [vmem:[#allocation72_spill] sm:$0xff] %v20297_v48  ;;  %14823 = vmatprep.mubr.msk.f32.mxu1 %vm5412_vm6, %v20294_v62  ;;  %v5886_v31 = vrot.slane %v20299_v56, 1  ;;  %v5330_v4 = vadd.f32 %v19860_v34, %v5259_v19  ;;  %v15760_v49 = vadd.f32 %v5063_v10, %v19822_v59  ;;  %v5883_v5 = vrot.slane %v20306_v15, 1 }
 0x539   :  { %23751 = vst [vmem:[#allocation75_spill] sm:$0xff] %v20299_v56  ;;  %5545 = vst.msk [vmem:[#allocation3 + $0x259] sm:$0xff] %vm5412_vm6, %v5392_v6  ;;  %14824 = vmatmul.mubr.msk.f32.gmra.mrb[72].mxu1 %vm5412_vm6, %v20297_v48  ;;  %v5884_v18 = vrot.slane %v20308_v37, 1  ;;  %v5395_v47 = vmax.f32 %v5331_v3, 0.0  ;;  %v5262_v29 = vmul.f32 %v15759_v45, %v19855_v8  ;;  %v20657_v56 = vld [vmem:[#allocation3 + $0xa8] sm:$0xff] }
 0x53a   :  { %v5394_v58 = vmax.f32 %v5330_v4, 0.0  ;;  %v5261_v62 = vmul.f32 %v15760_v49, %v19855_v8  ;;  %v14742_v50 = vpop.f32.mrb[50].mxu0 }
 0x53b   :  { %v20321_v6 = vsel %vm459_vm4, %v5883_v5, %v5884_v18  ;;  %v20324_v19 = vsel %vm459_vm4, %v5884_v18, %v5886_v31  ;;  %v20326_v59 = vld [vmem:[#allocation3 + $0x250] sm:$0x3]  ;;  %5548 = vst.msk [vmem:[#allocation3 + $0x279] sm:$0xff] %vm5412_vm6, %v5395_v47  ;;  %v5333_v10 = vadd.f32 %v19860_v34, %v5262_v29  ;;  %v15761_v3 = vadd.f32 %v14742_v50, %v19824_v9  ;;  %v5073_v48 = vpop.f32.mrb[51].mxu0 }
 0x53c   :  { %23752 = vst [vmem:[#allocation76_spill] sm:$0xff] %v20321_v6  ;;  %23753 = vst [vmem:[#allocation79_spill] sm:$0xff] %v20324_v19  ;;  %14826 = vmatprep.mubr.msk.f32.mxu1 %vm5412_vm6, %v20321_v6  ;;  %v20333_v45 = vld [vmem:[#allocation3 + $0x240] sm:$0xff]  ;;  %v20335_v4 = vld [vmem:[#allocation3 + $0x248] sm:$0xff]  ;;  %v5891_v49 = vrot.slane %v20326_v59, 1  ;;  %v5332_v31 = vadd.f32 %v19860_v34, %v5261_v62  ;;  %v15762_v5 = vadd.f32 %v5073_v48, %v19826_v51 }
 0x53d   :  { %23754 = vst [vmem:[#allocation80_spill] sm:$0xff] %v20326_v59  ;;  %5547 = vst.msk [vmem:[#allocation3 + $0x271] sm:$0xff] %vm5412_vm6, %v5394_v58  ;;  %14827 = vmatmul.mubr.msk.f32.gmra.mrb[74].mxu1 %vm5412_vm6, %v20324_v19  ;;  %v5888_v9 = vrot.slane %v20333_v45, 1  ;;  %v5889_v50 = vrot.slane %v20335_v4, 1  ;;  %v5397_v18 = vmax.f32 %v5333_v10, 0.0  ;;  %v5264_v47 = vmul.f32 %v15761_v3, %v19855_v8  ;;  %v20653_v59 = vld [vmem:[#allocation3 + $0x98] sm:$0xff] }
 0x53e   :  { %v5396_v29 = vmax.f32 %v5332_v31, 0.0  ;;  %v5263_v6 = vmul.f32 %v15762_v5, %v19855_v8  ;;  %v14745_v27 = vpop.f32.mrb[52].mxu0  ;;  %v20353_v51 = vld [vmem:[#allocation3 + $0x268] sm:$0x3] }
 0x53f   :  { %v20348_v58 = vsel %vm459_vm4, %v5888_v9, %v5889_v50  ;;  %v20351_v62 = vsel %vm459_vm4, %v5889_v50, %v5891_v49  ;;  %23757 = vst [vmem:[#allocation87_spill] sm:$0xff] %v20353_v51  ;;  %5550 = vst.msk [vmem:[#allocation3 + $0x291] sm:$0xff] %vm5412_vm6, %v5397_v18  ;;  %v5335_v48 = vadd.f32 %v19860_v34, %v5264_v47  ;;  %v5083_v19 = vpop.f32.mrb[53].mxu0  ;;  %v5896_v5 = vrot.slane %v20353_v51, 1  ;;  %v20649_v51 = vld [vmem:[#allocation3 + $0x90] sm:$0xff] }
 0x540   :  { %23755 = vst [vmem:[#allocation83_spill] sm:$0xff] %v20348_v58  ;;  %23756 = vst [vmem:[#allocation84_spill] sm:$0xff] %v20351_v62  ;;  %v15763_v10 = vadd.f32 %v14745_v27, %v19828_v63  ;;  %14829 = vmatprep.mubr.msk.f32.mxu1 %vm5412_vm6, %v20348_v58  ;;  %v20360_v3 = vld [vmem:[#allocation3 + $0x258] sm:$0xff]  ;;  %v20362_v31 = vld [vmem:[#allocation3 + $0x260] sm:$0xff]  ;;  %v5334_v49 = vadd.f32 %v19860_v34, %v5263_v6  ;;  %v15764_v9 = vadd.f32 %v5083_v19, %v19830_v26 }
 0x541   :  { %5549 = vst.msk [vmem:[#allocation3 + $0x289] sm:$0xff] %vm5412_vm6, %v5396_v29  ;;  %14830 = vmatmul.mubr.msk.f32.gmra.mrb[76].mxu1 %vm5412_vm6, %v20351_v62  ;;  %v5893_v63 = vrot.slane %v20360_v3, 1  ;;  %v5894_v27 = vrot.slane %v20362_v31, 1  ;;  %v5399_v50 = vmax.f32 %v5335_v48, 0.0  ;;  %v20376_v58 = vld [vmem:[%s22762_s2] ss:$0 sm:$0xff] }
 0x542   :  { %v5266_v18 = vmul.f32 %v15763_v10, %v19855_v8  ;;  %v5398_v47 = vmax.f32 %v5334_v49, 0.0  ;;  %v5265_v34 = vmul.f32 %v20376_v58, %v15764_v9  ;;  %v14748_v6 = vpop.f32.mrb[54].mxu0  ;;  %v20385_v29 = vld [vmem:[#allocation3 + $0x280] sm:$0x3] }
 0x543   :  { %v20380_v26 = vsel %vm459_vm4, %v5893_v63, %v5894_v27  ;;  %v20383_v19 = vsel %vm459_vm4, %v5894_v27, %v5896_v5  ;;  %23760 = vst [vmem:[#allocation92_spill] sm:$0xff] %v20385_v29  ;;  %5552 = vst.msk [vmem:[#allocation3 + $0x2a9] sm:$0xff] %vm5412_vm6, %v5399_v50  ;;  %v20391_v8 = vld [vmem:[%s22763_s3] ss:$0 sm:$0xff]  ;;  %v15765_v10 = vadd.f32 %v14748_v6, %v19832_v25  ;;  %v5093_v49 = vpop.f32.mrb[55].mxu0  ;;  %v5901_v63 = vrot.slane %v20385_v29, 1 }
 0x544   :  { %23758 = vst [vmem:[#allocation88_spill] sm:$0xff] %v20380_v26  ;;  %23759 = vst [vmem:[#allocation91_spill] sm:$0xff] %v20383_v19  ;;  %v5337_v48 = vadd.f32 %v20391_v8, %v5266_v18  ;;  %14832 = vmatprep.mubr.msk.f32.mxu1 %vm5412_vm6, %v20380_v26  ;;  %v20397_v9 = vld [vmem:[#allocation3 + $0x270] sm:$0xff]  ;;  %v20399_v5 = vld [vmem:[#allocation3 + $0x278] sm:$0xff]  ;;  %v5336_v27 = vadd.f32 %v20391_v8, %v5265_v34  ;;  %v15766_v50 = vadd.f32 %v5093_v49, %v19834_v43 }
 0x545   :  { %5551 = vst.msk [vmem:[#allocation3 + $0x2a1] sm:$0xff] %vm5412_vm6, %v5398_v47  ;;  %14833 = vmatmul.mubr.msk.f32.gmra.mrb[78].mxu1 %vm5412_vm6, %v20383_v19  ;;  %v5898_v25 = vrot.slane %v20397_v9, 1  ;;  %v5899_v18 = vrot.slane %v20399_v5, 1  ;;  %v5268_v26 = vmul.f32 %v20376_v58, %v15765_v10 }
 0x546   :  { %v5401_v6 = vmax.f32 %v5337_v48, 0.0  ;;  %v5400_v62 = vmax.f32 %v5336_v27, 0.0  ;;  %v5267_v60 = vmul.f32 %v20376_v58, %v15766_v50  ;;  %v14751_v29 = vpop.f32.mrb[56].mxu0  ;;  %v20417_v43 = vld [vmem:[#allocation3 + $0x298] sm:$0x3] }
 0x547   :  { %v20412_v47 = vsel %vm459_vm4, %v5898_v25, %v5899_v18  ;;  %v20415_v34 = vsel %vm459_vm4, %v5899_v18, %v5901_v63  ;;  %23763 = vst [vmem:[#allocation123_spill] sm:$0xff] %v20417_v43  ;;  %v5339_v49 = vadd.f32 %v20391_v8, %v5268_v26  ;;  %v15767_v48 = vadd.f32 %v14751_v29, %v19836_v7  ;;  %v5103_v19 = vpop.f32.mrb[57].mxu0 }
 0x548   :  { %23761 = vst [vmem:[#allocation121_spill] sm:$0xff] %v20412_v47  ;;  %23762 = vst [vmem:[#allocation122_spill] sm:$0xff] %v20415_v34  ;;  %14835 = vmatprep.mubr.msk.f32.mxu1 %vm5412_vm6, %v20412_v47  ;;  %v20424_v10 = vld [vmem:[#allocation3 + $0x288] sm:$0xff]  ;;  %v20426_v27 = vld [vmem:[#allocation3 + $0x290] sm:$0xff]  ;;  %v5906_v50 = vrot.slane %v20417_v43, 1  ;;  %v5338_v63 = vadd.f32 %v20391_v8, %v5267_v60  ;;  %v15768_v25 = vadd.f32 %v5103_v19, %v19838_v40 }
 0x549   :  { %5554 = vst.msk [vmem:[#allocation3 + $0x2c1] sm:$0xff] %vm5412_vm6, %v5401_v6  ;;  %5553 = vst.msk [vmem:[#allocation3 + $0x2b9] sm:$0xff] %vm5412_vm6, %v5400_v62  ;;  %14836 = vmatmul.mubr.msk.f32.gmra.mrb[80].mxu1 %vm5412_vm6, %v20415_v34  ;;  %v5903_v7 = vrot.slane %v20424_v10, 1  ;;  %v5904_v26 = vrot.slane %v20426_v27, 1  ;;  %v5403_v29 = vmax.f32 %v5339_v49, 0.0  ;;  %v5270_v18 = vmul.f32 %v20376_v58, %v15767_v48 }
 0x54a   :  { %v5402_v6 = vmax.f32 %v5338_v63, 0.0  ;;  %v5269_v47 = vmul.f32 %v20376_v58, %v15768_v25  ;;  %v14754_v43 = vpop.f32.mrb[58].mxu0  ;;  %v20444_v40 = vld [vmem:[#allocation3 + $0x2b0] sm:$0x3] }
 0x54b   :  { %v20439_v62 = vsel %vm459_vm4, %v5903_v7, %v5904_v26  ;;  %v20442_v60 = vsel %vm459_vm4, %v5904_v26, %v5906_v50  ;;  %23766 = vst [vmem:[#allocation126_spill] sm:$0xff] %v20444_v40  ;;  %5556 = vst.msk [vmem:[#allocation3 + $0x2d9] sm:$0xff] %vm5412_vm6, %v5403_v29  ;;  %v5341_v19 = vadd.f32 %v20391_v8, %v5270_v18  ;;  %v5113_v34 = vpop.f32.mrb[59].mxu0  ;;  %v5911_v25 = vrot.slane %v20444_v40, 1 }
 0x54c   :  { %23764 = vst [vmem:[#allocation124_spill] sm:$0xff] %v20439_v62  ;;  %23765 = vst [vmem:[#allocation125_spill] sm:$0xff] %v20442_v60  ;;  %v15769_v49 = vadd.f32 %v14754_v43, %v19840_v57  ;;  %14838 = vmatprep.mubr.msk.f32.mxu1 %vm5412_vm6, %v20439_v62  ;;  %v20451_v48 = vld [vmem:[#allocation3 + $0x2a0] sm:$0xff]  ;;  %v20453_v63 = vld [vmem:[#allocation3 + $0x2a8] sm:$0xff]  ;;  %v5340_v50 = vadd.f32 %v20391_v8, %v5269_v47  ;;  %v15770_v7 = vadd.f32 %v5113_v34, %v19842_v30 }
 0x54d   :  { %5555 = vst.msk [vmem:[#allocation3 + $0x2d1] sm:$0xff] %vm5412_vm6, %v5402_v6  ;;  %14839 = vmatmul.mubr.msk.f32.gmra.mrb[82].mxu1 %vm5412_vm6, %v20442_v60  ;;  %v5908_v57 = vrot.slane %v20451_v48, 1  ;;  %v5909_v43 = vrot.slane %v20453_v63, 1  ;;  %v5405_v26 = vmax.f32 %v5341_v19, 0.0 }
 0x54e   :  { %v5272_v29 = vmul.f32 %v20376_v58, %v15769_v49  ;;  %v5404_v18 = vmax.f32 %v5340_v50, 0.0  ;;  %v5271_v62 = vmul.f32 %v20376_v58, %v15770_v7  ;;  %v14757_v40 = vpop.f32.mrb[60].mxu0 }
 0x54f   :  { %v20466_v6 = vsel %vm459_vm4, %v5908_v57, %v5909_v43  ;;  %v20469_v47 = vsel %vm459_vm4, %v5909_v43, %v5911_v25  ;;  %5558 = vst.msk [vmem:[#allocation3 + $0x2f1] sm:$0xff] %vm5412_vm6, %v5405_v26  ;;  %v15771_v19 = vadd.f32 %v14757_v40, %v19844_v17  ;;  %v5123_v60 = vpop.f32.mrb[61].mxu0 }
 0x550   :  { %23767 = vst [vmem:[#allocation127_spill] sm:$0xff] %v20466_v6  ;;  %23768 = vst [vmem:[#allocation128_spill] sm:$0xff] %v20469_v47  ;;  %v20471_v30 = vld [vmem:[#allocation3 + $0x2c8] sm:$0x3]  ;;  %v5343_v34 = vadd.f32 %v20391_v8, %v5272_v29  ;;  %14841 = vmatprep.mubr.msk.f32.mxu1 %vm5412_vm6, %v20466_v6  ;;  %v20478_v49 = vld [vmem:[#allocation3 + $0x2b8] sm:$0xff]  ;;  %v5342_v25 = vadd.f32 %v20391_v8, %v5271_v62  ;;  %v15772_v57 = vadd.f32 %v5123_v60, %v19846_v1 }
 0x551   :  { %23769 = vst [vmem:[#allocation129_spill] sm:$0xff] %v20471_v30  ;;  %v20480_v50 = vld [vmem:[#allocation3 + $0x2c0] sm:$0xff]  ;;  %v5916_v7 = vrot.slane %v20471_v30, 1  ;;  %5557 = vst.msk [vmem:[#allocation3 + $0x2e9] sm:$0xff] %vm5412_vm6, %v5404_v18  ;;  %14842 = vmatmul.mubr.msk.f32.gmra.mrb[84].mxu1 %vm5412_vm6, %v20469_v47  ;;  %v5913_v17 = vrot.slane %v20478_v49, 1  ;;  %v5274_v26 = vmul.f32 %v20376_v58, %v15771_v19 }
 0x552   :  { %v5914_v40 = vrot.slane %v20480_v50, 1  ;;  %v5407_v43 = vmax.f32 %v5343_v34, 0.0  ;;  %v5406_v29 = vmax.f32 %v5342_v25, 0.0  ;;  %v5273_v6 = vmul.f32 %v20376_v58, %v15772_v57  ;;  %v14760_v30 = vpop.f32.mrb[62].mxu0  ;;  %v20498_v1 = vld [vmem:[#allocation3 + $0x2e0] sm:$0x3] }
 0x553   :  { %23772 = vst [vmem:[#allocation132_spill] sm:$0xff] %v20498_v1  ;;  %v5345_v60 = vadd.f32 %v20391_v8, %v5274_v26  ;;  %v15773_v34 = vadd.f32 %v14760_v30, %v19848_v11  ;;  %v5133_v47 = vpop.f32.mrb[63].mxu0  ;;  %v5921_v57 = vrot.slane %v20498_v1, 1 }
 0x554   :  { %v20493_v18 = vsel %vm459_vm4, %v5913_v17, %v5914_v40  ;;  %v20496_v62 = vsel %vm459_vm4, %v5914_v40, %v5916_v7  ;;  %5560 = vst.msk [vmem:[#allocation3 + $0x309] sm:$0xff] %vm5412_vm6, %v5407_v43  ;;  %v20505_v19 = vld [vmem:[#allocation3 + $0x2d0] sm:$0xff]  ;;  %v20507_v25 = vld [vmem:[#allocation3 + $0x2d8] sm:$0xff]  ;;  %5559 = vst.msk [vmem:[#allocation3 + $0x301] sm:$0xff] %vm5412_vm6, %v5406_v29  ;;  %v5344_v7 = vadd.f32 %v20391_v8, %v5273_v6 }
 0x555   :  { %23770 = vst [vmem:[#allocation130_spill] sm:$0xff] %v20493_v18  ;;  %23771 = vst [vmem:[#allocation131_spill] sm:$0xff] %v20496_v62  ;;  %14844 = vmatprep.mubr.msk.f32.mxu1 %vm5412_vm6, %v20493_v18  ;;  %v15774_v17 = vadd.f32 %v5133_v47, %v19850_v12  ;;  %v5918_v11 = vrot.slane %v20505_v19, 1  ;;  %v5919_v30 = vrot.slane %v20507_v25, 1  ;;  %v5409_v40 = vmax.f32 %v5345_v60, 0.0 }
 0x556   :  { %14845 = vmatmul.mubr.msk.f32.gmra.mrb[86].mxu1 %vm5412_vm6, %v20496_v62  ;;  %v5276_v43 = vmul.f32 %v20376_v58, %v15773_v34  ;;  %v5408_v26 = vmax.f32 %v5344_v7, 0.0  ;;  %v20525_v12 = vld [vmem:[#allocation3 + $0x2f8] sm:$0x3]  ;;  %v20633_v62 = vld [vmem:[#allocation3 + $0x60] sm:$0xff] }
 0x557   :  { %v5275_v18 = vmul.f32 %v20376_v58, %v15774_v17  ;;  %v20520_v1 = vsel %vm459_vm4, %v5918_v11, %v5919_v30  ;;  %v20523_v6 = vsel %vm459_vm4, %v5919_v30, %v5921_v57  ;;  %23775 = vst [vmem:[#allocation135_spill] sm:$0xff] %v20525_v12  ;;  %5562 = vst.msk [vmem:[#allocation3 + $0x321] sm:$0xff] %vm5412_vm6, %v5409_v40  ;;  %v5926_v58 = vrot.slane %v20525_v12, 1  ;;  %v20645_v12 = vld [vmem:[#allocation3 + $0x80] sm:$0xff] }
 0x558   :  { %23773 = vst [vmem:[#allocation133_spill] sm:$0xff] %v20520_v1  ;;  %23774 = vst [vmem:[#allocation134_spill] sm:$0xff] %v20523_v6  ;;  %v5347_v47 = vadd.f32 %v20391_v8, %v5276_v43  ;;  %14847 = vmatprep.mubr.msk.f32.mxu1 %vm5412_vm6, %v20520_v1  ;;  %v20531_v29 = vld [vmem:[#allocation3 + $0x2e8] sm:$0xff]  ;;  %v20533_v60 = vld [vmem:[#allocation3 + $0x2f0] sm:$0xff] }
 0x559   :  { %5561 = vst.msk [vmem:[#allocation3 + $0x319] sm:$0xff] %vm5412_vm6, %v5408_v26  ;;  %v5346_v34 = vadd.f32 %v20391_v8, %v5275_v18  ;;  %v5923_v57 = vrot.slane %v20531_v29, 1  ;;  %v5924_v7 = vrot.slane %v20533_v60, 1  ;;  %v20629_v1 = vld [vmem:[#allocation3 + $0x50] sm:$0xff] }
 0x55a   :  { %14848 = vmatmul.mubr.msk.f32.gmra.mrb[88].mxu1 %vm5412_vm6, %v20523_v6  ;;  %v5411_v17 = vmax.f32 %v5347_v47, 0.0  ;;  %v20621_v6 = vld [vmem:[#allocation3 + $0x38] sm:$0xff] }
 0x55b   :  { %v5410_v11 = vmax.f32 %v5346_v34, 0.0  ;;  %v20543_v30 = vsel %vm459_vm4, %v5923_v57, %v5924_v7  ;;  %v20546_v40 = vsel %vm459_vm4, %v5924_v7, %v5926_v58  ;;  %v20548_v43 = vld [vmem:[#allocation3 + $0x310] sm:$0x3]  ;;  %v20553_v8 = vld [vmem:[#allocation3 + $0x300] sm:$0xff]  ;;  %v20555_v18 = vld [vmem:[#allocation3 + $0x308] sm:$0xff] }
 0x55c   :  { %23776 = vst [vmem:[#allocation136_spill] sm:$0xff] %v20543_v30  ;;  %23777 = vst [vmem:[#allocation137_spill] sm:$0xff] %v20546_v40  ;;  %14850 = vmatprep.mubr.msk.f32.mxu1 %vm5412_vm6, %v20543_v30  ;;  %v5931_v26 = vrot.slane %v20548_v43, 1  ;;  %v5928_v47 = vrot.slane %v20553_v8, 1  ;;  %v5929_v58 = vrot.slane %v20555_v18, 1 }
 0x55d   :  { %23778 = vst [vmem:[#allocation138_spill] sm:$0xff] %v20548_v43  ;;  %5564 = vst.msk [vmem:[#allocation3 + $0x339] sm:$0xff] %vm5412_vm6, %v5411_v17  ;;  %v20641_v43 = vld [vmem:[#allocation3 + $0x78] sm:$0xff] }
 0x55e   :  { %5563 = vst.msk [vmem:[#allocation3 + $0x331] sm:$0xff] %vm5412_vm6, %v5410_v11  ;;  %14851 = vmatmul.mubr.msk.f32.gmra.mrb[90].mxu1 %vm5412_vm6, %v20546_v40  ;;  %v20564_v34 = vsel %vm459_vm4, %v5928_v47, %v5929_v58  ;;  %v20567_v57 = vsel %vm459_vm4, %v5929_v58, %v5931_v26  ;;  %v20569_v7 = vld [vmem:[#allocation3 + $0x328] sm:$0x3] }
 0x55f   :  { %23779 = vst [vmem:[#allocation139_spill] sm:$0xff] %v20564_v34  ;;  %23780 = vst [vmem:[#allocation140_spill] sm:$0xff] %v20567_v57  ;;  %14853 = vmatprep.mubr.msk.f32.mxu1 %vm5412_vm6, %v20564_v34  ;;  %v5936_v40 = vrot.slane %v20569_v7, 1  ;;  %v20592_v34 = vld [vmem:[#allocation3] sm:$0xff] }
 0x560   :  { %23781 = vst [vmem:[#allocation141_spill] sm:$0xff] %v20569_v7  ;;  %v20573_v17 = vld [vmem:[#allocation3 + $0x318] sm:$0xff]  ;;  %v20575_v11 = vld [vmem:[#allocation3 + $0x320] sm:$0xff]  ;;  %v20637_v7 = vld [vmem:[#allocation3 + $0x68] sm:$0xff] }
 0x561   :  { %v5933_v47 = vrot.slane %v20573_v17, 1  ;;  %v5934_v30 = vrot.slane %v20575_v11, 1 }
 0x562   :  { %14854 = vmatmul.mubr.msk.f32.gmra.mrb[92].mxu1 %vm5412_vm6, %v20567_v57  ;;  %v20599_v57 = vld [vmem:[%s22761_s4 + $0x18] sm:$0xff] }
 0x563   :  { %v20583_v26 = vsel %vm459_vm4, %v5933_v47, %v5934_v30  ;;  %v20586_v58 = vsel %vm459_vm4, %v5934_v30, %v5936_v40  ;;  %v20601_v47 = vld [vmem:[#allocation3 + $0x8] sm:$0xff]  ;;  %v16833_v30 = vld [vmem:[%s22761_s4 + $0x10] sm:$0xff]  ;;  %v20608_v40 = vld [vmem:[#allocation3 + $0x18] sm:$0xff] }
 0x564   :  { %23782 = vst [vmem:[#allocation142_spill] sm:$0xff] %v20583_v26  ;;  %23783 = vst [vmem:[#allocation144_spill] sm:$0xff] %v20586_v58  ;;  %14856 = vmatprep.mubr.msk.f32.mxu1 %vm5412_vm6, %v20583_v26  ;;  %v20617_v26 = vld [vmem:[#allocation3 + $0x30] sm:$0xff] }
 0x566   :  { %14857 = vmatmul.mubr.msk.f32.gmra.mrb[94].mxu1 %vm5412_vm6, %v20586_v58  ;;  %v20613_v58 = vld [vmem:[#allocation3 + $0x20] sm:$0xff] }
 0x567   :  { %14861 = vmatprep.mubr.msk.f32.mxu1 %vm5412_vm6, %v20592_v34 }
 0x56a   :  { %14862 = vmatmul.mubr.msk.f32.vlgmr.msra.gmra.mrb[32].mxu1 %vm5412_vm6, %v20601_v47 }
 0x56b   :  { %14958 = vmatpush3.msra.mxu1 %v16833_v30  ;;  %14864 = vmatprep.mubr.msk.f32.mxu1 %vm5412_vm6, %v20608_v40  ;;  %v20625_v30 = vld [vmem:[#allocation3 + $0x48] sm:$0xff] }
 0x56c   :  { %15055 = vmatprep.subr.mxu1 %v20599_v57 }
 0x56e   :  { %14865 = vmatmul.mubr.msk.f32.gmra.mrb[34].mxu1 %vm5412_vm6, %v20613_v58 }
 0x56f   :  { %14867 = vmatprep.mubr.msk.f32.mxu1 %vm5412_vm6, %v20617_v26 }
 0x572   :  { %14868 = vmatmul.mubr.msk.f32.gmra.mrb[36].mxu1 %vm5412_vm6, %v20621_v6 }
 0x573   :  { %14870 = vmatprep.mubr.msk.f32.mxu1 %vm5412_vm6, %v20625_v30 }
 0x576   :  { %14871 = vmatmul.mubr.msk.f32.gmra.mrb[38].mxu1 %vm5412_vm6, %v20629_v1 }
 0x577   :  { %14873 = vmatprep.mubr.msk.f32.mxu1 %vm5412_vm6, %v20633_v62 }
 0x57a   :  { %14874 = vmatmul.mubr.msk.f32.gmra.mrb[40].mxu1 %vm5412_vm6, %v20637_v7 }
 0x57b   :  { %14876 = vmatprep.mubr.msk.f32.mxu1 %vm5412_vm6, %v20641_v43 }
 0x57e   :  { %14877 = vmatmul.mubr.msk.f32.gmra.mrb[42].mxu1 %vm5412_vm6, %v20645_v12 }
 0x57f   :  { %14879 = vmatprep.mubr.msk.f32.mxu1 %vm5412_vm6, %v20649_v51 }
 0x582   :  { %14880 = vmatmul.mubr.msk.f32.gmra.mrb[44].mxu1 %vm5412_vm6, %v20653_v59 }
 0x583   :  { %14882 = vmatprep.mubr.msk.f32.mxu1 %vm5412_vm6, %v20657_v56 }
 0x586   :  { %14883 = vmatmul.mubr.msk.f32.gmra.mrb[46].mxu1 %vm5412_vm6, %v20661_v14 }
 0x587   :  { %14885 = vmatprep.mubr.msk.f32.mxu1 %vm5412_vm6, %v19995_v46  ;;  %v23784_v46 = vld [vmem:[#allocation30_spill] sm:$0xff] }
 0x58a   :  { %14886 = vmatmul.mubr.msk.f32.gmra.mrb[48].mxu1 %vm5412_vm6, %v19997_v54  ;;  %v23785_v54 = vld [vmem:[#allocation42_spill] sm:$0xff] }
 0x58b   :  { %14888 = vmatprep.mubr.msk.f32.mxu1 %vm5412_vm6, %v20017_v55  ;;  %v23786_v55 = vld [vmem:[#allocation169_spill] sm:$0xff] }
 0x58e   :  { %14889 = vmatmul.mubr.msk.f32.gmra.mrb[50].mxu1 %vm5412_vm6, %v20019_v38  ;;  %v23787_v38 = vld [vmem:[#allocation29_spill] sm:$0xff] }
 0x58f   :  { %14891 = vmatprep.mubr.msk.f32.mxu1 %vm5412_vm6, %v20039_v61  ;;  %v6964_v61 = vrot.slane %v20592_v34, 2  ;;  %v20771_v34 = vld [vmem:[%s22761_s4 + $0x20] sm:$0xff] }
 0x592   :  { %14892 = vmatmul.mubr.msk.f32.gmra.mrb[52].mxu1 %vm5412_vm6, %v20041_v2  ;;  %v6965_v2 = vrot.slane %v20601_v47, 2 }
 0x593   :  { %14894 = vmatprep.mubr.msk.f32.mxu1 %vm5412_vm6, %v20061_v0  ;;  %v16848_v0 = vld [vmem:[#allocation3 + $0x10] sm:$0x3] }
 0x596   :  { %14895 = vmatmul.mubr.msk.f32.gmra.mrb[54].mxu1 %vm5412_vm6, %v20063_v44  ;;  %v6967_v44 = vrot.slane %v16848_v0, 2  ;;  %v6979_v0 = vrot.slane %v20625_v30, 2 }
 0x597   :  { %14897 = vmatprep.mubr.msk.f32.mxu1 %vm5412_vm6, %v20083_v41  ;;  %v6966_v41 = vsel %vm1653_vm5, %v6964_v61, %v6965_v2 }
 0x59a   :  { %14898 = vmatmul.mubr.msk.f32.gmra.mrb[56].mxu1 %vm5412_vm6, %v20085_v21  ;;  %v6969_v21 = vrot.slane %v20608_v40, 2 }
 0x59b   :  { %14900 = vmatprep.mubr.msk.f32.mxu1 %vm5412_vm6, %v20105_v39  ;;  %v6970_v39 = vrot.slane %v20613_v58, 2 }
 0x59d   :  { %v20775_v47 = vsel %vm1653_vm5, %v6969_v21, %v6970_v39 }
 0x59e   :  { %14901 = vmatmul.mubr.msk.f32.gmra.mrb[58].mxu1 %vm5412_vm6, %v20107_v28  ;;  %v6968_v28 = vsel %vm1653_vm5, %v6965_v2, %v6967_v44  ;;  %23788 = vst [vmem:[#allocation147_spill] sm:$0xff] %v20775_v47 }
 0x59f   :  { %14903 = vmatprep.mubr.msk.f32.mxu1 %vm5412_vm6, %v20131_v16  ;;  %v16849_v16 = vld [vmem:[#allocation3 + $0x28] sm:$0x3] }
 0x5a2   :  { %14904 = vmatmul.mubr.msk.f32.gmra.mrb[60].mxu1 %vm5412_vm6, %v23784_v46  ;;  %v6974_v46 = vrot.slane %v20617_v26, 2 }
 0x5a3   :  { %14906 = vmatprep.mubr.msk.f32.mxu1 %vm5412_vm6, %v20156_v42  ;;  %v6972_v42 = vrot.slane %v16849_v16, 2  ;;  %v6985_v16 = vrot.slane %v20637_v7, 2 }
 0x5a6   :  { %14907 = vmatmul.mubr.msk.f32.gmra.mrb[62].mxu1 %vm5412_vm6, %v23785_v54  ;;  %v6975_v54 = vrot.slane %v20621_v6, 2 }
 0x5a7   :  { %14909 = vmatprep.mubr.msk.f32.mxu1 %vm5412_vm6, %v23786_v55  ;;  %v20784_v55 = vsel %vm1653_vm5, %v6970_v39, %v6972_v42 }
 0x5a8   :  { %23789 = vst [vmem:[#allocation148_spill] sm:$0xff] %v20784_v55  ;;  %v20789_v2 = vsel %vm1653_vm5, %v6974_v46, %v6975_v54  ;;  %v16852_v46 = vld [vmem:[#allocation3 + $0x70] sm:$0x3] }
 0x5a9   :  { %23790 = vst [vmem:[#allocation149_spill] sm:$0xff] %v20789_v2 }
 0x5aa   :  { %14910 = vmatmul.mubr.msk.f32.gmra.mrb[64].mxu1 %vm5412_vm6, %v23787_v38  ;;  %v16850_v38 = vld [vmem:[#allocation3 + $0x40] sm:$0x3] }
 0x5ab   :  { %14912 = vmatprep.mubr.msk.f32.mxu1 %vm5412_vm6, %v20200_v23  ;;  %v6977_v61 = vrot.slane %v16850_v38, 2 }
 0x5ad   :  { %v20796_v44 = vsel %vm1653_vm5, %v6975_v54, %v6977_v61  ;;  %v6987_v54 = vrot.slane %v16852_v46, 2  ;;  %v6989_v61 = vrot.slane %v20641_v43, 2 }
 0x5ae   :  { %14913 = vmatmul.mubr.msk.f32.gmra.mrb[66].mxu1 %vm5412_vm6, %v20202_v35  ;;  %23791 = vst [vmem:[#allocation26_spill] sm:$0xff] %v20796_v44 }
 0x5af   :  { %14915 = vmatprep.mubr.msk.f32.mxu1 %vm5412_vm6, %v20225_v22 }
 0x5b2   :  { %14916 = vmatmul.mubr.msk.f32.gmra.mrb[68].mxu1 %vm5412_vm6, %v20227_v32 }
 0x5b3   :  { %14918 = vmatprep.mubr.msk.f32.mxu1 %vm5412_vm6, %v20252_v13 }
 0x5b6   :  { %14919 = vmatmul.mubr.msk.f32.gmra.mrb[70].mxu1 %vm5412_vm6, %v20254_v36 }
 0x5b7   :  { %14921 = vmatprep.mubr.msk.f32.mxu1 %vm5412_vm6, %v20279_v24 }
 0x5ba   :  { %14922 = vmatmul.mubr.msk.f32.gmra.mrb[72].mxu1 %vm5412_vm6, %v20281_v33 }
 0x5bb   :  { %14924 = vmatprep.mubr.msk.f32.mxu1 %vm5412_vm6, %v20306_v15 }
 0x5be   :  { %14925 = vmatmul.mubr.msk.f32.gmra.mrb[74].mxu1 %vm5412_vm6, %v20308_v37 }
 0x5bf   :  { %14927 = vmatprep.mubr.msk.f32.mxu1 %vm5412_vm6, %v20333_v45 }
 0x5c2   :  { %14928 = vmatmul.mubr.msk.f32.gmra.mrb[76].mxu1 %vm5412_vm6, %v20335_v4 }
 0x5c3   :  { %14930 = vmatprep.mubr.msk.f32.mxu1 %vm5412_vm6, %v20360_v3 }
 0x5c6   :  { %14931 = vmatmul.mubr.msk.f32.gmra.mrb[78].mxu1 %vm5412_vm6, %v20362_v31 }
 0x5c7   :  { %14933 = vmatprep.mubr.msk.f32.mxu1 %vm5412_vm6, %v20397_v9 }
 0x5ca   :  { %14934 = vmatmul.mubr.msk.f32.gmra.mrb[80].mxu1 %vm5412_vm6, %v20399_v5 }
 0x5cb   :  { %14936 = vmatprep.mubr.msk.f32.mxu1 %vm5412_vm6, %v20424_v10 }
 0x5ce   :  { %14937 = vmatmul.mubr.msk.f32.gmra.mrb[82].mxu1 %vm5412_vm6, %v20426_v27 }
 0x5cf   :  { %14939 = vmatprep.mubr.msk.f32.mxu1 %vm5412_vm6, %v20451_v48 }
 0x5d2   :  { %14940 = vmatmul.mubr.msk.f32.gmra.mrb[84].mxu1 %vm5412_vm6, %v20453_v63 }
 0x5d3   :  { %14942 = vmatprep.mubr.msk.f32.mxu1 %vm5412_vm6, %v20478_v49 }
 0x5d6   :  { %14943 = vmatmul.mubr.msk.f32.gmra.mrb[86].mxu1 %vm5412_vm6, %v20480_v50 }
 0x5d7   :  { %14945 = vmatprep.mubr.msk.f32.mxu1 %vm5412_vm6, %v20505_v19 }
 0x5da   :  { %14946 = vmatmul.mubr.msk.f32.gmra.mrb[88].mxu1 %vm5412_vm6, %v20507_v25 }
 0x5db   :  { %14948 = vmatprep.mubr.msk.f32.mxu1 %vm5412_vm6, %v20531_v29 }
 0x5de   :  { %14949 = vmatmul.mubr.msk.f32.gmra.mrb[90].mxu1 %vm5412_vm6, %v20533_v60 }
 0x5df   :  { %14951 = vmatprep.mubr.msk.f32.mxu1 %vm5412_vm6, %v20553_v8 }
 0x5e2   :  { %14952 = vmatmul.mubr.msk.f32.gmra.mrb[92].mxu1 %vm5412_vm6, %v20555_v18 }
 0x5e3   :  { %14954 = vmatprep.mubr.msk.f32.mxu1 %vm5412_vm6, %v20573_v17 }
 0x5e6   :  { %14955 = vmatmul.mubr.msk.f32.gmra.mrb[94].mxu1 %vm5412_vm6, %v20575_v11 }
 0x5e7   :  { %14959 = vmatprep.mubr.msk.f32.mxu1 %vm5412_vm6, %v6966_v41  ;;  %v16851_v41 = vld [vmem:[#allocation3 + $0x58] sm:$0x3] }
 0x5e8   :  { %v6982_v21 = vrot.slane %v16851_v41, 2  ;;  %v20820_v41 = vsel %vm1653_vm5, %v6985_v16, %v6987_v54 }
 0x5e9   :  { %23795 = vst [vmem:[#allocation96_spill] sm:$0xff] %v20820_v41 }
 0x5ea   :  { %14960 = vmatmul.mubr.msk.f32.vlgmr.msra.gmra.mrb[32].mxu1 %vm5412_vm6, %v6968_v28  ;;  %v6984_v28 = vrot.slane %v20633_v62, 2 }
 0x5eb   :  { %15056 = vmatpush3.msra.mxu1 %v20599_v57  ;;  %14962 = vmatprep.mubr.msk.f32.mxu1 %vm5412_vm6, %v20775_v47  ;;  %v6980_v57 = vrot.slane %v20629_v1, 2  ;;  %v20886_v47 = vld [vmem:[#allocation3 + $0xf8] sm:$0xff] }
 0x5ec   :  { %15153 = vmatprep.subr.mxu1 %v20771_v34  ;;  %v20813_v38 = vsel %vm1653_vm5, %v6984_v28, %v6985_v16  ;;  %v6994_v28 = vrot.slane %v20649_v51, 2  ;;  %v16854_v16 = vld [vmem:[#allocation3 + $0xa0] sm:$0x3]  ;;  %23808 = vst [vmem:[#allocation159_spill] sm:$0xff] %v20886_v47 }
 0x5ed   :  { %v20801_v39 = vsel %vm1653_vm5, %v6979_v0, %v6980_v57  ;;  %v20808_v42 = vsel %vm1653_vm5, %v6980_v57, %v6982_v21  ;;  %23794 = vst [vmem:[#allocation95_spill] sm:$0xff] %v20813_v38  ;;  %v6990_v0 = vrot.slane %v20645_v12, 2  ;;  %v16853_v57 = vld [vmem:[#allocation3 + $0x88] sm:$0x3]  ;;  %v6997_v54 = vrot.slane %v16854_v16, 2 }
 0x5ee   :  { %14963 = vmatmul.mubr.msk.f32.gmra.mrb[34].mxu1 %vm5412_vm6, %v20784_v55  ;;  %23792 = vst [vmem:[#allocation152_spill] sm:$0xff] %v20801_v39  ;;  %23793 = vst [vmem:[#allocation94_spill] sm:$0xff] %v20808_v42  ;;  %v6992_v21 = vrot.slane %v16853_v57, 2 }
 0x5ef   :  { %14965 = vmatprep.mubr.msk.f32.mxu1 %vm5412_vm6, %v20789_v2  ;;  %v20825_v46 = vsel %vm1653_vm5, %v6989_v61, %v6990_v0  ;;  %v6999_v61 = vrot.slane %v20657_v56, 2  ;;  %v20870_v2 = vld [vmem:[#allocation3 + $0xe0] sm:$0xff] }
 0x5f0   :  { %23796 = vst [vmem:[#allocation97_spill] sm:$0xff] %v20825_v46  ;;  %23804 = vst [vmem:[#allocation156_spill] sm:$0xff] %v20870_v2  ;;  %v7010_v55 = vrot.slane %v20870_v2, 2  ;;  %v7015_v2 = vrot.slane %v20886_v47, 2 }
 0x5f2   :  { %14966 = vmatmul.mubr.msk.f32.gmra.mrb[36].mxu1 %vm5412_vm6, %v20796_v44 }
 0x5f3   :  { %14968 = vmatprep.mubr.msk.f32.mxu1 %vm5412_vm6, %v20801_v39  ;;  %v20854_v39 = vld [vmem:[#allocation3 + $0xc8] sm:$0xff] }
 0x5f4   :  { %v7005_v44 = vrot.slane %v20854_v39, 2 }
 0x5f6   :  { %14969 = vmatmul.mubr.msk.f32.gmra.mrb[38].mxu1 %vm5412_vm6, %v20808_v42  ;;  %v6995_v42 = vrot.slane %v20653_v59, 2 }
 0x5f7   :  { %14971 = vmatprep.mubr.msk.f32.mxu1 %vm5412_vm6, %v20813_v38  ;;  %v20832_v38 = vsel %vm1653_vm5, %v6990_v0, %v6992_v21  ;;  %v16855_v0 = vld [vmem:[#allocation3 + $0xb8] sm:$0x3] }
 0x5f8   :  { %23797 = vst [vmem:[#allocation99_spill] sm:$0xff] %v20832_v38  ;;  %v20837_v57 = vsel %vm1653_vm5, %v6994_v28, %v6995_v42  ;;  %v7002_v21 = vrot.slane %v16855_v0, 2  ;;  %v20851_v28 = vld [vmem:[#allocation3 + $0xc0] sm:$0xff] }
 0x5f9   :  { %23798 = vst [vmem:[#allocation153_spill] sm:$0xff] %v20837_v57 }
 0x5fa   :  { %14972 = vmatmul.mubr.msk.f32.gmra.mrb[40].mxu1 %vm5412_vm6, %v20820_v41  ;;  %v7000_v41 = vrot.slane %v20661_v14, 2 }
 0x5fb   :  { %14974 = vmatprep.mubr.msk.f32.mxu1 %vm5412_vm6, %v20825_v46  ;;  %v20844_v46 = vsel %vm1653_vm5, %v6995_v42, %v6997_v54  ;;  %v16858_v54 = vld [vmem:[#allocation3 + $0xd0] sm:$0x3] }
 0x5fc   :  { %23799 = vst [vmem:[#allocation101_spill] sm:$0xff] %v20844_v46  ;;  %v20849_v16 = vsel %vm1653_vm5, %v6999_v61, %v7000_v41  ;;  %v20860_v42 = vsel %vm1653_vm5, %v7000_v41, %v7002_v21  ;;  %v7007_v0 = vrot.slane %v16858_v54, 2  ;;  %v16861_v21 = vld [vmem:[#allocation3 + $0xe8] sm:$0x3] }
 0x5fd   :  { %23800 = vst [vmem:[#allocation154_spill] sm:$0xff] %v20849_v16  ;;  %23801 = vst [vmem:[#allocation103_spill] sm:$0xff] %v20860_v42  ;;  %v7012_v54 = vrot.slane %v16861_v21, 2 }
 0x5fe   :  { %14975 = vmatmul.mubr.msk.f32.gmra.mrb[42].mxu1 %vm5412_vm6, %v20832_v38  ;;  %v7004_v38 = vrot.slane %v20851_v28, 2  ;;  %v20876_v41 = vsel %vm1653_vm5, %v7005_v44, %v7007_v0  ;;  %v16864_v0 = vld [vmem:[#allocation3 + $0x100] sm:$0x3] }
 0x5ff   :  { %14977 = vmatprep.mubr.msk.f32.mxu1 %vm5412_vm6, %v20837_v57  ;;  %23805 = vst [vmem:[#allocation107_spill] sm:$0xff] %v20876_v41  ;;  %v7017_v21 = vrot.slane %v16864_v0, 2 }
 0x600   :  { %v20865_v61 = vsel %vm1653_vm5, %v7004_v38, %v7005_v44  ;;  %v20892_v44 = vsel %vm1653_vm5, %v7010_v55, %v7012_v54  ;;  %v16867_v54 = vld [vmem:[#allocation3 + $0x118] sm:$0x3] }
 0x601   :  { %23802 = vst [vmem:[#allocation155_spill] sm:$0xff] %v20865_v61  ;;  %23809 = vst [vmem:[#allocation115_spill] sm:$0xff] %v20892_v44  ;;  %v7022_v0 = vrot.slane %v16867_v54, 2 }
 0x602   :  { %14978 = vmatmul.mubr.msk.f32.gmra.mrb[44].mxu1 %vm5412_vm6, %v20844_v46  ;;  %v20867_v46 = vld [vmem:[#allocation3 + $0xd8] sm:$0xff] }
 0x603   :  { %14980 = vmatprep.mubr.msk.f32.mxu1 %vm5412_vm6, %v20849_v16  ;;  %23803 = vst [vmem:[#allocation105_spill] sm:$0xff] %v20867_v46  ;;  %v7009_v57 = vrot.slane %v20867_v46, 2 }
 0x605   :  { %v20881_v38 = vsel %vm1653_vm5, %v7009_v57, %v7010_v55  ;;  %v20908_v55 = vsel %vm1653_vm5, %v7015_v2, %v7017_v21  ;;  %v16870_v21 = vld [vmem:[#allocation3 + $0x130] sm:$0x3] }
 0x606   :  { %14981 = vmatmul.mubr.msk.f32.gmra.mrb[46].mxu1 %vm5412_vm6, %v20860_v42  ;;  %23806 = vst [vmem:[#allocation109_spill] sm:$0xff] %v20881_v38  ;;  %v20883_v42 = vld [vmem:[#allocation3 + $0xf0] sm:$0xff]  ;;  %23813 = vst [vmem:[#allocation28_spill] sm:$0xff] %v20908_v55  ;;  %v7027_v54 = vrot.slane %v16870_v21, 2 }
 0x607   :  { %14983 = vmatprep.mubr.msk.f32.mxu1 %vm5412_vm6, %v20865_v61  ;;  %23807 = vst [vmem:[#allocation111_spill] sm:$0xff] %v20883_v42  ;;  %v7014_v16 = vrot.slane %v20883_v42, 2  ;;  %v20902_v42 = vld [vmem:[#allocation3 + $0x110] sm:$0xff] }
 0x608   :  { %23812 = vst [vmem:[#allocation27_spill] sm:$0xff] %v20902_v42  ;;  %v7020_v47 = vrot.slane %v20902_v42, 2 }
 0x609   :  { %v20897_v57 = vsel %vm1653_vm5, %v7014_v16, %v7015_v2 }
 0x60a   :  { %14984 = vmatmul.mubr.msk.f32.gmra.mrb[48].mxu1 %vm5412_vm6, %v20876_v41  ;;  %23810 = vst [vmem:[#allocation161_spill] sm:$0xff] %v20897_v57  ;;  %v20899_v41 = vld [vmem:[#allocation3 + $0x108] sm:$0xff]  ;;  %v20924_v2 = vsel %vm1653_vm5, %v7020_v47, %v7022_v0 }
 0x60b   :  { %14986 = vmatprep.mubr.msk.f32.mxu1 %vm5412_vm6, %v20881_v38  ;;  %23811 = vst [vmem:[#allocation162_spill] sm:$0xff] %v20899_v41  ;;  %v7019_v61 = vrot.slane %v20899_v41, 2  ;;  %v20918_v41 = vld [vmem:[#allocation3 + $0x128] sm:$0xff]  ;;  %23817 = vst [vmem:[#allocation169_spill] sm:$0xff] %v20924_v2 }
 0x60c   :  { %23816 = vst [vmem:[#allocation42_spill] sm:$0xff] %v20918_v41  ;;  %v7025_v42 = vrot.slane %v20918_v41, 2  ;;  %v16873_v0 = vld [vmem:[#allocation3 + $0x148] sm:$0x3] }
 0x60d   :  { %v20913_v16 = vsel %vm1653_vm5, %v7019_v61, %v7020_v47  ;;  %v7032_v21 = vrot.slane %v16873_v0, 2 }
 0x60e   :  { %14987 = vmatmul.mubr.msk.f32.gmra.mrb[50].mxu1 %vm5412_vm6, %v20892_v44  ;;  %23814 = vst [vmem:[#allocation4_spill] sm:$0xff] %v20913_v16  ;;  %v20915_v44 = vld [vmem:[#allocation3 + $0x120] sm:$0xff]  ;;  %v20940_v47 = vsel %vm1653_vm5, %v7025_v42, %v7027_v54 }
 0x60f   :  { %14989 = vmatprep.mubr.msk.f32.mxu1 %vm5412_vm6, %v20897_v57  ;;  %23815 = vst [vmem:[#allocation30_spill] sm:$0xff] %v20915_v44  ;;  %v7024_v38 = vrot.slane %v20915_v44, 2  ;;  %v20934_v44 = vld [vmem:[#allocation3 + $0x140] sm:$0xff]  ;;  %23821 = vst [vmem:[#allocation172_spill] sm:$0xff] %v20940_v47 }
 0x610   :  { %23820 = vst [vmem:[#allocation171_spill] sm:$0xff] %v20934_v44  ;;  %v7030_v41 = vrot.slane %v20934_v44, 2  ;;  %v16876_v54 = vld [vmem:[#allocation3 + $0x160] sm:$0x3] }
 0x611   :  { %v20929_v61 = vsel %vm1653_vm5, %v7024_v38, %v7025_v42  ;;  %v7037_v0 = vrot.slane %v16876_v54, 2  ;;  %v16880_v54 = vld [vmem:[#allocation3 + $0x1b8] sm:$0xff] }
 0x612   :  { %14990 = vmatmul.mubr.msk.f32.gmra.mrb[52].mxu1 %vm5412_vm6, %v20908_v55  ;;  %23818 = vst [vmem:[#allocation29_spill] sm:$0xff] %v20929_v61  ;;  %v20931_v55 = vld [vmem:[#allocation3 + $0x138] sm:$0xff]  ;;  %v20956_v42 = vsel %vm1653_vm5, %v7030_v41, %v7032_v21 }
 0x613   :  { %14992 = vmatprep.mubr.msk.f32.mxu1 %vm5412_vm6, %v20913_v16  ;;  %23819 = vst [vmem:[#allocation170_spill] sm:$0xff] %v20931_v55  ;;  %v7029_v57 = vrot.slane %v20931_v55, 2  ;;  %v20950_v55 = vld [vmem:[#allocation3 + $0x158] sm:$0xff]  ;;  %23825 = vst [vmem:[#allocation176_spill] sm:$0xff] %v20956_v42 }
 0x614   :  { %23824 = vst [vmem:[#allocation175_spill] sm:$0xff] %v20950_v55  ;;  %v7035_v44 = vrot.slane %v20950_v55, 2 }
 0x615   :  { %v20945_v38 = vsel %vm1653_vm5, %v7029_v57, %v7030_v41  ;;  %v16879_v41 = vld [vmem:[#allocation3 + $0x1b0] sm:$0xff] }
 0x616   :  { %14993 = vmatmul.mubr.msk.f32.gmra.mrb[54].mxu1 %vm5412_vm6, %v20924_v2  ;;  %23822 = vst [vmem:[#allocation173_spill] sm:$0xff] %v20945_v38  ;;  %v20947_v2 = vld [vmem:[#allocation3 + $0x150] sm:$0xff]  ;;  %v7044_v21 = vrot.slane %v16879_v41, 2 }
 0x617   :  { %14995 = vmatprep.mubr.msk.f32.mxu1 %vm5412_vm6, %v20929_v61  ;;  %23823 = vst [vmem:[#allocation174_spill] sm:$0xff] %v20947_v2  ;;  %v7034_v16 = vrot.slane %v20947_v2, 2  ;;  %v20966_v2 = vld [vmem:[#allocation3 + $0x170] sm:$0xff] }
 0x618   :  { %23828 = vst [vmem:[#allocation179_spill] sm:$0xff] %v20966_v2  ;;  %v7040_v55 = vrot.slane %v20966_v2, 2  ;;  %v16882_v2 = vld [vmem:[#allocation3 + $0x1c0] sm:$0x3] }
 0x619   :  { %v20961_v57 = vsel %vm1653_vm5, %v7034_v16, %v7035_v44  ;;  %v16881_v16 = vld [vmem:[#allocation3 + $0x178] sm:$0x3] }
 0x61a   :  { %14996 = vmatmul.mubr.msk.f32.gmra.mrb[56].mxu1 %vm5412_vm6, %v20940_v47  ;;  %23826 = vst [vmem:[#allocation177_spill] sm:$0xff] %v20961_v57  ;;  %v20963_v47 = vld [vmem:[#allocation3 + $0x168] sm:$0xff]  ;;  %v7042_v46 = vrot.slane %v16881_v16, 2  ;;  %v7052_v16 = vrot.slane %v20195_v52, 2 }
 0x61b   :  { %14998 = vmatprep.mubr.msk.f32.mxu1 %vm5412_vm6, %v20945_v38  ;;  %23827 = vst [vmem:[#allocation178_spill] sm:$0xff] %v20963_v47  ;;  %v7039_v61 = vrot.slane %v20963_v47, 2  ;;  %v7045_v38 = vrot.slane %v16880_v54, 2 }
 0x61c   :  { %v20983_v54 = vsel %vm1653_vm5, %v7040_v55, %v7042_v46  ;;  %v7054_v46 = vrot.slane %v20225_v22, 2  ;;  %v7060_v22 = vrot.slane %v20254_v36, 2 }
 0x61d   :  { %v20977_v47 = vsel %vm1653_vm5, %v7039_v61, %v7040_v55  ;;  %v7046_v41 = vsel %vm1653_vm5, %v7044_v21, %v7045_v38  ;;  %v7055_v55 = vrot.slane %v20227_v32, 2  ;;  %v7064_v21 = vrot.slane %v20279_v24, 2 }
 0x61e   :  { %14999 = vmatmul.mubr.msk.f32.gmra.mrb[58].mxu1 %vm5412_vm6, %v20956_v42  ;;  %v20972_v42 = vsel %vm1653_vm5, %v7035_v44, %v7037_v0  ;;  %v7049_v44 = vrot.slane %v20200_v23, 2  ;;  %v7050_v0 = vrot.slane %v20202_v35, 2  ;;  %v7057_v35 = vrot.slane %v20218_v20, 2 }
 0x61f   :  { %15001 = vmatprep.mubr.msk.f32.mxu1 %vm5412_vm6, %v20961_v57  ;;  %v7047_v57 = vrot.slane %v16882_v2, 2  ;;  %v21007_v52 = vsel %vm1653_vm5, %v7054_v46, %v7055_v55  ;;  %v7070_v24 = vrot.slane %v20308_v37, 2 }
 0x620   :  { %v20994_v2 = vsel %vm1653_vm5, %v7049_v44, %v7050_v0  ;;  %v21001_v23 = vsel %vm1653_vm5, %v7050_v0, %v7052_v16  ;;  %v21014_v32 = vsel %vm1653_vm5, %v7055_v55, %v7057_v35  ;;  %v7069_v0 = vrot.slane %v20306_v15, 2  ;;  %v23831_v35 = vld [vmem:[#allocation80_spill] sm:$0xff] }
 0x621   :  { %v7048_v61 = vsel %vm1653_vm5, %v7045_v38, %v7047_v57  ;;  %v7059_v38 = vrot.slane %v20252_v13, 2  ;;  %v7062_v57 = vrot.slane %v20245_v53, 2  ;;  %v7065_v13 = vrot.slane %v20281_v33, 2 }
 0x622   :  { %15002 = vmatmul.mubr.msk.f32.gmra.mrb[60].mxu1 %vm5412_vm6, %v20972_v42  ;;  %v21046_v46 = vsel %vm1653_vm5, %v7069_v0, %v7070_v24  ;;  %v7074_v55 = vrot.slane %v20333_v45, 2  ;;  %v7075_v15 = vrot.slane %v20335_v4, 2  ;;  %v7080_v45 = vrot.slane %v20362_v31, 2 }
 0x623   :  { %15004 = vmatprep.mubr.msk.f32.mxu1 %vm5412_vm6, %v20977_v47  ;;  %v21020_v20 = vsel %vm1653_vm5, %v7059_v38, %v7060_v22  ;;  %v21027_v36 = vsel %vm1653_vm5, %v7060_v22, %v7062_v57  ;;  %v21033_v53 = vsel %vm1653_vm5, %v7064_v21, %v7065_v13  ;;  %v7077_v38 = vrot.slane %v23831_v35, 2  ;;  %v23832_v21 = vld [vmem:[#allocation87_spill] sm:$0xff] }
 0x624   :  { %v21059_v22 = vsel %vm1653_vm5, %v7074_v55, %v7075_v15  ;;  %v7079_v57 = vrot.slane %v20360_v3, 2  ;;  %v7085_v0 = vrot.slane %v20399_v5, 2  ;;  %v7090_v35 = vrot.slane %v20426_v27, 2 }
 0x625   :  { %v21066_v4 = vsel %vm1653_vm5, %v7075_v15, %v7077_v38  ;;  %v7089_v15 = vrot.slane %v20424_v10, 2 }
 0x626   :  { %15005 = vmatmul.mubr.msk.f32.gmra.mrb[62].mxu1 %vm5412_vm6, %v20983_v54 }
 0x627   :  { %15007 = vmatprep.mubr.msk.f32.mxu1 %vm5412_vm6, %v7046_v41  ;;  %v23829_v41 = vld [vmem:[#allocation68_spill] sm:$0xff] }
 0x628   :  { %v7067_v44 = vrot.slane %v23829_v41, 2  ;;  %v21072_v41 = vsel %vm1653_vm5, %v7079_v57, %v7080_v45  ;;  %v23837_v57 = vld [vmem:[#allocation123_spill] sm:$0xff] }
 0x62a   :  { %15008 = vmatmul.mubr.msk.f32.gmra.mrb[64].mxu1 %vm5412_vm6, %v7048_v61  ;;  %v21040_v33 = vsel %vm1653_vm5, %v7065_v13, %v7067_v44  ;;  %v23830_v61 = vld [vmem:[#allocation75_spill] sm:$0xff]  ;;  %v7082_v13 = vrot.slane %v23832_v21, 2  ;;  %v7084_v44 = vrot.slane %v20397_v9, 2  ;;  %v21098_v21 = vsel %vm1653_vm5, %v7089_v15, %v7090_v35 }
 0x62b   :  { %15010 = vmatprep.mubr.msk.f32.mxu1 %vm5412_vm6, %v20994_v2  ;;  %v7072_v16 = vrot.slane %v23830_v61, 2  ;;  %v23834_v61 = vld [vmem:[#allocation92_spill] sm:$0xff]  ;;  %23838 = vst [vmem:[#allocation87_spill] sm:$0xff] %v21098_v21  ;;  %v7099_v15 = vrot.slane %v20478_v49, 2 }
 0x62c   :  { %v21085_v55 = vsel %vm1653_vm5, %v7084_v44, %v7085_v0  ;;  %v7095_v44 = vrot.slane %v20453_v63, 2 }
 0x62d   :  { %v21053_v37 = vsel %vm1653_vm5, %v7070_v24, %v7072_v16  ;;  %v21079_v24 = vsel %vm1653_vm5, %v7080_v45, %v7082_v13  ;;  %v7087_v16 = vrot.slane %v23834_v61, 2  ;;  %23835 = vst [vmem:[#allocation75_spill] sm:$0xff] %v21085_v55  ;;  %v7092_v45 = vrot.slane %v23837_v57, 2 }
 0x62e   :  { %15011 = vmatmul.mubr.msk.f32.gmra.mrb[66].mxu1 %vm5412_vm6, %v21001_v23  ;;  %23833 = vst [vmem:[#allocation68_spill] sm:$0xff] %v21079_v24  ;;  %v7094_v13 = vrot.slane %v20451_v48, 2 }
 0x62f   :  { %15013 = vmatprep.mubr.msk.f32.mxu1 %vm5412_vm6, %v21007_v52  ;;  %v21092_v38 = vsel %vm1653_vm5, %v7085_v0, %v7087_v16  ;;  %v21105_v61 = vsel %vm1653_vm5, %v7090_v35, %v7092_v45  ;;  %v23840_v0 = vld [vmem:[#allocation126_spill] sm:$0xff]  ;;  %v23843_v35 = vld [vmem:[#allocation129_spill] sm:$0xff] }
 0x630   :  { %23836 = vst [vmem:[#allocation80_spill] sm:$0xff] %v21092_v38  ;;  %23839 = vst [vmem:[#allocation92_spill] sm:$0xff] %v21105_v61  ;;  %v7097_v16 = vrot.slane %v23840_v0, 2  ;;  %v21111_v57 = vsel %vm1653_vm5, %v7094_v13, %v7095_v44  ;;  %v7102_v45 = vrot.slane %v23843_v35, 2  ;;  %v7104_v13 = vrot.slane %v20505_v19, 2 }
 0x631   :  { %23841 = vst [vmem:[#allocation123_spill] sm:$0xff] %v21111_v57 }
 0x632   :  { %15014 = vmatmul.mubr.msk.f32.gmra.mrb[68].mxu1 %vm5412_vm6, %v21014_v32 }
 0x633   :  { %15016 = vmatprep.mubr.msk.f32.mxu1 %vm5412_vm6, %v21020_v20 }
 0x636   :  { %15017 = vmatmul.mubr.msk.f32.gmra.mrb[70].mxu1 %vm5412_vm6, %v21027_v36 }
 0x637   :  { %15019 = vmatprep.mubr.msk.f32.mxu1 %vm5412_vm6, %v21033_v53 }
 0x63a   :  { %15020 = vmatmul.mubr.msk.f32.gmra.mrb[72].mxu1 %vm5412_vm6, %v21040_v33 }
 0x63b   :  { %15022 = vmatprep.mubr.msk.f32.mxu1 %vm5412_vm6, %v21046_v46 }
 0x63e   :  { %15023 = vmatmul.mubr.msk.f32.gmra.mrb[74].mxu1 %vm5412_vm6, %v21053_v37 }
 0x63f   :  { %15025 = vmatprep.mubr.msk.f32.mxu1 %vm5412_vm6, %v21059_v22 }
 0x642   :  { %15026 = vmatmul.mubr.msk.f32.gmra.mrb[76].mxu1 %vm5412_vm6, %v21066_v4 }
 0x643   :  { %15028 = vmatprep.mubr.msk.f32.mxu1 %vm5412_vm6, %v21072_v41 }
 0x646   :  { %15029 = vmatmul.mubr.msk.f32.gmra.mrb[78].mxu1 %vm5412_vm6, %v21079_v24 }
 0x647   :  { %15031 = vmatprep.mubr.msk.f32.mxu1 %vm5412_vm6, %v21085_v55 }
 0x64a   :  { %15032 = vmatmul.mubr.msk.f32.gmra.mrb[80].mxu1 %vm5412_vm6, %v21092_v38  ;;  %v7100_v38 = vrot.slane %v20480_v50, 2 }
 0x64b   :  { %15034 = vmatprep.mubr.msk.f32.mxu1 %vm5412_vm6, %v21098_v21  ;;  %v21118_v21 = vsel %vm1653_vm5, %v7095_v44, %v7097_v16  ;;  %v23846_v44 = vld [vmem:[#allocation132_spill] sm:$0xff] }
 0x64c   :  { %23842 = vst [vmem:[#allocation126_spill] sm:$0xff] %v21118_v21  ;;  %v21124_v0 = vsel %vm1653_vm5, %v7099_v15, %v7100_v38  ;;  %v7107_v16 = vrot.slane %v23846_v44, 2  ;;  %v7109_v15 = vrot.slane %v20531_v29, 2 }
 0x64d   :  { %23844 = vst [vmem:[#allocation129_spill] sm:$0xff] %v21124_v0 }
 0x64e   :  { %15035 = vmatmul.mubr.msk.f32.gmra.mrb[82].mxu1 %vm5412_vm6, %v21105_v61  ;;  %v7105_v61 = vrot.slane %v20507_v25, 2 }
 0x64f   :  { %15037 = vmatprep.mubr.msk.f32.mxu1 %vm5412_vm6, %v21111_v57  ;;  %v21131_v57 = vsel %vm1653_vm5, %v7100_v38, %v7102_v45  ;;  %v23849_v38 = vld [vmem:[#allocation135_spill] sm:$0xff] }
 0x650   :  { %23845 = vst [vmem:[#allocation180_spill] sm:$0xff] %v21131_v57  ;;  %v21137_v35 = vsel %vm1653_vm5, %v7104_v13, %v7105_v61  ;;  %v7112_v45 = vrot.slane %v23849_v38, 2  ;;  %v7114_v13 = vrot.slane %v20553_v8, 2 }
 0x651   :  { %23847 = vst [vmem:[#allocation132_spill] sm:$0xff] %v21137_v35 }
 0x652   :  { %15038 = vmatmul.mubr.msk.f32.gmra.mrb[84].mxu1 %vm5412_vm6, %v21118_v21  ;;  %v7110_v21 = vrot.slane %v20533_v60, 2 }
 0x653   :  { %15040 = vmatprep.mubr.msk.f32.mxu1 %vm5412_vm6, %v21124_v0  ;;  %v21144_v0 = vsel %vm1653_vm5, %v7105_v61, %v7107_v16  ;;  %v23852_v61 = vld [vmem:[#allocation138_spill] sm:$0xff] }
 0x654   :  { %23848 = vst [vmem:[#allocation181_spill] sm:$0xff] %v21144_v0  ;;  %v21150_v44 = vsel %vm1653_vm5, %v7109_v15, %v7110_v21  ;;  %v7117_v16 = vrot.slane %v23852_v61, 2  ;;  %v7119_v15 = vrot.slane %v20573_v17, 2 }
 0x655   :  { %23850 = vst [vmem:[#allocation135_spill] sm:$0xff] %v21150_v44 }
 0x656   :  { %15041 = vmatmul.mubr.msk.f32.gmra.mrb[86].mxu1 %vm5412_vm6, %v21131_v57  ;;  %v7115_v57 = vrot.slane %v20555_v18, 2 }
 0x657   :  { %15043 = vmatprep.mubr.msk.f32.mxu1 %vm5412_vm6, %v21137_v35  ;;  %v21157_v35 = vsel %vm1653_vm5, %v7110_v21, %v7112_v45  ;;  %v23855_v21 = vld [vmem:[#allocation141_spill] sm:$0xff] }
 0x658   :  { %23851 = vst [vmem:[#allocation182_spill] sm:$0xff] %v21157_v35  ;;  %v21163_v38 = vsel %vm1653_vm5, %v7114_v13, %v7115_v57  ;;  %v7122_v45 = vrot.slane %v23855_v21, 2  ;;  %v21262_v21 = vld [vmem:[#allocation3 + $0x1e0] sm:$0xff] }
 0x659   :  { %23853 = vst [vmem:[#allocation138_spill] sm:$0xff] %v21163_v38 }
 0x65a   :  { %15044 = vmatmul.mubr.msk.f32.gmra.mrb[88].mxu1 %vm5412_vm6, %v21144_v0  ;;  %v7120_v0 = vrot.slane %v20575_v11, 2 }
 0x65b   :  { %15046 = vmatprep.mubr.msk.f32.mxu1 %vm5412_vm6, %v21150_v44  ;;  %v21170_v44 = vsel %vm1653_vm5, %v7115_v57, %v7117_v16  ;;  %v21190_v57 = vld [vmem:[%s22761_s4 + $0x28] sm:$0xff] }
 0x65c   :  { %23854 = vst [vmem:[#allocation183_spill] sm:$0xff] %v21170_v44  ;;  %v21176_v61 = vsel %vm1653_vm5, %v7119_v15, %v7120_v0  ;;  %v21181_v13 = vsel %vm1653_vm5, %v7120_v0, %v7122_v45  ;;  %v21256_v0 = vld [vmem:[#allocation3 + $0x188] sm:$0xff]  ;;  %v16884_v15 = vld [vmem:[#allocation3 + $0x1d0] sm:$0xff] }
 0x65d   :  { %23856 = vst [vmem:[#allocation141_spill] sm:$0xff] %v21181_v13  ;;  %v16883_v16 = vld [vmem:[#allocation3 + $0x1c8] sm:$0xff] }
 0x65e   :  { %15047 = vmatmul.mubr.msk.f32.gmra.mrb[90].mxu1 %vm5412_vm6, %v21157_v35  ;;  %v21266_v45 = vld [vmem:[#allocation3 + $0x1e8] sm:$0xff] }
 0x65f   :  { %15049 = vmatprep.mubr.msk.f32.mxu1 %vm5412_vm6, %v21163_v38 }
 0x662   :  { %15050 = vmatmul.mubr.msk.f32.gmra.mrb[92].mxu1 %vm5412_vm6, %v21170_v44 }
 0x663   :  { %15052 = vmatprep.mubr.msk.f32.mxu1 %vm5412_vm6, %v21176_v61 }
 0x666   :  { %15053 = vmatmul.mubr.msk.f32.gmra.mrb[94].mxu1 %vm5412_vm6, %v21181_v13 }
 0x667   :  { %15057 = vmatprep.mubr.msk.f32.mxu1 %vm5412_vm6, %v20608_v40  ;;  %v23869_v40 = vld [vmem:[#allocation178_spill] sm:$0xff] }
 0x66a   :  { %15058 = vmatmul.mubr.msk.f32.vlgmr.msra.gmra.mrb[32].mxu1 %vm5412_vm6, %v20613_v58  ;;  %v23868_v58 = vld [vmem:[#allocation175_spill] sm:$0xff] }
 0x66b   :  { %15154 = vmatpush3.msra.mxu1 %v20771_v34  ;;  %15060 = vmatprep.mubr.msk.f32.mxu1 %vm5412_vm6, %v20617_v26  ;;  %v23867_v26 = vld [vmem:[#allocation174_spill] sm:$0xff]  ;;  %v21252_v34 = vld [vmem:[#allocation3 + $0x180] sm:$0xff] }
 0x66c   :  { %15251 = vmatprep.subr.mxu1 %v21190_v57 }
 0x66e   :  { %15061 = vmatmul.mubr.msk.f32.gmra.mrb[34].mxu1 %vm5412_vm6, %v20621_v6  ;;  %v23863_v6 = vld [vmem:[#allocation30_spill] sm:$0xff] }
 0x66f   :  { %15063 = vmatprep.mubr.msk.f32.mxu1 %vm5412_vm6, %v20625_v30  ;;  %v23870_v30 = vld [vmem:[#allocation179_spill] sm:$0xff] }
 0x672   :  { %15064 = vmatmul.mubr.msk.f32.gmra.mrb[36].mxu1 %vm5412_vm6, %v20629_v1  ;;  %v23858_v1 = vld [vmem:[#allocation156_spill] sm:$0xff] }
 0x673   :  { %15066 = vmatprep.mubr.msk.f32.mxu1 %vm5412_vm6, %v20633_v62  ;;  %v23857_v62 = vld [vmem:[#allocation105_spill] sm:$0xff] }
 0x674   :  { %23871 = vst [vmem:[#allocation105_spill] sm:$0xff] %v21266_v45 }
 0x676   :  { %15067 = vmatmul.mubr.msk.f32.gmra.mrb[38].mxu1 %vm5412_vm6, %v20637_v7  ;;  %v23866_v7 = vld [vmem:[#allocation171_spill] sm:$0xff] }
 0x677   :  { %15069 = vmatprep.mubr.msk.f32.mxu1 %vm5412_vm6, %v20641_v43  ;;  %v23865_v43 = vld [vmem:[#allocation170_spill] sm:$0xff] }
 0x67a   :  { %15070 = vmatmul.mubr.msk.f32.gmra.mrb[40].mxu1 %vm5412_vm6, %v20645_v12  ;;  %v23864_v12 = vld [vmem:[#allocation42_spill] sm:$0xff] }
 0x67b   :  { %15072 = vmatprep.mubr.msk.f32.mxu1 %vm5412_vm6, %v20649_v51  ;;  %v23859_v51 = vld [vmem:[#allocation111_spill] sm:$0xff] }
 0x67e   :  { %15073 = vmatmul.mubr.msk.f32.gmra.mrb[42].mxu1 %vm5412_vm6, %v20653_v59  ;;  %v23860_v59 = vld [vmem:[#allocation159_spill] sm:$0xff] }
 0x67f   :  { %15075 = vmatprep.mubr.msk.f32.mxu1 %vm5412_vm6, %v20657_v56  ;;  %v23861_v56 = vld [vmem:[#allocation162_spill] sm:$0xff] }
 0x682   :  { %15076 = vmatmul.mubr.msk.f32.gmra.mrb[44].mxu1 %vm5412_vm6, %v20661_v14  ;;  %v23862_v14 = vld [vmem:[#allocation27_spill] sm:$0xff] }
 0x683   :  { %15078 = vmatprep.mubr.msk.f32.mxu1 %vm5412_vm6, %v20851_v28 }
 0x686   :  { %15079 = vmatmul.mubr.msk.f32.gmra.mrb[46].mxu1 %vm5412_vm6, %v20854_v39 }
 0x687   :  { %15081 = vmatprep.mubr.msk.f32.mxu1 %vm5412_vm6, %v23857_v62 }
 0x68a   :  { %15082 = vmatmul.mubr.msk.f32.gmra.mrb[48].mxu1 %vm5412_vm6, %v23858_v1 }
 0x68b   :  { %15084 = vmatprep.mubr.msk.f32.mxu1 %vm5412_vm6, %v23859_v51 }
 0x68e   :  { %15085 = vmatmul.mubr.msk.f32.gmra.mrb[50].mxu1 %vm5412_vm6, %v23860_v59 }
 0x68f   :  { %15087 = vmatprep.mubr.msk.f32.mxu1 %vm5412_vm6, %v23861_v56 }
 0x692   :  { %15088 = vmatmul.mubr.msk.f32.gmra.mrb[52].mxu1 %vm5412_vm6, %v23862_v14 }
 0x693   :  { %15090 = vmatprep.mubr.msk.f32.mxu1 %vm5412_vm6, %v23863_v6 }
 0x696   :  { %15091 = vmatmul.mubr.msk.f32.gmra.mrb[54].mxu1 %vm5412_vm6, %v23864_v12 }
 0x697   :  { %15093 = vmatprep.mubr.msk.f32.mxu1 %vm5412_vm6, %v23865_v43 }
 0x69a   :  { %15094 = vmatmul.mubr.msk.f32.gmra.mrb[56].mxu1 %vm5412_vm6, %v23866_v7 }
 0x69b   :  { %15096 = vmatprep.mubr.msk.f32.mxu1 %vm5412_vm6, %v23867_v26 }
 0x69e   :  { %15097 = vmatmul.mubr.msk.f32.gmra.mrb[58].mxu1 %vm5412_vm6, %v23868_v58 }
 0x69f   :  { %15099 = vmatprep.mubr.msk.f32.mxu1 %vm5412_vm6, %v23869_v40  ;;  %v21274_v40 = vld [vmem:[#allocation3 + $0x200] sm:$0xff] }
 0x6a0   :  { %23873 = vst [vmem:[#allocation111_spill] sm:$0xff] %v21274_v40 }
 0x6a2   :  { %15100 = vmatmul.mubr.msk.f32.gmra.mrb[60].mxu1 %vm5412_vm6, %v23870_v30  ;;  %v21270_v30 = vld [vmem:[#allocation3 + $0x1f8] sm:$0xff] }
 0x6a3   :  { %15102 = vmatprep.mubr.msk.f32.mxu1 %vm5412_vm6, %v21252_v34  ;;  %23872 = vst [vmem:[#allocation156_spill] sm:$0xff] %v21270_v30 }
 0x6a6   :  { %15103 = vmatmul.mubr.msk.f32.gmra.mrb[62].mxu1 %vm5412_vm6, %v21256_v0 }
 0x6a7   :  { %15105 = vmatprep.mubr.msk.f32.mxu1 %vm5412_vm6, %v16883_v16  ;;  %v21278_v16 = vld [vmem:[#allocation3 + $0x210] sm:$0xff] }
 0x6a8   :  { %23874 = vst [vmem:[#allocation159_spill] sm:$0xff] %v21278_v16 }
 0x6aa   :  { %15106 = vmatmul.mubr.msk.f32.gmra.mrb[64].mxu1 %vm5412_vm6, %v16884_v15  ;;  %v21282_v15 = vld [vmem:[#allocation3 + $0x218] sm:$0xff] }
 0x6ab   :  { %15108 = vmatprep.mubr.msk.f32.mxu1 %vm5412_vm6, %v21262_v21 }
 0x6ae   :  { %15109 = vmatmul.mubr.msk.f32.gmra.mrb[66].mxu1 %vm5412_vm6, %v21266_v45  ;;  %v21286_v45 = vld [vmem:[#allocation3 + $0x228] sm:$0xff] }
 0x6af   :  { %15111 = vmatprep.mubr.msk.f32.mxu1 %vm5412_vm6, %v21270_v30  ;;  %v21290_v30 = vld [vmem:[#allocation3 + $0x230] sm:$0xff] }
 0x6b2   :  { %15112 = vmatmul.mubr.msk.f32.gmra.mrb[68].mxu1 %vm5412_vm6, %v21274_v40  ;;  %v21294_v40 = vld [vmem:[#allocation3 + $0x240] sm:$0xff] }
 0x6b3   :  { %15114 = vmatprep.mubr.msk.f32.mxu1 %vm5412_vm6, %v21278_v16  ;;  %v21298_v16 = vld [vmem:[#allocation3 + $0x248] sm:$0xff] }
 0x6b6   :  { %15115 = vmatmul.mubr.msk.f32.gmra.mrb[70].mxu1 %vm5412_vm6, %v21282_v15 }
 0x6b7   :  { %15117 = vmatprep.mubr.msk.f32.mxu1 %vm5412_vm6, %v21286_v45 }
 0x6ba   :  { %15118 = vmatmul.mubr.msk.f32.gmra.mrb[72].mxu1 %vm5412_vm6, %v21290_v30 }
 0x6bb   :  { %15120 = vmatprep.mubr.msk.f32.mxu1 %vm5412_vm6, %v21294_v40 }
 0x6be   :  { %15121 = vmatmul.mubr.msk.f32.gmra.mrb[74].mxu1 %vm5412_vm6, %v21298_v16 }
 0x6bf   :  { %15123 = vmatprep.mubr.msk.f32.mxu1 %vm5412_vm6, %v20360_v3  ;;  %v21338_v3 = vld [vmem:[#allocation3 + $0x330] sm:$0xff] }
 0x6c2   :  { %15124 = vmatmul.mubr.msk.f32.gmra.mrb[76].mxu1 %vm5412_vm6, %v20362_v31  ;;  %v21342_v31 = vld [vmem:[#allocation3 + $0x338] sm:$0xff] }
 0x6c3   :  { %15126 = vmatprep.mubr.msk.f32.mxu1 %vm5412_vm6, %v20397_v9  ;;  %v23875_v9 = vld [vmem:[#allocation93_spill] sm:$0xff] }
 0x6c6   :  { %15127 = vmatmul.mubr.msk.f32.gmra.mrb[78].mxu1 %vm5412_vm6, %v20399_v5  ;;  %v21351_v5 = vld [vmem:[%s22761_s4 + $0x30] sm:$0xff] }
 0x6c7   :  { %15129 = vmatprep.mubr.msk.f32.mxu1 %vm5412_vm6, %v20424_v10  ;;  %v23876_v10 = vld [vmem:[#allocation98_spill] sm:$0xff] }
 0x6ca   :  { %15130 = vmatmul.mubr.msk.f32.gmra.mrb[80].mxu1 %vm5412_vm6, %v20426_v27  ;;  %v23877_v27 = vld [vmem:[#allocation100_spill] sm:$0xff] }
 0x6cb   :  { %15132 = vmatprep.mubr.msk.f32.mxu1 %vm5412_vm6, %v20451_v48  ;;  %v23878_v48 = vld [vmem:[#allocation102_spill] sm:$0xff] }
 0x6ce   :  { %15133 = vmatmul.mubr.msk.f32.gmra.mrb[82].mxu1 %vm5412_vm6, %v20453_v63  ;;  %v23879_v63 = vld [vmem:[#allocation104_spill] sm:$0xff] }
 0x6cf   :  { %15135 = vmatprep.mubr.msk.f32.mxu1 %vm5412_vm6, %v20478_v49  ;;  %v23880_v49 = vld [vmem:[#allocation106_spill] sm:$0xff] }
 0x6d2   :  { %15136 = vmatmul.mubr.msk.f32.gmra.mrb[84].mxu1 %vm5412_vm6, %v20480_v50  ;;  %v23881_v50 = vld [vmem:[#allocation108_spill] sm:$0xff] }
 0x6d3   :  { %15138 = vmatprep.mubr.msk.f32.mxu1 %vm5412_vm6, %v20505_v19  ;;  %v23882_v19 = vld [vmem:[#allocation110_spill] sm:$0xff] }
 0x6d6   :  { %15139 = vmatmul.mubr.msk.f32.gmra.mrb[86].mxu1 %vm5412_vm6, %v20507_v25  ;;  %v23883_v25 = vld [vmem:[#allocation112_spill] sm:$0xff] }
 0x6d7   :  { %15141 = vmatprep.mubr.msk.f32.mxu1 %vm5412_vm6, %v20531_v29  ;;  %v23884_v29 = vld [vmem:[#allocation114_spill] sm:$0xff] }
 0x6da   :  { %15142 = vmatmul.mubr.msk.f32.gmra.mrb[88].mxu1 %vm5412_vm6, %v20533_v60  ;;  %v23885_v60 = vld [vmem:[#allocation118_spill] sm:$0xff] }
 0x6db   :  { %15144 = vmatprep.mubr.msk.f32.mxu1 %vm5412_vm6, %v20553_v8  ;;  %v23886_v8 = vld [vmem:[#allocation119_spill] sm:$0xff] }
 0x6de   :  { %15145 = vmatmul.mubr.msk.f32.gmra.mrb[90].mxu1 %vm5412_vm6, %v20555_v18  ;;  %v23887_v18 = vld [vmem:[#allocation120_spill] sm:$0xff] }
 0x6df   :  { %15147 = vmatprep.mubr.msk.f32.mxu1 %vm5412_vm6, %v20573_v17  ;;  %v23888_v17 = vld [vmem:[#allocation143_spill] sm:$0xff] }
 0x6e2   :  { %15148 = vmatmul.mubr.msk.f32.gmra.mrb[92].mxu1 %vm5412_vm6, %v20575_v11  ;;  %v23889_v11 = vld [vmem:[#allocation150_spill] sm:$0xff] }
 0x6e3   :  { %15150 = vmatprep.mubr.msk.f32.mxu1 %vm5412_vm6, %v21338_v3 }
 0x6e6   :  { %15151 = vmatmul.mubr.msk.f32.gmra.mrb[94].mxu1 %vm5412_vm6, %v21342_v31 }
 0x6e7   :  { %15155 = vmatprep.mubr.msk.f32.mxu1 %vm5412_vm6, %v23875_v9  ;;  %v23891_v9 = vld [vmem:[#allocation157_spill] sm:$0xff] }
 0x6ea   :  { %15156 = vmatmul.mubr.msk.f32.vlgmr.msra.gmra.mrb[32].mxu1 %vm5412_vm6, %v23876_v10  ;;  %v23892_v10 = vld [vmem:[#allocation158_spill] sm:$0xff] }
 0x6eb   :  { %15252 = vmatpush3.msra.mxu1 %v21190_v57  ;;  %15158 = vmatprep.mubr.msk.f32.mxu1 %vm5412_vm6, %v23877_v27  ;;  %v23890_v57 = vld [vmem:[#allocation151_spill] sm:$0xff] }
 0x6ec   :  { %15349 = vmatprep.subr.mxu1 %v21351_v5 }
 0x6ee   :  { %15159 = vmatmul.mubr.msk.f32.gmra.mrb[34].mxu1 %vm5412_vm6, %v23878_v48 }
 0x6ef   :  { %15161 = vmatprep.mubr.msk.f32.mxu1 %vm5412_vm6, %v23879_v63 }
 0x6f2   :  { %15162 = vmatmul.mubr.msk.f32.gmra.mrb[36].mxu1 %vm5412_vm6, %v23880_v49 }
 0x6f3   :  { %15164 = vmatprep.mubr.msk.f32.mxu1 %vm5412_vm6, %v23881_v50 }
 0x6f6   :  { %15165 = vmatmul.mubr.msk.f32.gmra.mrb[38].mxu1 %vm5412_vm6, %v23882_v19 }
 0x6f7   :  { %15167 = vmatprep.mubr.msk.f32.mxu1 %vm5412_vm6, %v23883_v25  ;;  %v23909_v25 = vld [vmem:[#allocation58_spill] sm:$0xff] }
 0x6fa   :  { %15168 = vmatmul.mubr.msk.f32.gmra.mrb[40].mxu1 %vm5412_vm6, %v23884_v29  ;;  %v23903_v29 = vld [vmem:[#allocation46_spill] sm:$0xff] }
 0x6fb   :  { %15170 = vmatprep.mubr.msk.f32.mxu1 %vm5412_vm6, %v23885_v60  ;;  %v23893_v60 = vld [vmem:[#allocation113_spill] sm:$0xff] }
 0x6fe   :  { %15171 = vmatmul.mubr.msk.f32.gmra.mrb[42].mxu1 %vm5412_vm6, %v23886_v8  ;;  %v23894_v8 = vld [vmem:[#allocation160_spill] sm:$0xff] }
 0x6ff   :  { %15173 = vmatprep.mubr.msk.f32.mxu1 %vm5412_vm6, %v23887_v18  ;;  %v23895_v18 = vld [vmem:[#allocation116_spill] sm:$0xff] }
 0x702   :  { %15174 = vmatmul.mubr.msk.f32.gmra.mrb[44].mxu1 %vm5412_vm6, %v23888_v17  ;;  %v23896_v17 = vld [vmem:[#allocation164_spill] sm:$0xff] }
 0x703   :  { %15176 = vmatprep.mubr.msk.f32.mxu1 %vm5412_vm6, %v23889_v11  ;;  %v23897_v11 = vld [vmem:[#allocation165_spill] sm:$0xff] }
 0x706   :  { %15177 = vmatmul.mubr.msk.f32.gmra.mrb[46].mxu1 %vm5412_vm6, %v23890_v57  ;;  %v23898_v57 = vld [vmem:[#allocation166_spill] sm:$0xff] }
 0x707   :  { %15179 = vmatprep.mubr.msk.f32.mxu1 %vm5412_vm6, %v23891_v9  ;;  %v23899_v9 = vld [vmem:[#allocation167_spill] sm:$0xff] }
 0x70a   :  { %15180 = vmatmul.mubr.msk.f32.gmra.mrb[48].mxu1 %vm5412_vm6, %v23892_v10  ;;  %v23900_v10 = vld [vmem:[#allocation168_spill] sm:$0xff] }
 0x70b   :  { %15182 = vmatprep.mubr.msk.f32.mxu1 %vm5412_vm6, %v23893_v60  ;;  %v23901_v60 = vld [vmem:[#allocation32_spill] sm:$0xff] }
 0x70e   :  { %15183 = vmatmul.mubr.msk.f32.gmra.mrb[50].mxu1 %vm5412_vm6, %v23894_v8  ;;  %v8165_v8 = vrot.slane %v21256_v0, 1 }
 0x70f   :  { %15185 = vmatprep.mubr.msk.f32.mxu1 %vm5412_vm6, %v23895_v18  ;;  %v8164_v18 = vrot.slane %v21252_v34, 1 }
 0x712   :  { %15186 = vmatmul.mubr.msk.f32.gmra.mrb[52].mxu1 %vm5412_vm6, %v23896_v17  ;;  %v23902_v17 = vld [vmem:[#allocation35_spill] sm:$0xff] }
 0x713   :  { %15188 = vmatprep.mubr.msk.f32.mxu1 %vm5412_vm6, %v23897_v11  ;;  %v21411_v11 = vld [vmem:[#allocation3 + $0x190] sm:$0x3] }
 0x716   :  { %15189 = vmatmul.mubr.msk.f32.gmra.mrb[54].mxu1 %vm5412_vm6, %v23898_v57  ;;  %v23904_v57 = vld [vmem:[#allocation55_spill] sm:$0xff] }
 0x717   :  { %15191 = vmatprep.mubr.msk.f32.mxu1 %vm5412_vm6, %v23899_v9  ;;  %v8167_v9 = vrot.slane %v21411_v11, 1 }
 0x71a   :  { %15192 = vmatmul.mubr.msk.f32.gmra.mrb[56].mxu1 %vm5412_vm6, %v23900_v10  ;;  %v21419_v10 = vsel %vm459_vm4, %v8164_v18, %v8165_v8  ;;  %v23910_v18 = vld [vmem:[#allocation59_spill] sm:$0xff] }
 0x71b   :  { %15194 = vmatprep.mubr.msk.f32.mxu1 %vm5412_vm6, %v23901_v60  ;;  %23905 = vst [vmem:[#allocation162_spill] sm:$0xff] %v21419_v10  ;;  %v21424_v60 = vsel %vm459_vm4, %v8165_v8, %v8167_v9  ;;  %v23912_v8 = vld [vmem:[#allocation67_spill] sm:$0xff] }
 0x71c   :  { %23906 = vst [vmem:[#allocation27_spill] sm:$0xff] %v21424_v60  ;;  %v23913_v9 = vld [vmem:[#allocation71_spill] sm:$0xff] }
 0x71e   :  { %15195 = vmatmul.mubr.msk.f32.gmra.mrb[58].mxu1 %vm5412_vm6, %v23902_v17  ;;  %v23907_v17 = vld [vmem:[#allocation56_spill] sm:$0xff] }
 0x71f   :  { %15197 = vmatprep.mubr.msk.f32.mxu1 %vm5412_vm6, %v23903_v29  ;;  %v23908_v29 = vld [vmem:[#allocation57_spill] sm:$0xff] }
 0x722   :  { %15198 = vmatmul.mubr.msk.f32.gmra.mrb[60].mxu1 %vm5412_vm6, %v23904_v57  ;;  %v23911_v57 = vld [vmem:[#allocation63_spill] sm:$0xff] }
 0x723   :  { %15200 = vmatprep.mubr.msk.f32.mxu1 %vm5412_vm6, %v21419_v10  ;;  %v23935_v10 = vld [vmem:[#allocation142_spill] sm:$0xff] }
 0x726   :  { %15201 = vmatmul.mubr.msk.f32.gmra.mrb[62].mxu1 %vm5412_vm6, %v21424_v60  ;;  %v23914_v60 = vld [vmem:[#allocation72_spill] sm:$0xff] }
 0x727   :  { %15203 = vmatprep.mubr.msk.f32.mxu1 %vm5412_vm6, %v23907_v17  ;;  %v23915_v17 = vld [vmem:[#allocation76_spill] sm:$0xff] }
 0x72a   :  { %15204 = vmatmul.mubr.msk.f32.gmra.mrb[64].mxu1 %vm5412_vm6, %v23908_v29  ;;  %v23916_v29 = vld [vmem:[#allocation79_spill] sm:$0xff] }
 0x72b   :  { %15206 = vmatprep.mubr.msk.f32.mxu1 %vm5412_vm6, %v23909_v25  ;;  %v23917_v25 = vld [vmem:[#allocation83_spill] sm:$0xff] }
 0x72e   :  { %15207 = vmatmul.mubr.msk.f32.gmra.mrb[66].mxu1 %vm5412_vm6, %v23910_v18  ;;  %v23918_v18 = vld [vmem:[#allocation84_spill] sm:$0xff] }
 0x72f   :  { %15209 = vmatprep.mubr.msk.f32.mxu1 %vm5412_vm6, %v23911_v57  ;;  %v23919_v57 = vld [vmem:[#allocation88_spill] sm:$0xff] }
 0x732   :  { %15210 = vmatmul.mubr.msk.f32.gmra.mrb[68].mxu1 %vm5412_vm6, %v23912_v8  ;;  %v23920_v8 = vld [vmem:[#allocation91_spill] sm:$0xff] }
 0x733   :  { %15212 = vmatprep.mubr.msk.f32.mxu1 %vm5412_vm6, %v23913_v9  ;;  %v23921_v9 = vld [vmem:[#allocation121_spill] sm:$0xff] }
 0x736   :  { %15213 = vmatmul.mubr.msk.f32.gmra.mrb[70].mxu1 %vm5412_vm6, %v23914_v60  ;;  %v23922_v60 = vld [vmem:[#allocation122_spill] sm:$0xff] }
 0x737   :  { %15215 = vmatprep.mubr.msk.f32.mxu1 %vm5412_vm6, %v23915_v17  ;;  %v23923_v17 = vld [vmem:[#allocation124_spill] sm:$0xff] }
 0x73a   :  { %15216 = vmatmul.mubr.msk.f32.gmra.mrb[72].mxu1 %vm5412_vm6, %v23916_v29  ;;  %v23924_v29 = vld [vmem:[#allocation125_spill] sm:$0xff] }
 0x73b   :  { %15218 = vmatprep.mubr.msk.f32.mxu1 %vm5412_vm6, %v23917_v25  ;;  %v23925_v25 = vld [vmem:[#allocation127_spill] sm:$0xff] }
 0x73e   :  { %15219 = vmatmul.mubr.msk.f32.gmra.mrb[74].mxu1 %vm5412_vm6, %v23918_v18  ;;  %v23926_v18 = vld [vmem:[#allocation128_spill] sm:$0xff] }
 0x73f   :  { %15221 = vmatprep.mubr.msk.f32.mxu1 %vm5412_vm6, %v23919_v57  ;;  %v23927_v57 = vld [vmem:[#allocation130_spill] sm:$0xff] }
 0x742   :  { %15222 = vmatmul.mubr.msk.f32.gmra.mrb[76].mxu1 %vm5412_vm6, %v23920_v8  ;;  %v23928_v8 = vld [vmem:[#allocation131_spill] sm:$0xff] }
 0x743   :  { %15224 = vmatprep.mubr.msk.f32.mxu1 %vm5412_vm6, %v23921_v9  ;;  %v23929_v9 = vld [vmem:[#allocation133_spill] sm:$0xff] }
 0x746   :  { %15225 = vmatmul.mubr.msk.f32.gmra.mrb[78].mxu1 %vm5412_vm6, %v23922_v60  ;;  %v23930_v60 = vld [vmem:[#allocation134_spill] sm:$0xff] }
 0x747   :  { %15227 = vmatprep.mubr.msk.f32.mxu1 %vm5412_vm6, %v23923_v17  ;;  %v23931_v17 = vld [vmem:[#allocation136_spill] sm:$0xff] }
 0x74a   :  { %15228 = vmatmul.mubr.msk.f32.gmra.mrb[80].mxu1 %vm5412_vm6, %v23924_v29  ;;  %v23932_v29 = vld [vmem:[#allocation137_spill] sm:$0xff] }
 0x74b   :  { %15230 = vmatprep.mubr.msk.f32.mxu1 %vm5412_vm6, %v23925_v25  ;;  %v23933_v25 = vld [vmem:[#allocation139_spill] sm:$0xff] }
 0x74e   :  { %15231 = vmatmul.mubr.msk.f32.gmra.mrb[82].mxu1 %vm5412_vm6, %v23926_v18  ;;  %v8170_v18 = vrot.slane %v21342_v31, 1 }
 0x74f   :  { %15233 = vmatprep.mubr.msk.f32.mxu1 %vm5412_vm6, %v23927_v57  ;;  %v8169_v57 = vrot.slane %v21338_v3, 1 }
 0x752   :  { %15234 = vmatmul.mubr.msk.f32.gmra.mrb[84].mxu1 %vm5412_vm6, %v23928_v8  ;;  %v23934_v8 = vld [vmem:[#allocation140_spill] sm:$0xff] }
 0x753   :  { %15236 = vmatprep.mubr.msk.f32.mxu1 %vm5412_vm6, %v23929_v9  ;;  %v21486_v9 = vld [vmem:[#allocation3 + $0x340] sm:$0x3] }
 0x756   :  { %15237 = vmatmul.mubr.msk.f32.gmra.mrb[86].mxu1 %vm5412_vm6, %v23930_v60  ;;  %v23936_v60 = vld [vmem:[#allocation144_spill] sm:$0xff] }
 0x757   :  { %15239 = vmatprep.mubr.msk.f32.mxu1 %vm5412_vm6, %v23931_v17  ;;  %v8172_v17 = vrot.slane %v21486_v9, 1 }
 0x75a   :  { %15240 = vmatmul.mubr.msk.f32.gmra.mrb[88].mxu1 %vm5412_vm6, %v23932_v29  ;;  %v21494_v29 = vsel %vm459_vm4, %v8169_v57, %v8170_v18  ;;  %v23941_v57 = vld [vmem:[#allocation149_spill] sm:$0xff] }
 0x75b   :  { %15242 = vmatprep.mubr.msk.f32.mxu1 %vm5412_vm6, %v23933_v25  ;;  %23937 = vst [vmem:[#allocation30_spill] sm:$0xff] %v21494_v29  ;;  %v21499_v25 = vsel %vm459_vm4, %v8170_v18, %v8172_v17  ;;  %v23942_v18 = vld [vmem:[#allocation26_spill] sm:$0xff]  ;;  %v23943_v17 = vld [vmem:[#allocation152_spill] sm:$0xff] }
 0x75c   :  { %23938 = vst [vmem:[#allocation42_spill] sm:$0xff] %v21499_v25 }
 0x75e   :  { %15243 = vmatmul.mubr.msk.f32.gmra.mrb[90].mxu1 %vm5412_vm6, %v23934_v8  ;;  %v23939_v8 = vld [vmem:[#allocation147_spill] sm:$0xff] }
 0x75f   :  { %15245 = vmatprep.mubr.msk.f32.mxu1 %vm5412_vm6, %v23935_v10  ;;  %v21508_v10 = vld [vmem:[%s22761_s4 + $0x38] sm:$0xff] }
 0x762   :  { %15246 = vmatmul.mubr.msk.f32.gmra.mrb[92].mxu1 %vm5412_vm6, %v23936_v60  ;;  %v23940_v60 = vld [vmem:[#allocation148_spill] sm:$0xff] }
 0x763   :  { %15248 = vmatprep.mubr.msk.f32.mxu1 %vm5412_vm6, %v21494_v29  ;;  %v23949_v29 = vld [vmem:[#allocation153_spill] sm:$0xff] }
 0x766   :  { %15249 = vmatmul.mubr.msk.f32.gmra.mrb[94].mxu1 %vm5412_vm6, %v21499_v25  ;;  %v23945_v25 = vld [vmem:[#allocation95_spill] sm:$0xff] }
 0x767   :  { %15253 = vmatprep.mubr.msk.f32.mxu1 %vm5412_vm6, %v23939_v8  ;;  %v23944_v8 = vld [vmem:[#allocation94_spill] sm:$0xff] }
 0x76a   :  { %15254 = vmatmul.mubr.msk.f32.vlgmr.msra.gmra.mrb[32].mxu1 %vm5412_vm6, %v23940_v60  ;;  %v23946_v60 = vld [vmem:[#allocation96_spill] sm:$0xff] }
 0x76b   :  { %15350 = vmatpush3.msra.mxu1 %v21351_v5  ;;  %15256 = vmatprep.mubr.msk.f32.mxu1 %vm5412_vm6, %v23941_v57  ;;  %v23947_v5 = vld [vmem:[#allocation97_spill] sm:$0xff]  ;;  %v23948_v57 = vld [vmem:[#allocation99_spill] sm:$0xff] }
 0x76c   :  { %15447 = vmatprep.subr.mxu1 %v21508_v10 }
 0x76e   :  { %15257 = vmatmul.mubr.msk.f32.gmra.mrb[34].mxu1 %vm5412_vm6, %v23942_v18  ;;  %v23950_v18 = vld [vmem:[#allocation101_spill] sm:$0xff] }
 0x76f   :  { %15259 = vmatprep.mubr.msk.f32.mxu1 %vm5412_vm6, %v23943_v17  ;;  %v23951_v17 = vld [vmem:[#allocation154_spill] sm:$0xff] }
 0x772   :  { %15260 = vmatmul.mubr.msk.f32.gmra.mrb[36].mxu1 %vm5412_vm6, %v23944_v8  ;;  %v23952_v8 = vld [vmem:[#allocation103_spill] sm:$0xff] }
 0x773   :  { %15262 = vmatprep.mubr.msk.f32.mxu1 %vm5412_vm6, %v23945_v25  ;;  %v23953_v25 = vld [vmem:[#allocation155_spill] sm:$0xff] }
 0x776   :  { %15263 = vmatmul.mubr.msk.f32.gmra.mrb[38].mxu1 %vm5412_vm6, %v23946_v60  ;;  %v23954_v60 = vld [vmem:[#allocation107_spill] sm:$0xff] }
 0x777   :  { %15265 = vmatprep.mubr.msk.f32.mxu1 %vm5412_vm6, %v23947_v5  ;;  %v23955_v5 = vld [vmem:[#allocation109_spill] sm:$0xff] }
 0x77a   :  { %15266 = vmatmul.mubr.msk.f32.gmra.mrb[40].mxu1 %vm5412_vm6, %v23948_v57  ;;  %v23956_v57 = vld [vmem:[#allocation115_spill] sm:$0xff] }
 0x77b   :  { %15268 = vmatprep.mubr.msk.f32.mxu1 %vm5412_vm6, %v23949_v29  ;;  %v23957_v29 = vld [vmem:[#allocation161_spill] sm:$0xff] }
 0x77e   :  { %15269 = vmatmul.mubr.msk.f32.gmra.mrb[42].mxu1 %vm5412_vm6, %v23950_v18  ;;  %v23958_v18 = vld [vmem:[#allocation28_spill] sm:$0xff] }
 0x77f   :  { %15271 = vmatprep.mubr.msk.f32.mxu1 %vm5412_vm6, %v23951_v17  ;;  %v23959_v17 = vld [vmem:[#allocation4_spill] sm:$0xff] }
 0x782   :  { %15272 = vmatmul.mubr.msk.f32.gmra.mrb[44].mxu1 %vm5412_vm6, %v23952_v8  ;;  %v23960_v8 = vld [vmem:[#allocation169_spill] sm:$0xff] }
 0x783   :  { %15274 = vmatprep.mubr.msk.f32.mxu1 %vm5412_vm6, %v23953_v25  ;;  %v23961_v25 = vld [vmem:[#allocation29_spill] sm:$0xff] }
 0x786   :  { %15275 = vmatmul.mubr.msk.f32.gmra.mrb[46].mxu1 %vm5412_vm6, %v23954_v60  ;;  %v23962_v60 = vld [vmem:[#allocation172_spill] sm:$0xff] }
 0x787   :  { %15277 = vmatprep.mubr.msk.f32.mxu1 %vm5412_vm6, %v23955_v5  ;;  %v23963_v5 = vld [vmem:[#allocation173_spill] sm:$0xff] }
 0x78a   :  { %15278 = vmatmul.mubr.msk.f32.gmra.mrb[48].mxu1 %vm5412_vm6, %v23956_v57  ;;  %v23964_v57 = vld [vmem:[#allocation176_spill] sm:$0xff] }
 0x78b   :  { %15280 = vmatprep.mubr.msk.f32.mxu1 %vm5412_vm6, %v23957_v29  ;;  %v23965_v29 = vld [vmem:[#allocation177_spill] sm:$0xff] }
 0x78e   :  { %15281 = vmatmul.mubr.msk.f32.gmra.mrb[50].mxu1 %vm5412_vm6, %v23958_v18  ;;  %v8632_v18 = vrot.slane %v21256_v0, 2 }
 0x78f   :  { %15283 = vmatprep.mubr.msk.f32.mxu1 %vm5412_vm6, %v23959_v17  ;;  %v8631_v17 = vrot.slane %v21252_v34, 2 }
 0x792   :  { %15284 = vmatmul.mubr.msk.f32.gmra.mrb[52].mxu1 %vm5412_vm6, %v23960_v8 }
 0x793   :  { %15286 = vmatprep.mubr.msk.f32.mxu1 %vm5412_vm6, %v23961_v25 }
 0x796   :  { %15287 = vmatmul.mubr.msk.f32.gmra.mrb[54].mxu1 %vm5412_vm6, %v23962_v60  ;;  %v8634_v60 = vrot.slane %v21411_v11, 2  ;;  %v23968_v11 = vld [vmem:[#allocation92_spill] sm:$0xff] }
 0x797   :  { %15289 = vmatprep.mubr.msk.f32.mxu1 %vm5412_vm6, %v23963_v5 }
 0x79a   :  { %15290 = vmatmul.mubr.msk.f32.gmra.mrb[56].mxu1 %vm5412_vm6, %v23964_v57  ;;  %v21574_v57 = vsel %vm1653_vm5, %v8631_v17, %v8632_v18  ;;  %v23970_v17 = vld [vmem:[#allocation126_spill] sm:$0xff] }
 0x79b   :  { %15292 = vmatprep.mubr.msk.f32.mxu1 %vm5412_vm6, %v23965_v29  ;;  %v21579_v29 = vsel %vm1653_vm5, %v8632_v18, %v8634_v60  ;;  %v23969_v18 = vld [vmem:[#allocation123_spill] sm:$0xff]  ;;  %v23971_v60 = vld [vmem:[#allocation129_spill] sm:$0xff] }
 0x79e   :  { %15293 = vmatmul.mubr.msk.f32.gmra.mrb[58].mxu1 %vm5412_vm6, %v20972_v42 }
 0x79f   :  { %15295 = vmatprep.mubr.msk.f32.mxu1 %vm5412_vm6, %v20977_v47 }
 0x7a2   :  { %15296 = vmatmul.mubr.msk.f32.gmra.mrb[60].mxu1 %vm5412_vm6, %v20983_v54 }
 0x7a3   :  { %15298 = vmatprep.mubr.msk.f32.mxu1 %vm5412_vm6, %v21574_v57 }
 0x7a6   :  { %15299 = vmatmul.mubr.msk.f32.gmra.mrb[62].mxu1 %vm5412_vm6, %v21579_v29 }
 0x7a7   :  { %15301 = vmatprep.mubr.msk.f32.mxu1 %vm5412_vm6, %v20994_v2  ;;  %v23966_v2 = vld [vmem:[#allocation80_spill] sm:$0xff] }
 0x7aa   :  { %15302 = vmatmul.mubr.msk.f32.gmra.mrb[64].mxu1 %vm5412_vm6, %v21001_v23  ;;  %v23967_v23 = vld [vmem:[#allocation87_spill] sm:$0xff] }
 0x7ab   :  { %15304 = vmatprep.mubr.msk.f32.mxu1 %vm5412_vm6, %v21007_v52 }
 0x7ae   :  { %15305 = vmatmul.mubr.msk.f32.gmra.mrb[66].mxu1 %vm5412_vm6, %v21014_v32 }
 0x7af   :  { %15307 = vmatprep.mubr.msk.f32.mxu1 %vm5412_vm6, %v21020_v20 }
 0x7b2   :  { %15308 = vmatmul.mubr.msk.f32.gmra.mrb[68].mxu1 %vm5412_vm6, %v21027_v36 }
 0x7b3   :  { %15310 = vmatprep.mubr.msk.f32.mxu1 %vm5412_vm6, %v21033_v53 }
 0x7b6   :  { %15311 = vmatmul.mubr.msk.f32.gmra.mrb[70].mxu1 %vm5412_vm6, %v21040_v33 }
 0x7b7   :  { %15313 = vmatprep.mubr.msk.f32.mxu1 %vm5412_vm6, %v21046_v46 }
 0x7ba   :  { %15314 = vmatmul.mubr.msk.f32.gmra.mrb[72].mxu1 %vm5412_vm6, %v21053_v37 }
 0x7bb   :  { %15316 = vmatprep.mubr.msk.f32.mxu1 %vm5412_vm6, %v21059_v22 }
 0x7be   :  { %15317 = vmatmul.mubr.msk.f32.gmra.mrb[74].mxu1 %vm5412_vm6, %v21066_v4 }
 0x7bf   :  { %15319 = vmatprep.mubr.msk.f32.mxu1 %vm5412_vm6, %v21072_v41 }
 0x7c2   :  { %15320 = vmatmul.mubr.msk.f32.gmra.mrb[76].mxu1 %vm5412_vm6, %v21079_v24  ;;  %v23972_v24 = vld [vmem:[#allocation180_spill] sm:$0xff] }
 0x7c3   :  { %15322 = vmatprep.mubr.msk.f32.mxu1 %vm5412_vm6, %v21085_v55  ;;  %v23973_v55 = vld [vmem:[#allocation132_spill] sm:$0xff] }
 0x7c6   :  { %15323 = vmatmul.mubr.msk.f32.gmra.mrb[78].mxu1 %vm5412_vm6, %v23966_v2  ;;  %v23974_v2 = vld [vmem:[#allocation181_spill] sm:$0xff] }
 0x7c7   :  { %15325 = vmatprep.mubr.msk.f32.mxu1 %vm5412_vm6, %v23967_v23  ;;  %v23975_v23 = vld [vmem:[#allocation135_spill] sm:$0xff] }
 0x7ca   :  { %15326 = vmatmul.mubr.msk.f32.gmra.mrb[80].mxu1 %vm5412_vm6, %v23968_v11 }
 0x7cb   :  { %15328 = vmatprep.mubr.msk.f32.mxu1 %vm5412_vm6, %v23969_v18 }
 0x7ce   :  { %15329 = vmatmul.mubr.msk.f32.gmra.mrb[82].mxu1 %vm5412_vm6, %v23970_v17  ;;  %v8637_v17 = vrot.slane %v21342_v31, 2 }
 0x7cf   :  { %15331 = vmatprep.mubr.msk.f32.mxu1 %vm5412_vm6, %v23971_v60  ;;  %v8636_v60 = vrot.slane %v21338_v3, 2 }
 0x7d2   :  { %15332 = vmatmul.mubr.msk.f32.gmra.mrb[84].mxu1 %vm5412_vm6, %v23972_v24 }
 0x7d3   :  { %15334 = vmatprep.mubr.msk.f32.mxu1 %vm5412_vm6, %v23973_v55 }
 0x7d6   :  { %15335 = vmatmul.mubr.msk.f32.gmra.mrb[86].mxu1 %vm5412_vm6, %v23974_v2  ;;  %v8639_v2 = vrot.slane %v21486_v9, 2  ;;  %v21660_v9 = vld [vmem:[%s22761_s4 + $0x40] sm:$0xff] }
 0x7d7   :  { %15337 = vmatprep.mubr.msk.f32.mxu1 %vm5412_vm6, %v23975_v23 }
 0x7da   :  { %15338 = vmatmul.mubr.msk.f32.gmra.mrb[88].mxu1 %vm5412_vm6, %v21157_v35  ;;  %v21647_v35 = vsel %vm1653_vm5, %v8636_v60, %v8637_v17  ;;  %v16897_v60 = vld [vmem:[#allocation3 + $0x48] sm:$0xff] }
 0x7db   :  { %15340 = vmatprep.mubr.msk.f32.mxu1 %vm5412_vm6, %v21163_v38  ;;  %23976 = vst [vmem:[#allocation170_spill] sm:$0xff] %v21647_v35  ;;  %v21652_v38 = vsel %vm1653_vm5, %v8637_v17, %v8639_v2  ;;  %v16898_v2 = vld [vmem:[#allocation3 + $0x50] sm:$0xff]  ;;  %v16899_v17 = vld [vmem:[#allocation3 + $0x60] sm:$0xff] }
 0x7dc   :  { %23977 = vst [vmem:[#allocation171_spill] sm:$0xff] %v21652_v38 }
 0x7de   :  { %15341 = vmatmul.mubr.msk.f32.gmra.mrb[90].mxu1 %vm5412_vm6, %v21170_v44  ;;  %v16895_v44 = vld [vmem:[#allocation3 + $0x30] sm:$0xff] }
 0x7df   :  { %15343 = vmatprep.mubr.msk.f32.mxu1 %vm5412_vm6, %v21176_v61 }
 0x7e2   :  { %15344 = vmatmul.mubr.msk.f32.gmra.mrb[92].mxu1 %vm5412_vm6, %v21181_v13  ;;  %v16896_v13 = vld [vmem:[#allocation3 + $0x38] sm:$0xff] }
 0x7e3   :  { %15346 = vmatprep.mubr.msk.f32.mxu1 %vm5412_vm6, %v21647_v35  ;;  %v23980_v35 = vld [vmem:[#allocation7_spill] sm:$0xff] }
 0x7e6   :  { %15347 = vmatmul.mubr.msk.f32.gmra.mrb[94].mxu1 %vm5412_vm6, %v21652_v38  ;;  %v16903_v38 = vld [vmem:[#allocation3 + $0x90] sm:$0xff] }
 0x7e7   :  { %15351 = vmatprep.mubr.msk.f32.mxu1 %vm5412_vm6, %v16895_v44  ;;  %v10701_v44 = vld [vmem:[%s22764_s7] sm:$0xf] }
 0x7e8   :  { %15643 = vmatprep.subr.msk.mxu0 %vm748_vm0, %v10701_v44 }
 0x7e9   :  { %15644 = vmatpush3.msk.msra.mxu0 %vm748_vm0, %v10701_v44  ;;  %v16904_v44 = vld [vmem:[#allocation3 + $0x98] sm:$0xff] }
 0x7ea   :  { %15352 = vmatmul.mubr.msk.f32.vlgmr.msra.gmra.mrb[32].mxu1 %vm5412_vm6, %v16896_v13  ;;  %v16900_v13 = vld [vmem:[#allocation3 + $0x68] sm:$0xff] }
 0x7eb   :  { %15448 = vmatpush3.msra.mxu1 %v21508_v10  ;;  %15354 = vmatprep.mubr.msk.f32.mxu1 %vm5412_vm6, %v16897_v60  ;;  %v16901_v10 = vld [vmem:[#allocation3 + $0x78] sm:$0xff]  ;;  %v23978_v60 = vld [vmem:[#allocation5_spill] sm:$0xff] }
 0x7ec   :  { %15545 = vmatprep.subr.mxu1 %v21660_v9  ;;  %15646 = vmatmul.mubr.msk.f32.vlgmr.msra.gmra.mrb[64].mxu0 %vm93_vm1, %v23978_v60  ;;  %v23982_v60 = vld [vmem:[#allocation9_spill] sm:$0xff] }
 0x7ee   :  { %15355 = vmatmul.mubr.msk.f32.gmra.mrb[34].mxu1 %vm5412_vm6, %v16898_v2  ;;  %v23979_v2 = vld [vmem:[#allocation6_spill] sm:$0xff] }
 0x7ef   :  { %15357 = vmatprep.mubr.msk.f32.mxu1 %vm5412_vm6, %v16899_v17  ;;  %15648 = vmatprep.mubr.msk.f32.mxu0 %vm93_vm1, %v23979_v2  ;;  %v16902_v17 = vld [vmem:[#allocation3 + $0x80] sm:$0xff]  ;;  %v23983_v2 = vld [vmem:[#allocation10_spill] sm:$0xff] }
 0x7f0   :  { %15649 = vmatmul.mubr.msk.f32.gmra.mrb[66].mxu0 %vm93_vm1, %v23980_v35  ;;  %v23984_v35 = vld [vmem:[#allocation11_spill] sm:$0xff] }
 0x7f2   :  { %15358 = vmatmul.mubr.msk.f32.gmra.mrb[36].mxu1 %vm5412_vm6, %v16900_v13  ;;  %v23981_v13 = vld [vmem:[#allocation8_spill] sm:$0xff] }
 0x7f3   :  { %15360 = vmatprep.mubr.msk.f32.mxu1 %vm5412_vm6, %v16901_v10  ;;  %15651 = vmatprep.mubr.msk.f32.mxu0 %vm93_vm1, %v23981_v13  ;;  %v16905_v10 = vld [vmem:[#allocation3 + $0xa8] sm:$0xff] }
 0x7f4   :  { %15652 = vmatmul.mubr.msk.f32.gmra.mrb[68].mxu0 %vm93_vm1, %v23982_v60  ;;  %v23986_v13 = vld [vmem:[#allocation13_spill] sm:$0xff]  ;;  %v24000_v60 = vld [vmem:[#allocation31_spill] sm:$0xff] }
 0x7f5   :  { %15654 = vmatprep.mubr.msk.f32.mxu0 %vm93_vm1, %v23983_v2  ;;  %v21760_v2 = vld [vmem:[#allocation3 + $0x198] sm:$0xff] }
 0x7f6   :  { %15361 = vmatmul.mubr.msk.f32.gmra.mrb[38].mxu1 %vm5412_vm6, %v16902_v17  ;;  %v16906_v17 = vld [vmem:[#allocation3 + $0xb0] sm:$0xff] }
 0x7f7   :  { %15363 = vmatprep.mubr.msk.f32.mxu1 %vm5412_vm6, %v16903_v38  ;;  %v23985_v38 = vld [vmem:[#allocation12_spill] sm:$0xff] }
 0x7f8   :  { %15655 = vmatmul.mubr.msk.f32.gmra.mrb[70].mxu0 %vm93_vm1, %v23984_v35  ;;  %v24004_v35 = vld [vmem:[#allocation36_spill] sm:$0xff] }
 0x7f9   :  { %15657 = vmatprep.mubr.msk.f32.mxu0 %vm93_vm1, %v23985_v38  ;;  %v24006_v38 = vld [vmem:[#allocation38_spill] sm:$0xff] }
 0x7fa   :  { %15364 = vmatmul.mubr.msk.f32.gmra.mrb[40].mxu1 %vm5412_vm6, %v16904_v44  ;;  %v23987_v44 = vld [vmem:[#allocation14_spill] sm:$0xff] }
 0x7fb   :  { %15366 = vmatprep.mubr.msk.f32.mxu1 %vm5412_vm6, %v16905_v10  ;;  %v23989_v10 = vld [vmem:[#allocation16_spill] sm:$0xff] }
 0x7fc   :  { %15658 = vmatmul.mubr.msk.f32.gmra.mrb[72].mxu0 %vm93_vm1, %v23986_v13  ;;  %v24008_v13 = vld [vmem:[#allocation105_spill] sm:$0xff] }
 0x7fd   :  { %15660 = vmatprep.mubr.msk.f32.mxu0 %vm93_vm1, %v23987_v44  ;;  %v24009_v44 = vld [vmem:[#allocation156_spill] sm:$0xff] }
 0x7fe   :  { %15367 = vmatmul.mubr.msk.f32.gmra.mrb[42].mxu1 %vm5412_vm6, %v16906_v17  ;;  %v21768_v17 = vld [vmem:[#allocation3 + $0x1a0] sm:$0xff] }
 0x7ff   :  { %15369 = vmatprep.mubr.msk.f32.mxu1 %vm5412_vm6, %v20851_v28  ;;  %v23988_v28 = vld [vmem:[#allocation15_spill] sm:$0xff] }
 0x800   :  { %15661 = vmatmul.mubr.msk.f32.gmra.mrb[74].mxu0 %vm93_vm1, %v23988_v28  ;;  %v24010_v28 = vld [vmem:[#allocation40_spill] sm:$0xff] }
 0x801   :  { %15663 = vmatprep.mubr.msk.f32.mxu0 %vm93_vm1, %v23989_v10  ;;  %v24011_v10 = vld [vmem:[#allocation145_spill] sm:$0xff] }
 0x802   :  { %15370 = vmatmul.mubr.msk.f32.gmra.mrb[44].mxu1 %vm5412_vm6, %v20854_v39  ;;  %v23990_v39 = vld [vmem:[#allocation17_spill] sm:$0xff] }
 0x803   :  { %15372 = vmatprep.mubr.msk.f32.mxu1 %vm5412_vm6, %v23857_v62  ;;  %v23991_v62 = vld [vmem:[#allocation18_spill] sm:$0xff] }
 0x804   :  { %15664 = vmatmul.mubr.msk.f32.gmra.mrb[76].mxu0 %vm93_vm1, %v23990_v39  ;;  %v24012_v39 = vld [vmem:[#allocation111_spill] sm:$0xff] }
 0x805   :  { %15666 = vmatprep.mubr.msk.f32.mxu0 %vm93_vm1, %v23991_v62  ;;  %v24014_v62 = vld [vmem:[#allocation146_spill] sm:$0xff] }
 0x806   :  { %15373 = vmatmul.mubr.msk.f32.gmra.mrb[46].mxu1 %vm5412_vm6, %v23858_v1  ;;  %v23992_v1 = vld [vmem:[#allocation19_spill] sm:$0xff] }
 0x807   :  { %15375 = vmatprep.mubr.msk.f32.mxu1 %vm5412_vm6, %v23859_v51  ;;  %v23993_v51 = vld [vmem:[#allocation20_spill] sm:$0xff] }
 0x808   :  { %15667 = vmatmul.mubr.msk.f32.gmra.mrb[78].mxu0 %vm93_vm1, %v23992_v1  ;;  %v24015_v1 = vld [vmem:[#allocation41_spill] sm:$0xff] }
 0x809   :  { %15669 = vmatprep.mubr.msk.f32.mxu0 %vm93_vm1, %v23993_v51  ;;  %v24016_v51 = vld [vmem:[#allocation43_spill] sm:$0xff] }
 0x80a   :  { %15376 = vmatmul.mubr.msk.f32.gmra.mrb[48].mxu1 %vm5412_vm6, %v23860_v59  ;;  %v23994_v59 = vld [vmem:[#allocation21_spill] sm:$0xff] }
 0x80b   :  { %15378 = vmatprep.mubr.msk.f32.mxu1 %vm5412_vm6, %v23861_v56  ;;  %v23995_v56 = vld [vmem:[#allocation22_spill] sm:$0xff] }
 0x80c   :  { %15670 = vmatmul.mubr.msk.f32.gmra.mrb[80].mxu0 %vm93_vm1, %v23994_v59  ;;  %v24017_v59 = vld [vmem:[#allocation44_spill] sm:$0xff] }
 0x80d   :  { %15672 = vmatprep.mubr.msk.f32.mxu0 %vm93_vm1, %v23995_v56  ;;  %v24018_v56 = vld [vmem:[#allocation45_spill] sm:$0xff] }
 0x80e   :  { %15379 = vmatmul.mubr.msk.f32.gmra.mrb[50].mxu1 %vm5412_vm6, %v23862_v14  ;;  %v23996_v14 = vld [vmem:[#allocation23_spill] sm:$0xff] }
 0x80f   :  { %15381 = vmatprep.mubr.msk.f32.mxu1 %vm5412_vm6, %v23863_v6  ;;  %v23997_v6 = vld [vmem:[#allocation24_spill] sm:$0xff] }
 0x810   :  { %15673 = vmatmul.mubr.msk.f32.gmra.mrb[82].mxu0 %vm93_vm1, %v23996_v14  ;;  %v24019_v14 = vld [vmem:[#allocation47_spill] sm:$0xff] }
 0x811   :  { %15675 = vmatprep.mubr.msk.f32.mxu0 %vm93_vm1, %v23997_v6  ;;  %v24021_v6 = vld [vmem:[#allocation49_spill] sm:$0xff] }
 0x812   :  { %15382 = vmatmul.mubr.msk.f32.gmra.mrb[52].mxu1 %vm5412_vm6, %v23864_v12  ;;  %v23998_v12 = vld [vmem:[#allocation178_spill] sm:$0xff] }
 0x813   :  { %15384 = vmatprep.mubr.msk.f32.mxu1 %vm5412_vm6, %v23865_v43  ;;  %v23999_v43 = vld [vmem:[#allocation25_spill] sm:$0xff] }
 0x814   :  { %15676 = vmatmul.mubr.msk.f32.gmra.mrb[84].mxu0 %vm93_vm1, %v23999_v43  ;;  %v24023_v43 = vld [vmem:[#allocation51_spill] sm:$0xff] }
 0x815   :  { %15678 = vmatprep.mubr.msk.f32.mxu0 %vm93_vm1, %v24000_v60  ;;  %v16911_v60 = vld [vmem:[#allocation3 + $0x288] sm:$0xff] }
 0x816   :  { %15385 = vmatmul.mubr.msk.f32.gmra.mrb[54].mxu1 %vm5412_vm6, %v23866_v7  ;;  %v24001_v7 = vld [vmem:[#allocation179_spill] sm:$0xff] }
 0x817   :  { %15387 = vmatprep.mubr.msk.f32.mxu1 %vm5412_vm6, %v23867_v26  ;;  %v24002_v26 = vld [vmem:[#allocation33_spill] sm:$0xff] }
 0x818   :  { %15679 = vmatmul.mubr.msk.f32.gmra.mrb[86].mxu0 %vm93_vm1, %v24002_v26  ;;  %v24025_v26 = vld [vmem:[#allocation53_spill] sm:$0xff] }
 0x81a   :  { %15388 = vmatmul.mubr.msk.f32.gmra.mrb[56].mxu1 %vm5412_vm6, %v23868_v58  ;;  %v24003_v58 = vld [vmem:[#allocation34_spill] sm:$0xff] }
 0x81b   :  { %15390 = vmatprep.mubr.msk.f32.mxu1 %vm5412_vm6, %v23998_v12  ;;  %15681 = vmatprep.mubr.msk.f32.mxu0 %vm93_vm1, %v24003_v58  ;;  %v24022_v12 = vld [vmem:[#allocation50_spill] sm:$0xff] }
 0x81c   :  { %15682 = vmatmul.mubr.msk.f32.gmra.mrb[88].mxu0 %vm93_vm1, %v24004_v35  ;;  %v16912_v58 = vld [vmem:[#allocation3 + $0x290] sm:$0xff]  ;;  %v16913_v35 = vld [vmem:[#allocation3 + $0x2a0] sm:$0xff] }
 0x81e   :  { %15391 = vmatmul.mubr.msk.f32.gmra.mrb[58].mxu1 %vm5412_vm6, %v24001_v7  ;;  %v24024_v7 = vld [vmem:[#allocation52_spill] sm:$0xff] }
 0x81f   :  { %15393 = vmatprep.mubr.msk.f32.mxu1 %vm5412_vm6, %v21252_v34  ;;  %v24005_v34 = vld [vmem:[#allocation37_spill] sm:$0xff] }
 0x820   :  { %15684 = vmatprep.mubr.msk.f32.mxu0 %vm93_vm1, %v24005_v34  ;;  %v24026_v34 = vld [vmem:[#allocation54_spill] sm:$0xff] }
 0x821   :  { %15685 = vmatmul.mubr.msk.f32.gmra.mrb[90].mxu0 %vm93_vm1, %v24006_v38  ;;  %v24027_v38 = vld [vmem:[#allocation60_spill] sm:$0xff] }
 0x822   :  { %15394 = vmatmul.mubr.msk.f32.gmra.mrb[60].mxu1 %vm5412_vm6, %v21256_v0  ;;  %v24007_v0 = vld [vmem:[#allocation39_spill] sm:$0xff] }
 0x823   :  { %15396 = vmatprep.mubr.msk.f32.mxu1 %vm5412_vm6, %v21760_v2  ;;  %15687 = vmatprep.mubr.msk.f32.mxu0 %vm93_vm1, %v24007_v0  ;;  %v16914_v0 = vld [vmem:[#allocation3 + $0x2a8] sm:$0xff] }
 0x825   :  { %15688 = vmatmul.mubr.msk.f32.gmra.mrb[92].mxu0 %vm93_vm1, %v24010_v28  ;;  %v24029_v28 = vld [vmem:[#allocation62_spill] sm:$0xff] }
 0x826   :  { %15397 = vmatmul.mubr.msk.f32.gmra.mrb[62].mxu1 %vm5412_vm6, %v21768_v17  ;;  %15690 = vmatprep.mubr.msk.f32.mxu0 %vm93_vm1, %v24011_v10  ;;  %v16916_v10 = vld [vmem:[#allocation3 + $0x2c0] sm:$0xff] }
 0x827   :  { %15399 = vmatprep.mubr.msk.f32.mxu1 %vm5412_vm6, %v21262_v21  ;;  %v24013_v21 = vld [vmem:[#allocation159_spill] sm:$0xff] }
 0x829   :  { %15691 = vmatmul.mubr.msk.f32.gmra.mrb[94].mxu0 %vm93_vm1, %v24014_v62  ;;  %v24031_v62 = vld [vmem:[#allocation65_spill] sm:$0xff] }
 0x82a   :  { %15400 = vmatmul.mubr.msk.f32.gmra.mrb[64].mxu1 %vm5412_vm6, %v24008_v13  ;;  %15693 = vmatprep.mubr.msk.f32.mxu0 %vm93_vm1, %v24015_v1  ;;  %v16915_v13 = vld [vmem:[#allocation3 + $0x2b8] sm:$0xff] }
 0x82b   :  { %15402 = vmatprep.mubr.msk.f32.mxu1 %vm5412_vm6, %v24009_v44  ;;  %v24028_v44 = vld [vmem:[#allocation61_spill] sm:$0xff]  ;;  %v16918_v1 = vld [vmem:[#allocation3 + $0x2d8] sm:$0xff] }
 0x82d   :  { %15694 = vmatmul.mubr.msk.f32.gmra.mrb[96].mxu0 %vm93_vm1, %v24016_v51  ;;  %v16919_v51 = vld [vmem:[#allocation3 + $0x2e8] sm:$0xff] }
 0x82e   :  { %15403 = vmatmul.mubr.msk.f32.gmra.mrb[66].mxu1 %vm5412_vm6, %v24012_v39  ;;  %15696 = vmatprep.mubr.msk.f32.mxu0 %vm93_vm1, %v24017_v59  ;;  %v16917_v39 = vld [vmem:[#allocation3 + $0x2d0] sm:$0xff] }
 0x82f   :  { %15405 = vmatprep.mubr.msk.f32.mxu1 %vm5412_vm6, %v24013_v21  ;;  %v24030_v21 = vld [vmem:[#allocation64_spill] sm:$0xff]  ;;  %v24032_v59 = vld [vmem:[#allocation66_spill] sm:$0xff] }
 0x831   :  { %15697 = vmatmul.mubr.msk.f32.gmra.mrb[98].mxu0 %vm93_vm1, %v24018_v56  ;;  %v24033_v56 = vld [vmem:[#allocation69_spill] sm:$0xff] }
 0x832   :  { %15406 = vmatmul.mubr.msk.f32.gmra.mrb[68].mxu1 %vm5412_vm6, %v21282_v15  ;;  %15699 = vmatprep.mubr.msk.f32.mxu0 %vm93_vm1, %v24019_v14  ;;  %v24020_v15 = vld [vmem:[#allocation48_spill] sm:$0xff]  ;;  %v16920_v14 = vld [vmem:[#allocation3 + $0x2f0] sm:$0xff] }
 0x833   :  { %15408 = vmatprep.mubr.msk.f32.mxu1 %vm5412_vm6, %v21286_v45  ;;  %v16907_v45 = vld [vmem:[#allocation3 + $0x258] sm:$0xff] }
 0x835   :  { %15700 = vmatmul.mubr.msk.f32.gmra.mrb[100].mxu0 %vm93_vm1, %v24020_v15  ;;  %v24034_v15 = vld [vmem:[#allocation70_spill] sm:$0xff] }
 0x836   :  { %15409 = vmatmul.mubr.msk.f32.gmra.mrb[70].mxu1 %vm5412_vm6, %v21290_v30  ;;  %15702 = vmatprep.mubr.msk.f32.mxu0 %vm93_vm1, %v24021_v6  ;;  %v16908_v30 = vld [vmem:[#allocation3 + $0x260] sm:$0xff]  ;;  %v24035_v6 = vld [vmem:[#allocation73_spill] sm:$0xff] }
 0x837   :  { %15411 = vmatprep.mubr.msk.f32.mxu1 %vm5412_vm6, %v21294_v40  ;;  %v16909_v40 = vld [vmem:[#allocation3 + $0x270] sm:$0xff] }
 0x839   :  { %15703 = vmatmul.mubr.msk.f32.gmra.mrb[102].mxu0 %vm93_vm1, %v24022_v12  ;;  %v24036_v12 = vld [vmem:[#allocation74_spill] sm:$0xff] }
 0x83a   :  { %15412 = vmatmul.mubr.msk.f32.gmra.mrb[72].mxu1 %vm5412_vm6, %v21298_v16  ;;  %15705 = vmatprep.mubr.msk.f32.mxu0 %vm93_vm1, %v24023_v43  ;;  %v16910_v16 = vld [vmem:[#allocation3 + $0x278] sm:$0xff]  ;;  %v24037_v43 = vld [vmem:[#allocation77_spill] sm:$0xff] }
 0x83b   :  { %15414 = vmatprep.mubr.msk.f32.mxu1 %vm5412_vm6, %v16907_v45  ;;  %v16921_v45 = vld [vmem:[#allocation3 + $0x300] sm:$0xff] }
 0x83d   :  { %15706 = vmatmul.mubr.msk.f32.gmra.mrb[104].mxu0 %vm93_vm1, %v24024_v7  ;;  %v21874_v7 = vld [vmem:[#allocation3 + $0x348] sm:$0xff] }
 0x83e   :  { %15415 = vmatmul.mubr.msk.f32.gmra.mrb[74].mxu1 %vm5412_vm6, %v16908_v30  ;;  %15708 = vmatprep.mubr.msk.f32.mxu0 %vm93_vm1, %v24025_v26  ;;  %v16922_v30 = vld [vmem:[#allocation3 + $0x308] sm:$0xff] }
 0x83f   :  { %15417 = vmatprep.mubr.msk.f32.mxu1 %vm5412_vm6, %v16909_v40  ;;  %v16923_v40 = vld [vmem:[#allocation3 + $0x318] sm:$0xff]  ;;  %v24039_v26 = vld [vmem:[#allocation81_spill] sm:$0xff] }
 0x841   :  { %15709 = vmatmul.mubr.msk.f32.gmra.mrb[106].mxu0 %vm93_vm1, %v24026_v34  ;;  %v24042_v34 = vld [vmem:[#allocation86_spill] sm:$0xff] }
 0x842   :  { %15418 = vmatmul.mubr.msk.f32.gmra.mrb[76].mxu1 %vm5412_vm6, %v16910_v16  ;;  %15711 = vmatprep.mubr.msk.f32.mxu0 %vm93_vm1, %v24027_v38  ;;  %v16924_v16 = vld [vmem:[#allocation3 + $0x320] sm:$0xff]  ;;  %v24044_v38 = vld [vmem:[#allocation90_spill] sm:$0xff] }
 0x843   :  { %15420 = vmatprep.mubr.msk.f32.mxu1 %vm5412_vm6, %v16911_v60  ;;  %v24038_v60 = vld [vmem:[#allocation78_spill] sm:$0xff] }
 0x845   :  { %15712 = vmatmul.mubr.msk.f32.gmra.mrb[108].mxu0 %vm93_vm1, %v24028_v44  ;;  %v24053_v44 = vld [vmem:[#allocation150_spill] sm:$0xff] }
 0x846   :  { %15421 = vmatmul.mubr.msk.f32.gmra.mrb[78].mxu1 %vm5412_vm6, %v16912_v58  ;;  %15714 = vmatprep.mubr.msk.f32.mxu0 %vm93_vm1, %v24029_v28  ;;  %v21882_v58 = vld [vmem:[#allocation3 + $0x350] sm:$0xff]  ;;  %v24055_v28 = vld [vmem:[#allocation157_spill] sm:$0xff] }
 0x847   :  { %15423 = vmatprep.mubr.msk.f32.mxu1 %vm5412_vm6, %v16913_v35  ;;  %v24040_v35 = vld [vmem:[#allocation82_spill] sm:$0xff] }
 0x849   :  { %15715 = vmatmul.mubr.msk.f32.gmra.mrb[110].mxu0 %vm93_vm1, %v24030_v21  ;;  %v24058_v21 = vld [vmem:[#allocation160_spill] sm:$0xff] }
 0x84a   :  { %15424 = vmatmul.mubr.msk.f32.gmra.mrb[80].mxu1 %vm5412_vm6, %v16914_v0  ;;  %15717 = vmatprep.mubr.msk.f32.mxu0 %vm93_vm1, %v24031_v62  ;;  %v24045_v0 = vld [vmem:[#allocation117_spill] sm:$0xff]  ;;  %v24059_v62 = vld [vmem:[#allocation116_spill] sm:$0xff] }
 0x84b   :  { %15426 = vmatprep.mubr.msk.f32.mxu1 %vm5412_vm6, %v16915_v13  ;;  %v24050_v13 = vld [vmem:[#allocation119_spill] sm:$0xff] }
 0x84d   :  { %15718 = vmatmul.mubr.msk.f32.gmra.mrb[112].mxu0 %vm93_vm1, %v24032_v59  ;;  %v24062_v59 = vld [vmem:[#allocation166_spill] sm:$0xff] }
 0x84e   :  { %15427 = vmatmul.mubr.msk.f32.gmra.mrb[82].mxu1 %vm5412_vm6, %v16916_v10  ;;  %15720 = vmatprep.mubr.msk.f32.mxu0 %vm93_vm1, %v24033_v56  ;;  %v24056_v10 = vld [vmem:[#allocation158_spill] sm:$0xff]  ;;  %v24063_v56 = vld [vmem:[#allocation167_spill] sm:$0xff] }
 0x84f   :  { %15429 = vmatprep.mubr.msk.f32.mxu1 %vm5412_vm6, %v16917_v39  ;;  %v24057_v39 = vld [vmem:[#allocation113_spill] sm:$0xff] }
 0x851   :  { %15721 = vmatmul.mubr.msk.f32.gmra.mrb[114].mxu0 %vm93_vm1, %v24034_v15  ;;  %v24066_v15 = vld [vmem:[#allocation35_spill] sm:$0xff] }
 0x852   :  { %15430 = vmatmul.mubr.msk.f32.gmra.mrb[84].mxu1 %vm5412_vm6, %v16918_v1  ;;  %15723 = vmatprep.mubr.msk.f32.mxu0 %vm93_vm1, %v24035_v6  ;;  %v24060_v1 = vld [vmem:[#allocation164_spill] sm:$0xff]  ;;  %v24067_v6 = vld [vmem:[#allocation46_spill] sm:$0xff] }
 0x853   :  { %15432 = vmatprep.mubr.msk.f32.mxu1 %vm5412_vm6, %v16919_v51  ;;  %v24061_v51 = vld [vmem:[#allocation165_spill] sm:$0xff] }
 0x855   :  { %15724 = vmatmul.mubr.msk.f32.gmra.mrb[116].mxu0 %vm93_vm1, %v24036_v12  ;;  %v21957_v12 = vld [vmem:[#allocation3 + $0x1a8] sm:$0x3] }
 0x856   :  { %15433 = vmatmul.mubr.msk.f32.gmra.mrb[86].mxu1 %vm5412_vm6, %v16920_v14  ;;  %15726 = vmatprep.mubr.msk.f32.mxu0 %vm93_vm1, %v24037_v43  ;;  %v24064_v14 = vld [vmem:[#allocation168_spill] sm:$0xff]  ;;  %v24068_v43 = vld [vmem:[#allocation55_spill] sm:$0xff] }
 0x857   :  { %15435 = vmatprep.mubr.msk.f32.mxu1 %vm5412_vm6, %v16921_v45  ;;  %v24065_v45 = vld [vmem:[#allocation32_spill] sm:$0xff] }
 0x859   :  { %15727 = vmatmul.mubr.msk.f32.gmra.mrb[118].mxu0 %vm93_vm1, %v24038_v60  ;;  %v9564_v60 = vrot.slane %v21957_v12, 1 }
 0x85a   :  { %15436 = vmatmul.mubr.msk.f32.gmra.mrb[88].mxu1 %vm5412_vm6, %v16922_v30  ;;  %15729 = vmatprep.mubr.msk.f32.mxu0 %vm93_vm1, %v24039_v26  ;;  %v9561_v30 = vrot.slane %v21760_v2, 1 }
 0x85b   :  { %15438 = vmatprep.mubr.msk.f32.mxu1 %vm5412_vm6, %v16923_v40  ;;  %v9562_v40 = vrot.slane %v21768_v17, 1 }
 0x85d   :  { %15730 = vmatmul.mubr.msk.f32.gmra.mrb[120].mxu0 %vm93_vm1, %v24040_v35  ;;  %v9563_v26 = vsel %vm459_vm4, %v9561_v30, %v9562_v40  ;;  %v24070_v35 = vld [vmem:[#allocation27_spill] sm:$0xff]  ;;  %v24097_v30 = vld [vmem:[#allocation142_spill] sm:$0xff] }
 0x85e   :  { %15439 = vmatmul.mubr.msk.f32.gmra.mrb[90].mxu1 %vm5412_vm6, %v16924_v16  ;;  %v24069_v16 = vld [vmem:[#allocation162_spill] sm:$0xff] }
 0x85f   :  { %15441 = vmatprep.mubr.msk.f32.mxu1 %vm5412_vm6, %v21338_v3  ;;  %v24041_v3 = vld [vmem:[#allocation85_spill] sm:$0xff] }
 0x860   :  { %15732 = vmatprep.mubr.msk.f32.mxu0 %vm93_vm1, %v24041_v3  ;;  %v9565_v3 = vsel %vm459_vm4, %v9562_v40, %v9564_v60  ;;  %v9566_v40 = vrot.slane %v21874_v7, 1  ;;  %v24098_v60 = vld [vmem:[#allocation144_spill] sm:$0xff] }
 0x861   :  { %15733 = vmatmul.mubr.msk.f32.gmra.mrb[122].mxu0 %vm93_vm1, %v24042_v34  ;;  %v24071_v34 = vld [vmem:[#allocation58_spill] sm:$0xff] }
 0x862   :  { %15442 = vmatmul.mubr.msk.f32.gmra.mrb[92].mxu1 %vm5412_vm6, %v21342_v31  ;;  %v24043_v31 = vld [vmem:[#allocation89_spill] sm:$0xff] }
 0x863   :  { %15444 = vmatprep.mubr.msk.f32.mxu1 %vm5412_vm6, %v21874_v7  ;;  %15735 = vmatprep.mubr.msk.f32.mxu0 %vm93_vm1, %v24043_v31  ;;  %v24072_v31 = vld [vmem:[#allocation59_spill] sm:$0xff] }
 0x865   :  { %15736 = vmatmul.mubr.msk.f32.gmra.mrb[124].mxu0 %vm93_vm1, %v24044_v38  ;;  %v24073_v38 = vld [vmem:[#allocation63_spill] sm:$0xff] }
 0x866   :  { %15445 = vmatmul.mubr.msk.f32.gmra.mrb[94].mxu1 %vm5412_vm6, %v21882_v58  ;;  %15738 = vmatprep.mubr.msk.f32.mxu0 %vm93_vm1, %v24045_v0  ;;  %v24074_v0 = vld [vmem:[#allocation67_spill] sm:$0xff] }
 0x867   :  { %15449 = vmatprep.mubr.msk.f32.mxu1 %vm5412_vm6, %v23877_v27  ;;  %v24046_v27 = vld [vmem:[#allocation163_spill] sm:$0xff] }
 0x869   :  { %15739 = vmatmul.mubr.msk.f32.gmra.mrb[126].mxu0 %vm93_vm1, %v24046_v27  ;;  %v24075_v27 = vld [vmem:[#allocation71_spill] sm:$0xff] }
 0x86a   :  { %15450 = vmatmul.mubr.msk.f32.vlgmr.msra.gmra.mrb[32].mxu1 %vm5412_vm6, %v23878_v48  ;;  %v24047_v48 = vld [vmem:[#allocation112_spill] sm:$0xff] }
 0x86b   :  { %15546 = vmatpush3.msra.mxu1 %v21660_v9  ;;  %15452 = vmatprep.mubr.msk.f32.mxu1 %vm5412_vm6, %v23879_v63  ;;  %v24048_v63 = vld [vmem:[#allocation114_spill] sm:$0xff] }
 0x86c   :  { %v24049_v9 = vld [vmem:[#allocation118_spill] sm:$0xff] }
 0x86e   :  { %15453 = vmatmul.mubr.msk.f32.gmra.mrb[34].mxu1 %vm5412_vm6, %v23880_v49  ;;  %v24051_v49 = vld [vmem:[#allocation120_spill] sm:$0xff] }
 0x86f   :  { %15455 = vmatprep.mubr.msk.f32.mxu1 %vm5412_vm6, %v23881_v50  ;;  %v24052_v50 = vld [vmem:[#allocation143_spill] sm:$0xff] }
 0x872   :  { %15456 = vmatmul.mubr.msk.f32.gmra.mrb[36].mxu1 %vm5412_vm6, %v23882_v19  ;;  %v24054_v19 = vld [vmem:[#allocation151_spill] sm:$0xff] }
 0x873   :  { %15458 = vmatprep.mubr.msk.f32.mxu1 %vm5412_vm6, %v24047_v48  ;;  %v24076_v48 = vld [vmem:[#allocation72_spill] sm:$0xff] }
 0x876   :  { %15459 = vmatmul.mubr.msk.f32.gmra.mrb[38].mxu1 %vm5412_vm6, %v24048_v63  ;;  %v24077_v63 = vld [vmem:[#allocation76_spill] sm:$0xff] }
 0x877   :  { %15461 = vmatprep.mubr.msk.f32.mxu1 %vm5412_vm6, %v24049_v9  ;;  %v24078_v9 = vld [vmem:[#allocation79_spill] sm:$0xff] }
 0x87a   :  { %15462 = vmatmul.mubr.msk.f32.gmra.mrb[40].mxu1 %vm5412_vm6, %v24050_v13  ;;  %v24079_v13 = vld [vmem:[#allocation83_spill] sm:$0xff] }
 0x87b   :  { %15464 = vmatprep.mubr.msk.f32.mxu1 %vm5412_vm6, %v24051_v49  ;;  %v24080_v49 = vld [vmem:[#allocation84_spill] sm:$0xff] }
 0x87e   :  { %15465 = vmatmul.mubr.msk.f32.gmra.mrb[42].mxu1 %vm5412_vm6, %v24052_v50  ;;  %v24081_v50 = vld [vmem:[#allocation88_spill] sm:$0xff] }
 0x87f   :  { %15467 = vmatprep.mubr.msk.f32.mxu1 %vm5412_vm6, %v24053_v44  ;;  %v24082_v44 = vld [vmem:[#allocation91_spill] sm:$0xff] }
 0x882   :  { %15468 = vmatmul.mubr.msk.f32.gmra.mrb[44].mxu1 %vm5412_vm6, %v24054_v19  ;;  %v24083_v19 = vld [vmem:[#allocation121_spill] sm:$0xff] }
 0x883   :  { %15470 = vmatprep.mubr.msk.f32.mxu1 %vm5412_vm6, %v24055_v28  ;;  %v24084_v28 = vld [vmem:[#allocation122_spill] sm:$0xff] }
 0x886   :  { %15471 = vmatmul.mubr.msk.f32.gmra.mrb[46].mxu1 %vm5412_vm6, %v24056_v10  ;;  %v24085_v10 = vld [vmem:[#allocation124_spill] sm:$0xff] }
 0x887   :  { %15473 = vmatprep.mubr.msk.f32.mxu1 %vm5412_vm6, %v24057_v39  ;;  %v24086_v39 = vld [vmem:[#allocation125_spill] sm:$0xff] }
 0x88a   :  { %15474 = vmatmul.mubr.msk.f32.gmra.mrb[48].mxu1 %vm5412_vm6, %v24058_v21  ;;  %v24087_v21 = vld [vmem:[#allocation127_spill] sm:$0xff] }
 0x88b   :  { %15476 = vmatprep.mubr.msk.f32.mxu1 %vm5412_vm6, %v24059_v62  ;;  %v24088_v62 = vld [vmem:[#allocation128_spill] sm:$0xff] }
 0x88e   :  { %15477 = vmatmul.mubr.msk.f32.gmra.mrb[50].mxu1 %vm5412_vm6, %v24060_v1  ;;  %v24089_v1 = vld [vmem:[#allocation130_spill] sm:$0xff] }
 0x88f   :  { %15479 = vmatprep.mubr.msk.f32.mxu1 %vm5412_vm6, %v24061_v51  ;;  %v24090_v51 = vld [vmem:[#allocation131_spill] sm:$0xff] }
 0x892   :  { %15480 = vmatmul.mubr.msk.f32.gmra.mrb[52].mxu1 %vm5412_vm6, %v24062_v59  ;;  %v24091_v59 = vld [vmem:[#allocation133_spill] sm:$0xff] }
 0x893   :  { %15482 = vmatprep.mubr.msk.f32.mxu1 %vm5412_vm6, %v24063_v56  ;;  %v24092_v56 = vld [vmem:[#allocation134_spill] sm:$0xff] }
 0x896   :  { %15483 = vmatmul.mubr.msk.f32.gmra.mrb[54].mxu1 %vm5412_vm6, %v24064_v14  ;;  %v24093_v14 = vld [vmem:[#allocation136_spill] sm:$0xff] }
 0x897   :  { %15485 = vmatprep.mubr.msk.f32.mxu1 %vm5412_vm6, %v24065_v45  ;;  %v24094_v45 = vld [vmem:[#allocation137_spill] sm:$0xff] }
 0x89a   :  { %15486 = vmatmul.mubr.msk.f32.gmra.mrb[56].mxu1 %vm5412_vm6, %v24066_v15  ;;  %v24095_v15 = vld [vmem:[#allocation139_spill] sm:$0xff] }
 0x89b   :  { %15488 = vmatprep.mubr.msk.f32.mxu1 %vm5412_vm6, %v24067_v6  ;;  %v24096_v6 = vld [vmem:[#allocation140_spill] sm:$0xff] }
 0x89e   :  { %15489 = vmatmul.mubr.msk.f32.gmra.mrb[58].mxu1 %vm5412_vm6, %v24068_v43  ;;  %v9567_v43 = vrot.slane %v21882_v58, 1 }
 0x89f   :  { %15491 = vmatprep.mubr.msk.f32.mxu1 %vm5412_vm6, %v24069_v16  ;;  %v22026_v16 = vld [vmem:[#allocation3 + $0x358] sm:$0x3] }
 0x8a2   :  { %15492 = vmatmul.mubr.msk.f32.gmra.mrb[60].mxu1 %vm5412_vm6, %v24070_v35  ;;  %v9569_v35 = vrot.slane %v22026_v16, 1 }
 0x8a3   :  { %15494 = vmatprep.mubr.msk.f32.mxu1 %vm5412_vm6, %v9563_v26  ;;  %v24099_v26 = vld [vmem:[#allocation30_spill] sm:$0xff] }
 0x8a6   :  { %15495 = vmatmul.mubr.msk.f32.gmra.mrb[62].mxu1 %vm5412_vm6, %v9565_v3  ;;  %v9568_v3 = vsel %vm459_vm4, %v9566_v40, %v9567_v43  ;;  %v24133_v40 = vld [vmem:[#allocation141_spill] sm:$0xff] }
 0x8a7   :  { %15497 = vmatprep.mubr.msk.f32.mxu1 %vm5412_vm6, %v24071_v34  ;;  %v24100_v34 = vld [vmem:[#allocation42_spill] sm:$0xff] }
 0x8aa   :  { %15498 = vmatmul.mubr.msk.f32.gmra.mrb[64].mxu1 %vm5412_vm6, %v24072_v31  ;;  %v9570_v31 = vsel %vm459_vm4, %v9567_v43, %v9569_v35 }
 0x8ab   :  { %15500 = vmatprep.mubr.msk.f32.mxu1 %vm5412_vm6, %v24073_v38  ;;  %v24101_v38 = vld [vmem:[#allocation149_spill] sm:$0xff] }
 0x8ae   :  { %15501 = vmatmul.mubr.msk.f32.gmra.mrb[66].mxu1 %vm5412_vm6, %v24074_v0  ;;  %v24102_v0 = vld [vmem:[#allocation26_spill] sm:$0xff] }
 0x8af   :  { %15503 = vmatprep.mubr.msk.f32.mxu1 %vm5412_vm6, %v24075_v27  ;;  %v24103_v27 = vld [vmem:[#allocation152_spill] sm:$0xff] }
 0x8b2   :  { %15504 = vmatmul.mubr.msk.f32.gmra.mrb[68].mxu1 %vm5412_vm6, %v24076_v48  ;;  %v24104_v48 = vld [vmem:[#allocation94_spill] sm:$0xff] }
 0x8b3   :  { %15506 = vmatprep.mubr.msk.f32.mxu1 %vm5412_vm6, %v24077_v63  ;;  %v24105_v63 = vld [vmem:[#allocation95_spill] sm:$0xff] }
 0x8b6   :  { %15507 = vmatmul.mubr.msk.f32.gmra.mrb[70].mxu1 %vm5412_vm6, %v24078_v9  ;;  %v24106_v9 = vld [vmem:[#allocation96_spill] sm:$0xff] }
 0x8b7   :  { %15509 = vmatprep.mubr.msk.f32.mxu1 %vm5412_vm6, %v24079_v13  ;;  %v24107_v13 = vld [vmem:[#allocation97_spill] sm:$0xff] }
 0x8ba   :  { %15510 = vmatmul.mubr.msk.f32.gmra.mrb[72].mxu1 %vm5412_vm6, %v24080_v49  ;;  %v24108_v49 = vld [vmem:[#allocation99_spill] sm:$0xff] }
 0x8bb   :  { %15512 = vmatprep.mubr.msk.f32.mxu1 %vm5412_vm6, %v24081_v50  ;;  %v24109_v50 = vld [vmem:[#allocation153_spill] sm:$0xff] }
 0x8be   :  { %15513 = vmatmul.mubr.msk.f32.gmra.mrb[74].mxu1 %vm5412_vm6, %v24082_v44  ;;  %v24110_v44 = vld [vmem:[#allocation101_spill] sm:$0xff] }
 0x8bf   :  { %15515 = vmatprep.mubr.msk.f32.mxu1 %vm5412_vm6, %v24083_v19  ;;  %v24111_v19 = vld [vmem:[#allocation154_spill] sm:$0xff] }
 0x8c2   :  { %15516 = vmatmul.mubr.msk.f32.gmra.mrb[76].mxu1 %vm5412_vm6, %v24084_v28  ;;  %v24112_v28 = vld [vmem:[#allocation103_spill] sm:$0xff] }
 0x8c3   :  { %15518 = vmatprep.mubr.msk.f32.mxu1 %vm5412_vm6, %v24085_v10  ;;  %v24113_v10 = vld [vmem:[#allocation155_spill] sm:$0xff] }
 0x8c6   :  { %15519 = vmatmul.mubr.msk.f32.gmra.mrb[78].mxu1 %vm5412_vm6, %v24086_v39  ;;  %v24114_v39 = vld [vmem:[#allocation107_spill] sm:$0xff] }
 0x8c7   :  { %15521 = vmatprep.mubr.msk.f32.mxu1 %vm5412_vm6, %v24087_v21  ;;  %v24115_v21 = vld [vmem:[#allocation109_spill] sm:$0xff] }
 0x8ca   :  { %15522 = vmatmul.mubr.msk.f32.gmra.mrb[80].mxu1 %vm5412_vm6, %v24088_v62  ;;  %v24116_v62 = vld [vmem:[#allocation115_spill] sm:$0xff] }
 0x8cb   :  { %15524 = vmatprep.mubr.msk.f32.mxu1 %vm5412_vm6, %v24089_v1  ;;  %v24117_v1 = vld [vmem:[#allocation161_spill] sm:$0xff] }
 0x8ce   :  { %15525 = vmatmul.mubr.msk.f32.gmra.mrb[82].mxu1 %vm5412_vm6, %v24090_v51  ;;  %v24118_v51 = vld [vmem:[#allocation28_spill] sm:$0xff] }
 0x8cf   :  { %15527 = vmatprep.mubr.msk.f32.mxu1 %vm5412_vm6, %v24091_v59  ;;  %v24119_v59 = vld [vmem:[#allocation4_spill] sm:$0xff] }
 0x8d2   :  { %15528 = vmatmul.mubr.msk.f32.gmra.mrb[84].mxu1 %vm5412_vm6, %v24092_v56  ;;  %v24120_v56 = vld [vmem:[#allocation172_spill] sm:$0xff] }
 0x8d3   :  { %15530 = vmatprep.mubr.msk.f32.mxu1 %vm5412_vm6, %v24093_v14  ;;  %v24121_v14 = vld [vmem:[#allocation176_spill] sm:$0xff] }
 0x8d6   :  { %15531 = vmatmul.mubr.msk.f32.gmra.mrb[86].mxu1 %vm5412_vm6, %v24094_v45  ;;  %v24122_v45 = vld [vmem:[#allocation177_spill] sm:$0xff] }
 0x8d7   :  { %15533 = vmatprep.mubr.msk.f32.mxu1 %vm5412_vm6, %v24095_v15 }
 0x8da   :  { %15534 = vmatmul.mubr.msk.f32.gmra.mrb[88].mxu1 %vm5412_vm6, %v24096_v6  ;;  %v10034_v6 = vrot.slane %v21882_v58, 2 }
 0x8db   :  { %15536 = vmatprep.mubr.msk.f32.mxu1 %vm5412_vm6, %v24097_v30 }
 0x8de   :  { %15537 = vmatmul.mubr.msk.f32.gmra.mrb[90].mxu1 %vm5412_vm6, %v24098_v60  ;;  %v24134_v60 = vld [vmem:[#allocation170_spill] sm:$0xff] }
 0x8df   :  { %15539 = vmatprep.mubr.msk.f32.mxu1 %vm5412_vm6, %v24099_v26  ;;  %v10036_v26 = vrot.slane %v22026_v16, 2 }
 0x8e1   :  { %v10037_v58 = vsel %vm1653_vm5, %v10034_v6, %v10036_v26  ;;  %v22296_v26 = vld [vmem:[%s22765_s5] ss:$0 sm:$0xff] }
 0x8e2   :  { %15540 = vmatmul.mubr.msk.f32.gmra.mrb[92].mxu1 %vm5412_vm6, %v24100_v34 }
 0x8e3   :  { %15542 = vmatprep.mubr.msk.f32.mxu1 %vm5412_vm6, %v9568_v3 }
 0x8e6   :  { %15543 = vmatmul.mubr.msk.f32.gmra.mrb[94].mxu1 %vm5412_vm6, %v9570_v31 }
 0x8e7   :  { %15547 = vmatprep.mubr.msk.f32.mxu1 %vm5412_vm6, %v24101_v38 }
 0x8ea   :  { %15548 = vmatmul.mubr.msk.f32.vlgmr.msra.gmra.mrb[32].mxu1 %vm5412_vm6, %v24102_v0 }
 0x8eb   :  { %15550 = vmatprep.mubr.msk.f32.mxu1 %vm5412_vm6, %v24103_v27 }
 0x8ee   :  { %15551 = vmatmul.mubr.msk.f32.gmra.mrb[34].mxu1 %vm5412_vm6, %v24104_v48 }
 0x8ef   :  { %15553 = vmatprep.mubr.msk.f32.mxu1 %vm5412_vm6, %v24105_v63 }
 0x8f2   :  { %15554 = vmatmul.mubr.msk.f32.gmra.mrb[36].mxu1 %vm5412_vm6, %v24106_v9 }
 0x8f3   :  { %15556 = vmatprep.mubr.msk.f32.mxu1 %vm5412_vm6, %v24107_v13 }
 0x8f6   :  { %15557 = vmatmul.mubr.msk.f32.gmra.mrb[38].mxu1 %vm5412_vm6, %v24108_v49 }
 0x8f7   :  { %15559 = vmatprep.mubr.msk.f32.mxu1 %vm5412_vm6, %v24109_v50 }
 0x8fa   :  { %15560 = vmatmul.mubr.msk.f32.gmra.mrb[40].mxu1 %vm5412_vm6, %v24110_v44 }
 0x8fb   :  { %15562 = vmatprep.mubr.msk.f32.mxu1 %vm5412_vm6, %v24111_v19 }
 0x8fe   :  { %15563 = vmatmul.mubr.msk.f32.gmra.mrb[42].mxu1 %vm5412_vm6, %v24112_v28 }
 0x8ff   :  { %15565 = vmatprep.mubr.msk.f32.mxu1 %vm5412_vm6, %v24113_v10 }
 0x902   :  { %15566 = vmatmul.mubr.msk.f32.gmra.mrb[44].mxu1 %vm5412_vm6, %v24114_v39 }
 0x903   :  { %15568 = vmatprep.mubr.msk.f32.mxu1 %vm5412_vm6, %v24115_v21 }
 0x906   :  { %15569 = vmatmul.mubr.msk.f32.gmra.mrb[46].mxu1 %vm5412_vm6, %v24116_v62 }
 0x907   :  { %15571 = vmatprep.mubr.msk.f32.mxu1 %vm5412_vm6, %v24117_v1 }
 0x90a   :  { %15572 = vmatmul.mubr.msk.f32.gmra.mrb[48].mxu1 %vm5412_vm6, %v24118_v51 }
 0x90b   :  { %15574 = vmatprep.mubr.msk.f32.mxu1 %vm5412_vm6, %v24119_v59 }
 0x90e   :  { %15575 = vmatmul.mubr.msk.f32.gmra.mrb[50].mxu1 %vm5412_vm6, %v23960_v8  ;;  %v10029_v8 = vrot.slane %v21768_v17, 2  ;;  %v24132_v17 = vld [vmem:[#allocation183_spill] sm:$0xff] }
 0x90f   :  { %15577 = vmatprep.mubr.msk.f32.mxu1 %vm5412_vm6, %v23961_v25  ;;  %v10028_v25 = vrot.slane %v21760_v2, 2  ;;  %v24131_v2 = vld [vmem:[#allocation138_spill] sm:$0xff] }
 0x911   :  { %v10030_v15 = vsel %vm1653_vm5, %v10028_v25, %v10029_v8 }
 0x912   :  { %15578 = vmatmul.mubr.msk.f32.gmra.mrb[52].mxu1 %vm5412_vm6, %v24120_v56 }
 0x913   :  { %15580 = vmatprep.mubr.msk.f32.mxu1 %vm5412_vm6, %v23963_v5  ;;  %v10031_v5 = vrot.slane %v21957_v12, 2 }
 0x916   :  { %15581 = vmatmul.mubr.msk.f32.gmra.mrb[54].mxu1 %vm5412_vm6, %v24121_v14 }
 0x917   :  { %15583 = vmatprep.mubr.msk.f32.mxu1 %vm5412_vm6, %v24122_v45 }
 0x91a   :  { %15584 = vmatmul.mubr.msk.f32.gmra.mrb[56].mxu1 %vm5412_vm6, %v20972_v42  ;;  %v24123_v42 = vld [vmem:[#allocation68_spill] sm:$0xff] }
 0x91b   :  { %15586 = vmatprep.mubr.msk.f32.mxu1 %vm5412_vm6, %v20977_v47  ;;  %v10032_v47 = vsel %vm1653_vm5, %v10029_v8, %v10031_v5 }
 0x91e   :  { %15587 = vmatmul.mubr.msk.f32.gmra.mrb[58].mxu1 %vm5412_vm6, %v20983_v54  ;;  %v24124_v54 = vld [vmem:[#allocation75_spill] sm:$0xff] }
 0x91f   :  { %15589 = vmatprep.mubr.msk.f32.mxu1 %vm5412_vm6, %v21574_v57 }
 0x922   :  { %15590 = vmatmul.mubr.msk.f32.gmra.mrb[60].mxu1 %vm5412_vm6, %v21579_v29  ;;  %v24129_v29 = vld [vmem:[#allocation181_spill] sm:$0xff] }
 0x923   :  { %15592 = vmatprep.mubr.msk.f32.mxu1 %vm5412_vm6, %v10030_v15 }
 0x926   :  { %15593 = vmatmul.mubr.msk.f32.gmra.mrb[62].mxu1 %vm5412_vm6, %v10032_v47 }
 0x927   :  { %15595 = vmatprep.mubr.msk.f32.mxu1 %vm5412_vm6, %v21007_v52  ;;  %v24125_v52 = vld [vmem:[#allocation80_spill] sm:$0xff] }
 0x92a   :  { %15596 = vmatmul.mubr.msk.f32.gmra.mrb[64].mxu1 %vm5412_vm6, %v21014_v32  ;;  %v24126_v32 = vld [vmem:[#allocation87_spill] sm:$0xff] }
 0x92b   :  { %15598 = vmatprep.mubr.msk.f32.mxu1 %vm5412_vm6, %v21020_v20  ;;  %v22136_v20 = vpop.f32.mrb[64].mxu0 }
 0x92e   :  { %15599 = vmatmul.mubr.msk.f32.gmra.mrb[66].mxu1 %vm5412_vm6, %v21027_v36  ;;  %v22140_v36 = vpop.f32.mrb[65].mxu0 }
 0x92f   :  { %15601 = vmatprep.mubr.msk.f32.mxu1 %vm5412_vm6, %v21033_v53  ;;  %v22144_v53 = vpop.f32.mrb[66].mxu0 }
 0x932   :  { %15602 = vmatmul.mubr.msk.f32.gmra.mrb[68].mxu1 %vm5412_vm6, %v21040_v33  ;;  %v24127_v33 = vld [vmem:[#allocation126_spill] sm:$0xff] }
 0x933   :  { %15604 = vmatprep.mubr.msk.f32.mxu1 %vm5412_vm6, %v21046_v46  ;;  %v22148_v46 = vpop.f32.mrb[67].mxu0 }
 0x936   :  { %15605 = vmatmul.mubr.msk.f32.gmra.mrb[70].mxu1 %vm5412_vm6, %v21053_v37  ;;  %v24128_v37 = vld [vmem:[#allocation129_spill] sm:$0xff] }
 0x937   :  { %15607 = vmatprep.mubr.msk.f32.mxu1 %vm5412_vm6, %v21059_v22  ;;  %v22152_v22 = vpop.f32.mrb[68].mxu0 }
 0x93a   :  { %15608 = vmatmul.mubr.msk.f32.gmra.mrb[72].mxu1 %vm5412_vm6, %v21066_v4  ;;  %v22156_v4 = vpop.f32.mrb[69].mxu0 }
 0x93b   :  { %15610 = vmatprep.mubr.msk.f32.mxu1 %vm5412_vm6, %v21072_v41  ;;  %v22160_v41 = vpop.f32.mrb[70].mxu0 }
 0x93c   :  { %v22164_v57 = vpop.f32.mrb[71].mxu0 }
 0x93e   :  { %15611 = vmatmul.mubr.msk.f32.gmra.mrb[74].mxu1 %vm5412_vm6, %v24123_v42 }
 0x93f   :  { %15613 = vmatprep.mubr.msk.f32.mxu1 %vm5412_vm6, %v24124_v54 }
 0x942   :  { %15614 = vmatmul.mubr.msk.f32.gmra.mrb[76].mxu1 %vm5412_vm6, %v24125_v52 }
 0x943   :  { %15616 = vmatprep.mubr.msk.f32.mxu1 %vm5412_vm6, %v24126_v32 }
 0x946   :  { %15617 = vmatmul.mubr.msk.f32.gmra.mrb[78].mxu1 %vm5412_vm6, %v23968_v11  ;;  %v22168_v11 = vpop.f32.mrb[72].mxu0 }
 0x947   :  { %15619 = vmatprep.mubr.msk.f32.mxu1 %vm5412_vm6, %v23969_v18  ;;  %v24130_v18 = vld [vmem:[#allocation182_spill] sm:$0xff] }
 0x94a   :  { %15620 = vmatmul.mubr.msk.f32.gmra.mrb[80].mxu1 %vm5412_vm6, %v24127_v33 }
 0x94b   :  { %15622 = vmatprep.mubr.msk.f32.mxu1 %vm5412_vm6, %v24128_v37 }
 0x94e   :  { %15623 = vmatmul.mubr.msk.f32.gmra.mrb[82].mxu1 %vm5412_vm6, %v23972_v24  ;;  %v22172_v24 = vpop.f32.mrb[73].mxu0 }
 0x94f   :  { %15625 = vmatprep.mubr.msk.f32.mxu1 %vm5412_vm6, %v23973_v55  ;;  %v22176_v55 = vpop.f32.mrb[74].mxu0 }
 0x950   :  { %v22180_v12 = vpop.f32.mrb[75].mxu0 }
 0x951   :  { %v22186_v30 = vpop.f32.mrb[76].mxu0 }
 0x952   :  { %15626 = vmatmul.mubr.msk.f32.gmra.mrb[84].mxu1 %vm5412_vm6, %v24129_v29  ;;  %v22190_v43 = vpop.f32.mrb[77].mxu0 }
 0x953   :  { %15628 = vmatprep.mubr.msk.f32.mxu1 %vm5412_vm6, %v23975_v23  ;;  %v10033_v23 = vrot.slane %v21874_v7, 2  ;;  %v22196_v3 = vpop.f32.mrb[78].mxu0 }
 0x954   :  { %v22200_v7 = vpop.f32.mrb[79].mxu0 }
 0x955   :  { %v10035_v35 = vsel %vm1653_vm5, %v10033_v23, %v10034_v6  ;;  %v22204_v34 = vpop.f32.mrb[80].mxu0 }
 0x956   :  { %15629 = vmatmul.mubr.msk.f32.gmra.mrb[86].mxu1 %vm5412_vm6, %v24130_v18  ;;  %v22207_v31 = vpop.f32.mrb[81].mxu0 }
 0x957   :  { %15631 = vmatprep.mubr.msk.f32.mxu1 %vm5412_vm6, %v24131_v2  ;;  %v22209_v16 = vpop.f32.mrb[82].mxu0 }
 0x958   :  { %v22211_v38 = vpop.f32.mrb[83].mxu0 }
 0x959   :  { %v22213_v0 = vpop.f32.mrb[84].mxu0 }
 0x95a   :  { %15632 = vmatmul.mubr.msk.f32.gmra.mrb[88].mxu1 %vm5412_vm6, %v24132_v17  ;;  %v22215_v27 = vpop.f32.mrb[85].mxu0 }
 0x95b   :  { %15634 = vmatprep.mubr.msk.f32.mxu1 %vm5412_vm6, %v21176_v61  ;;  %v24135_v61 = vld [vmem:[#allocation171_spill] sm:$0xff]  ;;  %v22217_v48 = vpop.f32.mrb[86].mxu0 }
 0x95c   :  { %v22219_v63 = vpop.f32.mrb[87].mxu0 }
 0x95d   :  { %v22221_v9 = vpop.f32.mrb[88].mxu0 }
 0x95e   :  { %15635 = vmatmul.mubr.msk.f32.gmra.mrb[90].mxu1 %vm5412_vm6, %v24133_v40  ;;  %v22223_v13 = vpop.f32.mrb[89].mxu0 }
 0x95f   :  { %15637 = vmatprep.mubr.msk.f32.mxu1 %vm5412_vm6, %v24134_v60  ;;  %v22225_v49 = vpop.f32.mrb[90].mxu0 }
 0x960   :  { %v22227_v50 = vpop.f32.mrb[91].mxu0 }
 0x961   :  { %v22229_v44 = vpop.f32.mrb[92].mxu0 }
 0x962   :  { %15638 = vmatmul.mubr.msk.f32.gmra.mrb[92].mxu1 %vm5412_vm6, %v24135_v61  ;;  %v22231_v19 = vpop.f32.mrb[93].mxu0  ;;  %v22301_v61 = vld [vmem:[%s22766_s6] ss:$0 sm:$0xff] }
 0x963   :  { %15640 = vmatprep.mubr.msk.f32.mxu1 %vm5412_vm6, %v10035_v35  ;;  %v22233_v28 = vpop.f32.mrb[94].mxu0 }
 0x964   :  { %v22235_v10 = vpop.f32.mrb[95].mxu0 }
 0x965   :  { %v22237_v39 = vpop.f32.mrb[96].mxu0 }
 0x966   :  { %15641 = vmatmul.mubr.msk.f32.gmra.mrb[94].mxu1 %vm5412_vm6, %v10037_v58  ;;  %v22239_v21 = vpop.f32.mrb[97].mxu0 }
 0x967   :  { %v22241_v62 = vpop.f32.mrb[98].mxu0 }
 0x968   :  { %v22243_v1 = vpop.f32.mrb[99].mxu0 }
 0x969   :  { %v22245_v51 = vpop.f32.mrb[100].mxu0 }
 0x96a   :  { %v22247_v59 = vpop.f32.mrb[101].mxu0 }
 0x96b   :  { %v22249_v56 = vpop.f32.mrb[102].mxu0 }
 0x96c   :  { %v22251_v14 = vpop.f32.mrb[103].mxu0 }
 0x96d   :  { %v22253_v45 = vpop.f32.mrb[104].mxu0 }
 0x96e   :  { %v22255_v25 = vpop.f32.mrb[105].mxu0 }
 0x96f   :  { %v22257_v8 = vpop.f32.mrb[106].mxu0 }
 0x970   :  { %v22259_v5 = vpop.f32.mrb[107].mxu0 }
 0x971   :  { %v22261_v15 = vpop.f32.mrb[108].mxu0 }
 0x972   :  { %v22263_v47 = vpop.f32.mrb[109].mxu0 }
 0x973   :  { %v22265_v42 = vpop.f32.mrb[110].mxu0 }
 0x974   :  { %v22267_v54 = vpop.f32.mrb[111].mxu0 }
 0x975   :  { %24136 = vst [vmem:[#allocation174_spill] sm:$0xff] %v22267_v54  ;;  %v22269_v52 = vpop.f32.mrb[112].mxu0 }
 0x976   :  { %24137 = vst [vmem:[#allocation175_spill] sm:$0xff] %v22269_v52  ;;  %v22271_v32 = vpop.f32.mrb[113].mxu0 }
 0x977   :  { %24138 = vst [vmem:[#allocation93_spill] sm:$0xff] %v22271_v32  ;;  %v22273_v33 = vpop.f32.mrb[114].mxu0 }
 0x978   :  { %24139 = vst [vmem:[#allocation98_spill] sm:$0xff] %v22273_v33  ;;  %v22275_v37 = vpop.f32.mrb[115].mxu0 }
 0x979   :  { %24140 = vst [vmem:[#allocation100_spill] sm:$0xff] %v22275_v37  ;;  %v22277_v29 = vpop.f32.mrb[116].mxu0 }
 0x97a   :  { %24141 = vst [vmem:[#allocation102_spill] sm:$0xff] %v22277_v29  ;;  %v22279_v18 = vpop.f32.mrb[117].mxu0 }
 0x97b   :  { %24142 = vst [vmem:[#allocation104_spill] sm:$0xff] %v22279_v18  ;;  %v22281_v2 = vpop.f32.mrb[118].mxu0 }
 0x97c   :  { %24143 = vst [vmem:[#allocation106_spill] sm:$0xff] %v22281_v2  ;;  %v22283_v17 = vpop.f32.mrb[119].mxu0 }
 0x97d   :  { %24144 = vst [vmem:[#allocation108_spill] sm:$0xff] %v22283_v17  ;;  %v22285_v23 = vpop.f32.mrb[120].mxu0 }
 0x97e   :  { %24145 = vst [vmem:[#allocation110_spill] sm:$0xff] %v22285_v23  ;;  %v22287_v6 = vpop.f32.mrb[121].mxu0 }
 0x97f   :  { %24146 = vst [vmem:[#allocation56_spill] sm:$0xff] %v22287_v6  ;;  %v22289_v40 = vpop.f32.mrb[122].mxu0 }
 0x980   :  { %24147 = vst [vmem:[#allocation57_spill] sm:$0xff] %v22289_v40  ;;  %v22291_v60 = vpop.f32.mrb[123].mxu0 }
 0x981   :  { %24148 = vst [vmem:[#allocation147_spill] sm:$0xff] %v22291_v60  ;;  %v22303_v58 = vpop.f32.mrb[124].mxu0 }
 0x982   :  { %24149 = vst [vmem:[#allocation148_spill] sm:$0xff] %v22303_v58  ;;  %v22306_v17 = vpop.f32.mrb[125].mxu0 }
 0x983   :  { %24150 = vst [vmem:[#allocation169_spill] sm:$0xff] %v22306_v17  ;;  %v22309_v40 = vpop.f32.mrb[126].mxu0 }
 0x984   :  { %24151 = vst [vmem:[#allocation29_spill] sm:$0xff] %v22309_v40  ;;  %v22314_v52 = vpop.f32.mrb[127].mxu0 }
 0x9bd   :  { %v15549_v35 = vpop.f32.mrb[32].mxu1 }
 0x9be   :  { %v10503_v23 = vmul.f32 %v15549_v35, %v22296_v26  ;;  %v10112_v6 = vpop.f32.mrb[33].mxu1 }
 0x9bf   :  { %v10502_v60 = vmul.f32 %v22296_v26, %v10112_v6 }
 0x9c0   :  { %v10574_v2 = vadd.f32 %v22301_v61, %v10503_v23 }
 0x9c1   :  { %v10573_v18 = vadd.f32 %v22301_v61, %v10502_v60  ;;  %v15552_v29 = vpop.f32.mrb[34].mxu1 }
 0x9c2   :  { %v10505_v37 = vmul.f32 %v15552_v29, %v22296_v26  ;;  %v10122_v33 = vpop.f32.mrb[35].mxu1  ;;  %v10638_v32 = vmax.f32 %v10574_v2, 0.0 }
 0x9c3   :  { %v10504_v35 = vmul.f32 %v22296_v26, %v10122_v33  ;;  %v10637_v58 = vmax.f32 %v10573_v18, 0.0 }
 0x9c4   :  { %v10576_v17 = vadd.f32 %v22301_v61, %v10505_v37  ;;  %v11283_v6 = vadd.f32 %v22136_v20, %v10638_v32 }
 0x9c5   :  { %v10575_v40 = vadd.f32 %v22301_v61, %v10504_v35  ;;  %v11282_v23 = vadd.f32 %v22140_v36, %v10637_v58  ;;  %v15555_v54 = vpop.f32.mrb[36].mxu1 }
 0x9c6   :  { %11347 = vst.msk [vmem:[%s22767_s8 + $0x8] sm:$0xff] %vm5412_vm6, %v11283_v6  ;;  %v10507_v29 = vmul.f32 %v15555_v54, %v22296_v26  ;;  %v10132_v2 = vpop.f32.mrb[37].mxu1  ;;  %v10640_v60 = vmax.f32 %v10576_v17, 0.0 }
 0x9c7   :  { %11346 = vst.msk [vmem:[%s22767_s8] sm:$0xff] %vm5412_vm6, %v11282_v23  ;;  %v10506_v20 = vmul.f32 %v22296_v26, %v10132_v2  ;;  %v10639_v32 = vmax.f32 %v10575_v40, 0.0 }
 0x9c8   :  { %v10578_v36 = vadd.f32 %v22301_v61, %v10507_v29  ;;  %v11285_v33 = vadd.f32 %v22144_v53, %v10640_v60 }
 0x9c9   :  { %v10577_v37 = vadd.f32 %v22301_v61, %v10506_v20  ;;  %v11284_v18 = vadd.f32 %v22148_v46, %v10639_v32  ;;  %v15558_v58 = vpop.f32.mrb[38].mxu1 }
 0x9ca   :  { %11349 = vst.msk [vmem:[%s22767_s8 + $0x18] sm:$0xff] %vm5412_vm6, %v11285_v33  ;;  %v10509_v54 = vmul.f32 %v15558_v58, %v22296_v26  ;;  %v10142_v17 = vpop.f32.mrb[39].mxu1  ;;  %v10642_v35 = vmax.f32 %v10578_v36, 0.0 }
 0x9cb   :  { %11348 = vst.msk [vmem:[%s22767_s8 + $0x10] sm:$0xff] %vm5412_vm6, %v11284_v18  ;;  %v10508_v53 = vmul.f32 %v22296_v26, %v10142_v17  ;;  %v10641_v40 = vmax.f32 %v10577_v37, 0.0 }
 0x9cc   :  { %v10580_v46 = vadd.f32 %v22301_v61, %v10509_v54  ;;  %v11287_v6 = vadd.f32 %v22152_v22, %v10642_v35 }
 0x9cd   :  { %v10579_v23 = vadd.f32 %v22301_v61, %v10508_v53  ;;  %v11286_v29 = vadd.f32 %v22156_v4, %v10641_v40  ;;  %v15561_v2 = vpop.f32.mrb[40].mxu1 }
 0x9ce   :  { %11351 = vst.msk [vmem:[%s22767_s8 + $0x28] sm:$0xff] %vm5412_vm6, %v11287_v6  ;;  %v10511_v60 = vmul.f32 %v15561_v2, %v22296_v26  ;;  %v10152_v20 = vpop.f32.mrb[41].mxu1  ;;  %v10644_v32 = vmax.f32 %v10580_v46, 0.0 }
 0x9cf   :  { %11350 = vst.msk [vmem:[%s22767_s8 + $0x20] sm:$0xff] %vm5412_vm6, %v11286_v29  ;;  %v10510_v22 = vmul.f32 %v22296_v26, %v10152_v20  ;;  %v10643_v36 = vmax.f32 %v10579_v23, 0.0 }
 0x9d0   :  { %v10582_v4 = vadd.f32 %v22301_v61, %v10511_v60  ;;  %v11289_v33 = vadd.f32 %v22160_v41, %v10644_v32 }
 0x9d1   :  { %v10581_v37 = vadd.f32 %v22301_v61, %v10510_v22  ;;  %v11288_v18 = vadd.f32 %v22164_v57, %v10643_v36  ;;  %v15564_v58 = vpop.f32.mrb[42].mxu1 }
 0x9d2   :  { %11353 = vst.msk [vmem:[%s22767_s8 + $0x38] sm:$0xff] %vm5412_vm6, %v11289_v33  ;;  %v10513_v54 = vmul.f32 %v15564_v58, %v22296_v26  ;;  %v10162_v17 = vpop.f32.mrb[43].mxu1  ;;  %v10646_v35 = vmax.f32 %v10582_v4, 0.0 }
 0x9d3   :  { %11352 = vst.msk [vmem:[%s22767_s8 + $0x30] sm:$0xff] %vm5412_vm6, %v11288_v18  ;;  %v10512_v41 = vmul.f32 %v22296_v26, %v10162_v17  ;;  %v10645_v53 = vmax.f32 %v10581_v37, 0.0 }
 0x9d4   :  { %v10584_v57 = vadd.f32 %v22301_v61, %v10513_v54  ;;  %v11291_v40 = vadd.f32 %v22168_v11, %v10646_v35 }
 0x9d5   :  { %v10583_v46 = vadd.f32 %v22301_v61, %v10512_v41  ;;  %v11290_v6 = vadd.f32 %v22172_v24, %v10645_v53  ;;  %v15567_v23 = vpop.f32.mrb[44].mxu1 }
 0x9d6   :  { %11355 = vst.msk [vmem:[%s22767_s8 + $0x48] sm:$0xff] %vm5412_vm6, %v11291_v40  ;;  %v10515_v29 = vmul.f32 %v15567_v23, %v22296_v26  ;;  %v10172_v2 = vpop.f32.mrb[45].mxu1  ;;  %v10648_v60 = vmax.f32 %v10584_v57, 0.0 }
 0x9d7   :  { %11354 = vst.msk [vmem:[%s22767_s8 + $0x40] sm:$0xff] %vm5412_vm6, %v11290_v6  ;;  %v10514_v11 = vmul.f32 %v22296_v26, %v10172_v2  ;;  %v10647_v20 = vmax.f32 %v10583_v46, 0.0 }
 0x9d8   :  { %v10586_v24 = vadd.f32 %v22301_v61, %v10515_v29  ;;  %v11293_v32 = vadd.f32 %v22176_v55, %v10648_v60 }
 0x9d9   :  { %v10585_v22 = vadd.f32 %v22301_v61, %v10514_v11  ;;  %v11292_v36 = vadd.f32 %v22180_v12, %v10647_v20  ;;  %v15570_v4 = vpop.f32.mrb[46].mxu1 }
 0x9da   :  { %11357 = vst.msk [vmem:[%s22767_s8 + $0x58] sm:$0xff] %vm5412_vm6, %v11293_v32  ;;  %v10517_v33 = vmul.f32 %v15570_v4, %v22296_v26  ;;  %v10182_v37 = vpop.f32.mrb[47].mxu1  ;;  %v10650_v18 = vmax.f32 %v10586_v24, 0.0 }
 0x9db   :  { %11356 = vst.msk [vmem:[%s22767_s8 + $0x50] sm:$0xff] %vm5412_vm6, %v11292_v36  ;;  %v10516_v55 = vmul.f32 %v22296_v26, %v10182_v37  ;;  %v10649_v58 = vmax.f32 %v10585_v22, 0.0 }
 0x9dc   :  { %v10588_v12 = vadd.f32 %v22301_v61, %v10517_v33  ;;  %v11295_v54 = vadd.f32 %v22186_v30, %v10650_v18 }
 0x9dd   :  { %v10587_v17 = vadd.f32 %v22301_v61, %v10516_v55  ;;  %v11294_v35 = vadd.f32 %v22190_v43, %v10649_v58  ;;  %v15573_v41 = vpop.f32.mrb[48].mxu1 }
 0x9de   :  { %11359 = vst.msk [vmem:[%s22767_s8 + $0x68] sm:$0xff] %vm5412_vm6, %v11295_v54  ;;  %v10519_v53 = vmul.f32 %v15573_v41, %v22296_v26  ;;  %v10192_v57 = vpop.f32.mrb[49].mxu1  ;;  %v10652_v40 = vmax.f32 %v10588_v12, 0.0 }
 0x9df   :  { %11358 = vst.msk [vmem:[%s22767_s8 + $0x60] sm:$0xff] %vm5412_vm6, %v11294_v35  ;;  %v10518_v30 = vmul.f32 %v22296_v26, %v10192_v57  ;;  %v10651_v46 = vmax.f32 %v10587_v17, 0.0 }
 0x9e0   :  { %v10590_v43 = vadd.f32 %v22301_v61, %v10519_v53  ;;  %v11297_v6 = vadd.f32 %v22196_v3, %v10652_v40 }
 0x9e1   :  { %v10589_v23 = vadd.f32 %v22301_v61, %v10518_v30  ;;  %v11296_v29 = vadd.f32 %v22200_v7, %v10651_v46  ;;  %v15576_v2 = vpop.f32.mrb[50].mxu1 }
 0x9e2   :  { %11361 = vst.msk [vmem:[%s22767_s8 + $0x78] sm:$0xff] %vm5412_vm6, %v11297_v6  ;;  %v10521_v60 = vmul.f32 %v15576_v2, %v22296_v26  ;;  %v10202_v11 = vpop.f32.mrb[51].mxu1  ;;  %v10654_v20 = vmax.f32 %v10590_v43, 0.0 }
 0x9e3   :  { %11360 = vst.msk [vmem:[%s22767_s8 + $0x70] sm:$0xff] %vm5412_vm6, %v11296_v29  ;;  %v10520_v3 = vmul.f32 %v22296_v26, %v10202_v11  ;;  %v10653_v24 = vmax.f32 %v10589_v23, 0.0 }
 0x9e4   :  { %v10592_v7 = vadd.f32 %v22301_v61, %v10521_v60  ;;  %v11299_v32 = vadd.f32 %v22204_v34, %v10654_v20 }
 0x9e5   :  { %v10591_v22 = vadd.f32 %v22301_v61, %v10520_v3  ;;  %v11298_v36 = vadd.f32 %v22207_v31, %v10653_v24  ;;  %v15579_v4 = vpop.f32.mrb[52].mxu1 }
 0x9e6   :  { %11363 = vst.msk [vmem:[%s22767_s8 + $0x88] sm:$0xff] %vm5412_vm6, %v11299_v32  ;;  %v10523_v33 = vmul.f32 %v15579_v4, %v22296_v26  ;;  %v10212_v37 = vpop.f32.mrb[53].mxu1  ;;  %v10656_v18 = vmax.f32 %v10592_v7, 0.0 }
 0x9e7   :  { %11362 = vst.msk [vmem:[%s22767_s8 + $0x80] sm:$0xff] %vm5412_vm6, %v11298_v36  ;;  %v10522_v34 = vmul.f32 %v22296_v26, %v10212_v37  ;;  %v10655_v55 = vmax.f32 %v10591_v22, 0.0 }
 0x9e8   :  { %v10594_v31 = vadd.f32 %v22301_v61, %v10523_v33  ;;  %v11301_v58 = vadd.f32 %v22209_v16, %v10656_v18 }
 0x9e9   :  { %v10593_v12 = vadd.f32 %v22301_v61, %v10522_v34  ;;  %v11300_v54 = vadd.f32 %v22211_v38, %v10655_v55  ;;  %v15582_v17 = vpop.f32.mrb[54].mxu1 }
 0x9ea   :  { %11365 = vst.msk [vmem:[%s22767_s8 + $0x98] sm:$0xff] %vm5412_vm6, %v11301_v58  ;;  %v10525_v35 = vmul.f32 %v15582_v17, %v22296_v26  ;;  %v10222_v41 = vpop.f32.mrb[55].mxu1  ;;  %v10658_v53 = vmax.f32 %v10594_v31, 0.0 }
 0x9eb   :  { %11364 = vst.msk [vmem:[%s22767_s8 + $0x90] sm:$0xff] %vm5412_vm6, %v11300_v54  ;;  %v10524_v16 = vmul.f32 %v22296_v26, %v10222_v41  ;;  %v10657_v57 = vmax.f32 %v10593_v12, 0.0 }
 0x9ec   :  { %v10596_v38 = vadd.f32 %v22301_v61, %v10525_v35  ;;  %v11303_v40 = vadd.f32 %v22213_v0, %v10658_v53 }
 0x9ed   :  { %v10595_v30 = vadd.f32 %v22301_v61, %v10524_v16  ;;  %v11302_v46 = vadd.f32 %v22215_v27, %v10657_v57  ;;  %v15585_v43 = vpop.f32.mrb[56].mxu1 }
 0x9ee   :  { %11367 = vst.msk [vmem:[%s22767_s8 + $0xa8] sm:$0xff] %vm5412_vm6, %v11303_v40  ;;  %v10527_v6 = vmul.f32 %v15585_v43, %v22296_v26  ;;  %v10232_v23 = vpop.f32.mrb[57].mxu1  ;;  %v10660_v29 = vmax.f32 %v10596_v38, 0.0 }
 0x9ef   :  { %11366 = vst.msk [vmem:[%s22767_s8 + $0xa0] sm:$0xff] %vm5412_vm6, %v11302_v46  ;;  %v10526_v0 = vmul.f32 %v22296_v26, %v10232_v23  ;;  %v10659_v2 = vmax.f32 %v10595_v30, 0.0 }
 0x9f0   :  { %v10598_v27 = vadd.f32 %v22301_v61, %v10527_v6  ;;  %v11305_v60 = vadd.f32 %v22217_v48, %v10660_v29 }
 0x9f1   :  { %v10597_v11 = vadd.f32 %v22301_v61, %v10526_v0  ;;  %v11304_v20 = vadd.f32 %v22219_v63, %v10659_v2  ;;  %v15588_v3 = vpop.f32.mrb[58].mxu1 }
 0x9f2   :  { %11369 = vst.msk [vmem:[%s22767_s8 + $0xb8] sm:$0xff] %vm5412_vm6, %v11305_v60  ;;  %v10529_v24 = vmul.f32 %v15588_v3, %v22296_v26  ;;  %v10242_v7 = vpop.f32.mrb[59].mxu1  ;;  %v10662_v32 = vmax.f32 %v10598_v27, 0.0 }
 0x9f3   :  { %11368 = vst.msk [vmem:[%s22767_s8 + $0xb0] sm:$0xff] %vm5412_vm6, %v11304_v20  ;;  %v10528_v48 = vmul.f32 %v22296_v26, %v10242_v7  ;;  %v10661_v22 = vmax.f32 %v10597_v11, 0.0 }
 0x9f4   :  { %v10600_v63 = vadd.f32 %v22301_v61, %v10529_v24  ;;  %v11307_v36 = vadd.f32 %v22221_v9, %v10662_v32 }
 0x9f5   :  { %v10599_v4 = vadd.f32 %v22301_v61, %v10528_v48  ;;  %v11306_v33 = vadd.f32 %v22223_v13, %v10661_v22  ;;  %v15591_v37 = vpop.f32.mrb[60].mxu1 }
 0x9f6   :  { %11371 = vst.msk [vmem:[%s22767_s8 + $0xc8] sm:$0xff] %vm5412_vm6, %v11307_v36  ;;  %v10531_v18 = vmul.f32 %v15591_v37, %v22296_v26  ;;  %v10252_v34 = vpop.f32.mrb[61].mxu1  ;;  %v10664_v55 = vmax.f32 %v10600_v63, 0.0 }
 0x9f7   :  { %11370 = vst.msk [vmem:[%s22767_s8 + $0xc0] sm:$0xff] %vm5412_vm6, %v11306_v33  ;;  %v10530_v9 = vmul.f32 %v22296_v26, %v10252_v34  ;;  %v10663_v31 = vmax.f32 %v10599_v4, 0.0 }
 0x9f8   :  { %v10602_v13 = vadd.f32 %v22301_v61, %v10531_v18  ;;  %v11309_v58 = vadd.f32 %v22225_v49, %v10664_v55 }
 0x9f9   :  { %v10601_v12 = vadd.f32 %v22301_v61, %v10530_v9  ;;  %v11308_v54 = vadd.f32 %v22227_v50, %v10663_v31  ;;  %v15594_v17 = vpop.f32.mrb[62].mxu1 }
 0x9fa   :  { %11373 = vst.msk [vmem:[%s22767_s8 + $0xd8] sm:$0xff] %vm5412_vm6, %v11309_v58  ;;  %v10533_v35 = vmul.f32 %v15594_v17, %v22296_v26  ;;  %v10262_v41 = vpop.f32.mrb[63].mxu1  ;;  %v10666_v53 = vmax.f32 %v10602_v13, 0.0 }
 0x9fb   :  { %11372 = vst.msk [vmem:[%s22767_s8 + $0xd0] sm:$0xff] %vm5412_vm6, %v11308_v54  ;;  %v10532_v49 = vmul.f32 %v22296_v26, %v10262_v41  ;;  %v10665_v16 = vmax.f32 %v10601_v12, 0.0 }
 0x9fc   :  { %v10604_v50 = vadd.f32 %v22301_v61, %v10533_v35  ;;  %v11311_v57 = vadd.f32 %v22229_v44, %v10666_v53 }
 0x9fd   :  { %v10603_v38 = vadd.f32 %v22301_v61, %v10532_v49  ;;  %v11310_v40 = vadd.f32 %v22231_v19, %v10665_v16  ;;  %v15597_v30 = vpop.f32.mrb[64].mxu1 }
 0x9fe   :  { %11375 = vst.msk [vmem:[%s22767_s8 + $0xe8] sm:$0xff] %vm5412_vm6, %v11311_v57  ;;  %v10535_v46 = vmul.f32 %v15597_v30, %v22296_v26  ;;  %v10272_v43 = vpop.f32.mrb[65].mxu1  ;;  %v10668_v6 = vmax.f32 %v10604_v50, 0.0 }
 0x9ff   :  { %11374 = vst.msk [vmem:[%s22767_s8 + $0xe0] sm:$0xff] %vm5412_vm6, %v11310_v40  ;;  %v10534_v44 = vmul.f32 %v22296_v26, %v10272_v43  ;;  %v10667_v23 = vmax.f32 %v10603_v38, 0.0 }
 0xa00   :  { %v10606_v19 = vadd.f32 %v22301_v61, %v10535_v46  ;;  %v11313_v29 = vadd.f32 %v22233_v28, %v10668_v6 }
 0xa01   :  { %v10605_v0 = vadd.f32 %v22301_v61, %v10534_v44  ;;  %v11312_v2 = vadd.f32 %v22235_v10, %v10667_v23  ;;  %v15600_v27 = vpop.f32.mrb[66].mxu1 }
 0xa02   :  { %11377 = vst.msk [vmem:[%s22767_s8 + $0xf8] sm:$0xff] %vm5412_vm6, %v11313_v29  ;;  %v10537_v60 = vmul.f32 %v15600_v27, %v22296_v26  ;;  %v10282_v11 = vpop.f32.mrb[67].mxu1  ;;  %v10670_v20 = vmax.f32 %v10606_v19, 0.0 }
 0xa03   :  { %11376 = vst.msk [vmem:[%s22767_s8 + $0xf0] sm:$0xff] %vm5412_vm6, %v11312_v2  ;;  %v10536_v28 = vmul.f32 %v22296_v26, %v10282_v11  ;;  %v10669_v3 = vmax.f32 %v10605_v0, 0.0 }
 0xa04   :  { %v10608_v10 = vadd.f32 %v22301_v61, %v10537_v60  ;;  %v11315_v24 = vadd.f32 %v22237_v39, %v10670_v20 }
 0xa05   :  { %v10607_v7 = vadd.f32 %v22301_v61, %v10536_v28  ;;  %v11314_v32 = vadd.f32 %v22239_v21, %v10669_v3  ;;  %v15603_v48 = vpop.f32.mrb[68].mxu1 }
 0xa06   :  { %11379 = vst.msk [vmem:[%s22767_s8 + $0x108] sm:$0xff] %vm5412_vm6, %v11315_v24  ;;  %v10539_v22 = vmul.f32 %v15603_v48, %v22296_v26  ;;  %v10292_v63 = vpop.f32.mrb[69].mxu1  ;;  %v10672_v36 = vmax.f32 %v10608_v10, 0.0 }
 0xa07   :  { %11378 = vst.msk [vmem:[%s22767_s8 + $0x100] sm:$0xff] %vm5412_vm6, %v11314_v32  ;;  %v10538_v39 = vmul.f32 %v22296_v26, %v10292_v63  ;;  %v10671_v4 = vmax.f32 %v10607_v7, 0.0 }
 0xa08   :  { %v10610_v21 = vadd.f32 %v22301_v61, %v10539_v22  ;;  %v11317_v33 = vadd.f32 %v22241_v62, %v10672_v36 }
 0xa09   :  { %v10609_v37 = vadd.f32 %v22301_v61, %v10538_v39  ;;  %v11316_v18 = vadd.f32 %v22243_v1, %v10671_v4  ;;  %v15606_v34 = vpop.f32.mrb[70].mxu1 }
 0xa0a   :  { %11381 = vst.msk [vmem:[%s22767_s8 + $0x118] sm:$0xff] %vm5412_vm6, %v11317_v33  ;;  %v10541_v55 = vmul.f32 %v15606_v34, %v22296_v26  ;;  %v10302_v9 = vpop.f32.mrb[71].mxu1  ;;  %v10674_v31 = vmax.f32 %v10610_v21, 0.0 }
 0xa0b   :  { %11380 = vst.msk [vmem:[%s22767_s8 + $0x110] sm:$0xff] %vm5412_vm6, %v11316_v18  ;;  %v10540_v62 = vmul.f32 %v22296_v26, %v10302_v9  ;;  %v10673_v13 = vmax.f32 %v10609_v37, 0.0  ;;  %v24152_v18 = vld [vmem:[#allocation174_spill] sm:$0xff] }
 0xa0c   :  { %v10612_v1 = vadd.f32 %v22301_v61, %v10541_v55  ;;  %v11319_v58 = vadd.f32 %v22245_v51, %v10674_v31 }
 0xa0d   :  { %v10611_v12 = vadd.f32 %v22301_v61, %v10540_v62  ;;  %v11318_v54 = vadd.f32 %v22247_v59, %v10673_v13  ;;  %v15609_v17 = vpop.f32.mrb[72].mxu1 }
 0xa0e   :  { %11383 = vst.msk [vmem:[%s22767_s8 + $0x128] sm:$0xff] %vm5412_vm6, %v11319_v58  ;;  %v10543_v35 = vmul.f32 %v15609_v17, %v22296_v26  ;;  %v10312_v41 = vpop.f32.mrb[73].mxu1  ;;  %v10676_v53 = vmax.f32 %v10612_v1, 0.0  ;;  %v24153_v58 = vld [vmem:[#allocation175_spill] sm:$0xff]  ;;  %v24154_v17 = vld [vmem:[#allocation93_spill] sm:$0xff] }
 0xa0f   :  { %11382 = vst.msk [vmem:[%s22767_s8 + $0x120] sm:$0xff] %vm5412_vm6, %v11318_v54  ;;  %v10542_v51 = vmul.f32 %v22296_v26, %v10312_v41  ;;  %v10675_v49 = vmax.f32 %v10611_v12, 0.0 }
 0xa10   :  { %v10614_v59 = vadd.f32 %v22301_v61, %v10543_v35  ;;  %v11321_v16 = vadd.f32 %v22249_v56, %v10676_v53 }
 0xa11   :  { %v10613_v50 = vadd.f32 %v22301_v61, %v10542_v51  ;;  %v11320_v57 = vadd.f32 %v22251_v14, %v10675_v49  ;;  %v15612_v38 = vpop.f32.mrb[74].mxu1 }
 0xa12   :  { %11385 = vst.msk [vmem:[%s22767_s8 + $0x138] sm:$0xff] %vm5412_vm6, %v11321_v16  ;;  %v10545_v40 = vmul.f32 %v15612_v38, %v22296_v26  ;;  %v10322_v30 = vpop.f32.mrb[75].mxu1  ;;  %v10678_v46 = vmax.f32 %v10614_v59, 0.0 }
 0xa13   :  { %11384 = vst.msk [vmem:[%s22767_s8 + $0x130] sm:$0xff] %vm5412_vm6, %v11320_v57  ;;  %v10544_v56 = vmul.f32 %v22296_v26, %v10322_v30  ;;  %v10677_v43 = vmax.f32 %v10613_v50, 0.0  ;;  %v24155_v57 = vld [vmem:[#allocation98_spill] sm:$0xff]  ;;  %v24156_v30 = vld [vmem:[#allocation100_spill] sm:$0xff] }
 0xa14   :  { %v10616_v14 = vadd.f32 %v22301_v61, %v10545_v40  ;;  %v11323_v6 = vadd.f32 %v22253_v45, %v10678_v46 }
 0xa15   :  { %v10615_v44 = vadd.f32 %v22301_v61, %v10544_v56  ;;  %v11322_v23 = vadd.f32 %v22255_v25, %v10677_v43  ;;  %v15615_v19 = vpop.f32.mrb[76].mxu1 }
 0xa16   :  { %11387 = vst.msk [vmem:[%s22767_s8 + $0x148] sm:$0xff] %vm5412_vm6, %v11323_v6  ;;  %v10547_v29 = vmul.f32 %v15615_v19, %v22296_v26  ;;  %v10332_v0 = vpop.f32.mrb[77].mxu1  ;;  %v10680_v2 = vmax.f32 %v10616_v14, 0.0 }
 0xa17   :  { %11386 = vst.msk [vmem:[%s22767_s8 + $0x140] sm:$0xff] %vm5412_vm6, %v11322_v23  ;;  %v10546_v45 = vmul.f32 %v22296_v26, %v10332_v0  ;;  %v10679_v27 = vmax.f32 %v10615_v44, 0.0 }
 0xa18   :  { %v10618_v25 = vadd.f32 %v22301_v61, %v10547_v29  ;;  %v11325_v60 = vadd.f32 %v22257_v8, %v10680_v2  ;;  %v24157_v29 = vld [vmem:[#allocation102_spill] sm:$0xff] }
 0xa19   :  { %v10617_v11 = vadd.f32 %v22301_v61, %v10546_v45  ;;  %v11324_v20 = vadd.f32 %v22259_v5, %v10679_v27  ;;  %v15618_v28 = vpop.f32.mrb[78].mxu1  ;;  %v24158_v45 = vld [vmem:[#allocation104_spill] sm:$0xff] }
 0xa1a   :  { %11389 = vst.msk [vmem:[%s22767_s8 + $0x158] sm:$0xff] %vm5412_vm6, %v11325_v60  ;;  %v10549_v3 = vmul.f32 %v15618_v28, %v22296_v26  ;;  %v10342_v10 = vpop.f32.mrb[79].mxu1  ;;  %v10682_v24 = vmax.f32 %v10618_v25, 0.0 }
 0xa1b   :  { %11388 = vst.msk [vmem:[%s22767_s8 + $0x150] sm:$0xff] %vm5412_vm6, %v11324_v20  ;;  %v10548_v8 = vmul.f32 %v22296_v26, %v10342_v10  ;;  %v10681_v7 = vmax.f32 %v10617_v11, 0.0 }
 0xa1c   :  { %v10620_v5 = vadd.f32 %v22301_v61, %v10549_v3  ;;  %v11327_v32 = vadd.f32 %v22261_v15, %v10682_v24  ;;  %v24159_v24 = vld [vmem:[#allocation106_spill] sm:$0xff] }
 0xa1d   :  { %v10619_v48 = vadd.f32 %v22301_v61, %v10548_v8  ;;  %v11326_v22 = vadd.f32 %v22263_v47, %v10681_v7  ;;  %v15621_v63 = vpop.f32.mrb[80].mxu1 }
 0xa1e   :  { %11391 = vst.msk [vmem:[%s22767_s8 + $0x168] sm:$0xff] %vm5412_vm6, %v11327_v32  ;;  %v10551_v36 = vmul.f32 %v15621_v63, %v22296_v26  ;;  %v10352_v39 = vpop.f32.mrb[81].mxu1  ;;  %v10684_v4 = vmax.f32 %v10620_v5, 0.0  ;;  %v24160_v5 = vld [vmem:[#allocation108_spill] sm:$0xff] }
 0xa1f   :  { %11390 = vst.msk [vmem:[%s22767_s8 + $0x160] sm:$0xff] %vm5412_vm6, %v11326_v22  ;;  %v10550_v15 = vmul.f32 %v22296_v26, %v10352_v39  ;;  %v10683_v21 = vmax.f32 %v10619_v48, 0.0 }
 0xa20   :  { %v10622_v47 = vadd.f32 %v22301_v61, %v10551_v36  ;;  %v11329_v33 = vadd.f32 %v22265_v42, %v10684_v4 }
 0xa21   :  { %v10621_v37 = vadd.f32 %v22301_v61, %v10550_v15  ;;  %v11328_v34 = vadd.f32 %v24152_v18, %v10683_v21  ;;  %v15624_v55 = vpop.f32.mrb[82].mxu1  ;;  %v24161_v21 = vld [vmem:[#allocation110_spill] sm:$0xff] }
 0xa22   :  { %11393 = vst.msk [vmem:[%s22767_s8 + $0x178] sm:$0xff] %vm5412_vm6, %v11329_v33  ;;  %v10553_v9 = vmul.f32 %v15624_v55, %v22296_v26  ;;  %v10362_v31 = vpop.f32.mrb[83].mxu1  ;;  %v10686_v62 = vmax.f32 %v10622_v47, 0.0 }
 0xa23   :  { %11392 = vst.msk [vmem:[%s22767_s8 + $0x170] sm:$0xff] %vm5412_vm6, %v11328_v34  ;;  %v10552_v42 = vmul.f32 %v22296_v26, %v10362_v31  ;;  %v10685_v13 = vmax.f32 %v10621_v37, 0.0  ;;  %v24162_v37 = vld [vmem:[#allocation56_spill] sm:$0xff] }
 0xa24   :  { %v10624_v1 = vadd.f32 %v22301_v61, %v10553_v9  ;;  %v11331_v12 = vadd.f32 %v24153_v58, %v10686_v62 }
 0xa25   :  { %v10623_v54 = vadd.f32 %v22301_v61, %v10552_v42  ;;  %v11330_v35 = vadd.f32 %v24154_v17, %v10685_v13  ;;  %v15627_v41 = vpop.f32.mrb[84].mxu1 }
 0xa26   :  { %11395 = vst.msk [vmem:[%s22767_s8 + $0x188] sm:$0xff] %vm5412_vm6, %v11331_v12  ;;  %v10555_v53 = vmul.f32 %v15627_v41, %v22296_v26  ;;  %v10372_v51 = vpop.f32.mrb[85].mxu1  ;;  %v10688_v49 = vmax.f32 %v10624_v1, 0.0  ;;  %v24163_v1 = vld [vmem:[#allocation57_spill] sm:$0xff] }
 0xa27   :  { %11394 = vst.msk [vmem:[%s22767_s8 + $0x180] sm:$0xff] %vm5412_vm6, %v11330_v35  ;;  %v10554_v59 = vmul.f32 %v22296_v26, %v10372_v51  ;;  %v10687_v16 = vmax.f32 %v10623_v54, 0.0  ;;  %v24164_v54 = vld [vmem:[#allocation147_spill] sm:$0xff] }
 0xa28   :  { %v10626_v50 = vadd.f32 %v22301_v61, %v10555_v53  ;;  %v11333_v38 = vadd.f32 %v24155_v57, %v10688_v49 }
 0xa29   :  { %v10625_v40 = vadd.f32 %v22301_v61, %v10554_v59  ;;  %v11332_v46 = vadd.f32 %v24156_v30, %v10687_v16  ;;  %v15630_v56 = vpop.f32.mrb[86].mxu1 }
 0xa2a   :  { %11397 = vst.msk [vmem:[%s22767_s8 + $0x198] sm:$0xff] %vm5412_vm6, %v11333_v38  ;;  %v10557_v43 = vmul.f32 %v15630_v56, %v22296_v26  ;;  %v10382_v14 = vpop.f32.mrb[87].mxu1  ;;  %v10690_v6 = vmax.f32 %v10626_v50, 0.0  ;;  %v24165_v50 = vld [vmem:[#allocation148_spill] sm:$0xff]  ;;  %v24167_v56 = vld [vmem:[#allocation29_spill] sm:$0xff] }
 0xa2b   :  { %11396 = vst.msk [vmem:[%s22767_s8 + $0x190] sm:$0xff] %vm5412_vm6, %v11332_v46  ;;  %v10556_v44 = vmul.f32 %v22296_v26, %v10382_v14  ;;  %v10689_v23 = vmax.f32 %v10625_v40, 0.0  ;;  %v24166_v40 = vld [vmem:[#allocation169_spill] sm:$0xff] }
 0xa2c   :  { %v10628_v19 = vadd.f32 %v22301_v61, %v10557_v43  ;;  %v11335_v0 = vadd.f32 %v24157_v29, %v10690_v6 }
 0xa2d   :  { %v10627_v2 = vadd.f32 %v22301_v61, %v10556_v44  ;;  %v11334_v27 = vadd.f32 %v24158_v45, %v10689_v23  ;;  %v15633_v25 = vpop.f32.mrb[88].mxu1 }
 0xa2e   :  { %11399 = vst.msk [vmem:[%s22767_s8 + $0x1a8] sm:$0xff] %vm5412_vm6, %v11335_v0  ;;  %v10559_v60 = vmul.f32 %v15633_v25, %v22296_v26  ;;  %v10392_v11 = vpop.f32.mrb[89].mxu1  ;;  %v10692_v20 = vmax.f32 %v10628_v19, 0.0 }
 0xa2f   :  { %11398 = vst.msk [vmem:[%s22767_s8 + $0x1a0] sm:$0xff] %vm5412_vm6, %v11334_v27  ;;  %v10558_v28 = vmul.f32 %v22296_v26, %v10392_v11  ;;  %v10691_v3 = vmax.f32 %v10627_v2, 0.0 }
 0xa30   :  { %v10630_v10 = vadd.f32 %v22301_v61, %v10559_v60  ;;  %v11337_v8 = vadd.f32 %v24159_v24, %v10692_v20 }
 0xa31   :  { %v10629_v7 = vadd.f32 %v22301_v61, %v10558_v28  ;;  %v11336_v32 = vadd.f32 %v24160_v5, %v10691_v3  ;;  %v15636_v48 = vpop.f32.mrb[90].mxu1 }
 0xa32   :  { %11401 = vst.msk [vmem:[%s22767_s8 + $0x1b8] sm:$0xff] %vm5412_vm6, %v11337_v8  ;;  %v10561_v22 = vmul.f32 %v15636_v48, %v22296_v26  ;;  %v10402_v63 = vpop.f32.mrb[91].mxu1  ;;  %v10694_v36 = vmax.f32 %v10630_v10, 0.0 }
 0xa33   :  { %11400 = vst.msk [vmem:[%s22767_s8 + $0x1b0] sm:$0xff] %vm5412_vm6, %v11336_v32  ;;  %v10560_v39 = vmul.f32 %v22296_v26, %v10402_v63  ;;  %v10693_v4 = vmax.f32 %v10629_v7, 0.0 }
 0xa34   :  { %v10632_v15 = vadd.f32 %v22301_v61, %v10561_v22  ;;  %v11339_v47 = vadd.f32 %v24161_v21, %v10694_v36 }
 0xa35   :  { %v10631_v33 = vadd.f32 %v22301_v61, %v10560_v39  ;;  %v11338_v18 = vadd.f32 %v24162_v37, %v10693_v4  ;;  %v15639_v34 = vpop.f32.mrb[92].mxu1 }
 0xa36   :  { %11403 = vst.msk [vmem:[%s22767_s8 + $0x1c8] sm:$0xff] %vm5412_vm6, %v11339_v47  ;;  %v10563_v55 = vmul.f32 %v15639_v34, %v22296_v26  ;;  %v10412_v9 = vpop.f32.mrb[93].mxu1  ;;  %v10696_v31 = vmax.f32 %v10632_v15, 0.0 }
 0xa37   :  { %11402 = vst.msk [vmem:[%s22767_s8 + $0x1c0] sm:$0xff] %vm5412_vm6, %v11338_v18  ;;  %v10562_v62 = vmul.f32 %v22296_v26, %v10412_v9  ;;  %v10695_v42 = vmax.f32 %v10631_v33, 0.0 }
 0xa38   :  { %v10634_v13 = vadd.f32 %v22301_v61, %v10563_v55  ;;  %v11341_v58 = vadd.f32 %v24163_v1, %v10696_v31 }
 0xa39   :  { %v10633_v12 = vadd.f32 %v22301_v61, %v10562_v62  ;;  %v11340_v17 = vadd.f32 %v24164_v54, %v10695_v42  ;;  %v15642_v35 = vpop.f32.mrb[94].mxu1 }
 0xa3a   :  { %11405 = vst.msk [vmem:[%s22767_s8 + $0x1d8] sm:$0xff] %vm5412_vm6, %v11341_v58  ;;  %v10565_v41 = vmul.f32 %v15642_v35, %v22296_v26  ;;  %v10422_v53 = vpop.f32.mrb[95].mxu1  ;;  %v10698_v51 = vmax.f32 %v10634_v13, 0.0 }
 0xa3b   :  { %11404 = vst.msk [vmem:[%s22767_s8 + $0x1d0] sm:$0xff] %vm5412_vm6, %v11340_v17  ;;  %v10564_v49 = vmul.f32 %v22296_v26, %v10422_v53  ;;  %v10697_v59 = vmax.f32 %v10633_v12, 0.0 }
 0xa3c   :  { %v10636_v16 = vadd.f32 %v22301_v61, %v10565_v41  ;;  %v11343_v57 = vadd.f32 %v24165_v50, %v10698_v51 }
 0xa3d   :  { %v10635_v38 = vadd.f32 %v22301_v61, %v10564_v49  ;;  %v11342_v30 = vadd.f32 %v24166_v40, %v10697_v59 }
 0xa3e   :  { %11407 = vst.msk [vmem:[%s22767_s8 + $0x1e8] sm:$0xff] %vm5412_vm6, %v11343_v57  ;;  %v10700_v46 = vmax.f32 %v10636_v16, 0.0 }
 0xa3f   :  { %11406 = vst.msk [vmem:[%s22767_s8 + $0x1e0] sm:$0xff] %vm5412_vm6, %v11342_v30  ;;  %v10699_v26 = vmax.f32 %v10635_v38, 0.0 }
 0xa40   :  { %v11345_v43 = vadd.f32 %v24167_v56, %v10700_v46 }
 0xa41   :  { %v11344_v14 = vadd.f32 %v22314_v52, %v10699_v26 }
 0xa42   :  { %11409 = vst.msk [vmem:[%s22767_s8 + $0x1f8] sm:$0xff] %vm5412_vm6, %v11345_v43 }
 0xa43   :  { %11408 = vst.msk [vmem:[%s22767_s8 + $0x1f0] sm:$0xff] %vm5412_vm6, %v11344_v14 }

</bundles_post_ra>
